<compile_context>
chip_gen: v7x
topology: tpu7x:2x2x1
jax: 0.10.0
libtpu: 0.0.40
codegen_flags: <defaults>
</compile_context>

<pallas_src>
import functools
import math

import numpy as np
import jax
import jax.numpy as jnp
from jax.experimental import pallas as pl
from jax.experimental.pallas import tpu as pltpu

# Keep XLA-side (reference) and Pallas-side matmuls at full f32 accuracy so the
# correctness check in __main__ is tight on every TPU generation.
jax.config.update("jax_default_matmul_precision", "highest")


# ----------------------------------------------------------------------------
# Host-side constant builders (numpy, run once)
# ----------------------------------------------------------------------------

def _linear_interp_matrix_np(in_len, out_len):
    """Matches torch.nn.functional.interpolate(mode='linear', align_corners=False).

    TODO(synk): spot-checked only for small sizes here; verify against torch
    for large in_len/out_len before relying on it elsewhere.
    """
    w = np.zeros((out_len, in_len), dtype=np.float32)
    scale = in_len / out_len
    for i in range(out_len):
        src = (i + 0.5) * scale - 0.5
        if src < 0.0:
            src = 0.0
        i0 = min(int(np.floor(src)), in_len - 1)
        i1 = min(i0 + 1, in_len - 1)
        lam = src - i0
        w[i, i0] += 1.0 - lam
        w[i, i1] += lam
    return w


def _block_diag_np(a, b):
    out = np.zeros((a.shape[0] + b.shape[0], a.shape[1] + b.shape[1]), np.float32)
    out[:a.shape[0], :a.shape[1]] = a
    out[a.shape[0]:, a.shape[1]:] = b
    return out


def _pack_rows(pieces):
    """Pack named 2-D pieces into one (S, W) f32 slab (each piece padded to
    8-row / 128-lane multiples) and return (slab, {name: (row_off, rows, cols)})."""
    width = max(a.shape[1] for _, a in pieces)
    width = int(np.ceil(width / 128.0)) * 128
    offs, blocks, r = {}, [], 0
    for name, a in pieces:
        a = np.asarray(a, np.float32)
        rows = int(np.ceil(a.shape[0] / 8.0)) * 8
        blk = np.zeros((rows, width), np.float32)
        blk[:a.shape[0], :a.shape[1]] = a
        blocks.append(blk)
        offs[name] = (r, a.shape[0], a.shape[1])
        r += rows
    return jnp.asarray(np.concatenate(blocks, axis=0)), offs


# ----------------------------------------------------------------------------
# Fused Pallas kernel
# ----------------------------------------------------------------------------

def _fused_kernel(act_ref, gridp_ref, packa_ref, rw1f_ref, up_ref,
                  graph_out_ref, grid_out_ref,
                  *, bb, qh, tn, tnp, e, dpad, offs):
    """One grid step = `bb` batches; every intermediate stays in VMEM."""
    f32 = jnp.float32

    def cut(name):
        r0, nrows, ncols = offs[name]
        return packa_ref[r0:r0 + nrows, :ncols]

    def dot(a, b):
        return jnp.dot(a, b, preferred_element_type=f32)

    relu = lambda x: jnp.maximum(x, 0.0)

    act = act_ref[...]                                      # (bb, qh+tn, dpad)
    tx = act[:, :qh, :].reshape(bb * qh, dpad)              # time rows (b,q,h)
    gx = act[:, qh:, :].reshape(bb * tn, dpad)              # graph rows

    # ---- shared time-embedding MLP -> packed, pre-scaled, pre-masked queries
    th = relu(dot(tx, cut("tw1")) + cut("tb1"))             # (bb*qh, E)
    hmask2 = cut("hmask2")                                  # (bb*qh, 2E)
    qexp = (dot(th, cut("wq")) + cut("bq")) * hmask2        # [q_graph | q_grid]
    hmask1 = hmask2[:qh, :e]                                # (qh, E)

    # ---- graph branch: fc1 + ReLU, then folded fc2 . (k|v)_proj ----
    gh = relu(dot(gx, cut("gw1")) + cut("gb1"))             # (bb*tn, 2E)
    g_kv = dot(gh, cut("g_kvw")) + cut("g_kvb")             # (bb*tn, 2E) = [K|V]

    # ---- grid branch: folded patch-conv.fc1 + ReLU, then folded fc2 . (k|v)
    px = gridp_ref[...].reshape(bb * tnp, gridp_ref.shape[-1])   # (bb*tnp, C*p*p)
    rh = relu(dot(px, rw1f_ref[...]) + cut("rb1f"))         # (bb*tnp, 2E)
    r_kv = dot(rh, cut("r_kvw")) + cut("r_kvb")             # (bb*tnp, 2E)

    ir_g = cut("ir_g")                                      # (tn, qh)  interp@reduce
    ir_r = cut("ir_r")                                      # (tnp, qh)
    wo_g = cut("wo_g")
    bo_g = cut("bo_g")

    def attend(q, k, v):
        # heads live on sublanes (rows = (query, head)); K transpose folded
        # into the contraction dims, softmax over k_len, exact division.
        s = jax.lax.dot_general(q, k, (((1,), (1,)), ((), ())),
                                preferred_element_type=f32)      # (qh, k_len)
        s = s - jnp.max(s, axis=-1, keepdims=True)
        p = jnp.exp(s)
        p = p / jnp.sum(p, axis=-1, keepdims=True)
        return dot(p, v) * hmask1                                # (qh, E)

    grid_pre = []
    for b in range(bb):                                     # tiny, unrolled
        q_b = qexp[b * qh:(b + 1) * qh, :]

        kv_g = g_kv[b * tn:(b + 1) * tn, :]
        o_g = attend(q_b[:, :e], kv_g[:, :e], kv_g[:, e:])
        graph_out_ref[b] = dot(dot(ir_g, o_g), wo_g) + bo_g      # (tn, E)

        kv_r = r_kv[b * tnp:(b + 1) * tnp, :]
        o_r = attend(q_b[:, e:], kv_r[:, :e], kv_r[:, e:])
        grid_pre.append(dot(ir_r, o_r))                          # (tnp, E)

    gp_all = grid_pre[0] if bb == 1 else jnp.concatenate(grid_pre, axis=0)
    w_up = up_ref[:e, :]                                    # (E, E*p*p) = rao @ uw
    b_up = up_ref[e:e + 1, :]                               # folded bias row
    out = dot(gp_all, w_up) + b_up                          # (bb*tnp, E*p*p) lane-dense
    grid_out_ref[...] = out.reshape(bb, tnp, out.shape[-1])


# ----------------------------------------------------------------------------
# Parameter init (mirrors the PyTorch module's layers used by forward())
# ----------------------------------------------------------------------------

def init_params(key, graph_input_dim, grid_input_dim, embed_dim, patch_size):
    E, p = embed_dim, patch_size
    ks = jax.random.split(key, 11)

    def linear(k, fi, fo, scale=0.1):
        kw, kb = jax.random.split(k)
        return (jax.random.normal(kw, (fi, fo), jnp.float32) * scale,
                jax.random.normal(kb, (1, fo), jnp.float32) * scale)

    def mlp(k, fi, hid, fo):
        k1, k2 = jax.random.split(k)
        return linear(k1, fi, hid) + linear(k2, hid, fo)

    def attn(k):
        kq, kk, kv, ko = jax.random.split(k, 4)
        return (linear(kq, E, E) + linear(kk, E, E)
                + linear(kv, E, E) + linear(ko, E, E))

    return {
        "graph_embed_k": mlp(ks[0], graph_input_dim, E, E),
        "graph_embed_v": mlp(ks[1], graph_input_dim, E, E),
        "grid_embed_k": mlp(ks[2], grid_input_dim, E, E),
        "grid_embed_v": mlp(ks[3], grid_input_dim, E, E),
        "graph_time_emb": mlp(ks[4], 1, E, E),
        # Conv2d(E, E, k=p, s=p): weight (E_out, C, p, p)
        "patch_emb": (jax.random.normal(ks[5], (E, grid_input_dim, p, p), jnp.float32) * 0.05,
                      jax.random.normal(ks[6], (E,), jnp.float32) * 0.05),
        # ConvTranspose2d(E, E, k=p, s=p): weight (E_in, E_out, p, p)
        "upsample": (jax.random.normal(ks[7], (E, E, p, p), jnp.float32) * 0.05,
                     jax.random.normal(ks[8], (E,), jnp.float32) * 0.05),
        "cross_attn_graph": attn(ks[9]),
        "cross_attn_grid": attn(ks[10]),
        # TODO(synk): grid_time_emb, graph_output, grid_output, t_prime/pred_dim
        # exist on the PyTorch module but are dead code in its forward(); omitted.
    }


# ----------------------------------------------------------------------------
# Build the fused forward: host folding + packing, then one jitted pallas_call
# ----------------------------------------------------------------------------

def build_fused_forward(params, *, h, w, patch_size, num_heads,
                        batch_size, t, n, core_groups=None):
    p = patch_size
    H = num_heads
    pnp = jax.tree_util.tree_map(lambda x: np.asarray(x, np.float32), params)

    w1t, b1t, w2t, b2t = pnp["graph_time_emb"]
    E = w1t.shape[1]
    assert E % H == 0
    hd = E // H
    scale = 1.0 / math.sqrt(hd)
    d = pnp["graph_embed_k"][0].shape[0]
    C = pnp["patch_emb"][0].shape[1]
    assert C == E, "reference model implicitly requires grid_input_dim == embed_dim"
    assert h % p == 0 and w % p == 0
    hp, wp = h // p, w // p
    n_patches = hp * wp
    qh = t * H                    # (query, head) rows
    tn = t * n                    # graph k_len
    tnp = t * n_patches           # grid  k_len
    Cpp = C * p * p
    Epp = E * p * p
    dpad = max(8, d)

    G = core_groups if core_groups is not None else (2 if batch_size % 2 == 0 else 1)
    assert batch_size % G == 0
    BB = batch_size // G

    gaq, gaqb, gak, gakb, gav, gavb, gao, gaob = pnp["cross_attn_graph"]
    raq, raqb, rak, rakb, rav, ravb, rao, raob = pnp["cross_attn_grid"]

    # -- time fc2 folded into both q-projections, pre-scaled by 1/sqrt(hd) --
    tw1 = np.zeros((dpad, E), np.float32)
    tw1[:1] = w1t
    wq_fold = np.concatenate([w2t @ gaq, w2t @ raq], axis=1) * scale      # (E, 2E)
    bq_fold = np.concatenate([b2t @ gaq + gaqb, b2t @ raq + raqb], axis=1) * scale

    # -- graph branch: packed fc1; fc2 folded into K|V projection (block-diag) --
    gkw1, gkb1, gkw2, gkb2 = pnp["graph_embed_k"]
    gvw1, gvb1, gvw2, gvb2 = pnp["graph_embed_v"]
    gw1 = np.zeros((dpad, 2 * E), np.float32)
    gw1[:d] = np.concatenate([gkw1, gvw1], axis=1)
    gb1 = np.concatenate([gkb1, gvb1], axis=1)
    g_kvw = _block_diag_np(gkw2 @ gak, gvw2 @ gav)                        # (2E, 2E)
    g_kvb = np.concatenate([gkb2 @ gak + gakb, gvb2 @ gav + gavb], axis=1)

    # -- grid branch: patch-conv folded into packed fc1; fc2 folded into K|V --
    rkw1, rkb1, rkw2, rkb2 = pnp["grid_embed_k"]
    rvw1, rvb1, rvw2, rvb2 = pnp["grid_embed_v"]
    conv_w, conv_b = pnp["patch_emb"]
    patch_w = conv_w.reshape(E, Cpp).T                                    # (Cpp, E)
    patch_b = conv_b.reshape(1, E)
    rw1_packed = np.concatenate([rkw1, rvw1], axis=1)                     # (E, 2E)
    rb1_packed = np.concatenate([rkb1, rvb1], axis=1)
    rw1f = patch_w @ rw1_packed                                           # (Cpp, 2E)
    rb1f = patch_b @ rw1_packed + rb1_packed
    r_kvw = _block_diag_np(rkw2 @ rak, rvw2 @ rav)
    r_kvb = np.concatenate([rkb2 @ rak + rakb, rvb2 @ rav + ravb], axis=1)

    # -- grid out-projection folded into the ConvTranspose upsample matmul --
    deconv_w, deconv_b = pnp["upsample"]
    up_w = deconv_w.reshape(E, Epp)
    up_b = np.repeat(deconv_b, p * p).reshape(1, Epp)
    w_up_fold = rao @ up_w                                                # (E, Epp)
    b_up_fold = raob @ up_w + up_b          # exact: interp rows sum to 1
    packup_np = np.zeros((int(np.ceil((E + 1) / 8.0)) * 8, Epp), np.float32)
    packup_np[:E] = w_up_fold
    packup_np[E:E + 1] = b_up_fold
    packup = jnp.asarray(packup_np)

    # -- interpolation + head-reduce folded into one matrix per branch --
    ir_g = np.repeat(_linear_interp_matrix_np(t, tn), H, axis=1)          # (tn, qh)
    ir_r = np.repeat(_linear_interp_matrix_np(t, tnp), H, axis=1)         # (tnp, qh)

    # head mask, duplicated for both branches and tiled over the batch block
    hmask = np.zeros((qh, E), np.float32)
    for q in range(t):
        for hh in range(H):
            hmask[q * H + hh, hh * hd:(hh + 1) * hd] = 1.0
    hmask2 = np.tile(np.concatenate([hmask, hmask], axis=1), (BB, 1))     # (BB*qh, 2E)

    packa, offs = _pack_rows([
        ("tw1", tw1), ("tb1", b1t), ("wq", wq_fold), ("bq", bq_fold),
        ("hmask2", hmask2),
        ("gw1", gw1), ("gb1", gb1), ("g_kvw", g_kvw), ("g_kvb", g_kvb),
        ("rb1f", rb1f), ("r_kvw", r_kvw), ("r_kvb", r_kvb),
        ("wo_g", gao), ("bo_g", gaob),
        ("ir_g", ir_g), ("ir_r", ir_r),
    ])
    rw1f = jnp.asarray(rw1f)

    kernel = functools.partial(_fused_kernel, bb=BB, qh=qh, tn=tn, tnp=tnp,
                               e=E, dpad=dpad, offs=offs)

    @jax.jit
    def forward(graph_features, grid_features, graph_time_indices,
                grid_time_indices):
        # grid_time_indices is accepted but unused by the reference forward().
        del grid_time_indices
        B = graph_features.shape[0]
        assert B == batch_size and graph_features.shape[1:] == (t, n, d)

        graph_features = graph_features.astype(jnp.float32)
        grid_features = grid_features.astype(jnp.float32)
        gti = graph_time_indices.astype(jnp.float32)
        if gti.ndim == 3:
            gti = gti[..., 0]                                  # (B, t)

        # time rows expanded to one row per (query, head) => full sublane tiles
        tvals = jnp.repeat(gti, H, axis=1)                     # (B, qh)
        tx = jnp.zeros((B, qh, dpad), jnp.float32).at[:, :, 0].set(tvals)
        gxf = graph_features.reshape(B, tn, d)
        gxp = jnp.pad(gxf, ((0, 0), (0, 0), (0, dpad - d)))
        act = jnp.concatenate([tx, gxp], axis=1)               # (B, qh+tn, dpad)

        # patch re-layout: rows ordered (t, i, j), cells laid out (c, ki, kj)
        gp = grid_features.reshape(B, t, C, hp, p, wp, p)
        gp = gp.transpose(0, 1, 3, 5, 2, 4, 6).reshape(B, tnp, Cpp)

        out_shapes = (jax.ShapeDtypeStruct((B, tn, E), jnp.float32),
                      jax.ShapeDtypeStruct((B, tnp, Epp), jnp.float32))

        graph_flat, grid_flat = pl.pallas_call(
            kernel,
            out_shape=out_shapes,
            grid=(G,),
            in_specs=[
                pl.BlockSpec((BB, qh + tn, dpad), lambda g: (g, 0, 0)),
                pl.BlockSpec((BB, tnp, Cpp), lambda g: (g, 0, 0)),
                pl.BlockSpec(packa.shape, lambda g: (0, 0)),
                pl.BlockSpec(rw1f.shape, lambda g: (0, 0)),
                pl.BlockSpec(packup.shape, lambda g: (0, 0)),
            ],
            out_specs=(
                pl.BlockSpec((BB, tn, E), lambda g: (g, 0, 0)),
                pl.BlockSpec((BB, tnp, Epp), lambda g: (g, 0, 0)),
            ),
            compiler_params=pltpu.CompilerParams(
                dimension_semantics=("parallel",)),
        )(act, gp, packa, rw1f, packup)

        # 'b (t n) c -> b t n c'
        graph_attn_output = graph_flat.reshape(B, t, n, E)
        # rows (t, i, j), cell layout (e, ki, kj) -> (B, t, E, h, w)
        up = grid_flat.reshape(B, t, hp, wp, E, p, p)
        grid_attn_output = up.transpose(0, 1, 4, 2, 5, 3, 6).reshape(B, t, E, h, w)
        return graph_attn_output, grid_attn_output

    return forward


# ----------------------------------------------------------------------------
# Pure-JAX reference of the PyTorch forward (used only for verification)
# ----------------------------------------------------------------------------

def reference_forward(params, graph_features, grid_features, graph_time_indices,
                      grid_time_indices, *, h, w, patch_size, num_heads):
    del grid_time_indices
    p = patch_size
    B, t, n, d = graph_features.shape
    C = grid_features.shape[2]
    E = params["graph_time_emb"][0].shape[1]
    hp, wp = h // p, w // p
    graph_features = graph_features.astype(jnp.float32)
    grid_features = grid_features.astype(jnp.float32)
    gti = graph_time_indices.astype(jnp.float32)
    if gti.ndim == 2:
        gti = gti[..., None]
    gti = gti[:, :, 0:1]

    def mlp(pm, x):
        w1, b1, w2, b2 = pm
        return jnp.maximum(x @ w1 + b1, 0.0) @ w2 + b2

    def cross_attn(pm, Q, K, V):
        wq, bq, wk, bk, wv, bv, wo, bo = pm
        Bq, ql, _ = Q.shape
        kl = K.shape[1]
        hd = E // num_heads
        q = (Q @ wq + bq).reshape(Bq, ql, num_heads, hd).transpose(0, 2, 1, 3)
        k = (K @ wk + bk).reshape(Bq, kl, num_heads, hd).transpose(0, 2, 1, 3)
        v = (V @ wv + bv).reshape(Bq, kl, num_heads, hd).transpose(0, 2, 1, 3)
        s = jnp.einsum("bhqd,bhkd->bhqk", q, k) / math.sqrt(hd)
        a = jax.nn.softmax(s, axis=-1)
        o = jnp.einsum("bhqk,bhkd->bhqd", a, v)
        o = o.transpose(0, 2, 1, 3).reshape(Bq, ql, E)
        o = o @ wo + bo
        interp = jnp.asarray(_linear_interp_matrix_np(ql, kl))
        return jnp.einsum("kq,bqe->bke", interp, o)

    time_emb = mlp(params["graph_time_emb"], gti)                         # (B,t,E)

    graph_x = graph_features.reshape(B, t * n, d)
    graph_k = mlp(params["graph_embed_k"], graph_x)
    graph_v = mlp(params["graph_embed_v"], graph_x)
    graph_attn = cross_attn(params["cross_attn_graph"], time_emb, graph_k, graph_v)
    graph_attn = graph_attn.reshape(B, t, n, E)

    conv_w, conv_b = params["patch_emb"]
    xp = grid_features.reshape(B, t, C, hp, p, wp, p)
    xp = xp.transpose(0, 1, 3, 5, 2, 4, 6).reshape(B, t * hp * wp, C * p * p)
    patched = xp @ conv_w.reshape(E, -1).T + conv_b.reshape(1, E)
    grid_k = mlp(params["grid_embed_k"], patched)
    grid_v = mlp(params["grid_embed_v"], patched)
    grid_attn = cross_attn(params["cross_attn_grid"], time_emb, grid_k, grid_v)

    deconv_w, deconv_b = params["upsample"]
    xg = grid_attn.reshape(B * t, hp, wp, E)
    y = jnp.einsum("bije,eokl->boikjl", xg, deconv_w)
    y = y.reshape(B * t, E, h, w) + deconv_b.reshape(1, E, 1, 1)
    grid_out = y.reshape(B, t, E, h, w)
    return graph_attn, grid_out


# ----------------------------------------------------------------------------
# Main
# ----------------------------------------------------------------------------

if __name__ == "__main__":
    B, t, n = 4, 2, 8
    graph_input_dim = 8
    embed_dim = 32
    h = w = 16
    patch_size = 8
    num_heads = 4
    grid_input_dim = embed_dim  # reference model implicitly requires this

    key = jax.random.PRNGKey(0)
    k0, k1, kp = jax.random.split(key, 3)
    graph_features = jax.random.normal(k0, (B, t, n, graph_input_dim), jnp.float32)
    grid_features = jax.random.normal(k1, (B, t, grid_input_dim, h, w), jnp.float32)
    graph_time_indices = jnp.tile(jnp.arange(t, dtype=jnp.float32)[None, :], (B, 1))
    grid_time_indices = jnp.tile(jnp.arange(t, dtype=jnp.float32)[None, :], (B, 1))

    params = init_params(kp, graph_input_dim, grid_input_dim, embed_dim, patch_size)

    forward = build_fused_forward(params, h=h, w=w, patch_size=patch_size,
                                  num_heads=num_heads, batch_size=B, t=t, n=n)
    graph_out, grid_out = forward(graph_features, grid_features,
                                  graph_time_indices, grid_time_indices)
    jax.block_until_ready((graph_out, grid_out))

    assert graph_out.shape == (B, t, n, embed_dim), graph_out.shape
    assert grid_out.shape == (B, t, embed_dim, h, w), grid_out.shape
    assert graph_out.dtype == jnp.float32 and grid_out.dtype == jnp.float32

    ref_graph, ref_grid = reference_forward(
        params, graph_features, grid_features, graph_time_indices,
        grid_time_indices, h=h, w=w, patch_size=patch_size, num_heads=num_heads)
    np.testing.assert_allclose(np.asarray(graph_out), np.asarray(ref_graph),
                               rtol=5e-4, atol=5e-4)
    np.testing.assert_allclose(np.asarray(grid_out), np.asarray(ref_grid),
                               rtol=5e-4, atol=5e-4)

    print("KERNEL_OK")
</pallas_src>

<mosaic_0001>
module attributes {stable_mosaic.version = 11 : i64} {
  func.func @_fused_kernel(%arg0: i32, %arg1: memref<2x24x8xf32, #tpu.memory_space<vmem>>, %arg2: memref<2x8x2048xf32, #tpu.memory_space<vmem>>, %arg3: memref<304x128xf32, #tpu.memory_space<vmem>>, %arg4: memref<2048x64xf32, #tpu.memory_space<vmem>>, %arg5: memref<40x2048xf32, #tpu.memory_space<vmem>>, %arg6: memref<2x16x32xf32, #tpu.memory_space<vmem>>, %arg7: memref<2x8x2048xf32, #tpu.memory_space<vmem>>) attributes {dimension_semantics = [#tpu.dimension_semantics<parallel>], iteration_bounds = array<i64: 2>, scalar_prefetch = 0 : i64, scratch_operands = 0 : i64, tpu.core_type = #tpu.core_type<tc>, window_params = [{transform_indices = @transform_0, window_bounds = array<i64: 2, 24, 8>}, {transform_indices = @transform_1, window_bounds = array<i64: 2, 8, 2048>}, {pipeline_mode = #tpu.pipeline_mode<synchronous>, transform_indices = @transform_2, window_bounds = array<i64: 304, 128>}, {pipeline_mode = #tpu.pipeline_mode<synchronous>, transform_indices = @transform_3, window_bounds = array<i64: 2048, 64>}, {pipeline_mode = #tpu.pipeline_mode<synchronous>, transform_indices = @transform_4, window_bounds = array<i64: 40, 2048>}, {transform_indices = @transform_5, window_bounds = array<i64: 2, 16, 32>}, {transform_indices = @transform_6, window_bounds = array<i64: 2, 8, 2048>}]} {
    %c0 = arith.constant 0 : index
    %c0_0 = arith.constant 0 : index
    %c0_1 = arith.constant 0 : index
    %0 = vector.load %arg1[%c0, %c0_0, %c0_1] : memref<2x24x8xf32, #tpu.memory_space<vmem>>, vector<2x24x8xf32>
    %1 = vector.extract_strided_slice %0 {offsets = [0, 0, 0], sizes = [2, 8, 8], strides = [1, 1, 1]} : vector<2x24x8xf32> to vector<2x8x8xf32>
    %2 = vector.shape_cast %1 : vector<2x8x8xf32> to vector<16x8xf32>
    %3 = vector.extract_strided_slice %0 {offsets = [0, 8, 0], sizes = [2, 16, 8], strides = [1, 1, 1]} : vector<2x24x8xf32> to vector<2x16x8xf32>
    %4 = vector.shape_cast %3 : vector<2x16x8xf32> to vector<32x8xf32>
    %c0_2 = arith.constant 0 : index
    %c0_3 = arith.constant 0 : index
    %5 = vector.load %arg3[%c0_2, %c0_3] : memref<304x128xf32, #tpu.memory_space<vmem>>, vector<8x32xf32>
    %cst = arith.constant dense<0.000000e+00> : vector<16x32xf32>
    %6 = tpu.matmul %2, %5, %cst {dimension_numbers = #tpu.dot_dimension_numbers<[1], [0], [0], [1], [0, 0, 1, 1], [], []>, precision = #tpu.contract_precision<fp32>} : vector<16x8xf32>, vector<8x32xf32>, vector<16x32xf32> -> vector<16x32xf32>
    %c8 = arith.constant 8 : index
    %c0_4 = arith.constant 0 : index
    %7 = vector.load %arg3[%c8, %c0_4] : memref<304x128xf32, #tpu.memory_space<vmem>>, vector<1x32xf32>
    %8 = vector.broadcast %7 : vector<1x32xf32> to vector<16x32xf32>
    %9 = arith.addf %6, %8 : vector<16x32xf32>
    %cst_5 = arith.constant 0.000000e+00 : f32
    %10 = vector.broadcast %cst_5 : f32 to vector<16x32xf32>
    %11 = arith.maximumf %9, %10 : vector<16x32xf32>
    %c56 = arith.constant 56 : index
    %c0_6 = arith.constant 0 : index
    %12 = vector.load %arg3[%c56, %c0_6] : memref<304x128xf32, #tpu.memory_space<vmem>>, vector<16x64xf32>
    %c16 = arith.constant 16 : index
    %c0_7 = arith.constant 0 : index
    %13 = vector.load %arg3[%c16, %c0_7] : memref<304x128xf32, #tpu.memory_space<vmem>>, vector<32x64xf32>
    %cst_8 = arith.constant dense<0.000000e+00> : vector<16x64xf32>
    %14 = tpu.matmul %11, %13, %cst_8 {dimension_numbers = #tpu.dot_dimension_numbers<[1], [0], [0], [1], [0, 0, 1, 1], [], []>, precision = #tpu.contract_precision<fp32>} : vector<16x32xf32>, vector<32x64xf32>, vector<16x64xf32> -> vector<16x64xf32>
    %c48 = arith.constant 48 : index
    %c0_9 = arith.constant 0 : index
    %15 = vector.load %arg3[%c48, %c0_9] : memref<304x128xf32, #tpu.memory_space<vmem>>, vector<1x64xf32>
    %16 = vector.broadcast %15 : vector<1x64xf32> to vector<16x64xf32>
    %17 = arith.addf %14, %16 : vector<16x64xf32>
    %18 = arith.mulf %17, %12 : vector<16x64xf32>
    %19 = vector.extract_strided_slice %12 {offsets = [0, 0], sizes = [8, 32], strides = [1, 1]} : vector<16x64xf32> to vector<8x32xf32>
    %c72 = arith.constant 72 : index
    %c0_10 = arith.constant 0 : index
    %20 = vector.load %arg3[%c72, %c0_10] : memref<304x128xf32, #tpu.memory_space<vmem>>, vector<8x64xf32>
    %cst_11 = arith.constant dense<0.000000e+00> : vector<32x64xf32>
    %21 = tpu.matmul %4, %20, %cst_11 {dimension_numbers = #tpu.dot_dimension_numbers<[1], [0], [0], [1], [0, 0, 1, 1], [], []>, precision = #tpu.contract_precision<fp32>} : vector<32x8xf32>, vector<8x64xf32>, vector<32x64xf32> -> vector<32x64xf32>
    %c80 = arith.constant 80 : index
    %c0_12 = arith.constant 0 : index
    %22 = vector.load %arg3[%c80, %c0_12] : memref<304x128xf32, #tpu.memory_space<vmem>>, vector<1x64xf32>
    %23 = vector.broadcast %22 : vector<1x64xf32> to vector<32x64xf32>
    %24 = arith.addf %21, %23 : vector<32x64xf32>
    %cst_13 = arith.constant 0.000000e+00 : f32
    %25 = vector.broadcast %cst_13 : f32 to vector<32x64xf32>
    %26 = arith.maximumf %24, %25 : vector<32x64xf32>
    %c88 = arith.constant 88 : index
    %c0_14 = arith.constant 0 : index
    %27 = vector.load %arg3[%c88, %c0_14] : memref<304x128xf32, #tpu.memory_space<vmem>>, vector<64x64xf32>
    %cst_15 = arith.constant dense<0.000000e+00> : vector<32x64xf32>
    %28 = tpu.matmul %26, %27, %cst_15 {dimension_numbers = #tpu.dot_dimension_numbers<[1], [0], [0], [1], [0, 0, 1, 1], [], []>, precision = #tpu.contract_precision<fp32>} : vector<32x64xf32>, vector<64x64xf32>, vector<32x64xf32> -> vector<32x64xf32>
    %c152 = arith.constant 152 : index
    %c0_16 = arith.constant 0 : index
    %29 = vector.load %arg3[%c152, %c0_16] : memref<304x128xf32, #tpu.memory_space<vmem>>, vector<1x64xf32>
    %30 = vector.broadcast %29 : vector<1x64xf32> to vector<32x64xf32>
    %31 = arith.addf %28, %30 : vector<32x64xf32>
    %c0_17 = arith.constant 0 : index
    %c0_18 = arith.constant 0 : index
    %c0_19 = arith.constant 0 : index
    %32 = vector.load %arg2[%c0_17, %c0_18, %c0_19] : memref<2x8x2048xf32, #tpu.memory_space<vmem>>, vector<2x8x2048xf32>
    %33 = vector.shape_cast %32 : vector<2x8x2048xf32> to vector<16x2048xf32>
    %c0_20 = arith.constant 0 : index
    %c0_21 = arith.constant 0 : index
    %34 = vector.load %arg4[%c0_20, %c0_21] : memref<2048x64xf32, #tpu.memory_space<vmem>>, vector<2048x64xf32>
    %cst_22 = arith.constant dense<0.000000e+00> : vector<16x64xf32>
    %35 = tpu.matmul %33, %34, %cst_22 {dimension_numbers = #tpu.dot_dimension_numbers<[1], [0], [0], [1], [0, 0, 1, 1], [], []>, precision = #tpu.contract_precision<fp32>} : vector<16x2048xf32>, vector<2048x64xf32>, vector<16x64xf32> -> vector<16x64xf32>
    %c160 = arith.constant 160 : index
    %c0_23 = arith.constant 0 : index
    %36 = vector.load %arg3[%c160, %c0_23] : memref<304x128xf32, #tpu.memory_space<vmem>>, vector<1x64xf32>
    %37 = vector.broadcast %36 : vector<1x64xf32> to vector<16x64xf32>
    %38 = arith.addf %35, %37 : vector<16x64xf32>
    %cst_24 = arith.constant 0.000000e+00 : f32
    %39 = vector.broadcast %cst_24 : f32 to vector<16x64xf32>
    %40 = arith.maximumf %38, %39 : vector<16x64xf32>
    %c168 = arith.constant 168 : index
    %c0_25 = arith.constant 0 : index
    %41 = vector.load %arg3[%c168, %c0_25] : memref<304x128xf32, #tpu.memory_space<vmem>>, vector<64x64xf32>
    %cst_26 = arith.constant dense<0.000000e+00> : vector<16x64xf32>
    %42 = tpu.matmul %40, %41, %cst_26 {dimension_numbers = #tpu.dot_dimension_numbers<[1], [0], [0], [1], [0, 0, 1, 1], [], []>, precision = #tpu.contract_precision<fp32>} : vector<16x64xf32>, vector<64x64xf32>, vector<16x64xf32> -> vector<16x64xf32>
    %c232 = arith.constant 232 : index
    %c0_27 = arith.constant 0 : index
    %43 = vector.load %arg3[%c232, %c0_27] : memref<304x128xf32, #tpu.memory_space<vmem>>, vector<1x64xf32>
    %44 = vector.broadcast %43 : vector<1x64xf32> to vector<16x64xf32>
    %45 = arith.addf %42, %44 : vector<16x64xf32>
    %c280 = arith.constant 280 : index
    %c0_28 = arith.constant 0 : index
    %46 = vector.load %arg3[%c280, %c0_28] : memref<304x128xf32, #tpu.memory_space<vmem>>, vector<16x8xf32>
    %c296 = arith.constant 296 : index
    %c0_29 = arith.constant 0 : index
    %47 = vector.load %arg3[%c296, %c0_29] : memref<304x128xf32, #tpu.memory_space<vmem>>, vector<8x8xf32>
    %c240 = arith.constant 240 : index
    %c0_30 = arith.constant 0 : index
    %48 = vector.load %arg3[%c240, %c0_30] : memref<304x128xf32, #tpu.memory_space<vmem>>, vector<32x32xf32>
    %c272 = arith.constant 272 : index
    %c0_31 = arith.constant 0 : index
    %49 = vector.load %arg3[%c272, %c0_31] : memref<304x128xf32, #tpu.memory_space<vmem>>, vector<1x32xf32>
    %50 = vector.extract_strided_slice %18 {offsets = [0, 0], sizes = [8, 64], strides = [1, 1]} : vector<16x64xf32> to vector<8x64xf32>
    %51 = vector.extract_strided_slice %31 {offsets = [0, 0], sizes = [16, 64], strides = [1, 1]} : vector<32x64xf32> to vector<16x64xf32>
    %52 = vector.extract_strided_slice %50 {offsets = [0, 0], sizes = [8, 32], strides = [1, 1]} : vector<8x64xf32> to vector<8x32xf32>
    %53 = vector.extract_strided_slice %51 {offsets = [0, 0], sizes = [16, 32], strides = [1, 1]} : vector<16x64xf32> to vector<16x32xf32>
    %54 = vector.extract_strided_slice %51 {offsets = [0, 32], sizes = [16, 32], strides = [1, 1]} : vector<16x64xf32> to vector<16x32xf32>
    %cst_32 = arith.constant dense<0.000000e+00> : vector<8x16xf32>
    %55 = tpu.matmul %52, %53, %cst_32 {dimension_numbers = #tpu.dot_dimension_numbers<[1], [1], [0], [0], [0, 0, 1, 0], [], []>, precision = #tpu.contract_precision<fp32>} : vector<8x32xf32>, vector<16x32xf32>, vector<8x16xf32> -> vector<8x16xf32>
    %cst_33 = arith.constant dense<0xFF800000> : vector<8xf32>
    %56 = vector.multi_reduction <maximumf>, %55, %cst_33 [1] : vector<8x16xf32> to vector<8xf32>
    %57 = vector.shape_cast %56 : vector<8xf32> to vector<8x1xf32>
    %58 = vector.broadcast %57 : vector<8x1xf32> to vector<8x16xf32>
    %59 = arith.subf %55, %58 : vector<8x16xf32>
    %60 = math.exp %59 : vector<8x16xf32>
    %cst_34 = arith.constant dense<0.000000e+00> : vector<8xf32>
    %61 = vector.multi_reduction <add>, %60, %cst_34 [1] : vector<8x16xf32> to vector<8xf32>
    %62 = vector.shape_cast %61 : vector<8xf32> to vector<8x1xf32>
    %63 = vector.broadcast %62 : vector<8x1xf32> to vector<8x16xf32>
    %64 = arith.divf %60, %63 : vector<8x16xf32>
    %cst_35 = arith.constant dense<0.000000e+00> : vector<8x32xf32>
    %65 = tpu.matmul %64, %54, %cst_35 {dimension_numbers = #tpu.dot_dimension_numbers<[1], [0], [0], [1], [0, 0, 1, 1], [], []>, precision = #tpu.contract_precision<fp32>} : vector<8x16xf32>, vector<16x32xf32>, vector<8x32xf32> -> vector<8x32xf32>
    %66 = arith.mulf %65, %19 : vector<8x32xf32>
    %cst_36 = arith.constant dense<0.000000e+00> : vector<16x32xf32>
    %67 = tpu.matmul %46, %66, %cst_36 {dimension_numbers = #tpu.dot_dimension_numbers<[1], [0], [0], [1], [0, 0, 1, 1], [], []>, precision = #tpu.contract_precision<fp32>} : vector<16x8xf32>, vector<8x32xf32>, vector<16x32xf32> -> vector<16x32xf32>
    %cst_37 = arith.constant dense<0.000000e+00> : vector<16x32xf32>
    %68 = tpu.matmul %67, %48, %cst_37 {dimension_numbers = #tpu.dot_dimension_numbers<[1], [0], [0], [1], [0, 0, 1, 1], [], []>, precision = #tpu.contract_precision<fp32>} : vector<16x32xf32>, vector<32x32xf32>, vector<16x32xf32> -> vector<16x32xf32>
    %69 = vector.broadcast %49 : vector<1x32xf32> to vector<16x32xf32>
    %70 = arith.addf %68, %69 : vector<16x32xf32>
    %c0_38 = arith.constant 0 : index
    %c0_39 = arith.constant 0 : index
    %c0_40 = arith.constant 0 : index
    %71 = vector.load %arg6[%c0_38, %c0_39, %c0_40] : memref<2x16x32xf32, #tpu.memory_space<vmem>>, vector<1x16x32xf32>
    %72 = vector.shape_cast %71 : vector<1x16x32xf32> to vector<16x32xf32>
    %73 = vector.shape_cast %70 : vector<16x32xf32> to vector<1x16x32xf32>
    tpu.vector_store %arg6[%c0_38, %c0_39, %c0_40], %73 {strides = array<i32>} : memref<2x16x32xf32, #tpu.memory_space<vmem>>, vector<1x16x32xf32>,
    %74 = vector.extract_strided_slice %45 {offsets = [0, 0], sizes = [8, 64], strides = [1, 1]} : vector<16x64xf32> to vector<8x64xf32>
    %75 = vector.extract_strided_slice %50 {offsets = [0, 32], sizes = [8, 32], strides = [1, 1]} : vector<8x64xf32> to vector<8x32xf32>
    %76 = vector.extract_strided_slice %74 {offsets = [0, 0], sizes = [8, 32], strides = [1, 1]} : vector<8x64xf32> to vector<8x32xf32>
    %77 = vector.extract_strided_slice %74 {offsets = [0, 32], sizes = [8, 32], strides = [1, 1]} : vector<8x64xf32> to vector<8x32xf32>
    %cst_41 = arith.constant dense<0.000000e+00> : vector<8x8xf32>
    %78 = tpu.matmul %75, %76, %cst_41 {dimension_numbers = #tpu.dot_dimension_numbers<[1], [1], [0], [0], [0, 0, 1, 0], [], []>, precision = #tpu.contract_precision<fp32>} : vector<8x32xf32>, vector<8x32xf32>, vector<8x8xf32> -> vector<8x8xf32>
    %cst_42 = arith.constant dense<0xFF800000> : vector<8xf32>
    %79 = vector.multi_reduction <maximumf>, %78, %cst_42 [1] : vector<8x8xf32> to vector<8xf32>
    %80 = vector.shape_cast %79 : vector<8xf32> to vector<8x1xf32>
    %81 = vector.broadcast %80 : vector<8x1xf32> to vector<8x8xf32>
    %82 = arith.subf %78, %81 : vector<8x8xf32>
    %83 = math.exp %82 : vector<8x8xf32>
    %cst_43 = arith.constant dense<0.000000e+00> : vector<8xf32>
    %84 = vector.multi_reduction <add>, %83, %cst_43 [1] : vector<8x8xf32> to vector<8xf32>
    %85 = vector.shape_cast %84 : vector<8xf32> to vector<8x1xf32>
    %86 = vector.broadcast %85 : vector<8x1xf32> to vector<8x8xf32>
    %87 = arith.divf %83, %86 : vector<8x8xf32>
    %cst_44 = arith.constant dense<0.000000e+00> : vector<8x32xf32>
    %88 = tpu.matmul %87, %77, %cst_44 {dimension_numbers = #tpu.dot_dimension_numbers<[1], [0], [0], [1], [0, 0, 1, 1], [], []>, precision = #tpu.contract_precision<fp32>} : vector<8x8xf32>, vector<8x32xf32>, vector<8x32xf32> -> vector<8x32xf32>
    %89 = arith.mulf %88, %19 : vector<8x32xf32>
    %cst_45 = arith.constant dense<0.000000e+00> : vector<8x32xf32>
    %90 = tpu.matmul %47, %89, %cst_45 {dimension_numbers = #tpu.dot_dimension_numbers<[1], [0], [0], [1], [0, 0, 1, 1], [], []>, precision = #tpu.contract_precision<fp32>} : vector<8x8xf32>, vector<8x32xf32>, vector<8x32xf32> -> vector<8x32xf32>
    %91 = vector.extract_strided_slice %18 {offsets = [8, 0], sizes = [8, 64], strides = [1, 1]} : vector<16x64xf32> to vector<8x64xf32>
    %92 = vector.extract_strided_slice %31 {offsets = [16, 0], sizes = [16, 64], strides = [1, 1]} : vector<32x64xf32> to vector<16x64xf32>
    %93 = vector.extract_strided_slice %91 {offsets = [0, 0], sizes = [8, 32], strides = [1, 1]} : vector<8x64xf32> to vector<8x32xf32>
    %94 = vector.extract_strided_slice %92 {offsets = [0, 0], sizes = [16, 32], strides = [1, 1]} : vector<16x64xf32> to vector<16x32xf32>
    %95 = vector.extract_strided_slice %92 {offsets = [0, 32], sizes = [16, 32], strides = [1, 1]} : vector<16x64xf32> to vector<16x32xf32>
    %cst_46 = arith.constant dense<0.000000e+00> : vector<8x16xf32>
    %96 = tpu.matmul %93, %94, %cst_46 {dimension_numbers = #tpu.dot_dimension_numbers<[1], [1], [0], [0], [0, 0, 1, 0], [], []>, precision = #tpu.contract_precision<fp32>} : vector<8x32xf32>, vector<16x32xf32>, vector<8x16xf32> -> vector<8x16xf32>
    %cst_47 = arith.constant dense<0xFF800000> : vector<8xf32>
    %97 = vector.multi_reduction <maximumf>, %96, %cst_47 [1] : vector<8x16xf32> to vector<8xf32>
    %98 = vector.shape_cast %97 : vector<8xf32> to vector<8x1xf32>
    %99 = vector.broadcast %98 : vector<8x1xf32> to vector<8x16xf32>
    %100 = arith.subf %96, %99 : vector<8x16xf32>
    %101 = math.exp %100 : vector<8x16xf32>
    %cst_48 = arith.constant dense<0.000000e+00> : vector<8xf32>
    %102 = vector.multi_reduction <add>, %101, %cst_48 [1] : vector<8x16xf32> to vector<8xf32>
    %103 = vector.shape_cast %102 : vector<8xf32> to vector<8x1xf32>
    %104 = vector.broadcast %103 : vector<8x1xf32> to vector<8x16xf32>
    %105 = arith.divf %101, %104 : vector<8x16xf32>
    %cst_49 = arith.constant dense<0.000000e+00> : vector<8x32xf32>
    %106 = tpu.matmul %105, %95, %cst_49 {dimension_numbers = #tpu.dot_dimension_numbers<[1], [0], [0], [1], [0, 0, 1, 1], [], []>, precision = #tpu.contract_precision<fp32>} : vector<8x16xf32>, vector<16x32xf32>, vector<8x32xf32> -> vector<8x32xf32>
    %107 = arith.mulf %106, %19 : vector<8x32xf32>
    %cst_50 = arith.constant dense<0.000000e+00> : vector<16x32xf32>
    %108 = tpu.matmul %46, %107, %cst_50 {dimension_numbers = #tpu.dot_dimension_numbers<[1], [0], [0], [1], [0, 0, 1, 1], [], []>, precision = #tpu.contract_precision<fp32>} : vector<16x8xf32>, vector<8x32xf32>, vector<16x32xf32> -> vector<16x32xf32>
    %cst_51 = arith.constant dense<0.000000e+00> : vector<16x32xf32>
    %109 = tpu.matmul %108, %48, %cst_51 {dimension_numbers = #tpu.dot_dimension_numbers<[1], [0], [0], [1], [0, 0, 1, 1], [], []>, precision = #tpu.contract_precision<fp32>} : vector<16x32xf32>, vector<32x32xf32>, vector<16x32xf32> -> vector<16x32xf32>
    %110 = vector.broadcast %49 : vector<1x32xf32> to vector<16x32xf32>
    %111 = arith.addf %109, %110 : vector<16x32xf32>
    %c1 = arith.constant 1 : index
    %c0_52 = arith.constant 0 : index
    %c0_53 = arith.constant 0 : index
    %112 = vector.load %arg6[%c1, %c0_52, %c0_53] : memref<2x16x32xf32, #tpu.memory_space<vmem>>, vector<1x16x32xf32>
    %113 = vector.shape_cast %112 : vector<1x16x32xf32> to vector<16x32xf32>
    %114 = vector.shape_cast %111 : vector<16x32xf32> to vector<1x16x32xf32>
    tpu.vector_store %arg6[%c1, %c0_52, %c0_53], %114 {strides = array<i32>} : memref<2x16x32xf32, #tpu.memory_space<vmem>>, vector<1x16x32xf32>,
    %115 = vector.extract_strided_slice %45 {offsets = [8, 0], sizes = [8, 64], strides = [1, 1]} : vector<16x64xf32> to vector<8x64xf32>
    %116 = vector.extract_strided_slice %91 {offsets = [0, 32], sizes = [8, 32], strides = [1, 1]} : vector<8x64xf32> to vector<8x32xf32>
    %117 = vector.extract_strided_slice %115 {offsets = [0, 0], sizes = [8, 32], strides = [1, 1]} : vector<8x64xf32> to vector<8x32xf32>
    %118 = vector.extract_strided_slice %115 {offsets = [0, 32], sizes = [8, 32], strides = [1, 1]} : vector<8x64xf32> to vector<8x32xf32>
    %cst_54 = arith.constant dense<0.000000e+00> : vector<8x8xf32>
    %119 = tpu.matmul %116, %117, %cst_54 {dimension_numbers = #tpu.dot_dimension_numbers<[1], [1], [0], [0], [0, 0, 1, 0], [], []>, precision = #tpu.contract_precision<fp32>} : vector<8x32xf32>, vector<8x32xf32>, vector<8x8xf32> -> vector<8x8xf32>
    %cst_55 = arith.constant dense<0xFF800000> : vector<8xf32>
    %120 = vector.multi_reduction <maximumf>, %119, %cst_55 [1] : vector<8x8xf32> to vector<8xf32>
    %121 = vector.shape_cast %120 : vector<8xf32> to vector<8x1xf32>
    %122 = vector.broadcast %121 : vector<8x1xf32> to vector<8x8xf32>
    %123 = arith.subf %119, %122 : vector<8x8xf32>
    %124 = math.exp %123 : vector<8x8xf32>
    %cst_56 = arith.constant dense<0.000000e+00> : vector<8xf32>
    %125 = vector.multi_reduction <add>, %124, %cst_56 [1] : vector<8x8xf32> to vector<8xf32>
    %126 = vector.shape_cast %125 : vector<8xf32> to vector<8x1xf32>
    %127 = vector.broadcast %126 : vector<8x1xf32> to vector<8x8xf32>
    %128 = arith.divf %124, %127 : vector<8x8xf32>
    %cst_57 = arith.constant dense<0.000000e+00> : vector<8x32xf32>
    %129 = tpu.matmul %128, %118, %cst_57 {dimension_numbers = #tpu.dot_dimension_numbers<[1], [0], [0], [1], [0, 0, 1, 1], [], []>, precision = #tpu.contract_precision<fp32>} : vector<8x8xf32>, vector<8x32xf32>, vector<8x32xf32> -> vector<8x32xf32>
    %130 = arith.mulf %129, %19 : vector<8x32xf32>
    %cst_58 = arith.constant dense<0.000000e+00> : vector<8x32xf32>
    %131 = tpu.matmul %47, %130, %cst_58 {dimension_numbers = #tpu.dot_dimension_numbers<[1], [0], [0], [1], [0, 0, 1, 1], [], []>, precision = #tpu.contract_precision<fp32>} : vector<8x8xf32>, vector<8x32xf32>, vector<8x32xf32> -> vector<8x32xf32>
    %132 = tpu.concatenate %90, %131 in 0 : vector<8x32xf32>, vector<8x32xf32> -> vector<16x32xf32>
    %c0_59 = arith.constant 0 : index
    %c0_60 = arith.constant 0 : index
    %133 = vector.load %arg5[%c0_59, %c0_60] : memref<40x2048xf32, #tpu.memory_space<vmem>>, vector<32x2048xf32>
    %c32 = arith.constant 32 : index
    %c0_61 = arith.constant 0 : index
    %134 = vector.load %arg5[%c32, %c0_61] : memref<40x2048xf32, #tpu.memory_space<vmem>>, vector<1x2048xf32>
    %cst_62 = arith.constant dense<0.000000e+00> : vector<16x2048xf32>
    %135 = tpu.matmul %132, %133, %cst_62 {dimension_numbers = #tpu.dot_dimension_numbers<[1], [0], [0], [1], [0, 0, 1, 1], [], []>, precision = #tpu.contract_precision<fp32>} : vector<16x32xf32>, vector<32x2048xf32>, vector<16x2048xf32> -> vector<16x2048xf32>
    %136 = vector.broadcast %134 : vector<1x2048xf32> to vector<16x2048xf32>
    %137 = arith.addf %135, %136 : vector<16x2048xf32>
    %138 = vector.shape_cast %137 : vector<16x2048xf32> to vector<2x8x2048xf32>
    %c0_63 = arith.constant 0 : index
    %c0_64 = arith.constant 0 : index
    %c0_65 = arith.constant 0 : index
    %139 = vector.load %arg7[%c0_63, %c0_64, %c0_65] : memref<2x8x2048xf32, #tpu.memory_space<vmem>>, vector<2x8x2048xf32>
    tpu.vector_store %arg7[%c0_63, %c0_64, %c0_65], %138 {strides = array<i32>} : memref<2x8x2048xf32, #tpu.memory_space<vmem>>, vector<2x8x2048xf32>,
    return
  }
  func.func @transform_0(%arg0: i32) -> (i32, i32, i32) {
    %c0_i32 = arith.constant 0 : i32
    %c0_i32_0 = arith.constant 0 : i32
    %c0_i32_1 = arith.constant 0 : i32
    return %arg0, %c0_i32, %c0_i32_0 : i32, i32, i32
  }
  func.func @transform_1(%arg0: i32) -> (i32, i32, i32) {
    %c0_i32 = arith.constant 0 : i32
    %c0_i32_0 = arith.constant 0 : i32
    %c0_i32_1 = arith.constant 0 : i32
    return %arg0, %c0_i32, %c0_i32_0 : i32, i32, i32
  }
  func.func @transform_2(%arg0: i32) -> (i32, i32) {
    %c0_i32 = arith.constant 0 : i32
    %c0_i32_0 = arith.constant 0 : i32
    %c0_i32_1 = arith.constant 0 : i32
    return %c0_i32, %c0_i32_0 : i32, i32
  }
  func.func @transform_3(%arg0: i32) -> (i32, i32) {
    %c0_i32 = arith.constant 0 : i32
    %c0_i32_0 = arith.constant 0 : i32
    %c0_i32_1 = arith.constant 0 : i32
    return %c0_i32, %c0_i32_0 : i32, i32
  }
  func.func @transform_4(%arg0: i32) -> (i32, i32) {
    %c0_i32 = arith.constant 0 : i32
    %c0_i32_0 = arith.constant 0 : i32
    %c0_i32_1 = arith.constant 0 : i32
    return %c0_i32, %c0_i32_0 : i32, i32
  }
  func.func @transform_5(%arg0: i32) -> (i32, i32, i32) {
    %c0_i32 = arith.constant 0 : i32
    %c0_i32_0 = arith.constant 0 : i32
    %c0_i32_1 = arith.constant 0 : i32
    return %arg0, %c0_i32, %c0_i32_0 : i32, i32, i32
  }
  func.func @transform_6(%arg0: i32) -> (i32, i32, i32) {
    %c0_i32 = arith.constant 0 : i32
    %c0_i32_0 = arith.constant 0 : i32
    %c0_i32_1 = arith.constant 0 : i32
    return %arg0, %c0_i32, %c0_i32_0 : i32, i32, i32
  }
}

</mosaic_0001>

<bundles_post_ra>
// kernel: forward.1
= control target key start
LH: loop header
LB: loop body
LE: loop exit
PB: predicated region body
PF: predicated region fallthrough
CT: control target
= control target key end

     0   :  { %12 = vsyncpa [#allocation3], 0  ;;  %s36224_s0 = inlined_call_operand.vmem [shape: f32[4,24,8], index: 0, kind: input, shape index: {}]   ;;  %s36225_s1 = inlined_call_operand.vmem [shape: f32[4,8,2048], index: 1, kind: input, shape index: {}]   ;;  %s36226_s2 = inlined_call_operand.vmem [shape: f32[304,128], index: 2, kind: input, shape index: {}]   ;;  %s36227_s3 = inlined_call_operand.vmem [shape: f32[2048,64], index: 3, kind: input, shape index: {}]   ;;  %s36228_s4 = inlined_call_operand.vmem [shape: f32[40,2048], index: 4, kind: input, shape index: {}]   ;;  %s36229_s5 = inlined_call_operand.hbm [shape: f32[4,16,32], index: 5, kind: output, shape index: {0}]   ;;  %s36230_s6 = inlined_call_operand.vmem [shape: f32[4,8,2048], index: 6, kind: output, shape index: {1}]  }
   0x1   :  { %14 = vsyncpa [#allocation3 + $0x1], 0  ;;  %s28805_s21 = smov 0   ;;  %s28807_s22 = smov 0  }
   0x2   :  { %s28809_s23 = smov 0   ;;  %s28811_s24 = smov 0  }
   0x3 LB: > { %s28826_s25 = sadd.s32 4294967295, %s28761_s24   ;;  %s22630_s26 = sadd.s32 4294967294, %s28761_s24   ;;  %s28761_s24 = sphi %s28811_s24, %s38198_s24   ;;  %s28757_s23 = sphi %s28809_s23, %s38197_s23   ;;  %s28753_s22 = sphi %s28807_s22, %s38196_s22   ;;  %s28749_s21 = sphi %s28805_s21, %s38195_s21  }
   0x4   : > { %s28830_s27 = sadd.s32 1, %s28761_s24   ;;  %s142_s28 = sadd.s32 1, %s28757_s23 }
   0x5   : > { %s139_s29 = ssub.s32 %s28761_s24, %s28830_s27  ;;  %p152_p0 = scmp.ne.s32.totalorder %s28757_s23, %s28753_s22 }
   0x6   : > { %p140_p1 = scmp.eq.s32.totalorder %s139_s29, 0  ;;  %p153_p2 = scmp.eq.s32.totalorder %s28826_s25, 1 }
   0x7   : > { %p158_p3 = scmp.ne.s32.totalorder %s28753_s22, %s28749_s21  ;;  %p159_p4 = scmp.eq.s32.totalorder %s22630_s26, 1 }
   0x8   : > { %s28841_s30 = scalar_select %p140_p1, %s28757_s23, %s142_s28  }
   0x9   : > { %p28843_p5 = por %p153_p2, %p152_p0  ;;  %p28847_p6 = por %p159_p4, %p158_p3 }
   0xa   : > { %p22633_p7 = scmp.ge.s32.totalorder %s28761_s24, 1  ;;  %p232_p8 = scmp.lt.s32.totalorder %s28761_s24, 3 }
   0xc   : > { %p233_p9 = pnand %p22633_p7, %p232_p8 }
   0xe   : > { %236 = sbr.rel (%p233_p9) target bundleno = 5303 (0x14b7), region = 40 }
  0x15   : > { %v303_v0 = vld [vmem:[%s36226_s2] sm:$0xff]  ;;  %s22635_s11 = sshll.u32 %s28826_s25, 1  ;;  %vm309_vm0 = vcmask 64512   ;;  %v809_v20 = vld [vmem:[%s36226_s2 + $0x10] sm:$0xff]  ;;  %v810_v21 = vld [vmem:[%s36226_s2 + $0x18] sm:$0xff]  ;;  %vm818_vm1 = vcmask 261120  }
  0x16   : > { %v317_v1 = vand.u32 4294901760, %v303_v0  ;;  %p276_p10 = scmp.lt.s32.totalorder %s22635_s11, 3  ;;  %v826_v22 = vand.u32 4294901760, %v809_v20  ;;  %v829_v23 = vand.u32 4294901760, %v810_v21  ;;  %v811_v26 = vld [vmem:[%s36226_s2 + $0x20] sm:$0xff]  ;;  %v812_v27 = vld [vmem:[%s36226_s2 + $0x28] sm:$0xff] }
  0x17   : > { %v832_v30 = vand.u32 4294901760, %v811_v26  ;;  %v835_v31 = vand.u32 4294901760, %v812_v27  ;;  %v1355_v50 = vld [vmem:[%s36226_s2 + $0x48] sm:$0xff]  ;;  %vm1965_vm2 = vcmask 523264   ;;  %s28763_s10 = smov 96   ;;  %vm28765_vm3 = vmmov 0  }
  0x18   : > { %24958 = vmatprep.subr.mxu0 %v317_v1  ;;  %s38200_s11 = smov (!%p276_p10, %s22635_s11), 3  ;;  %v404_v2 = vsub.f32 %v303_v0, %v317_v1  ;;  %v916_v24 = vsub.f32 %v809_v20, %v826_v22  ;;  %v923_v25 = vsub.f32 %v810_v21, %v829_v23  ;;  %v28881_v46 = vpack.c.bf16 %v829_v23, %v826_v22  ;;  %v22643_v58 = vld [vmem:[%s36226_s2 + $0x8] ss:$0 sm:$0xff]  ;;  %s264_s18 = sand.u32 1, %s28753_s22  }
  0x19   : > { %24959 = vmatpush3.msra.mxu0 %v317_v1  ;;  %s28636_s12 = smul.u32 24, %s38200_s11  ;;  %v930_v34 = vsub.f32 %v811_v26, %v832_v30  ;;  %v937_v35 = vsub.f32 %v812_v27, %v835_v31  ;;  %v28883_v48 = vpack.c.bf16 %v835_v31, %v832_v30  ;;  %v28892_v51 = vand.u32 4294901760, %v1355_v50  ;;  %s22662_s28 = sshll.u32 %s38200_s11, 7 }
  0x1a   : > { %v405_v3 = vand.u32 4294901760, %v404_v2  ;;  %v917_v28 = vand.u32 4294901760, %v916_v24  ;;  %v924_v29 = vand.u32 4294901760, %v923_v25  ;;  %v25904_v47 = vpack.c.bf16 %v923_v25, %v916_v24  ;;  %s29295_s19 = scalar_lea.vmem %s36225_s1, %s22662_s28  ;;  %s22634_s20 = sshll.u32 %s264_s18, 5 }
  0x1b   : > { %s28863_s15 = scalar_lea.vmem %s36224_s0, %s28636_s12  ;;  %v931_v38 = vand.u32 4294901760, %v930_v34  ;;  %v938_v39 = vand.u32 4294901760, %v937_v35  ;;  %v25908_v49 = vpack.c.bf16 %v937_v35, %v930_v34  ;;  %vm11358_vm4 = vcmask 130048   ;;  %s36100_s26 = scalar_lea.vmem %s36230_s6, %s22662_s28 }
  0x1c   : > { %v406_v4 = vsub.f32 %v404_v2, %v405_v3  ;;  %v297_v5 = vld [vmem:[%s28863_s15] sm:$0xff]  ;;  %v300_v6 = vld [vmem:[%s28863_s15 + $0x18] sm:$0xff]  ;;  %v918_v32 = vsub.f32 %v916_v24, %v917_v28  ;;  %v925_v33 = vsub.f32 %v923_v25, %v924_v29  ;;  %v28895_v52 = vpack.c.bf16 %v924_v29, %v917_v28  ;;  %v298_v54 = vld [vmem:[%s28863_s15 + $0x8] sm:$0xff]  ;;  %s22665_s28 = sshll.u32 %s28826_s25, 9  ;;  %s36121_s12 = scalar_lea.sflag [#allocation3], %s264_s18 }
  0x1d   : > { %v311_v7 = vsel %vm309_vm0, %v297_v5, 0  ;;  %v314_v8 = vsel %vm309_vm0, %v300_v6, 0  ;;  %v932_v41 = vsub.f32 %v930_v34, %v931_v38  ;;  %v939_v42 = vsub.f32 %v937_v35, %v938_v39  ;;  %v299_v55 = vld [vmem:[%s28863_s15 + $0x10] sm:$0xff]  ;;  %v301_v57 = vld [vmem:[%s28863_s15 + $0x20] sm:$0xff]  ;;  %v302_v63 = vld [vmem:[%s28863_s15 + $0x28] sm:$0xff]  ;;  %s36117_s9 = scalar_lea.hbm %s36229_s5, %s22665_s28 }
  0x1e   : > { %v407_v9 = vand.u32 4294901760, %v406_v4  ;;  %v382_v10 = vand.u32 4294901760, %v311_v7  ;;  %v392_v11 = vand.u32 4294901760, %v314_v8  ;;  %v919_v36 = vand.u32 4294901760, %v918_v32 }
  0x1f   : > { %v926_v37 = vand.u32 4294901760, %v925_v33  ;;  %v933_v43 = vand.u32 4294901760, %v932_v41  ;;  %v940_v44 = vand.u32 4294901760, %v939_v42  ;;  %v28897_v53 = vpack.c.bf16 %v938_v39, %v931_v38  ;;  %v1952_v41 = vld [vmem:[%s36226_s2 + $0x58] sm:$0xff]  ;;  %v1953_v42 = vld [vmem:[%s36226_s2 + $0x60] sm:$0xff] }
  0x20   : > { %24963 = vmatprep.subr.mxu0 %v407_v9  ;;  %v383_v12 = vsub.f32 %v311_v7, %v382_v10  ;;  %v393_v13 = vsub.f32 %v314_v8, %v392_v11  ;;  %v1362_v56 = vsel %vm309_vm0, %v298_v54, 0  ;;  %v1365_v59 = vsel %vm309_vm0, %v299_v55, 0  ;;  %v29022_v54 = vld [vmem:[%s36226_s2 + $0x68] sm:$0xff]  ;;  %v29027_v55 = vld [vmem:[%s36226_s2 + $0x70] sm:$0xff] }
  0x21   : > { %v25896_v40 = vpack.c.bf16 %v926_v37, %v919_v36  ;;  %v25900_v45 = vpack.c.bf16 %v940_v44, %v933_v43  ;;  %v28907_v61 = vand.u32 4294901760, %v1362_v56  ;;  %v1368_v62 = vsel %vm309_vm0, %v301_v57, 0 }
  0x22   : > { %v384_v14 = vand.u32 4294901760, %v383_v12  ;;  %v394_v15 = vand.u32 4294901760, %v393_v13  ;;  %v28913_v5 = vand.u32 4294901760, %v1368_v62  ;;  %v1371_v6 = vsel %vm309_vm0, %v302_v63, 0 }
  0x23   : > { %25897 = vmatprep.subr.bf16.mxu1 %v25896_v40  ;;  %v28917_v8 = vsub.f32 %v1362_v56, %v28907_v61  ;;  %v1979_v43 = vand.u32 4294901760, %v1952_v41  ;;  %v1982_v44 = vand.u32 4294901760, %v1953_v42  ;;  %v1985_v57 = vand.u32 4294901760, %v29022_v54 }
  0x24   : > { %v385_v16 = vsub.f32 %v383_v12, %v384_v14  ;;  %v395_v17 = vsub.f32 %v393_v13, %v394_v15  ;;  %25899 = vmatpush3.bf16.msra.mxu1 %v25896_v40 }
  0x25   : > { %25901 = vmatprep.subr.bf16.mxu1 %v25900_v45 }
  0x26   : > { %v386_v18 = vand.u32 4294901760, %v385_v16  ;;  %v396_v19 = vand.u32 4294901760, %v395_v17  ;;  %v28930_v16 = vsub.f32 %v1368_v62, %v28913_v5 }
  0x28   : > { %24960 = vmatprep.mubr.f32.mxu0 %v386_v18  ;;  %25903 = vmatpush3.bf16.msra.mxu1 %v25900_v45  ;;  %v1441_v18 = vand.u32 4294901760, %v28917_v8  ;;  %v1461_v25 = vand.u32 4294901760, %v28930_v16  ;;  %v2692_v45 = vld [vmem:[%s36227_s3 + $0x80] sm:$0xff] }
  0x29   : > { %24961 = vmatmul.mubr.f32.vlgmr.msra.gmra.mrb[0].mxu0 %v396_v19  ;;  %25905 = vmatprep.subr.bf16.mxu1 %v25904_v47 }
  0x2a   : > { %24964 = vmatpush3.msra.mxu0 %v407_v9  ;;  %24965 = vmatprep.mubr.f32.mxu0 %v382_v10  ;;  %v1442_v27 = vsub.f32 %v28917_v8, %v1441_v18  ;;  %v1462_v33 = vsub.f32 %v28930_v16, %v1461_v25 }
  0x2b   : > { %24968 = vmatprep.subr.mxu0 %v404_v2 }
  0x2c   : > { %v1443_v35 = vand.u32 4294901760, %v1442_v27  ;;  %v1463_v39 = vand.u32 4294901760, %v1462_v33 }
  0x31   : > { %24966 = vmatmul.mubr.f32.vlgmr.msra.gmra.mrb[0].mxu0 %v392_v11 }
  0x32   : > { %24969 = vmatpush3.msra.mxu0 %v404_v2  ;;  %24970 = vmatprep.mubr.f32.mxu0 %v383_v12 }
  0x33   : > { %24973 = vmatprep.subr.mxu0 %v317_v1 }
  0x39   : > { %24971 = vmatmul.mubr.f32.vlgmr.msra.gmra.mrb[0].mxu0 %v393_v13 }
  0x3a   : > { %24974 = vmatpush3.msra.mxu0 %v317_v1  ;;  %24975 = vmatprep.mubr.f32.mxu0 %v384_v14  ;;  %v28927_v14 = vand.u32 4294901760, %v1371_v6 }
  0x3b   : > { %24978 = vmatprep.subr.mxu0 %v405_v3 }
  0x3c   : > { %v28939_v23 = vsub.f32 %v1371_v6, %v28927_v14  ;;  %v29069_v6 = vld [vmem:[%s36226_s2 + $0x80] sm:$0xff] }
  0x3e   : > { %v1471_v31 = vand.u32 4294901760, %v28939_v23 }
  0x40   : > { %v1472_v38 = vsub.f32 %v28939_v23, %v1471_v31 }
  0x41   : > { %24976 = vmatmul.mubr.f32.vlgmr.msra.gmra.mrb[0].mxu0 %v394_v15 }
  0x42   : > { %24979 = vmatpush3.msra.mxu0 %v405_v3  ;;  %24980 = vmatprep.mubr.f32.mxu0 %v382_v10  ;;  %v28911_v3 = vand.u32 4294901760, %v1365_v59  ;;  %v1473_v40 = vand.u32 4294901760, %v1472_v38  ;;  %v2683_v38 = vld [vmem:[%s36227_s3 + $0x38] sm:$0xff] }
  0x43   : > { %24983 = vmatprep.subr.mxu0 %v317_v1 }
  0x44   : > { %v28925_v13 = vsub.f32 %v1365_v59, %v28911_v3 }
  0x46   : > { %v1451_v22 = vand.u32 4294901760, %v28925_v13 }
  0x48   : > { %v1452_v30 = vsub.f32 %v28925_v13, %v1451_v22 }
  0x49   : > { %24981 = vmatmul.mubr.f32.vlgmr.msra.gmra.mrb[0].mxu0 %v392_v11 }
  0x4a   : > { %24984 = vmatpush3.msra.mxu0 %v317_v1  ;;  %24985 = vmatprep.mubr.f32.mxu0 %v382_v10  ;;  %v1481_v10 = vsub.f32 %v1355_v50, %v28892_v51  ;;  %v1453_v37 = vand.u32 4294901760, %v1452_v30  ;;  %v29010_v50 = vld [vmem:[%s36227_s3] sm:$0xff] }
  0x4b   : > { %25889 = vmatprep.subr.bf16.mxu0 %v28881_v46 }
  0x4c   : > { %v28934_v20 = vand.u32 4294901760, %v1481_v10 }
  0x4e   : > { %v1483_v29 = vsub.f32 %v1481_v10, %v28934_v20 }
  0x50   : > { %v1484_v36 = vand.u32 4294901760, %v1483_v29 }
  0x51   : > { %24986 = vmatmul.mubr.f32.vlgmr.msra.gmra.mrb[0].mxu0 %v392_v11 }
  0x52   : > { %25891 = vmatpush3.bf16.msra.mxu0 %v28881_v46 }
  0x53   : > { %25893 = vmatprep.subr.bf16.mxu0 %v28883_v48 }
  0x56   : > { %25895 = vmatpush3.bf16.msra.mxu0 %v28883_v48 }
  0x57   : > { %25054 = vmatprep.subr.mxu0 %v28892_v51 }
 0x124   : > { %v24987_v60 = vpop.f32.mrb[0].mxu0 }
 0x125   : > { %v28216_v0 = vadd.f32 %v24987_v60, %v22643_v58  ;;  %v795_v1 = vpop.f32.mrb[1].mxu0  ;;  %v2694_v60 = vld [vmem:[%s36227_s3 + $0x90] sm:$0xff] }
 0x126   : > { %v28217_v2 = vadd.f32 %v22643_v58, %v795_v1  ;;  %v1988_v58 = vand.u32 4294901760, %v29027_v55  ;;  %v2992_v63 = vand.u32 4294901760, %v2694_v60  ;;  %v2678_v1 = vld [vmem:[%s36227_s3 + $0x10] sm:$0xff] }
 0x127   : > { %v806_v4 = vmax.f32 %v28216_v0, 0.0 }
 0x128   : > { %v805_v7 = vmax.f32 %v28217_v2, 0.0  ;;  %v29052_v62 = vpack.c.bf16 %v1988_v58, %v1985_v57  ;;  %v2679_v2 = vld [vmem:[%s36227_s3 + $0x18] sm:$0xff] }
 0x129   : > { %v823_v9 = vsel %vm818_vm1, %v806_v4, 0  ;;  %v2947_v4 = vand.u32 4294901760, %v2679_v2 }
 0x12a   : > { %v28921_v11 = vand.u32 4294901760, %v823_v9  ;;  %v820_v12 = vsel %vm818_vm1, %v805_v7, 0  ;;  %36941 = vst [vmem:[#allocation8_spill] sm:$0xff] %v29052_v62 }
 0x12b   : > { %v894_v15 = vand.u32 4294901760, %v820_v12 }
 0x12c   : > { %v905_v17 = vsub.f32 %v823_v9, %v28921_v11  ;;  %v1994_v9 = vand.u32 4294901760, %v29069_v6 }
 0x12d   : > { %25007 = vmatprep.mubr.f32.mxu1 %v894_v15  ;;  %v895_v19 = vsub.f32 %v820_v12, %v894_v15  ;;  %v2697_v12 = vld [vmem:[%s36227_s3 + $0xa8] sm:$0xff] }
 0x12e   : > { %v906_v21 = vand.u32 4294901760, %v905_v17  ;;  %25008 = vmatmul.mubr.f32.vlgmr.msra.gmra.mrb[0].mxu1 %v28921_v11 }
 0x12f   : > { %25907 = vmatpush3.bf16.msra.mxu1 %v25904_v47  ;;  %25018 = vmatprep.mubr.f32.mxu1 %v895_v19  ;;  %v896_v24 = vand.u32 4294901760, %v895_v19  ;;  %v29005_v47 = vpack.c.bf16 %v1982_v44, %v1979_v43 }
 0x130   : > { %25909 = vmatprep.subr.bf16.mxu1 %v25908_v49  ;;  %v907_v26 = vsub.f32 %v905_v17, %v906_v21 }
 0x131   : > { %v897_v28 = vsub.f32 %v895_v19, %v896_v24  ;;  %36938 = vst [vmem:[#allocation5_spill] sm:$0xff] %v29005_v47 }
 0x132   : > { %v908_v34 = vand.u32 4294901760, %v907_v26 }
 0x133   : > { %25911 = vmatpush3.bf16.msra.mxu1 %v25908_v49  ;;  %v898_v32 = vand.u32 4294901760, %v897_v28 }
 0x134   : > { %25913 = vmatprep.subr.bf16.mxu1 %v28881_v46 }
 0x135   : > { %24996 = vmatprep.mubr.f32.mxu0 %v898_v32  ;;  %v2699_v32 = vld [vmem:[%s36227_s3 + $0xb8] sm:$0xff] }
 0x136   : > { %24997 = vmatmul.mubr.f32.vlgmr.msra.gmra.mrb[2].mxu0 %v908_v34  ;;  %25019 = vmatmul.mubr.f32.vlgmr.msra.gmra.mrb[0].mxu1 %v905_v17  ;;  %v2681_v17 = vld [vmem:[%s36227_s3 + $0x28] sm:$0xff] }
 0x137   : > { %25915 = vmatpush3.bf16.msra.mxu1 %v28881_v46  ;;  %25029 = vmatprep.mubr.f32.mxu1 %v896_v24 }
 0x138   : > { %25055 = vmatpush3.msra.mxu0 %v28892_v51  ;;  %25056 = vmatprep.mubr.f32.mxu0 %v1443_v35 }
 0x139   : > { %25917 = vmatprep.subr.bf16.mxu1 %v28883_v48  ;;  %25062 = vmatprep.subr.mxu0 %v1484_v36 }
 0x13a   : > { %25057 = vmatmul.mubr.f32.vlgmr.msra.gmra.mrb[4].mxu0 %v1453_v37  ;;  %v2682_v37 = vld [vmem:[%s36227_s3 + $0x30] sm:$0xff] }
 0x13b   : > { %25919 = vmatpush3.bf16.msra.mxu1 %v28883_v48  ;;  %25059 = vmatprep.mubr.f32.mxu0 %v1463_v39 }
 0x13c   : > { %25921 = vmatprep.subr.bf16.mxu1 %v28895_v52  ;;  %25063 = vmatpush3.msra.mxu0 %v1484_v36  ;;  %v3007_v36 = vand.u32 4294901760, %v2699_v32 }
 0x13d   : > { %25070 = vmatprep.subr.mxu0 %v1481_v10 }
 0x13e   : > { %25030 = vmatmul.mubr.f32.vlgmr.msra.gmra.mrb[0].mxu1 %v906_v21  ;;  %25060 = vmatmul.mubr.f32.gmra.mrb[6].mxu0 %v1473_v40  ;;  %v29104_v21 = vld [vmem:[%s36226_s2 + $0x88] sm:$0xff] }
 0x13f   : > { %25923 = vmatpush3.bf16.msra.mxu1 %v28895_v52  ;;  %25040 = vmatprep.mubr.f32.mxu1 %v894_v15  ;;  %v2938_v52 = vand.u32 4294901760, %v29010_v50 }
 0x140   : > { %25064 = vmatprep.mubr.f32.mxu0 %v28907_v61  ;;  %25925 = vmatprep.subr.bf16.mxu1 %v28897_v53 }
 0x141   : > { %v29152_v40 = vsub.f32 %v29010_v50, %v2938_v52 }
 0x142   : > { %25065 = vmatmul.mubr.f32.vlgmr.msra.gmra.mrb[4].mxu0 %v28911_v3 }
 0x143   : > { %25927 = vmatpush3.bf16.msra.mxu1 %v28897_v53  ;;  %25067 = vmatprep.mubr.f32.mxu0 %v28913_v5 }
 0x144   : > { %25929 = vmatprep.subr.bf16.mxu1 %v28881_v46  ;;  %25071 = vmatpush3.msra.mxu0 %v1481_v10 }
 0x145   : > { %25078 = vmatprep.subr.mxu0 %v28892_v51 }
 0x146   : > { %25041 = vmatmul.mubr.f32.vlgmr.msra.gmra.mrb[0].mxu1 %v28921_v11  ;;  %25068 = vmatmul.mubr.f32.gmra.mrb[6].mxu0 %v28927_v14 }
 0x147   : > { %25931 = vmatpush3.bf16.msra.mxu1 %v28881_v46  ;;  %25051 = vmatprep.mubr.f32.mxu1 %v894_v15  ;;  %v2693_v46 = vld [vmem:[%s36227_s3 + $0x88] sm:$0xff]  ;;  %v3001_v15 = vand.u32 4294901760, %v2697_v12 }
 0x148   : > { %25072 = vmatprep.mubr.f32.mxu0 %v28917_v8  ;;  %25933 = vmatprep.subr.bf16.mxu1 %v28883_v48  ;;  %v2989_v49 = vand.u32 4294901760, %v2693_v46 }
 0x149   : > { %v29171_v50 = vsub.f32 %v2697_v12, %v3001_v15  ;;  %v2684_v12 = vld [vmem:[%s36227_s3 + $0x40] sm:$0xff] }
 0x14a   : > { %25073 = vmatmul.mubr.f32.vlgmr.msra.gmra.mrb[4].mxu0 %v28925_v13  ;;  %v29121_v29 = vsub.f32 %v2693_v46, %v2989_v49 }
 0x14b   : > { %25935 = vmatpush3.bf16.msra.mxu1 %v28883_v48  ;;  %25075 = vmatprep.mubr.f32.mxu0 %v28930_v16  ;;  %v2986_v48 = vand.u32 4294901760, %v2692_v45  ;;  %v2680_v16 = vld [vmem:[%s36227_s3 + $0x20] sm:$0xff] }
 0x14c   : > { %25079 = vmatpush3.msra.mxu0 %v28892_v51  ;;  %25937 = vmatprep.subr.bf16.mxu1 %v29005_v47  ;;  %v2950_v19 = vand.u32 4294901760, %v2680_v16 }
 0x14d   : > { %25086 = vmatprep.subr.mxu0 %v28934_v20  ;;  %v29030_v56 = vpack.c.bf16 %v2989_v49, %v2986_v48  ;;  %v29119_v28 = vsub.f32 %v2692_v45, %v2986_v48  ;;  %v29166_v48 = vsub.f32 %v2679_v2, %v2947_v4 }
 0x14e   : > { %25052 = vmatmul.mubr.f32.vlgmr.msra.gmra.mrb[0].mxu1 %v28921_v11  ;;  %25076 = vmatmul.mubr.f32.gmra.mrb[6].mxu0 %v28939_v23  ;;  %v2696_v11 = vld [vmem:[%s36227_s3 + $0xa0] sm:$0xff]  ;;  %v29111_v23 = vsub.f32 %v1953_v42, %v1982_v44  ;;  %v2956_v42 = vand.u32 4294901760, %v2682_v37  ;;  %v29160_v44 = vsub.f32 %v2694_v60, %v2992_v63 }
 0x14f   : > { %25080 = vmatprep.mubr.f32.mxu0 %v1441_v18  ;;  %36939 = vst [vmem:[#allocation6_spill] sm:$0xff] %v29030_v56  ;;  %25939 = vmatpush3.bf16.msra.mxu1 %v29005_v47  ;;  %v29098_v18 = vsub.f32 %v1952_v41, %v1979_v43  ;;  %v2959_v43 = vand.u32 4294901760, %v2683_v38 }
 0x150   : > { %25941 = vmatprep.subr.bf16.mxu1 %v29052_v62  ;;  %v36231_v33 = vand.u32 4294901760, %v29111_v23  ;;  %v29192_v2 = vsub.f32 %v2682_v37, %v2956_v42 }
 0x151   : > { %v36233_v27 = vand.u32 4294901760, %v29098_v18 }
 0x152   : > { %25081 = vmatmul.mubr.f32.vlgmr.msra.gmra.mrb[4].mxu0 %v1451_v22  ;;  %v29109_v22 = vld [vmem:[%s36226_s2 + $0x90] sm:$0xff] }
 0x153   : > { %25083 = vmatprep.mubr.f32.mxu0 %v1461_v25  ;;  %25087 = vmatpush3.msra.mxu0 %v28934_v20  ;;  %v2953_v20 = vand.u32 4294901760, %v2681_v17  ;;  %v1997_v25 = vand.u32 4294901760, %v29104_v21  ;;  %v36234_v26 = vand.u32 4294901760, %v29109_v22  ;;  %v2095_v39 = vsub.f32 %v29098_v18, %v36233_v27  ;;  %v2705_v27 = vld [vmem:[%s36227_s3 + $0xe8] sm:$0xff] }
 0x154   : > { %25094 = vmatprep.subr.mxu0 %v28892_v51  ;;  %25943 = vmatpush3.bf16.msra.mxu1 %v29052_v62 }
 0x155   : > { %v29124_v30 = vpack.c.bf16 %v2953_v20, %v2950_v19  ;;  %v29138_v34 = vpack.c.bf16 %v36234_v26, %v1997_v25 }
 0x156   : > { %25084 = vmatmul.mubr.f32.gmra.mrb[6].mxu0 %v1471_v31  ;;  %v2698_v31 = vld [vmem:[%s36227_s3 + $0xb0] sm:$0xff] }
 0x157   : > { %25088 = vmatprep.mubr.f32.mxu0 %v28907_v61  ;;  %36946 = vst [vmem:[#allocation13_spill] sm:$0xff] %v29124_v30  ;;  %36947 = vst [vmem:[#allocation14_spill] sm:$0xff] %v29138_v34  ;;  %v3004_v35 = vand.u32 4294901760, %v2698_v31 }
 0x159   : > { %v29180_v60 = vsub.f32 %v2698_v31, %v3004_v35  ;;  %v29210_v31 = vsub.f32 %v29022_v54, %v1985_v57  ;;  %v2702_v54 = vld [vmem:[%s36227_s3 + $0xd0] sm:$0xff] }
 0x15a   : > { %25089 = vmatmul.mubr.f32.vlgmr.msra.gmra.mrb[4].mxu0 %v28911_v3 }
 0x15b   : > { %25091 = vmatprep.mubr.f32.mxu0 %v28913_v5  ;;  %25095 = vmatpush3.msra.mxu0 %v28892_v51  ;;  %v29015_v51 = vld [vmem:[%s36227_s3 + $0x8] sm:$0xff] }
 0x15c   : > { %v2941_v53 = vand.u32 4294901760, %v29015_v51  ;;  %26033 = vmatprep.subr.bf16.mxu0 %v29030_v56 }
 0x15e   : > { %25092 = vmatmul.mubr.f32.gmra.mrb[6].mxu0 %v28927_v14  ;;  %v29039_v59 = vpack.c.bf16 %v2941_v53, %v2938_v52  ;;  %v29157_v41 = vsub.f32 %v29015_v51, %v2941_v53  ;;  %v29173_v51 = vsub.f32 %v2680_v16, %v2950_v19  ;;  %v29175_v52 = vsub.f32 %v2681_v17, %v2953_v20 }
 0x15f   : > { %25096 = vmatprep.mubr.f32.mxu0 %v28907_v61  ;;  %v2695_v61 = vld [vmem:[%s36227_s3 + $0x98] sm:$0xff]  ;;  %v29178_v53 = vpack.c.bf16 %v3007_v36, %v3004_v35  ;;  %v2962_v17 = vand.u32 4294901760, %v2684_v12 }
 0x160   : > { %36940 = vst [vmem:[#allocation7_spill] sm:$0xff] %v29039_v59  ;;  %v2995_v0 = vand.u32 4294901760, %v2695_v61 }
 0x161   : > { %36948 = vst [vmem:[#allocation15_spill] sm:$0xff] %v29178_v53 }
 0x162   : > { %25097 = vmatmul.mubr.f32.vlgmr.msra.gmra.mrb[4].mxu0 %v28911_v3  ;;  %v2944_v3 = vand.u32 4294901760, %v2678_v1  ;;  %v29072_v7 = vpack.c.bf16 %v2995_v0, %v2992_v63  ;;  %v29162_v45 = vsub.f32 %v2695_v61, %v2995_v0  ;;  %v29182_v61 = vsub.f32 %v2699_v32, %v3007_v36  ;;  %v2700_v0 = vld [vmem:[%s36227_s3 + $0xc0] sm:$0xff] }
 0x163   : > { %25099 = vmatprep.mubr.f32.mxu0 %v28913_v5  ;;  %26035 = vmatpush3.bf16.msra.mxu0 %v29039_v59  ;;  %v29064_v5 = vld [vmem:[%s36226_s2 + $0x78] sm:$0xff]  ;;  %v29184_v63 = vpack.c.bf16 %v2959_v43, %v2956_v42  ;;  %v29215_v32 = vsub.f32 %v29027_v55, %v1988_v58  ;;  %v29238_v58 = vsub.f32 %v2684_v12, %v2962_v17  ;;  %v2686_v42 = vld [vmem:[%s36227_s3 + $0x50] sm:$0xff] }
 0x164   : > { %36942 = vst [vmem:[#allocation9_spill] sm:$0xff] %v29072_v7  ;;  %v1991_v8 = vand.u32 4294901760, %v29064_v5  ;;  %v29077_v10 = vpack.c.bf16 %v2947_v4, %v2944_v3  ;;  %26037 = vmatprep.subr.bf16.mxu0 %v29072_v7  ;;  %v29164_v46 = vsub.f32 %v2678_v1, %v2944_v3  ;;  %v2701_v1 = vld [vmem:[%s36227_s3 + $0xc8] sm:$0xff]  ;;  %v29194_v3 = vsub.f32 %v2683_v38, %v2959_v43  ;;  %v2703_v55 = vld [vmem:[%s36227_s3 + $0xd8] sm:$0xff] }
 0x165   : > { %36949 = vst [vmem:[#allocation16_spill] sm:$0xff] %v29184_v63  ;;  %v2096_v4 = vand.u32 4294901760, %v2095_v39  ;;  %v3013_v16 = vand.u32 4294901760, %v2701_v1  ;;  %v2687_v43 = vld [vmem:[%s36227_s3 + $0x58] sm:$0xff] }
 0x166   : > { %25100 = vmatmul.mubr.f32.gmra.mrb[6].mxu0 %v28927_v14  ;;  %36943 = vst [vmem:[#allocation10_spill] sm:$0xff] %v29077_v10  ;;  %v29090_v13 = vpack.c.bf16 %v1994_v9, %v1991_v8  ;;  %v2998_v14 = vand.u32 4294901760, %v2696_v11  ;;  %v29220_v35 = vsub.f32 %v29064_v5, %v1991_v8  ;;  %v36232_v8 = vand.u32 4294901760, %v29210_v31 }
 0x167   : > { %26039 = vmatpush3.bf16.msra.mxu0 %v29077_v10  ;;  %v29226_v38 = vsub.f32 %v2701_v1, %v3013_v16  ;;  %v3016_v1 = vand.u32 4294901760, %v2702_v54 }
 0x168   : > { %36944 = vst [vmem:[#allocation11_spill] sm:$0xff] %v29090_v13  ;;  %25945 = vmatprep.subr.bf16.mxu1 %v29090_v13  ;;  %v29114_v24 = vpack.c.bf16 %v3001_v15, %v2998_v14  ;;  %v29169_v49 = vsub.f32 %v2696_v11, %v2998_v14  ;;  %v2102_v11 = vsub.f32 %v29111_v23, %v36231_v33  ;;  %v2685_v14 = vld [vmem:[%s36227_s3 + $0x48] sm:$0xff]  ;;  %v3010_v15 = vand.u32 4294901760, %v2700_v0 }
 0x169   : > { %25947 = vmatpush3.bf16.msra.mxu1 %v29090_v13  ;;  %v2965_v19 = vand.u32 4294901760, %v2685_v14  ;;  %v2109_v12 = vsub.f32 %v29210_v31, %v36232_v8  ;;  %v2704_v8 = vld [vmem:[%s36227_s3 + $0xe0] sm:$0xff] }
 0x16a   : > { %36945 = vst [vmem:[#allocation12_spill] sm:$0xff] %v29114_v24  ;;  %26041 = vmatprep.subr.bf16.mxu0 %v29114_v24  ;;  %25949 = vmatprep.subr.bf16.mxu1 %v29138_v34  ;;  %v2103_v20 = vand.u32 4294901760, %v2102_v11  ;;  %v29222_v36 = vpack.c.bf16 %v3013_v16, %v3010_v15  ;;  %v29224_v37 = vsub.f32 %v2700_v0, %v3010_v15  ;;  %v36235_v0 = vand.u32 4294901760, %v29215_v32 }
 0x16b   : > { %26043 = vmatpush3.bf16.msra.mxu0 %v29124_v30  ;;  %v29228_v39 = vpack.c.bf16 %v2965_v19, %v2962_v17  ;;  %v29240_v5 = vsub.f32 %v2685_v14, %v2965_v19  ;;  %v2968_v11 = vand.u32 4294901760, %v2686_v42  ;;  %v2971_v14 = vand.u32 4294901760, %v2687_v43 }
 0x16c   : > { %26045 = vmatprep.subr.bf16.mxu0 %v29178_v53  ;;  %36950 = vst [vmem:[#allocation17_spill] sm:$0xff] %v29222_v36  ;;  %v29236_v57 = vpack.c.bf16 %v2103_v20, %v2096_v4  ;;  %v3019_v4 = vand.u32 4294901760, %v2703_v55  ;;  %v36240_v15 = vand.u32 4294901760, %v29220_v35  ;;  %v29261_v16 = vsub.f32 %v29069_v6, %v1994_v9 }
 0x16d   : > { %25951 = vmatpush3.bf16.msra.mxu1 %v29138_v34  ;;  %36951 = vst [vmem:[#allocation18_spill] sm:$0xff] %v29228_v39  ;;  %v2116_v17 = vsub.f32 %v29215_v32, %v36235_v0  ;;  %v29268_v20 = vsub.f32 %v2702_v54, %v3016_v1  ;;  %v2110_v6 = vand.u32 4294901760, %v2109_v12  ;;  %v29278_v9 = vpack.c.bf16 %v2971_v14, %v2968_v11  ;;  %v2688_v54 = vld [vmem:[%s36227_s3 + $0x60] sm:$0xff] }
 0x16e   : > { %36952 = vst [vmem:[#allocation19_spill] sm:$0xff] %v29236_v57  ;;  %25953 = vmatprep.subr.bf16.mxu1 %v29236_v57  ;;  %v29266_v19 = vpack.c.bf16 %v3019_v4, %v3016_v1  ;;  %v29270_v33 = vsub.f32 %v2703_v55, %v3019_v4  ;;  %v29280_v26 = vsub.f32 %v2686_v42, %v2968_v11  ;;  %v2689_v55 = vld [vmem:[%s36227_s3 + $0x68] sm:$0xff]  ;;  %v3022_v4 = vand.u32 4294901760, %v2704_v8  ;;  %v2660_v57 = vld [vmem:[%s29295_s19 + $0x80] sm:$0xff] }
 0x16f   : > { %26047 = vmatpush3.bf16.msra.mxu0 %v29184_v63  ;;  %36954 = vst [vmem:[#allocation21_spill] sm:$0xff] %v29278_v9  ;;  %v29282_v0 = vsub.f32 %v2687_v43, %v2971_v14  ;;  %v2117_v1 = vand.u32 4294901760, %v2116_v17  ;;  %v2123_v42 = vsub.f32 %v29220_v35, %v36240_v15  ;;  %v36249_v43 = vand.u32 4294901760, %v29261_v16  ;;  %v2707_v63 = vld [vmem:[%s36227_s3 + $0xf8] sm:$0xff] }
 0x170   : > { %26049 = vmatprep.subr.bf16.mxu0 %v29222_v36  ;;  %36953 = vst [vmem:[#allocation20_spill] sm:$0xff] %v29266_v19  ;;  %v3025_v11 = vand.u32 4294901760, %v2705_v27  ;;  %v2974_v12 = vand.u32 4294901760, %v2688_v54  ;;  %v2977_v14 = vand.u32 4294901760, %v2689_v55  ;;  %v29313_v36 = vsub.f32 %v2704_v8, %v3022_v4  ;;  %v2690_v8 = vld [vmem:[%s36227_s3 + $0x70] sm:$0xff] }
 0x171   : > { %v29308_v17 = vpack.c.bf16 %v2117_v1, %v2110_v6  ;;  %v2130_v15 = vsub.f32 %v29261_v16, %v36249_v43  ;;  %v2691_v1 = vld [vmem:[%s36227_s3 + $0x78] sm:$0xff]  ;;  %v2980_v24 = vand.u32 4294901760, %v2690_v8 }
 0x172   : > { %v29321_v53 = vpack.c.bf16 %v3025_v11, %v3022_v4  ;;  %v29327_v6 = vsub.f32 %v2688_v54, %v2974_v12  ;;  %v29336_v30 = vsub.f32 %v2689_v55, %v2977_v14  ;;  %v2983_v10 = vand.u32 4294901760, %v2691_v1 }
 0x173   : > { %26051 = vmatpush3.bf16.msra.mxu0 %v29228_v39  ;;  %v29306_v39 = vsub.f32 %v29104_v21, %v1997_v25  ;;  %36955 = vst [vmem:[#allocation22_spill] sm:$0xff] %v29308_v17  ;;  %v29323_v21 = vsub.f32 %v2705_v27, %v3025_v11  ;;  %v29325_v25 = vpack.c.bf16 %v2977_v14, %v2974_v12  ;;  %v2131_v43 = vand.u32 4294901760, %v2130_v15 }
 0x174   : > { %26053 = vmatprep.subr.bf16.mxu0 %v29266_v19  ;;  %v2124_v19 = vand.u32 4294901760, %v2123_v42  ;;  %36956 = vst [vmem:[#allocation23_spill] sm:$0xff] %v29321_v53  ;;  %v2645_v42 = vld [vmem:[%s29295_s19 + $0x8] sm:$0xff]  ;;  %v36958_v27 = vand.u32 4294901760, %v29109_v22  ;;  %v3031_v12 = vand.u32 4294901760, %v2707_v63  ;;  %v29360_v59 = vpack.c.bf16 %v2983_v10, %v2980_v24 }
 0x175   : > { %36957 = vst [vmem:[#allocation24_spill] sm:$0xff] %v29325_v25  ;;  %v36266_v4 = vand.u32 4294901760, %v29306_v39  ;;  %v29352_v14 = vand.u32 4294901760, %v2645_v42  ;;  %v29366_v56 = vsub.f32 %v2690_v8, %v2980_v24  ;;  %v36970_v8 = vand.u32 4294901760, %v29152_v40 }
 0x176   : > { %v29342_v54 = vsub.f32 %v29109_v22, %v36958_v27  ;;  %v29345_v7 = vpack.c.bf16 %v2131_v43, %v2124_v19  ;;  %36962 = vst [vmem:[#allocation28_spill] sm:$0xff] %v29360_v59  ;;  %v2644_v19 = vld [vmem:[%s29295_s19] sm:$0xff] }
 0x177   : > { %26055 = vmatpush3.bf16.msra.mxu0 %v29278_v9  ;;  %v2706_v9 = vld [vmem:[%s36227_s3 + $0xf0] sm:$0xff]  ;;  %v2137_v15 = vsub.f32 %v29306_v39, %v36266_v4  ;;  %36960 = vst [vmem:[#allocation26_spill] sm:$0xff] %v29352_v14  ;;  %36963 = vst [vmem:[#allocation29_spill] sm:$0xff] %v29366_v56  ;;  %v29368_v4 = vsub.f32 %v2691_v1, %v2983_v10  ;;  %v29381_v24 = vand.u32 4294901760, %v2644_v19 }
 0x178   : > { %26057 = vmatprep.subr.bf16.mxu0 %v29321_v53  ;;  %v3028_v11 = vand.u32 4294901760, %v2706_v9  ;;  %36959 = vst [vmem:[#allocation25_spill] sm:$0xff] %v29345_v7  ;;  %v36267_v55 = vand.u32 4294901760, %v29342_v54  ;;  %v29358_v53 = vsub.f32 %v2707_v63, %v3031_v12  ;;  %v29376_v63 = vsub.f32 %v2645_v42, %v29352_v14 }
 0x179   : > { %v2138_v43 = vand.u32 4294901760, %v2137_v15  ;;  %36966 = vst [vmem:[#allocation32_spill] sm:$0xff] %v29381_v24  ;;  %v29399_v10 = vsub.f32 %v2644_v19, %v29381_v24  ;;  %v3068_v1 = vsub.f32 %v29152_v40, %v36970_v8 }
 0x17a   : > { %v29354_v22 = vpack.c.bf16 %v3031_v12, %v3028_v11  ;;  %v29356_v27 = vsub.f32 %v2706_v9, %v3028_v11  ;;  %v29373_v9 = vpack.c.bf16 %v29111_v23, %v29098_v18  ;;  %36965 = vst [vmem:[#allocation31_spill] sm:$0xff] %v29376_v63  ;;  %v36272_v11 = vand.u32 4294901760, %v29119_v28 }
 0x17b   : > { %26059 = vmatpush3.bf16.msra.mxu0 %v29325_v25  ;;  %v2144_v25 = vsub.f32 %v29342_v54, %v36267_v55  ;;  %v36275_v12 = vand.u32 4294901760, %v29121_v29  ;;  %36969 = vst [vmem:[#allocation35_spill] sm:$0xff] %v29399_v10  ;;  %v36972_v34 = vand.u32 4294901760, %v29376_v63  ;;  %v3069_v19 = vand.u32 4294901760, %v3068_v1 }
 0x17c   : > { %36961 = vst [vmem:[#allocation27_spill] sm:$0xff] %v29354_v22  ;;  %26061 = vmatprep.subr.bf16.mxu0 %v29354_v22  ;;  %36964 = vst [vmem:[#allocation30_spill] sm:$0xff] %v29373_v9  ;;  %v3180_v42 = vsub.f32 %v29119_v28, %v36272_v11  ;;  %v36971_v22 = vand.u32 4294901760, %v29157_v41 }
 0x17d   : > { %v2145_v15 = vand.u32 4294901760, %v2144_v25  ;;  %v3187_v55 = vsub.f32 %v29121_v29, %v36275_v12  ;;  %v29394_v25 = vpack.c.bf16 %v29215_v32, %v29210_v31  ;;  %v3036_v12 = vsub.f32 %v29376_v63, %v36972_v34 }
 0x17e   : > { %v3075_v11 = vsub.f32 %v29157_v41, %v36971_v22  ;;  %v3181_v13 = vand.u32 4294901760, %v3180_v42  ;;  %v36290_v42 = vand.u32 4294901760, %v29169_v49 }
 0x17f   : > { %26063 = vmatpush3.bf16.msra.mxu0 %v29360_v59  ;;  %36967 = vst [vmem:[#allocation33_spill] sm:$0xff] %v29394_v25  ;;  %v29396_v59 = vpack.c.bf16 %v2145_v15, %v2138_v43  ;;  %v3188_v62 = vand.u32 4294901760, %v3187_v55  ;;  %v36288_v43 = vand.u32 4294901760, %v29160_v44  ;;  %v36285_v15 = vand.u32 4294901760, %v29399_v10 }
 0x180   : > { %v3076_v47 = vand.u32 4294901760, %v3075_v11  ;;  %v36287_v25 = vand.u32 4294901760, %v29162_v45  ;;  %v3037_v9 = vand.u32 4294901760, %v3036_v12  ;;  %v36292_v11 = vand.u32 4294901760, %v29166_v48 }
 0x181   : > { %36968 = vst [vmem:[#allocation34_spill] sm:$0xff] %v29396_v59  ;;  %v26064_v8 = vpack.c.bf16 %v3188_v62, %v3181_v13  ;;  %v3194_v22 = vsub.f32 %v29160_v44, %v36288_v43  ;;  %v36286_v59 = vand.u32 4294901760, %v29164_v46  ;;  %v3042_v34 = vsub.f32 %v29399_v10, %v36285_v15 }
 0x182   : > { %v26066_v55 = vpack.c.bf16 %v3076_v47, %v3069_v19  ;;  %v3201_v1 = vsub.f32 %v29162_v45, %v36287_v25  ;;  %3038 = vmatprep.mubr.f32.mxu0 %v3037_v9  ;;  %v29429_v12 = vpack.c.bf16 %v29261_v16, %v29220_v35  ;;  %v3089_v15 = vsub.f32 %v29166_v48, %v36292_v11 }
 0x183   : > { %26065 = vmatprep.subr.bf16.mxu0 %v26064_v8  ;;  %v3195_v62 = vand.u32 4294901760, %v3194_v22  ;;  %v3082_v13 = vsub.f32 %v29164_v46, %v36286_v59  ;;  %v3043_v47 = vand.u32 4294901760, %v3042_v34  ;;  %v36291_v9 = vand.u32 4294901760, %v29171_v50 }
 0x184   : > { %36973 = vst [vmem:[#allocation36_spill] sm:$0xff] %v29429_v12  ;;  %v3202_v19 = vand.u32 4294901760, %v3201_v1  ;;  %v3208_v22 = vsub.f32 %v29169_v49, %v36290_v42  ;;  %v36294_v59 = vand.u32 4294901760, %v29173_v51  ;;  %v36296_v25 = vand.u32 4294901760, %v29175_v52 }
 0x185   : > { %v3083_v8 = vand.u32 4294901760, %v3082_v13  ;;  %3044 = vmatmul.mubr.f32.vlgmr.msra.gmra.mrb[8].mxu0 %v3043_v47  ;;  %v3090_v12 = vand.u32 4294901760, %v3089_v15  ;;  %v3215_v34 = vsub.f32 %v29171_v50, %v36291_v9  ;;  %v29446_v1 = vpack.c.bf16 %v29342_v54, %v29306_v39 }
 0x186   : > { %v26068_v43 = vpack.c.bf16 %v3202_v19, %v3195_v62  ;;  %26067 = vmatpush3.bf16.msra.mxu0 %v26066_v55  ;;  %v3209_v13 = vand.u32 4294901760, %v3208_v22  ;;  %v3096_v42 = vsub.f32 %v29173_v51, %v36294_v59  ;;  %v3103_v47 = vsub.f32 %v29175_v52, %v36296_v25 }
 0x187   : > { %36974 = vst [vmem:[#allocation37_spill] sm:$0xff] %v29446_v1  ;;  %v36299_v15 = vand.u32 4294901760, %v29180_v60  ;;  %v26070_v62 = vpack.c.bf16 %v3090_v12, %v3083_v8  ;;  %v3216_v19 = vand.u32 4294901760, %v3215_v34  ;;  %v36297_v9 = vand.u32 4294901760, %v29182_v61 }
 0x188   : > { %26069 = vmatprep.subr.bf16.mxu0 %v26068_v43  ;;  %v36298_v11 = vand.u32 4294901760, %v29192_v2  ;;  %v3097_v1 = vand.u32 4294901760, %v3096_v42  ;;  %v3104_v55 = vand.u32 4294901760, %v3103_v47  ;;  %v36300_v59 = vand.u32 4294901760, %v29194_v3 }
 0x189   : > { %v3222_v22 = vsub.f32 %v29180_v60, %v36299_v15  ;;  %v26072_v7 = vpack.c.bf16 %v3216_v19, %v3209_v13  ;;  %v3229_v25 = vsub.f32 %v29182_v61, %v36297_v9  ;;  %v36301_v12 = vand.u32 4294901760, %v29224_v37 }
 0x18a   : > { %v3110_v43 = vsub.f32 %v29192_v2, %v36298_v11  ;;  %26071 = vmatpush3.bf16.msra.mxu0 %v26070_v62  ;;  %v26074_v42 = vpack.c.bf16 %v3104_v55, %v3097_v1  ;;  %v3117_v34 = vsub.f32 %v29194_v3, %v36300_v59  ;;  %v36302_v47 = vand.u32 4294901760, %v29226_v38 }
 0x18b   : > { %v3223_v8 = vand.u32 4294901760, %v3222_v22  ;;  %26073 = vmatprep.subr.bf16.mxu0 %v26072_v7  ;;  %v3230_v13 = vand.u32 4294901760, %v3229_v25  ;;  %v3236_v9 = vsub.f32 %v29224_v37, %v36301_v12  ;;  %v36303_v11 = vand.u32 4294901760, %v29238_v58 }
 0x18c   : > { %v3111_v19 = vand.u32 4294901760, %v3110_v43  ;;  %v3118_v15 = vand.u32 4294901760, %v3117_v34  ;;  %v3243_v1 = vsub.f32 %v29226_v38, %v36302_v47  ;;  %v36304_v62 = vand.u32 4294901760, %v29240_v5 }
 0x18d   : > { %v36306_v55 = vand.u32 4294901760, %v29268_v20  ;;  %v26076_v22 = vpack.c.bf16 %v3230_v13, %v3223_v8  ;;  %v3237_v59 = vand.u32 4294901760, %v3236_v9  ;;  %v3124_v7 = vsub.f32 %v29238_v58, %v36303_v11 }
 0x18e   : > { %v36305_v25 = vand.u32 4294901760, %v29270_v33  ;;  %26075 = vmatpush3.bf16.msra.mxu0 %v26074_v42  ;;  %v26078_v43 = vpack.c.bf16 %v3118_v15, %v3111_v19  ;;  %v3244_v12 = vand.u32 4294901760, %v3243_v1  ;;  %v3131_v34 = vsub.f32 %v29240_v5, %v36304_v62 }
 0x18f   : > { %v3250_v47 = vsub.f32 %v29268_v20, %v36306_v55  ;;  %26077 = vmatprep.subr.bf16.mxu0 %v26076_v22  ;;  %v3125_v9 = vand.u32 4294901760, %v3124_v7  ;;  %v36308_v13 = vand.u32 4294901760, %v29280_v26  ;;  %v36309_v15 = vand.u32 4294901760, %v29282_v0  ;;  %v2661_v55 = vld [vmem:[%s29295_s19 + $0x88] sm:$0xff] }
 0x190   : > { %v3257_v8 = vsub.f32 %v29270_v33, %v36305_v25  ;;  %v26080_v42 = vpack.c.bf16 %v3244_v12, %v3237_v59  ;;  %v3132_v19 = vand.u32 4294901760, %v3131_v34  ;;  %v36314_v11 = vand.u32 4294901760, %v29313_v36 }
 0x191   : > { %v3251_v1 = vand.u32 4294901760, %v3250_v47  ;;  %v3138_v22 = vsub.f32 %v29280_v26, %v36308_v13  ;;  %v3145_v7 = vsub.f32 %v29282_v0, %v36309_v15  ;;  %v36313_v25 = vand.u32 4294901760, %v29323_v21 }
 0x192   : > { %v3258_v62 = vand.u32 4294901760, %v3257_v8  ;;  %26079 = vmatpush3.bf16.msra.mxu0 %v26078_v43  ;;  %v26082_v17 = vpack.c.bf16 %v3132_v19, %v3125_v9  ;;  %v3264_v59 = vsub.f32 %v29313_v36, %v36314_v11  ;;  %v36315_v12 = vand.u32 4294901760, %v29327_v6 }
 0x193   : > { %v36316_v47 = vand.u32 4294901760, %v29336_v30  ;;  %26081 = vmatprep.subr.bf16.mxu0 %v26080_v42  ;;  %v3139_v8 = vand.u32 4294901760, %v3138_v22  ;;  %v3146_v13 = vand.u32 4294901760, %v3145_v7  ;;  %v3271_v15 = vsub.f32 %v29323_v21, %v36313_v25 }
 0x194   : > { %v26084_v34 = vpack.c.bf16 %v3258_v62, %v3251_v1  ;;  %v3265_v10 = vand.u32 4294901760, %v3264_v59  ;;  %v3152_v43 = vsub.f32 %v29327_v6, %v36315_v12  ;;  %v29520_v19 = vand.u32 4294901760, %v2661_v55 }
 0x195   : > { %v3159_v9 = vsub.f32 %v29336_v30, %v36316_v47  ;;  %v26086_v42 = vpack.c.bf16 %v3146_v13, %v3139_v8  ;;  %v3272_v62 = vand.u32 4294901760, %v3271_v15  ;;  %v36318_v1 = vand.u32 4294901760, %v29356_v27 }
 0x196   : > { %36975 = vst [vmem:[#allocation38_spill] sm:$0xff] %v29520_v19  ;;  %v36317_v22 = vand.u32 4294901760, %v29358_v53  ;;  %26083 = vmatpush3.bf16.msra.mxu0 %v26082_v17  ;;  %v3153_v7 = vand.u32 4294901760, %v3152_v43  ;;  %v29525_v59 = vsub.f32 %v2661_v55, %v29520_v19  ;;  %v29527_v11 = vand.u32 4294901760, %v2660_v57 }
 0x197   : > { %v3160_v25 = vand.u32 4294901760, %v3159_v9  ;;  %26085 = vmatprep.subr.bf16.mxu0 %v26084_v34  ;;  %v26088_v12 = vpack.c.bf16 %v3272_v62, %v3265_v10  ;;  %v3278_v47 = vsub.f32 %v29356_v27, %v36318_v1  ;;  %v36319_v15 = vand.u32 4294901760, %v29366_v56 }
 0x198   : > { %36976 = vst [vmem:[#allocation39_spill] sm:$0xff] %v29525_v59  ;;  %36977 = vst [vmem:[#allocation40_spill] sm:$0xff] %v29527_v11  ;;  %v3285_v13 = vsub.f32 %v29358_v53, %v36317_v22  ;;  %v36322_v17 = vand.u32 4294901760, %v29525_v59  ;;  %v29538_v8 = vsub.f32 %v2660_v57, %v29527_v11  ;;  %v36979_v9 = vand.u32 4294901760, %v29098_v18 }
 0x199   : > { %v3279_v43 = vand.u32 4294901760, %v3278_v47  ;;  %v3166_v10 = vsub.f32 %v29366_v56, %v36319_v15  ;;  %v36980_v62 = vand.u32 4294901760, %v29111_v23  ;;  %v26090_v1 = vpack.c.bf16 %v3160_v25, %v3153_v7 }
 0x19a   : > { %36978 = vst [vmem:[#allocation41_spill] sm:$0xff] %v29538_v8  ;;  %v3286_v34 = vand.u32 4294901760, %v3285_v13  ;;  %26087 = vmatpush3.bf16.msra.mxu0 %v26086_v42  ;;  %v3051_v57 = vsub.f32 %v29525_v59, %v36322_v17  ;;  %v36323_v55 = vand.u32 4294901760, %v29538_v8  ;;  %v36982_v47 = vand.u32 4294901760, %v29368_v4 }
 0x19b   : > { %v29548_v22 = vpack.c.bf16 %v36980_v62, %v36979_v9  ;;  %26089 = vmatprep.subr.bf16.mxu0 %v26088_v12  ;;  %v3167_v56 = vand.u32 4294901760, %v3166_v10  ;;  %v36983_v25 = vand.u32 4294901760, %v29210_v31  ;;  %v36984_v7 = vand.u32 4294901760, %v29215_v32 }
 0x19c   : > { %v3173_v13 = vsub.f32 %v29368_v4, %v36982_v47  ;;  %v26092_v15 = vpack.c.bf16 %v3286_v34, %v3279_v43  ;;  %v3052_v18 = vand.u32 4294901760, %v3051_v57  ;;  %v3057_v23 = vsub.f32 %v29538_v8, %v36323_v55  ;;  %v2717_v55 = vld [vmem:[%s36227_s3 + $0x148] sm:$0xff] }
 0x19d   : > { %36981 = vst [vmem:[#allocation42_spill] sm:$0xff] %v29548_v22  ;;  %v29564_v9 = vpack.c.bf16 %v36984_v7, %v36983_v25  ;;  %v26096_v12 = vpack.c.bf16 %v29121_v29, %v29119_v28  ;;  %v36986_v43 = vand.u32 4294901760, %v29220_v35  ;;  %v36987_v34 = vand.u32 4294901760, %v29261_v16 }
 0x19e   : > { %v3174_v42 = vand.u32 4294901760, %v3173_v13  ;;  %26091 = vmatpush3.bf16.msra.mxu0 %v26090_v1  ;;  %3053 = vmatprep.mubr.f32.mxu0 %v3052_v18  ;;  %v3058_v62 = vand.u32 4294901760, %v3057_v23  ;;  %v26098_v31 = vpack.c.bf16 %v29157_v41, %v29152_v40  ;;  %v36989_v32 = vand.u32 4294901760, %v29306_v39  ;;  %v22644_v39 = vld [vmem:[%s36226_s2 + $0x30] ss:$0 sm:$0xff] }
 0x19f   : > { %36985 = vst [vmem:[#allocation43_spill] sm:$0xff] %v29564_v9  ;;  %26093 = vmatprep.subr.bf16.mxu0 %v26092_v15  ;;  %v29572_v10 = vpack.c.bf16 %v36987_v34, %v36986_v43  ;;  %v36990_v1 = vand.u32 4294901760, %v29342_v54  ;;  %v26102_v16 = vpack.c.bf16 %v29166_v48, %v29164_v46  ;;  %v26104_v15 = vpack.c.bf16 %v29171_v50, %v29169_v49 }
 0x1a0   : > { %v26094_v17 = vpack.c.bf16 %v3174_v42, %v3167_v56  ;;  %3059 = vmatmul.mubr.f32.gmra.mrb[10].mxu0 %v3058_v62  ;;  %v26100_v56 = vpack.c.bf16 %v29162_v45, %v29160_v44  ;;  %v26106_v54 = vpack.c.bf16 %v29175_v52, %v29173_v51  ;;  %v26110_v18 = vpack.c.bf16 %v29194_v3, %v29192_v2 }
 0x1a1   : > { %36988 = vst [vmem:[#allocation44_spill] sm:$0xff] %v29572_v10  ;;  %3289 = vmatprep.mubr.f32.mxu0 %v29352_v14  ;;  %v29583_v35 = vpack.c.bf16 %v36990_v1, %v36989_v32  ;;  %v26112_v23 = vpack.c.bf16 %v29226_v38, %v29224_v37  ;;  %v26114_v42 = vpack.c.bf16 %v29240_v5, %v29238_v58  ;;  %v36992_v43 = vand.u32 4294901760, %v29119_v28 }
 0x1a2   : > { %26095 = vmatpush3.bf16.msra.mxu0 %v26094_v17  ;;  %v26108_v17 = vpack.c.bf16 %v29182_v61, %v29180_v60  ;;  %v26116_v25 = vpack.c.bf16 %v29270_v33, %v29268_v20  ;;  %v26118_v7 = vpack.c.bf16 %v29282_v0, %v29280_v26  ;;  %v26120_v62 = vpack.c.bf16 %v29323_v21, %v29313_v36 }
 0x1a3   : > { %26097 = vmatprep.subr.bf16.mxu0 %v26096_v12  ;;  %36991 = vst [vmem:[#allocation45_spill] sm:$0xff] %v29583_v35  ;;  %v26122_v12 = vpack.c.bf16 %v29336_v30, %v29327_v6  ;;  %v36993_v34 = vand.u32 4294901760, %v29121_v29  ;;  %v36994_v32 = vand.u32 4294901760, %v29152_v40  ;;  %v36995_v1 = vand.u32 4294901760, %v29157_v41 }
 0x1a4   : > { %v36998_v28 = vand.u32 4294901760, %v29162_v45  ;;  %v36999_v29 = vand.u32 4294901760, %v29164_v46  ;;  %v37001_v40 = vand.u32 4294901760, %v29169_v49  ;;  %v37002_v41 = vand.u32 4294901760, %v29171_v50 }
 0x1a5   : > { %3291 = vmatmul.mubr.f32.vlgmr.msra.gmra.mrb[12].mxu0 %v29381_v24  ;;  %v37008_v49 = vand.u32 4294901760, %v29180_v60  ;;  %v37009_v50 = vand.u32 4294901760, %v29182_v61  ;;  %v37014_v60 = vand.u32 4294901760, %v29238_v58  ;;  %v37015_v61 = vand.u32 4294901760, %v29240_v5 }
 0x1a6   : > { %26099 = vmatpush3.bf16.msra.mxu0 %v26098_v31  ;;  %3296 = vmatprep.mubr.f32.mxu0 %v29520_v19  ;;  %v26160_v31 = vpack.c.bf16 %v36993_v34, %v36992_v43  ;;  %v37006_v43 = vld [vmem:[#allocation35_spill] sm:$0xff]  ;;  %v37021_v58 = vand.u32 4294901760, %v29323_v21  ;;  %v37022_v5 = vand.u32 4294901760, %v29327_v6  ;;  %v37027_v21 = vand.u32 4294901760, %v29368_v4  ;;  %v2725_v6 = vld [vmem:[%s36227_s3 + $0x188] sm:$0xff] }
 0x1a7   : > { %26101 = vmatprep.subr.bf16.mxu0 %v26100_v56  ;;  %v26124_v56 = vpack.c.bf16 %v29358_v53, %v29356_v27  ;;  %v26172_v34 = vpack.c.bf16 %v37009_v50, %v37008_v49 }
 0x1a9   : > { %3298 = vmatmul.mubr.f32.gmra.mrb[14].mxu0 %v29527_v11 }
 0x1aa   : > { %26103 = vmatpush3.bf16.msra.mxu0 %v26102_v16  ;;  %3433 = vmatprep.mubr.f32.mxu0 %v29376_v63  ;;  %v26162_v16 = vpack.c.bf16 %v36995_v1, %v36994_v32 }
 0x1ab   : > { %26105 = vmatprep.subr.bf16.mxu0 %v26104_v15  ;;  %v36996_v15 = vld [vmem:[#allocation29_spill] sm:$0xff] }
 0x1ae   : > { %26107 = vmatpush3.bf16.msra.mxu0 %v26106_v54  ;;  %v26126_v54 = vpack.c.bf16 %v29368_v4, %v36996_v15  ;;  %v2709_v4 = vld [vmem:[%s36227_s3 + $0x108] sm:$0xff] }
 0x1af   : > { %26109 = vmatprep.subr.bf16.mxu0 %v26108_v17  ;;  %v36997_v17 = vand.u32 4294901760, %v29160_v44  ;;  %v37004_v44 = vand.u32 4294901760, %v29175_v52  ;;  %v37011_v52 = vand.u32 4294901760, %v29194_v3  ;;  %v37017_v3 = vand.u32 4294901760, %v29270_v33  ;;  %v22645_v33 = vld [vmem:[%s36226_s2 + $0x50] ss:$0 sm:$0xff] }
 0x1b2   : > { %26111 = vmatpush3.bf16.msra.mxu0 %v26110_v18  ;;  %v37000_v18 = vand.u32 4294901760, %v29166_v48 }
 0x1b3   : > { %26113 = vmatprep.subr.bf16.mxu0 %v26112_v23 }
 0x1b4   : > { %v26166_v23 = vpack.c.bf16 %v37000_v18, %v36999_v29 }
 0x1b6   : > { %26115 = vmatpush3.bf16.msra.mxu0 %v26114_v42  ;;  %v26168_v42 = vpack.c.bf16 %v37002_v41, %v37001_v40  ;;  %v3859_v41 = vand.u32 4294901760, %v2709_v4 }
 0x1b7   : > { %26117 = vmatprep.subr.bf16.mxu0 %v26116_v25  ;;  %v37003_v25 = vand.u32 4294901760, %v29173_v51  ;;  %v37010_v51 = vand.u32 4294901760, %v29192_v2  ;;  %v37016_v2 = vand.u32 4294901760, %v29268_v20  ;;  %v37023_v20 = vand.u32 4294901760, %v29336_v30  ;;  %v2724_v30 = vld [vmem:[%s36227_s3 + $0x180] sm:$0xff] }
 0x1b8   : > { %v3904_v18 = vand.u32 4294901760, %v2724_v30 }
 0x1b9   : > { %v26180_v32 = vpack.c.bf16 %v37017_v3, %v37016_v2 }
 0x1ba   : > { %26119 = vmatpush3.bf16.msra.mxu0 %v26118_v7  ;;  %v26170_v7 = vpack.c.bf16 %v37004_v44, %v37003_v25 }
 0x1bb   : > { %26121 = vmatprep.subr.bf16.mxu0 %v26120_v62 }
 0x1be   : > { %26123 = vmatpush3.bf16.msra.mxu0 %v26122_v12 }
 0x1bf   : > { %26125 = vmatprep.subr.bf16.mxu0 %v26124_v56  ;;  %v26178_v56 = vpack.c.bf16 %v37015_v61, %v37014_v60 }
 0x1c2   : > { %26127 = vmatpush3.bf16.msra.mxu0 %v26126_v54 }
 0x1c3   : > { %26161 = vmatprep.subr.bf16.mxu0 %v26160_v31 }
 0x1c5   : > { %3436 = vmatmul.mubr.f32.vlgmr.msra.gmra.mrb[16].mxu0 %v37006_v43 }
 0x1c6   : > { %26163 = vmatpush3.bf16.msra.mxu0 %v26162_v16  ;;  %3442 = vmatprep.mubr.f32.mxu0 %v29525_v59  ;;  %v37020_v16 = vand.u32 4294901760, %v29313_v36  ;;  %v37026_v36 = vand.u32 4294901760, %v36996_v15  ;;  %v2723_v59 = vld [vmem:[%s36227_s3 + $0x178] sm:$0xff] }
 0x1c7   : > { %v3901_v63 = vand.u32 4294901760, %v2723_v59 }
 0x1c8   : > { %v26184_v54 = vpack.c.bf16 %v37021_v58, %v37020_v16  ;;  %v29733_v16 = vsub.f32 %v2709_v4, %v3859_v41  ;;  %v2728_v58 = vld [vmem:[%s36227_s3 + $0x1a0] sm:$0xff] }
 0x1c9   : > { %3445 = vmatmul.mubr.f32.gmra.mrb[18].mxu0 %v29538_v8  ;;  %v2722_v8 = vld [vmem:[%s36227_s3 + $0x170] sm:$0xff] }
 0x1ca   : > { %3730 = vmatprep.mubr.f32.mxu0 %v29352_v14  ;;  %v3898_v43 = vand.u32 4294901760, %v2722_v8 }
 0x209   : > { %v24998_v57 = vpop.f32.mrb[2].mxu0 }
 0x20a   : > { %v911_v47 = vadd.f32 %v24998_v57, %v22644_v39  ;;  %v900_v13 = vpop.f32.mrb[3].mxu0  ;;  %v26164_v57 = vpack.c.bf16 %v36998_v28, %v36997_v17  ;;  %v26186_v17 = vpack.c.bf16 %v37023_v20, %v37022_v5 }
 0x20b   : > { %v901_v45 = vadd.f32 %v22644_v39, %v900_v13  ;;  %v26174_v39 = vpack.c.bf16 %v37011_v52, %v37010_v51  ;;  %v37013_v13 = vand.u32 4294901760, %v29226_v38  ;;  %v37019_v38 = vand.u32 4294901760, %v29282_v0  ;;  %v2710_v52 = vld [vmem:[%s36227_s3 + $0x110] sm:$0xff] }
 0x20c   : > { %26165 = vmatprep.subr.bf16.mxu0 %v26164_v57  ;;  %v37025_v0 = vand.u32 4294901760, %v29358_v53  ;;  %v26190_v57 = vpack.c.bf16 %v37027_v21, %v37026_v36  ;;  %v2708_v53 = vld [vmem:[%s36227_s3 + $0x100] sm:$0xff]  ;;  %v3862_v61 = vand.u32 4294901760, %v2710_v52 }
 0x20d   : > { %26167 = vmatpush3.bf16.msra.mxu0 %v26166_v23  ;;  %v3856_v40 = vand.u32 4294901760, %v2708_v53 }
 0x20e   : > { %26169 = vmatprep.subr.bf16.mxu0 %v26168_v42 }
 0x211   : > { %26171 = vmatpush3.bf16.msra.mxu0 %v26170_v7  ;;  %v29707_v7 = vsub.f32 %v2724_v30, %v3904_v18  ;;  %v2713_v30 = vld [vmem:[%s36227_s3 + $0x128] sm:$0xff] }
 0x212   : > { %26173 = vmatprep.subr.bf16.mxu0 %v26172_v34  ;;  %v29717_v34 = vpack.c.bf16 %v3859_v41, %v3856_v40 }
 0x213   : > { %v37051_v35 = vand.u32 4294901760, %v29707_v7 }
 0x214   : > { %37029 = vst [vmem:[#allocation48_spill] sm:$0xff] %v29717_v34 }
 0x215   : > { %26175 = vmatpush3.bf16.msra.mxu0 %v26174_v39  ;;  %v2711_v39 = vld [vmem:[%s36227_s3 + $0x118] sm:$0xff] }
 0x221   : > { %v25053_v62 = vpop.f32.mrb[0].mxu1 }
 0x222   : > { %v29642_v12 = vadd.f32 %v25053_v62, %v911_v47  ;;  %v1343_v46 = vpop.f32.mrb[1].mxu1  ;;  %v37012_v47 = vand.u32 4294901760, %v29224_v37  ;;  %v37018_v37 = vand.u32 4294901760, %v29280_v26  ;;  %v37024_v26 = vand.u32 4294901760, %v29356_v27  ;;  %v2727_v62 = vld [vmem:[%s36227_s3 + $0x198] sm:$0xff] }
 0x223   : > { %v29645_v48 = vadd.f32 %v1343_v46, %v901_v45  ;;  %v3907_v27 = vand.u32 4294901760, %v2725_v6  ;;  %v2726_v45 = vld [vmem:[%s36227_s3 + $0x190] sm:$0xff]  ;;  %v3913_v60 = vand.u32 4294901760, %v2727_v62 }
 0x224   : > { %37005 = vst [vmem:[#allocation29_spill] sm:$0xff] %v29642_v12  ;;  %v26176_v31 = vpack.c.bf16 %v37013_v13, %v37012_v47  ;;  %v26182_v1 = vpack.c.bf16 %v37019_v38, %v37018_v37  ;;  %v26188_v28 = vpack.c.bf16 %v37025_v0, %v37024_v26  ;;  %v3910_v51 = vand.u32 4294901760, %v2726_v45  ;;  %v2712_v26 = vld [vmem:[%s36227_s3 + $0x120] sm:$0xff] }
 0x225   : > { %37007 = vst [vmem:[#allocation46_spill] sm:$0xff] %v29645_v48  ;;  %v29705_v44 = vpack.c.bf16 %v3907_v27, %v3904_v18  ;;  %v29715_v50 = vsub.f32 %v2725_v6, %v3907_v27  ;;  %v29755_v36 = vsub.f32 %v2727_v62, %v3913_v60  ;;  %v3916_v27 = vand.u32 4294901760, %v2728_v58 }
 0x226   : > { %26177 = vmatprep.subr.bf16.mxu0 %v26176_v31  ;;  %v29741_v20 = vpack.c.bf16 %v3913_v60, %v3910_v51  ;;  %v3883_v12 = vand.u32 4294901760, %v2717_v55 }
 0x227   : > { %26179 = vmatpush3.bf16.msra.mxu0 %v26178_v56  ;;  %37028 = vst [vmem:[#allocation47_spill] sm:$0xff] %v29705_v44 }
 0x228   : > { %26181 = vmatprep.subr.bf16.mxu0 %v26180_v32  ;;  %v3865_v32 = vand.u32 4294901760, %v2711_v39  ;;  %37031 = vst [vmem:[#allocation50_spill] sm:$0xff] %v29741_v20 }
 0x22a   : > { %v29757_v21 = vpack.c.bf16 %v3865_v32, %v3862_v61 }
 0x22b   : > { %26183 = vmatpush3.bf16.msra.mxu0 %v26182_v1  ;;  %v29731_v1 = vsub.f32 %v2708_v53, %v3856_v40 }
 0x22c   : > { %26185 = vmatprep.subr.bf16.mxu0 %v26184_v54  ;;  %37032 = vst [vmem:[#allocation51_spill] sm:$0xff] %v29757_v21 }
 0x22d   : > { %v37054_v10 = vand.u32 4294901760, %v29731_v1 }
 0x22f   : > { %26187 = vmatpush3.bf16.msra.mxu0 %v26186_v17  ;;  %v29743_v17 = vsub.f32 %v2726_v45, %v3910_v51  ;;  %v2731_v51 = vld [vmem:[%s36227_s3 + $0x1b8] sm:$0xff] }
 0x230   : > { %26189 = vmatprep.subr.bf16.mxu0 %v26188_v28 }
 0x233   : > { %26191 = vmatpush3.bf16.msra.mxu0 %v26190_v57  ;;  %v2730_v57 = vld [vmem:[%s36227_s3 + $0x1b0] sm:$0xff] }
 0x234   : > { %26225 = vmatprep.subr.bf16.mxu0 %v29705_v44 }
 0x235   : > { %v25098_v29 = vpop.f32.mrb[4].mxu0 }
 0x236   : > { %v28222_v15 = vadd.f32 %v25098_v29, %v22645_v33  ;;  %v1926_v23 = vpop.f32.mrb[5].mxu0  ;;  %3732 = vmatmul.mubr.f32.vlgmr.msra.gmra.mrb[20].mxu0 %v29381_v24 }
 0x237   : > { %v28223_v42 = vadd.f32 %v22645_v33, %v1926_v23  ;;  %v3868_v23 = vand.u32 4294901760, %v2712_v26  ;;  %26227 = vmatpush3.bf16.msra.mxu0 %v29717_v34  ;;  %3737 = vmatprep.mubr.f32.mxu0 %v29520_v19  ;;  %v29876_v34 = vsub.f32 %v2717_v55, %v3883_v12  ;;  %v2646_v19 = vld [vmem:[%s29295_s19 + $0x10] sm:$0xff] }
 0x238   : > { %v1949_v25 = vmax.f32 %v28222_v15, 0.0  ;;  %26229 = vmatprep.subr.bf16.mxu0 %v29741_v20 }
 0x239   : > { %v1948_v46 = vmax.f32 %v28223_v42, 0.0  ;;  %v25101_v49 = vpop.f32.mrb[6].mxu0  ;;  %v29776_v42 = vsub.f32 %v2710_v52, %v3862_v61  ;;  %v2714_v52 = vld [vmem:[%s36227_s3 + $0x130] sm:$0xff] }
 0x23a   : > { %v1970_v47 = vsel %vm1965_vm2, %v1949_v25, 0  ;;  %v28224_v13 = vadd.f32 %v25101_v49, %v22645_v33  ;;  %v1938_v31 = vpop.f32.mrb[7].mxu0  ;;  %v3871_v25 = vand.u32 4294901760, %v2713_v30  ;;  %v29790_v49 = vsub.f32 %v2728_v58, %v3916_v27  ;;  %v2733_v58 = vld [vmem:[%s36227_s3 + $0x1c8] sm:$0xff]  ;;  %3739 = vmatmul.mubr.f32.gmra.mrb[22].mxu0 %v29527_v11 }
 0x23b   : > { %v29726_v56 = vand.u32 4294901760, %v1970_v47  ;;  %v1967_v2 = vsel %vm1965_vm2, %v1948_v46, 0  ;;  %v28225_v3 = vadd.f32 %v22645_v33, %v1938_v31  ;;  %v2729_v33 = vld [vmem:[%s36227_s3 + $0x1a8] sm:$0xff]  ;;  %v29788_v46 = vsub.f32 %v2711_v39, %v3865_v32  ;;  %26231 = vmatpush3.bf16.msra.mxu0 %v29757_v21 }
 0x23c   : > { %v29729_v37 = vand.u32 4294901760, %v1967_v2  ;;  %v1951_v38 = vmax.f32 %v28224_v13, 0.0  ;;  %v3919_v15 = vand.u32 4294901760, %v2729_v33  ;;  %v3922_v32 = vand.u32 4294901760, %v2730_v57 }
 0x23d   : > { %v29739_v54 = vsub.f32 %v1970_v47, %v29726_v56  ;;  %v1950_v5 = vmax.f32 %v28225_v3, 0.0  ;;  %v2715_v47 = vld [vmem:[%s36227_s3 + $0x138] sm:$0xff]  ;;  %v29810_v3 = vpack.c.bf16 %v3871_v25, %v3868_v23 }
 0x23e   : > { %37030 = vst [vmem:[#allocation49_spill] sm:$0xff] %v29729_v37  ;;  %v29752_v0 = vsub.f32 %v1967_v2, %v29729_v37  ;;  %v1976_v28 = vsel %vm1965_vm2, %v1951_v38, 0  ;;  %v29803_v39 = vpack.c.bf16 %v3919_v15, %v3916_v27  ;;  %v29805_v60 = vsub.f32 %v2729_v33, %v3919_v15  ;;  %v2732_v38 = vld [vmem:[%s36227_s3 + $0x1c0] sm:$0xff] }
 0x23f   : > { %v36326_v6 = vand.u32 4294901760, %v29739_v54  ;;  %v29763_v29 = vand.u32 4294901760, %v1976_v28  ;;  %v1973_v18 = vsel %vm1965_vm2, %v1950_v5, 0  ;;  %37034 = vst [vmem:[#allocation53_spill] sm:$0xff] %v29810_v3  ;;  %v3925_v33 = vand.u32 4294901760, %v2731_v51 }
 0x240   : > { %v29766_v53 = vand.u32 4294901760, %v1973_v18  ;;  %v36327_v4 = vand.u32 4294901760, %v29752_v0  ;;  %37033 = vst [vmem:[#allocation52_spill] sm:$0xff] %v29803_v39  ;;  %v29824_v15 = vsub.f32 %v2712_v26, %v3868_v23  ;;  %v3928_v26 = vand.u32 4294901760, %v2732_v38  ;;  %26233 = vmatprep.subr.bf16.mxu0 %v29803_v39 }
 0x241   : > { %v29771_v40 = vsub.f32 %v1976_v28, %v29763_v29  ;;  %v2064_v41 = vsub.f32 %v29739_v54, %v36326_v6  ;;  %v3874_v28 = vand.u32 4294901760, %v2714_v52  ;;  %v3931_v23 = vand.u32 4294901760, %v2733_v58  ;;  %26235 = vmatpush3.bf16.msra.mxu0 %v29810_v3 }
 0x242   : > { %v29782_v45 = vsub.f32 %v1973_v18, %v29766_v53  ;;  %v2054_v62 = vsub.f32 %v29752_v0, %v36327_v4  ;;  %v3877_v18 = vand.u32 4294901760, %v2715_v47  ;;  %v29842_v6 = vsub.f32 %v2731_v51, %v3925_v33  ;;  %v2718_v51 = vld [vmem:[%s36227_s3 + $0x150] sm:$0xff] }
 0x243   : > { %v2065_v13 = vand.u32 4294901760, %v2064_v41  ;;  %v36324_v31 = vand.u32 4294901760, %v29771_v40  ;;  %v29826_v41 = vsub.f32 %v2713_v30, %v3871_v25  ;;  %v37035_v30 = vld [vmem:[#allocation19_spill] sm:$0xff]  ;;  %v3886_v21 = vand.u32 4294901760, %v2718_v51 }
 0x244   : > { %v2055_v61 = vand.u32 4294901760, %v2054_v62  ;;  %v36325_v2 = vand.u32 4294901760, %v29782_v45  ;;  %v2716_v62 = vld [vmem:[%s36227_s3 + $0x140] sm:$0xff]  ;;  %v29844_v4 = vpack.c.bf16 %v3877_v18, %v3874_v28 }
 0x245   : > { %v2084_v5 = vsub.f32 %v29771_v40, %v36324_v31  ;;  %v29836_v31 = vsub.f32 %v2730_v57, %v3922_v32  ;;  %v2735_v57 = vld [vmem:[%s36227_s3 + $0x1d8] sm:$0xff] }
 0x246   : > { %25118 = vmatprep.mubr.f32.mxu1 %v2055_v61  ;;  %v2074_v27 = vsub.f32 %v29782_v45, %v36325_v2  ;;  %v29840_v2 = vpack.c.bf16 %v3925_v33, %v3922_v32  ;;  %37037 = vst [vmem:[#allocation54_spill] sm:$0xff] %v29844_v4  ;;  %v3880_v32 = vand.u32 4294901760, %v2716_v62  ;;  %v2719_v33 = vld [vmem:[%s36227_s3 + $0x158] sm:$0xff]  ;;  %v3937_v39 = vand.u32 4294901760, %v2735_v57 }
 0x247   : > { %25119 = vmatmul.mubr.f32.vlgmr.msra.gmra.mrb[2].mxu1 %v2065_v13  ;;  %v2085_v61 = vand.u32 4294901760, %v2084_v5  ;;  %v2734_v13 = vld [vmem:[%s36227_s3 + $0x1d0] sm:$0xff]  ;;  %v37038_v5 = vld [vmem:[#allocation22_spill] sm:$0xff]  ;;  %v3889_v20 = vand.u32 4294901760, %v2719_v33 }
 0x248   : > { %25955 = vmatpush3.bf16.msra.mxu1 %v37035_v30  ;;  %v2075_v25 = vand.u32 4294901760, %v2074_v27  ;;  %37036 = vst [vmem:[#allocation19_spill] sm:$0xff] %v29840_v2  ;;  %v29853_v30 = vsub.f32 %v2714_v52, %v3874_v28  ;;  %v29855_v27 = vsub.f32 %v2715_v47, %v3877_v18  ;;  %v3934_v48 = vand.u32 4294901760, %v2734_v13  ;;  %26237 = vmatprep.subr.bf16.mxu0 %v29840_v2 }
 0x249   : > { %25957 = vmatprep.subr.bf16.mxu1 %v37038_v5  ;;  %v29864_v52 = vpack.c.bf16 %v3931_v23, %v3928_v26  ;;  %v29866_v47 = vsub.f32 %v2732_v38, %v3928_v26  ;;  %v29868_v28 = vsub.f32 %v2733_v58, %v3931_v23  ;;  %v29872_v18 = vpack.c.bf16 %v3883_v12, %v3880_v32  ;;  %v2737_v38 = vld [vmem:[%s36227_s3 + $0x1e8] sm:$0xff]  ;;  %v37041_v58 = vld [vmem:[#allocation25_spill] sm:$0xff] }
 0x24a   : > { %25121 = vmatprep.mubr.f32.mxu1 %v2075_v25  ;;  %v29874_v25 = vsub.f32 %v2716_v62, %v3880_v32  ;;  %v29886_v26 = vpack.c.bf16 %v3937_v39, %v3934_v48  ;;  %v29888_v23 = vsub.f32 %v2734_v13, %v3934_v48  ;;  %v29890_v62 = vsub.f32 %v2735_v57, %v3937_v39  ;;  %v2720_v12 = vld [vmem:[%s36227_s3 + $0x160] sm:$0xff]  ;;  %v2647_v32 = vld [vmem:[%s29295_s19 + $0x18] sm:$0xff]  ;;  %v37047_v39 = vld [vmem:[#allocation34_spill] sm:$0xff] }
 0x24b   : > { %25122 = vmatmul.mubr.f32.gmra.mrb[4].mxu1 %v2085_v61  ;;  %37039 = vst [vmem:[#allocation22_spill] sm:$0xff] %v29864_v52  ;;  %37040 = vst [vmem:[#allocation55_spill] sm:$0xff] %v29872_v18  ;;  %v2736_v61 = vld [vmem:[%s36227_s3 + $0x1e0] sm:$0xff]  ;;  %v29899_v3 = vpack.c.bf16 %v3889_v20, %v3886_v21  ;;  %v3943_v44 = vand.u32 4294901760, %v2737_v38  ;;  %v3892_v2 = vand.u32 4294901760, %v2720_v12  ;;  %26239 = vmatpush3.bf16.msra.mxu0 %v29844_v4  ;;  %v29907_v57 = vand.u32 4294901760, %v2647_v32 }
 0x24c   : > { %25959 = vmatpush3.bf16.msra.mxu1 %v37038_v5  ;;  %25140 = vmatprep.mubr.f32.mxu1 %v29729_v37  ;;  %37042 = vst [vmem:[#allocation25_spill] sm:$0xff] %v29886_v26  ;;  %v3940_v55 = vand.u32 4294901760, %v2736_v61  ;;  %v2721_v5 = vld [vmem:[%s36227_s3 + $0x168] sm:$0xff]  ;;  %v29903_v48 = vsub.f32 %v2718_v51, %v3886_v21  ;;  %v29911_v24 = vsub.f32 %v2719_v33, %v3889_v20  ;;  %v2738_v4 = vld [vmem:[%s36227_s3 + $0x1f0] sm:$0xff]  ;;  %v2739_v21 = vld [vmem:[%s36227_s3 + $0x1f8] sm:$0xff]  ;;  %v29922_v13 = vand.u32 4294901760, %v2646_v19 }
 0x24d   : > { %25961 = vmatprep.subr.bf16.mxu1 %v37041_v58  ;;  %37043 = vst [vmem:[#allocation56_spill] sm:$0xff] %v29899_v3  ;;  %v3895_v11 = vand.u32 4294901760, %v2721_v5  ;;  %37044 = vst [vmem:[#allocation57_spill] sm:$0xff] %v29907_v57  ;;  %26241 = vmatprep.subr.bf16.mxu0 %v29864_v52  ;;  %v29927_v20 = vsub.f32 %v2737_v38, %v3943_v44  ;;  %v3946_v52 = vand.u32 4294901760, %v2738_v4  ;;  %v3949_v51 = vand.u32 4294901760, %v2739_v21 }
 0x24e   : > { %v29913_v14 = vpack.c.bf16 %v3943_v44, %v3940_v55  ;;  %37046 = vst [vmem:[#allocation59_spill] sm:$0xff] %v29922_v13  ;;  %v37052_v44 = vand.u32 4294901760, %v29715_v50  ;;  %v3986_v37 = vsub.f32 %v29731_v1, %v37054_v10  ;;  %v29964_v10 = vpack.c.bf16 %v3901_v63, %v3898_v43 }
 0x24f   : > { %37049 = vst [vmem:[#allocation60_spill] sm:$0xff] %v29927_v20  ;;  %v29929_v33 = vpack.c.bf16 %v3895_v11, %v3892_v2  ;;  %26243 = vmatpush3.bf16.msra.mxu0 %v29872_v18  ;;  %v29955_v18 = vsub.f32 %v2721_v5, %v3895_v11  ;;  %v29957_v22 = vpack.c.bf16 %v3949_v51, %v3946_v52  ;;  %v2663_v5 = vld [vmem:[%s29295_s19 + $0x98] sm:$0xff] }
 0x250   : > { %25963 = vmatpush3.bf16.msra.mxu1 %v37041_v58  ;;  %37045 = vst [vmem:[#allocation58_spill] sm:$0xff] %v29913_v14  ;;  %v29925_v58 = vsub.f32 %v2736_v61, %v3940_v55  ;;  %v4098_v61 = vsub.f32 %v29707_v7, %v37051_v35  ;;  %v4105_v38 = vsub.f32 %v29715_v50, %v37052_v44 }
 0x251   : > { %25965 = vmatprep.subr.bf16.mxu1 %v37047_v39  ;;  %37050 = vst [vmem:[#allocation61_spill] sm:$0xff] %v29929_v33  ;;  %v29945_v55 = vsub.f32 %v2647_v32, %v29907_v57  ;;  %26245 = vmatprep.subr.bf16.mxu0 %v29886_v26  ;;  %v29953_v35 = vsub.f32 %v2720_v12, %v3892_v2  ;;  %37055 = vst [vmem:[#allocation63_spill] sm:$0xff] %v29957_v22  ;;  %v37056_v32 = vld [vmem:[#allocation30_spill] sm:$0xff]  ;;  %v37058_v2 = vand.u32 4294901760, %v29733_v16 }
 0x252   : > { %37048 = vst [vmem:[#allocation34_spill] sm:$0xff] %v29925_v58  ;;  %v4099_v44 = vand.u32 4294901760, %v4098_v61  ;;  %v29960_v57 = vsub.f32 %v2738_v4, %v3946_v52  ;;  %v29962_v20 = vsub.f32 %v2739_v21, %v3949_v51  ;;  %37057 = vst [vmem:[#allocation30_spill] sm:$0xff] %v29964_v10  ;;  %v4106_v9 = vand.u32 4294901760, %v4105_v38 }
 0x253   : > { %37053 = vst [vmem:[#allocation62_spill] sm:$0xff] %v29945_v55  ;;  %v3987_v58 = vand.u32 4294901760, %v3986_v37  ;;  %v3993_v11 = vsub.f32 %v29733_v16, %v37058_v2  ;;  %v29971_v12 = vsub.f32 %v2646_v19, %v29922_v13  ;;  %26247 = vmatpush3.bf16.msra.mxu0 %v29899_v3  ;;  %v29976_v4 = vsub.f32 %v2722_v8, %v3898_v43  ;;  %v37061_v43 = vld [vmem:[#allocation33_spill] sm:$0xff] }
 0x254   : > { %25967 = vmatpush3.bf16.msra.mxu1 %v37047_v39  ;;  %v36365_v39 = vand.u32 4294901760, %v29945_v55  ;;  %v29978_v52 = vpack.c.bf16 %v4106_v9, %v4099_v44  ;;  %v36366_v21 = vand.u32 4294901760, %v29743_v17  ;;  %v36367_v37 = vand.u32 4294901760, %v29755_v36  ;;  %26249 = vmatprep.subr.bf16.mxu0 %v29913_v14  ;;  %v2662_v44 = vld [vmem:[%s29295_s19 + $0x90] sm:$0xff] }
 0x255   : > { %25969 = vmatprep.subr.bf16.mxu1 %v37056_v32  ;;  %37059 = vst [vmem:[#allocation64_spill] sm:$0xff] %v29971_v12  ;;  %v29984_v19 = vsub.f32 %v2723_v59, %v3901_v63  ;;  %v3994_v61 = vand.u32 4294901760, %v3993_v11  ;;  %v36370_v8 = vand.u32 4294901760, %v29971_v12  ;;  %v29998_v59 = vand.u32 4294901760, %v2663_v5 }
 0x256   : > { %37060 = vst [vmem:[#allocation65_spill] sm:$0xff] %v29978_v52  ;;  %v3954_v51 = vsub.f32 %v29945_v55, %v36365_v39  ;;  %v4112_v9 = vsub.f32 %v29743_v17, %v36366_v21  ;;  %v4119_v63 = vsub.f32 %v29755_v36, %v36367_v37  ;;  %v36371_v38 = vand.u32 4294901760, %v29776_v42 }
 0x257   : > { %25141 = vmatmul.mubr.f32.vlgmr.msra.gmra.mrb[2].mxu1 %v29726_v56  ;;  %37062 = vst [vmem:[#allocation33_spill] sm:$0xff] %v29998_v59  ;;  %v30002_v2 = vpack.c.bf16 %v3994_v61, %v3987_v58  ;;  %v3960_v11 = vsub.f32 %v29971_v12, %v36370_v8  ;;  %v36378_v39 = vand.u32 4294901760, %v29788_v46  ;;  %26251 = vmatpush3.bf16.msra.mxu0 %v29929_v33  ;;  %v36389_v52 = vand.u32 4294901760, %v29842_v6 }
 0x258   : > { %25143 = vmatprep.mubr.f32.mxu1 %v29766_v53  ;;  %25971 = vmatpush3.bf16.msra.mxu1 %v37056_v32  ;;  %v3955_v32 = vand.u32 4294901760, %v3954_v51  ;;  %v4113_v21 = vand.u32 4294901760, %v4112_v9  ;;  %v4120_v37 = vand.u32 4294901760, %v4119_v63  ;;  %v30011_v14 = vsub.f32 %v2663_v5, %v29998_v59  ;;  %v37066_v63 = vld [vmem:[#allocation36_spill] sm:$0xff] }
 0x259   : > { %25973 = vmatprep.subr.bf16.mxu1 %v37061_v43  ;;  %37063 = vst [vmem:[#allocation66_spill] sm:$0xff] %v30002_v2  ;;  %v4000_v58 = vsub.f32 %v29776_v42, %v36371_v38  ;;  %v26288_v51 = vpack.c.bf16 %v29715_v50, %v29707_v7  ;;  %v26290_v61 = vpack.c.bf16 %v29733_v16, %v29731_v1  ;;  %v30025_v5 = vand.u32 4294901760, %v2662_v44 }
 0x25a   : > { %37064 = vst [vmem:[#allocation67_spill] sm:$0xff] %v30011_v14  ;;  %v4007_v9 = vsub.f32 %v29788_v46, %v36378_v39  ;;  %26253 = vmatprep.subr.bf16.mxu0 %v29957_v22  ;;  %v3961_v8 = vand.u32 4294901760, %v3960_v11  ;;  %v36379_v38 = vand.u32 4294901760, %v30011_v14  ;;  %3956 = vmatprep.mubr.f32.mxu0 %v3955_v32  ;;  %v36382_v2 = vand.u32 4294901760, %v29790_v49 }
 0x25b   : > { %25144 = vmatmul.mubr.f32.gmra.mrb[4].mxu1 %v29763_v29  ;;  %37065 = vst [vmem:[#allocation68_spill] sm:$0xff] %v30025_v5  ;;  %v4001_v33 = vand.u32 4294901760, %v4000_v58  ;;  %v30033_v26 = vsub.f32 %v2662_v44, %v30025_v5  ;;  %v36383_v39 = vand.u32 4294901760, %v29805_v60  ;;  %26255 = vmatpush3.bf16.msra.mxu0 %v29964_v10  ;;  %v37070_v10 = vld [vmem:[#allocation37_spill] sm:$0xff]  ;;  %v26294_v32 = vpack.c.bf16 %v29788_v46, %v29776_v42 }
 0x25c   : > { %25975 = vmatpush3.bf16.msra.mxu1 %v37061_v43  ;;  %25162 = vmatprep.mubr.f32.mxu1 %v29752_v0  ;;  %v30029_v43 = vpack.c.bf16 %v4120_v37, %v4113_v21  ;;  %v4008_v3 = vand.u32 4294901760, %v4007_v9  ;;  %v3969_v11 = vsub.f32 %v30011_v14, %v36379_v38  ;;  %v26292_v21 = vpack.c.bf16 %v29755_v36, %v29743_v17 }
 0x25d   : > { %25977 = vmatprep.subr.bf16.mxu1 %v37066_v63  ;;  %37068 = vst [vmem:[#allocation69_spill] sm:$0xff] %v30033_v26  ;;  %26289 = vmatprep.subr.bf16.mxu0 %v26288_v51  ;;  %v36386_v58 = vand.u32 4294901760, %v30033_v26  ;;  %v4126_v9 = vsub.f32 %v29790_v49, %v36382_v2  ;;  %v4133_v38 = vsub.f32 %v29805_v60, %v36383_v39  ;;  %v37071_v51 = vand.u32 4294901760, %v29824_v15 }
 0x25e   : > { %37067 = vst [vmem:[#allocation36_spill] sm:$0xff] %v30029_v43  ;;  %v30046_v44 = vpack.c.bf16 %v4008_v3, %v4001_v33  ;;  %v3970_v37 = vand.u32 4294901760, %v3969_v11  ;;  %v37072_v33 = vand.u32 4294901760, %v29826_v41  ;;  %3962 = vmatmul.mubr.f32.vlgmr.msra.gmra.mrb[24].mxu0 %v3961_v8  ;;  %v36390_v11 = vand.u32 4294901760, %v29836_v31 }
 0x25f   : > { %v4014_v3 = vsub.f32 %v29824_v15, %v37071_v51  ;;  %v3975_v2 = vsub.f32 %v30033_v26, %v36386_v58  ;;  %v4127_v39 = vand.u32 4294901760, %v4126_v9  ;;  %v4134_v22 = vand.u32 4294901760, %v4133_v38  ;;  %26291 = vmatpush3.bf16.msra.mxu0 %v26290_v61  ;;  %v37074_v61 = vld [vmem:[#allocation5_spill] sm:$0xff] }
 0x260   : > { %25979 = vmatpush3.bf16.msra.mxu1 %v37066_v63  ;;  %37069 = vst [vmem:[#allocation70_spill] sm:$0xff] %v30046_v44  ;;  %v4021_v63 = vsub.f32 %v29826_v41, %v37072_v33  ;;  %3971 = vmatprep.mubr.f32.mxu0 %v3970_v37  ;;  %v36387_v51 = vand.u32 4294901760, %v29853_v30  ;;  %v4140_v38 = vsub.f32 %v29836_v31, %v36390_v11  ;;  %v36388_v9 = vand.u32 4294901760, %v29855_v27 }
 0x261   : > { %25981 = vmatprep.subr.bf16.mxu1 %v37070_v10  ;;  %v4015_v44 = vand.u32 4294901760, %v4014_v3  ;;  %v3976_v33 = vand.u32 4294901760, %v3975_v2  ;;  %26293 = vmatprep.subr.bf16.mxu0 %v26292_v21  ;;  %v30071_v8 = vpack.c.bf16 %v4134_v22, %v4127_v39  ;;  %v26296_v3 = vpack.c.bf16 %v29805_v60, %v29790_v49 }
 0x262   : > { %v4022_v43 = vand.u32 4294901760, %v4021_v63  ;;  %v4028_v22 = vsub.f32 %v29853_v30, %v36387_v51  ;;  %v26298_v39 = vpack.c.bf16 %v29826_v41, %v29824_v15  ;;  %v4141_v2 = vand.u32 4294901760, %v4140_v38 }
 0x263   : > { %37073 = vst [vmem:[#allocation37_spill] sm:$0xff] %v30071_v8  ;;  %3977 = vmatmul.mubr.f32.gmra.mrb[26].mxu0 %v3976_v33  ;;  %v36391_v21 = vand.u32 4294901760, %v29866_v47  ;;  %v36392_v58 = vand.u32 4294901760, %v29868_v28  ;;  %v36393_v51 = vand.u32 4294901760, %v29874_v25  ;;  %v26300_v38 = vpack.c.bf16 %v29842_v6, %v29836_v31 }
 0x264   : > { %25983 = vmatpush3.bf16.msra.mxu1 %v37070_v10  ;;  %v30078_v37 = vpack.c.bf16 %v4022_v43, %v4015_v44  ;;  %v4147_v10 = vsub.f32 %v29842_v6, %v36389_v52  ;;  %v4035_v43 = vsub.f32 %v29855_v27, %v36388_v9  ;;  %26295 = vmatpush3.bf16.msra.mxu0 %v26294_v32  ;;  %v4029_v63 = vand.u32 4294901760, %v4028_v22 }
 0x265   : > { %25985 = vmatprep.subr.bf16.mxu1 %v37074_v61  ;;  %v4154_v9 = vsub.f32 %v29866_v47, %v36391_v21  ;;  %26297 = vmatprep.subr.bf16.mxu0 %v26296_v3  ;;  %v4161_v52 = vsub.f32 %v29868_v28, %v36392_v58  ;;  %v36395_v11 = vand.u32 4294901760, %v29888_v23  ;;  %v26302_v21 = vpack.c.bf16 %v29855_v27, %v29853_v30 }
 0x266   : > { %37075 = vst [vmem:[#allocation5_spill] sm:$0xff] %v30078_v37  ;;  %v4148_v44 = vand.u32 4294901760, %v4147_v10  ;;  %v4036_v33 = vand.u32 4294901760, %v4035_v43  ;;  %v37076_v10 = vld [vmem:[#allocation8_spill] sm:$0xff]  ;;  %v4042_v43 = vsub.f32 %v29874_v25, %v36393_v51  ;;  %v37079_v3 = vand.u32 4294901760, %v29876_v34  ;;  %4351 = vmatprep.mubr.f32.mxu0 %v29945_v55 }
 0x267   : > { %25163 = vmatmul.mubr.f32.vlgmr.msra.gmra.mrb[2].mxu1 %v29739_v54  ;;  %v4155_v32 = vand.u32 4294901760, %v4154_v9  ;;  %v37080_v9 = vand.u32 4294901760, %v29752_v0  ;;  %v36396_v55 = vand.u32 4294901760, %v29903_v48  ;;  %v37083_v0 = vand.u32 4294901760, %v29890_v62 }
 0x268   : > { %25165 = vmatprep.mubr.f32.mxu1 %v29782_v45  ;;  %25987 = vmatpush3.bf16.msra.mxu1 %v37074_v61  ;;  %v30106_v22 = vpack.c.bf16 %v4148_v44, %v4141_v2  ;;  %v30115_v37 = vpack.c.bf16 %v4036_v33, %v4029_v63  ;;  %v4049_v2 = vsub.f32 %v29876_v34, %v37079_v3  ;;  %v4162_v44 = vand.u32 4294901760, %v4161_v52 }
 0x269   : > { %25989 = vmatprep.subr.bf16.mxu1 %v37076_v10  ;;  %26299 = vmatpush3.bf16.msra.mxu0 %v26298_v39  ;;  %v4043_v58 = vand.u32 4294901760, %v4042_v43  ;;  %v4168_v63 = vsub.f32 %v29888_v23, %v36395_v11  ;;  %v26304_v3 = vpack.c.bf16 %v29868_v28, %v29866_v47  ;;  %v36397_v52 = vand.u32 4294901760, %v29911_v24  ;;  %v37081_v39 = vld [vmem:[#allocation11_spill] sm:$0xff] }
 0x26a   : > { %37077 = vst [vmem:[#allocation8_spill] sm:$0xff] %v30106_v22  ;;  %37078 = vst [vmem:[#allocation71_spill] sm:$0xff] %v30115_v37  ;;  %v4050_v51 = vand.u32 4294901760, %v4049_v2  ;;  %26301 = vmatprep.subr.bf16.mxu0 %v26300_v38  ;;  %v30136_v43 = vpack.c.bf16 %v4162_v44, %v4155_v32  ;;  %v26306_v11 = vpack.c.bf16 %v29876_v34, %v29874_v25  ;;  %v37085_v32 = vld [vmem:[#allocation34_spill] sm:$0xff]  ;;  %v37086_v22 = vld [vmem:[#allocation60_spill] sm:$0xff]  ;;  %v36404_v8 = vand.u32 4294901760, %v29953_v35 }
 0x26b   : > { %25166 = vmatmul.mubr.f32.gmra.mrb[4].mxu1 %v29771_v40  ;;  %v4169_v33 = vand.u32 4294901760, %v4168_v63  ;;  %v4175_v2 = vsub.f32 %v29890_v62, %v37083_v0  ;;  %v4056_v37 = vsub.f32 %v29903_v48, %v36396_v55  ;;  %v4063_v38 = vsub.f32 %v29911_v24, %v36397_v52 }
 0x26c   : > { %25991 = vmatpush3.bf16.msra.mxu1 %v37076_v10  ;;  %25184 = vmatprep.mubr.f32.mxu1 %v37080_v9  ;;  %37082 = vst [vmem:[#allocation11_spill] sm:$0xff] %v30136_v43  ;;  %v30143_v9 = vpack.c.bf16 %v4050_v51, %v4043_v58  ;;  %v36398_v44 = vand.u32 4294901760, %v37085_v32  ;;  %v36401_v63 = vand.u32 4294901760, %v37086_v22  ;;  %v26308_v55 = vpack.c.bf16 %v29890_v62, %v29888_v23 }
 0x26d   : > { %25993 = vmatprep.subr.bf16.mxu1 %v37081_v39  ;;  %26303 = vmatpush3.bf16.msra.mxu0 %v26302_v21  ;;  %v4176_v43 = vand.u32 4294901760, %v4175_v2  ;;  %v4057_v58 = vand.u32 4294901760, %v4056_v37  ;;  %v4064_v51 = vand.u32 4294901760, %v4063_v38  ;;  %v37087_v21 = vld [vmem:[#allocation14_spill] sm:$0xff]  ;;  %v4070_v37 = vsub.f32 %v29953_v35, %v36404_v8 }
 0x26e   : > { %37084 = vst [vmem:[#allocation72_spill] sm:$0xff] %v30143_v9  ;;  %26305 = vmatprep.subr.bf16.mxu0 %v26304_v3  ;;  %v4182_v52 = vsub.f32 %v37085_v32, %v36398_v44  ;;  %v4189_v0 = vsub.f32 %v37086_v22, %v36401_v63  ;;  %v37089_v3 = vand.u32 4294901760, %v29955_v18  ;;  %v26310_v44 = vpack.c.bf16 %v29911_v24, %v29903_v48 }
 0x26f   : > { %v30162_v2 = vpack.c.bf16 %v4176_v43, %v4169_v33  ;;  %v30173_v9 = vpack.c.bf16 %v4064_v51, %v4057_v58  ;;  %v36405_v33 = vand.u32 4294901760, %v29960_v57  ;;  %v36406_v59 = vand.u32 4294901760, %v29962_v20 }
 0x270   : > { %25995 = vmatpush3.bf16.msra.mxu1 %v37081_v39  ;;  %v4077_v38 = vsub.f32 %v29955_v18, %v37089_v3  ;;  %v4183_v5 = vand.u32 4294901760, %v4182_v52  ;;  %v4190_v43 = vand.u32 4294901760, %v4189_v0  ;;  %v36407_v51 = vand.u32 4294901760, %v29976_v4  ;;  %v37091_v52 = vld [vmem:[#allocation42_spill] sm:$0xff] }
 0x271   : > { %25997 = vmatprep.subr.bf16.mxu1 %v37087_v21  ;;  %37088 = vst [vmem:[#allocation34_spill] sm:$0xff] %v30162_v2  ;;  %37090 = vst [vmem:[#allocation60_spill] sm:$0xff] %v30173_v9  ;;  %26307 = vmatpush3.bf16.msra.mxu0 %v26306_v11  ;;  %v4071_v2 = vand.u32 4294901760, %v4070_v37  ;;  %v4196_v58 = vsub.f32 %v29960_v57, %v36405_v33  ;;  %v4090_v3 = vand.u32 4294901760, %v29984_v19  ;;  %v2755_v9 = vld [vmem:[%s36227_s3 + $0x278] sm:$0xff] }
 0x272   : > { %v4078_v63 = vand.u32 4294901760, %v4077_v38  ;;  %26309 = vmatprep.subr.bf16.mxu0 %v26308_v55  ;;  %v30186_v8 = vpack.c.bf16 %v4190_v43, %v4183_v5  ;;  %v26312_v0 = vpack.c.bf16 %v37086_v22, %v37085_v32  ;;  %v4203_v55 = vsub.f32 %v29962_v20, %v36406_v59 }
 0x273   : > { %v4197_v37 = vand.u32 4294901760, %v4196_v58  ;;  %v4084_v38 = vsub.f32 %v29976_v4, %v36407_v51  ;;  %v4091_v33 = vsub.f32 %v29984_v19, %v4090_v3  ;;  %v37094_v5 = vand.u32 4294901760, %v29739_v54  ;;  %v37096_v51 = vld [vmem:[#allocation43_spill] sm:$0xff] }
 0x274   : > { %25999 = vmatpush3.bf16.msra.mxu1 %v37087_v21  ;;  %37092 = vst [vmem:[#allocation14_spill] sm:$0xff] %v30186_v8  ;;  %v30188_v11 = vpack.c.bf16 %v4078_v63, %v4071_v2  ;;  %v26314_v63 = vpack.c.bf16 %v29955_v18, %v29953_v35  ;;  %v4204_v2 = vand.u32 4294901760, %v4203_v55  ;;  %v37095_v43 = vand.u32 4294901760, %v29782_v45  ;;  %v2754_v8 = vld [vmem:[%s36227_s3 + $0x270] sm:$0xff] }
 0x275   : > { %26001 = vmatprep.subr.bf16.mxu1 %v37091_v52  ;;  %26311 = vmatpush3.bf16.msra.mxu0 %v26310_v44  ;;  %v4085_v58 = vand.u32 4294901760, %v4084_v38  ;;  %v4092_v59 = vand.u32 4294901760, %v4091_v33  ;;  %v26316_v54 = vpack.c.bf16 %v29962_v20, %v29960_v57  ;;  %v26318_v45 = vpack.c.bf16 %v29984_v19, %v29976_v4  ;;  %v37100_v33 = vld [vmem:[#allocation49_spill] sm:$0xff]  ;;  %v37142_v19 = vld [vmem:[#allocation12_spill] sm:$0xff] }
 0x276   : > { %37093 = vst [vmem:[#allocation42_spill] sm:$0xff] %v30188_v11  ;;  %26313 = vmatprep.subr.bf16.mxu0 %v26312_v0  ;;  %v30209_v11 = vpack.c.bf16 %v4204_v2, %v4197_v37  ;;  %v37102_v0 = vand.u32 4294901760, %v29715_v50  ;;  %v37103_v37 = vld [vmem:[#allocation44_spill] sm:$0xff]  ;;  %v37108_v2 = vld [vmem:[#allocation45_spill] sm:$0xff]  ;;  %v37109_v50 = vand.u32 4294901760, %v29776_v42  ;;  %v37113_v42 = vand.u32 4294901760, %v29824_v15 }
 0x277   : > { %25185 = vmatmul.mubr.f32.vlgmr.msra.gmra.mrb[2].mxu1 %v37094_v5  ;;  %v30213_v44 = vpack.c.bf16 %v4092_v59, %v4085_v58  ;;  %v37099_v5 = vand.u32 4294901760, %v29771_v40  ;;  %v37104_v40 = vand.u32 4294901760, %v29731_v1  ;;  %v37105_v59 = vand.u32 4294901760, %v29733_v16 }
 0x278   : > { %25187 = vmatprep.mubr.f32.mxu1 %v37095_v43  ;;  %26003 = vmatpush3.bf16.msra.mxu1 %v37091_v52  ;;  %37097 = vst [vmem:[#allocation43_spill] sm:$0xff] %v30209_v11  ;;  %v37101_v52 = vand.u32 4294901760, %v29707_v7  ;;  %v37110_v1 = vand.u32 4294901760, %v29788_v46  ;;  %v37114_v46 = vand.u32 4294901760, %v29826_v41  ;;  %v37118_v15 = vand.u32 4294901760, %v29853_v30 }
 0x279   : > { %26005 = vmatprep.subr.bf16.mxu1 %v37096_v51  ;;  %37098 = vst [vmem:[#allocation73_spill] sm:$0xff] %v30213_v44  ;;  %26315 = vmatpush3.bf16.msra.mxu0 %v26314_v63  ;;  %v26354_v38 = vpack.c.bf16 %v37105_v59, %v37104_v40  ;;  %v37107_v63 = vand.u32 4294901760, %v29755_v36  ;;  %v37112_v36 = vand.u32 4294901760, %v29805_v60  ;;  %v37116_v60 = vand.u32 4294901760, %v29842_v6  ;;  %v2740_v59 = vld [vmem:[%s36227_s3 + $0x200] sm:$0xff]  ;;  %v37167_v44 = vld [vmem:[#allocation24_spill] sm:$0xff] }
 0x27a   : > { %v26352_v55 = vpack.c.bf16 %v37102_v0, %v37101_v52  ;;  %26317 = vmatprep.subr.bf16.mxu0 %v26316_v54  ;;  %v26358_v16 = vpack.c.bf16 %v37110_v1, %v37109_v50  ;;  %v26362_v58 = vpack.c.bf16 %v37114_v46, %v37113_v42  ;;  %v37119_v41 = vand.u32 4294901760, %v29855_v27  ;;  %v37139_v1 = vld [vmem:[#allocation31_spill] sm:$0xff]  ;;  %v2761_v42 = vld [vmem:[%s36227_s3 + $0x2a8] sm:$0xff] }
 0x27b   : > { %25188 = vmatmul.mubr.f32.gmra.mrb[4].mxu1 %v37099_v5  ;;  %v37117_v5 = vld [vmem:[#allocation57_spill] sm:$0xff]  ;;  %v37122_v52 = vand.u32 4294901760, %v29874_v25  ;;  %v37123_v30 = vand.u32 4294901760, %v29876_v34  ;;  %v37124_v27 = vand.u32 4294901760, %v29888_v23  ;;  %v37128_v34 = vld [vmem:[#allocation6_spill] sm:$0xff]  ;;  %v37129_v25 = vand.u32 4294901760, %v37085_v32 }
 0x27c   : > { %26007 = vmatpush3.bf16.msra.mxu1 %v37096_v51  ;;  %25206 = vmatprep.mubr.f32.mxu1 %v37100_v33  ;;  %v37106_v51 = vand.u32 4294901760, %v29743_v17  ;;  %v37111_v17 = vand.u32 4294901760, %v29790_v49  ;;  %v37115_v49 = vand.u32 4294901760, %v29836_v31  ;;  %v37121_v31 = vand.u32 4294901760, %v29868_v28 }
 0x27d   : > { %26009 = vmatprep.subr.bf16.mxu1 %v37103_v37  ;;  %26319 = vmatpush3.bf16.msra.mxu0 %v26318_v45  ;;  %v26366_v45 = vpack.c.bf16 %v37119_v41, %v37118_v15  ;;  %v26370_v0 = vpack.c.bf16 %v37123_v30, %v37122_v52  ;;  %v37126_v28 = vand.u32 4294901760, %v29903_v48  ;;  %v37130_v23 = vand.u32 4294901760, %v37086_v22  ;;  %v2757_v48 = vld [vmem:[%s36227_s3 + $0x288] sm:$0xff]  ;;  %v37133_v22 = vld [vmem:[#allocation7_spill] sm:$0xff]  ;;  %v37144_v15 = vld [vmem:[#allocation13_spill] sm:$0xff] }
 0x27e   : > { %26353 = vmatprep.subr.bf16.mxu0 %v26352_v55  ;;  %v26356_v7 = vpack.c.bf16 %v37107_v63, %v37106_v51  ;;  %v26360_v43 = vpack.c.bf16 %v37112_v36, %v37111_v17  ;;  %v26364_v54 = vpack.c.bf16 %v37116_v60, %v37115_v49  ;;  %v4825_v40 = vand.u32 4294901760, %v2757_v48  ;;  %v2758_v51 = vld [vmem:[%s36227_s3 + $0x290] sm:$0xff]  ;;  %v2759_v63 = vld [vmem:[%s36227_s3 + $0x298] sm:$0xff]  ;;  %v2744_v60 = vld [vmem:[%s36227_s3 + $0x220] sm:$0xff] }
 0x27f   : > { %v4828_v36 = vand.u32 4294901760, %v2758_v51  ;;  %v2762_v52 = vld [vmem:[%s36227_s3 + $0x2b0] sm:$0xff]  ;;  %v2763_v30 = vld [vmem:[%s36227_s3 + $0x2b8] sm:$0xff] }
 0x280   : > { %26011 = vmatpush3.bf16.msra.mxu1 %v37103_v37  ;;  %4354 = vmatmul.mubr.f32.vlgmr.msra.gmra.mrb[28].mxu0 %v29971_v12 }
 0x281   : > { %26013 = vmatprep.subr.bf16.mxu1 %v37108_v2  ;;  %26355 = vmatpush3.bf16.msra.mxu0 %v26354_v38  ;;  %v37134_v38 = vld [vmem:[#allocation9_spill] sm:$0xff] }
 0x282   : > { %4360 = vmatprep.mubr.f32.mxu0 %v30011_v14  ;;  %26357 = vmatprep.subr.bf16.mxu0 %v26356_v7  ;;  %v37137_v7 = vand.u32 4294901760, %v29976_v4  ;;  %v2743_v4 = vld [vmem:[%s36227_s3 + $0x218] sm:$0xff]  ;;  %v37160_v14 = vld [vmem:[#allocation21_spill] sm:$0xff] }
 0x283   : > { %v4783_v49 = vand.u32 4294901760, %v2743_v4 }
 0x284   : > { %26015 = vmatpush3.bf16.msra.mxu1 %v37108_v2  ;;  %4363 = vmatmul.mubr.f32.gmra.mrb[30].mxu0 %v30033_v26  ;;  %v26382_v2 = vpack.c.bf16 %v4090_v3, %v37137_v7  ;;  %v2760_v3 = vld [vmem:[%s36227_s3 + $0x2a0] sm:$0xff]  ;;  %v37152_v7 = vld [vmem:[#allocation68_spill] sm:$0xff] }
 0x285   : > { %26017 = vmatprep.subr.bf16.mxu1 %v37074_v61  ;;  %26359 = vmatpush3.bf16.msra.mxu0 %v26358_v16  ;;  %v37140_v16 = vand.u32 4294901760, %v37139_v1 }
 0x286   : > { %26361 = vmatprep.subr.bf16.mxu0 %v26360_v43  ;;  %4648 = vmatprep.mubr.f32.mxu0 %v37117_v5  ;;  %v4831_v43 = vand.u32 4294901760, %v2759_v63  ;;  %v4816_v5 = vand.u32 4294901760, %v2754_v8 }
 0x287   : > { %25207 = vmatmul.mubr.f32.vlgmr.msra.gmra.mrb[2].mxu1 %v29726_v56 }
 0x288   : > { %25209 = vmatprep.mubr.f32.mxu1 %v29766_v53  ;;  %26019 = vmatpush3.bf16.msra.mxu1 %v37074_v61  ;;  %v37120_v61 = vand.u32 4294901760, %v29866_v47  ;;  %v30357_v41 = vpack.c.bf16 %v4831_v43, %v4828_v36 }
 0x289   : > { %26021 = vmatprep.subr.bf16.mxu1 %v37076_v10  ;;  %26363 = vmatpush3.bf16.msra.mxu0 %v26362_v58 }
 0x28a   : > { %v26368_v6 = vpack.c.bf16 %v37121_v31, %v37120_v61  ;;  %26365 = vmatprep.subr.bf16.mxu0 %v26364_v54  ;;  %v2745_v54 = vld [vmem:[%s36227_s3 + $0x228] sm:$0xff]  ;;  %37145 = vst [vmem:[#allocation45_spill] sm:$0xff] %v30357_v41  ;;  %v4837_v61 = vand.u32 4294901760, %v2761_v42  ;;  %v37146_v31 = vld [vmem:[#allocation15_spill] sm:$0xff] }
 0x28b   : > { %25210 = vmatmul.mubr.f32.gmra.mrb[4].mxu1 %v29763_v29 }
 0x28c   : > { %26023 = vmatpush3.bf16.msra.mxu1 %v37076_v10  ;;  %25228 = vmatprep.mubr.f32.mxu1 %v37100_v33  ;;  %v37125_v10 = vand.u32 4294901760, %v29890_v62  ;;  %v37127_v33 = vand.u32 4294901760, %v29911_v24  ;;  %v2756_v62 = vld [vmem:[%s36227_s3 + $0x280] sm:$0xff]  ;;  %v37131_v24 = vand.u32 4294901760, %v29953_v35  ;;  %v37136_v35 = vand.u32 4294901760, %v29962_v20  ;;  %v37138_v20 = vld [vmem:[#allocation10_spill] sm:$0xff] }
 0x28d   : > { %26025 = vmatprep.subr.bf16.mxu1 %v37081_v39  ;;  %26367 = vmatpush3.bf16.msra.mxu0 %v26366_v45  ;;  %v4822_v32 = vand.u32 4294901760, %v2756_v62  ;;  %v4834_v45 = vand.u32 4294901760, %v2760_v3 }
 0x28e   : > { %26369 = vmatprep.subr.bf16.mxu0 %v26368_v6  ;;  %v26372_v47 = vpack.c.bf16 %v37125_v10, %v37124_v27  ;;  %v26374_v55 = vpack.c.bf16 %v37127_v33, %v37126_v28  ;;  %v4786_v10 = vand.u32 4294901760, %v2744_v60  ;;  %v2746_v28 = vld [vmem:[%s36227_s3 + $0x230] sm:$0xff]  ;;  %v2747_v33 = vld [vmem:[%s36227_s3 + $0x238] sm:$0xff] }
 0x28f   : > { %v30332_v17 = vpack.c.bf16 %v4825_v40, %v4822_v32  ;;  %v30360_v6 = vsub.f32 %v2756_v62, %v4822_v32  ;;  %v37149_v62 = vld [vmem:[#allocation16_spill] sm:$0xff]  ;;  %v2764_v32 = vld [vmem:[%s36227_s3 + $0x2c0] sm:$0xff] }
 0x290   : > { %26027 = vmatpush3.bf16.msra.mxu1 %v37081_v39  ;;  %v26376_v39 = vpack.c.bf16 %v37130_v23, %v37129_v25  ;;  %v37147_v25 = vld [vmem:[#allocation33_spill] sm:$0xff]  ;;  %v30383_v23 = vsub.f32 %v2758_v51, %v4828_v36  ;;  %v30417_v1 = vsub.f32 %v2744_v60, %v4786_v10  ;;  %v2767_v60 = vld [vmem:[%s36227_s3 + $0x2d8] sm:$0xff] }
 0x291   : > { %26029 = vmatprep.subr.bf16.mxu1 %v37087_v21  ;;  %26371 = vmatpush3.bf16.msra.mxu0 %v26370_v0  ;;  %37141 = vst [vmem:[#allocation49_spill] sm:$0xff] %v30332_v17  ;;  %v30369_v0 = vsub.f32 %v2757_v48, %v4825_v40  ;;  %v30389_v48 = vsub.f32 %v2759_v63, %v4831_v43  ;;  %v2765_v40 = vld [vmem:[%s36227_s3 + $0x2c8] sm:$0xff]  ;;  %v2748_v51 = vld [vmem:[%s36227_s3 + $0x240] sm:$0xff] }
 0x292   : > { %26373 = vmatprep.subr.bf16.mxu0 %v26372_v47  ;;  %v4789_v47 = vand.u32 4294901760, %v2745_v54  ;;  %v2749_v63 = vld [vmem:[%s36227_s3 + $0x248] sm:$0xff]  ;;  %v4849_v36 = vand.u32 4294901760, %v2765_v40  ;;  %v4798_v43 = vand.u32 4294901760, %v2748_v51 }
 0x294   : > { %26031 = vmatpush3.bf16.msra.mxu1 %v37087_v21  ;;  %v37132_v21 = vand.u32 4294901760, %v29955_v18  ;;  %v37135_v18 = vand.u32 4294901760, %v29960_v57  ;;  %v4774_v57 = vand.u32 4294901760, %v2740_v59 }
 0x295   : > { %26129 = vmatprep.subr.bf16.mxu1 %v37128_v34  ;;  %26375 = vmatpush3.bf16.msra.mxu0 %v26374_v55 }
 0x296   : > { %v26378_v37 = vpack.c.bf16 %v37132_v21, %v37131_v24  ;;  %26377 = vmatprep.subr.bf16.mxu0 %v26376_v39  ;;  %v30371_v27 = vsub.f32 %v2740_v59, %v4774_v57  ;;  %v30391_v24 = vpack.c.bf16 %v4837_v61, %v4834_v45  ;;  %v4840_v21 = vand.u32 4294901760, %v2762_v52  ;;  %v37151_v59 = vld [vmem:[#allocation17_spill] sm:$0xff] }
 0x297   : > { %25229 = vmatmul.mubr.f32.vlgmr.msra.gmra.mrb[2].mxu1 %v29726_v56  ;;  %v2741_v56 = vld [vmem:[%s36227_s3 + $0x208] sm:$0xff] }
 0x298   : > { %25231 = vmatprep.mubr.f32.mxu1 %v29766_v53  ;;  %26131 = vmatpush3.bf16.msra.mxu1 %v37133_v22  ;;  %v26380_v53 = vpack.c.bf16 %v37136_v35, %v37135_v18  ;;  %v4777_v50 = vand.u32 4294901760, %v2741_v56  ;;  %37150 = vst [vmem:[#allocation7_spill] sm:$0xff] %v30391_v24  ;;  %v30402_v18 = vsub.f32 %v2743_v4, %v4783_v49  ;;  %v4792_v35 = vand.u32 4294901760, %v2746_v28  ;;  %v37154_v4 = vld [vmem:[#allocation18_spill] sm:$0xff] }
 0x299   : > { %26133 = vmatprep.subr.bf16.mxu1 %v37134_v38  ;;  %26379 = vmatpush3.bf16.msra.mxu0 %v26378_v37  ;;  %v4843_v37 = vand.u32 4294901760, %v2763_v30 }
 0x29a   : > { %26381 = vmatprep.subr.bf16.mxu0 %v26380_v53  ;;  %v30347_v46 = vpack.c.bf16 %v4777_v50, %v4774_v57  ;;  %v30380_v55 = vsub.f32 %v2741_v56, %v4777_v50  ;;  %v4795_v53 = vand.u32 4294901760, %v2747_v33  ;;  %v30413_v57 = vsub.f32 %v2761_v42, %v4837_v61 }
 0x29b   : > { %25232 = vmatmul.mubr.f32.gmra.mrb[4].mxu1 %v29763_v29  ;;  %v2742_v29 = vld [vmem:[%s36227_s3 + $0x210] sm:$0xff]  ;;  %v30415_v50 = vpack.c.bf16 %v4789_v47, %v4786_v10  ;;  %v30426_v42 = vsub.f32 %v2762_v52, %v4840_v21  ;;  %v30435_v61 = vsub.f32 %v2763_v30, %v4843_v37 }
 0x29c   : > { %26135 = vmatpush3.bf16.msra.mxu1 %v37138_v20  ;;  %3549 = vmatprep.mubr.f32.mxu1 %v37140_v16  ;;  %37143 = vst [vmem:[#allocation44_spill] sm:$0xff] %v30347_v46  ;;  %v4780_v58 = vand.u32 4294901760, %v2742_v29  ;;  %v4846_v16 = vand.u32 4294901760, %v2764_v32  ;;  %v30437_v10 = vpack.c.bf16 %v4795_v53, %v4792_v35  ;;  %v2750_v52 = vld [vmem:[%s36227_s3 + $0x250] sm:$0xff] }
 0x29d   : > { %26137 = vmatprep.subr.bf16.mxu1 %v37142_v19  ;;  %26383 = vmatpush3.bf16.msra.mxu0 %v26382_v2  ;;  %v30411_v2 = vsub.f32 %v2760_v3, %v4834_v45  ;;  %37153 = vst [vmem:[#allocation9_spill] sm:$0xff] %v30415_v50  ;;  %v30424_v3 = vpack.c.bf16 %v4843_v37, %v4840_v21  ;;  %v37156_v45 = vld [vmem:[#allocation20_spill] sm:$0xff] }
 0x29e   : > { %26417 = vmatprep.subr.bf16.mxu0 %v30332_v17  ;;  %v30385_v39 = vpack.c.bf16 %v4783_v49, %v4780_v58  ;;  %v30400_v56 = vsub.f32 %v2742_v29, %v4780_v58  ;;  %v4801_v29 = vand.u32 4294901760, %v2749_v63  ;;  %v30422_v58 = vsub.f32 %v2745_v54, %v4789_v47  ;;  %v2766_v49 = vld [vmem:[%s36227_s3 + $0x2d0] sm:$0xff]  ;;  %37157 = vst [vmem:[#allocation31_spill] sm:$0xff] %v30437_v10  ;;  %v2751_v21 = vld [vmem:[%s36227_s3 + $0x258] sm:$0xff] }
 0x29f   : > { %37155 = vst [vmem:[#allocation10_spill] sm:$0xff] %v30424_v3  ;;  %v4852_v54 = vand.u32 4294901760, %v2766_v49  ;;  %v4855_v47 = vand.u32 4294901760, %v2767_v60  ;;  %v30450_v30 = vpack.c.bf16 %v4849_v36, %v4846_v16  ;;  %v30452_v37 = vsub.f32 %v2764_v32, %v4846_v16  ;;  %v2768_v32 = vld [vmem:[%s36227_s3 + $0x2e0] sm:$0xff] }
 0x2a0   : > { %26139 = vmatpush3.bf16.msra.mxu1 %v37144_v15  ;;  %4650 = vmatmul.mubr.f32.vlgmr.msra.gmra.mrb[32].mxu0 %v29922_v13  ;;  %37148 = vst [vmem:[#allocation6_spill] sm:$0xff] %v30385_v39  ;;  %v30454_v17 = vsub.f32 %v2765_v40, %v4849_v36  ;;  %v30456_v26 = vpack.c.bf16 %v4801_v29, %v4798_v43  ;;  %v2769_v40 = vld [vmem:[%s36227_s3 + $0x2e8] sm:$0xff] }
 0x2a1   : > { %26141 = vmatprep.subr.bf16.mxu1 %v37146_v31  ;;  %26419 = vmatpush3.bf16.msra.mxu0 %v30347_v46  ;;  %v4807_v46 = vand.u32 4294901760, %v2751_v21  ;;  %37158 = vst [vmem:[#allocation12_spill] sm:$0xff] %v30450_v30  ;;  %v30473_v16 = vsub.f32 %v2766_v49, %v4852_v54  ;;  %v30475_v36 = vsub.f32 %v2767_v60, %v4855_v47 }
 0x2a2   : > { %4655 = vmatprep.mubr.f32.mxu0 %v37147_v25  ;;  %26421 = vmatprep.subr.bf16.mxu0 %v30357_v41  ;;  %v4804_v41 = vand.u32 4294901760, %v2750_v52  ;;  %37159 = vst [vmem:[#allocation13_spill] sm:$0xff] %v30456_v26 }
 0x2a3   : > { %v30490_v60 = vsub.f32 %v2751_v21, %v4807_v46  ;;  %v4819_v21 = vand.u32 4294901760, %v2755_v9 }
 0x2a4   : > { %26143 = vmatpush3.bf16.msra.mxu1 %v37149_v62  ;;  %4657 = vmatmul.mubr.f32.gmra.mrb[34].mxu0 %v37152_v7  ;;  %v30486_v12 = vsub.f32 %v2750_v52, %v4804_v41  ;;  %v2770_v52 = vld [vmem:[%s36227_s3 + $0x2f0] sm:$0xff] }
 0x2a5   : > { %26145 = vmatprep.subr.bf16.mxu1 %v37151_v59  ;;  %26423 = vmatpush3.bf16.msra.mxu0 %v30385_v39  ;;  %v30447_v39 = vsub.f32 %v2747_v33, %v4795_v53  ;;  %v30462_v33 = vsub.f32 %v2749_v63, %v4801_v29  ;;  %v37162_v53 = vld [vmem:[#allocation23_spill] sm:$0xff]  ;;  %v4861_v63 = vand.u32 4294901760, %v2769_v40  ;;  %v2753_v29 = vld [vmem:[%s36227_s3 + $0x268] sm:$0xff]  ;;  %37165 = vst [vmem:[#allocation18_spill] sm:$0xff] %v30490_v60 }
 0x2a6   : > { %26425 = vmatprep.subr.bf16.mxu0 %v30391_v24  ;;  %v30445_v24 = vsub.f32 %v2746_v28, %v4792_v35  ;;  %v30460_v28 = vsub.f32 %v2748_v51, %v4798_v43  ;;  %v30464_v35 = vpack.c.bf16 %v4855_v47, %v4852_v54  ;;  %v4858_v51 = vand.u32 4294901760, %v2768_v32  ;;  %v2752_v43 = vld [vmem:[%s36227_s3 + $0x260] sm:$0xff]  ;;  %37164 = vst [vmem:[#allocation17_spill] sm:$0xff] %v30486_v12  ;;  %v37171_v47 = vld [vmem:[#allocation27_spill] sm:$0xff]  ;;  %v37178_v12 = vld [vmem:[#allocation28_spill] sm:$0xff] }
 0x2a7   : > { %v4810_v7 = vand.u32 4294901760, %v2752_v43  ;;  %v4813_v49 = vand.u32 4294901760, %v2753_v29  ;;  %v2648_v54 = vld [vmem:[%s29295_s19 + $0x20] sm:$0xff] }
 0x2a8   : > { %26147 = vmatpush3.bf16.msra.mxu1 %v37154_v4  ;;  %37161 = vst [vmem:[#allocation15_spill] sm:$0xff] %v30464_v35  ;;  %v30498_v11 = vpack.c.bf16 %v4861_v63, %v4858_v51  ;;  %v30509_v25 = vand.u32 4294901760, %v2648_v54 }
 0x2a9   : > { %26149 = vmatprep.subr.bf16.mxu1 %v37156_v45  ;;  %26427 = vmatpush3.bf16.msra.mxu0 %v30415_v50  ;;  %v30484_v50 = vpack.c.bf16 %v4807_v46, %v4804_v41  ;;  %v30500_v41 = vsub.f32 %v2768_v32, %v4858_v51  ;;  %v2771_v46 = vld [vmem:[%s36227_s3 + $0x2f8] sm:$0xff]  ;;  %v4864_v32 = vand.u32 4294901760, %v2770_v52 }
 0x2aa   : > { %26429 = vmatprep.subr.bf16.mxu0 %v30424_v3  ;;  %v2649_v3 = vld [vmem:[%s29295_s19 + $0x28] sm:$0xff]  ;;  %37168 = vst [vmem:[#allocation74_spill] sm:$0xff] %v30498_v11  ;;  %37170 = vst [vmem:[#allocation76_spill] sm:$0xff] %v30509_v25  ;;  %v4867_v51 = vand.u32 4294901760, %v2771_v46 }
 0x2ab   : > { %37163 = vst [vmem:[#allocation16_spill] sm:$0xff] %v30484_v50  ;;  %v30494_v13 = vand.u32 4294901760, %v2649_v3  ;;  %37169 = vst [vmem:[#allocation75_spill] sm:$0xff] %v30500_v41 }
 0x2ac   : > { %26151 = vmatpush3.bf16.msra.mxu1 %v37160_v14 }
 0x2ad   : > { %26153 = vmatprep.subr.bf16.mxu1 %v37162_v53  ;;  %26431 = vmatpush3.bf16.msra.mxu0 %v30437_v10  ;;  %37166 = vst [vmem:[#allocation20_spill] sm:$0xff] %v30494_v13  ;;  %v30512_v10 = vsub.f32 %v2769_v40, %v4861_v63  ;;  %v37175_v40 = vand.u32 4294901760, %v30369_v0  ;;  %v30532_v41 = vsub.f32 %v2649_v3, %v30494_v13  ;;  %v37177_v53 = vand.u32 4294901760, %v30371_v27 }
 0x2ae   : > { %26433 = vmatprep.subr.bf16.mxu0 %v30450_v30  ;;  %v30514_v30 = vpack.c.bf16 %v4813_v49, %v4810_v7  ;;  %v30547_v3 = vsub.f32 %v2771_v46, %v4867_v51 }
 0x2af   : > { %37172 = vst [vmem:[#allocation77_spill] sm:$0xff] %v30512_v10  ;;  %v5023_v63 = vsub.f32 %v30369_v0, %v37175_v40  ;;  %v30529_v10 = vsub.f32 %v2752_v43, %v4810_v7  ;;  %37176 = vst [vmem:[#allocation79_spill] sm:$0xff] %v30532_v41  ;;  %v4904_v60 = vsub.f32 %v30371_v27, %v37177_v53  ;;  %v36439_v14 = vand.u32 4294901760, %v30532_v41 }
 0x2b0   : > { %26155 = vmatpush3.bf16.msra.mxu1 %v37167_v44  ;;  %37173 = vst [vmem:[#allocation78_spill] sm:$0xff] %v30514_v30  ;;  %v37174_v44 = vand.u32 4294901760, %v30360_v6  ;;  %v30542_v40 = vpack.c.bf16 %v4867_v51, %v4864_v32  ;;  %v30544_v7 = vsub.f32 %v2770_v52, %v4864_v32  ;;  %v2665_v52 = vld [vmem:[%s29295_s19 + $0xa8] sm:$0xff]  ;;  %v30563_v32 = vsub.f32 %v2754_v8, %v4816_v5 }
 0x2b1   : > { %26157 = vmatprep.subr.bf16.mxu1 %v37171_v47  ;;  %26435 = vmatpush3.bf16.msra.mxu0 %v30456_v26  ;;  %v30549_v26 = vpack.c.bf16 %v4819_v21, %v4816_v5  ;;  %v5024_v53 = vand.u32 4294901760, %v5023_v63  ;;  %v4905_v13 = vand.u32 4294901760, %v4904_v60  ;;  %v36440_v60 = vand.u32 4294901760, %v30389_v48 }
 0x2b2   : > { %v5016_v47 = vsub.f32 %v30360_v6, %v37174_v44  ;;  %26437 = vmatprep.subr.bf16.mxu0 %v30464_v35  ;;  %v30540_v44 = vsub.f32 %v2753_v29, %v4813_v49  ;;  %37179 = vst [vmem:[#allocation80_spill] sm:$0xff] %v30542_v40  ;;  %v30556_v49 = vsub.f32 %v2648_v54, %v30509_v25  ;;  %v37186_v54 = vld [vmem:[#allocation39_spill] sm:$0xff]  ;;  %v37188_v8 = vand.u32 4294901760, %v30383_v23 }
 0x2b3   : > { %37180 = vst [vmem:[#allocation81_spill] sm:$0xff] %v30549_v26  ;;  %v37187_v63 = vand.u32 4294901760, %v37186_v54  ;;  %v30586_v54 = vand.u32 4294901760, %v2665_v52 }
 0x2b4   : > { %26159 = vmatpush3.bf16.msra.mxu1 %v37178_v12  ;;  %v5017_v43 = vand.u32 4294901760, %v5016_v47  ;;  %v37181_v12 = vand.u32 4294901760, %v30380_v55  ;;  %37182 = vst [vmem:[#allocation82_spill] sm:$0xff] %v30556_v49  ;;  %v30574_v47 = vsub.f32 %v2755_v9, %v4819_v21  ;;  %v5030_v5 = vsub.f32 %v30383_v23, %v37188_v8  ;;  %v37191_v8 = vld [vmem:[#allocation41_spill] sm:$0xff] }
 0x2b5   : > { %26193 = vmatprep.subr.bf16.mxu1 %v37128_v34  ;;  %v37183_v34 = vld [vmem:[#allocation35_spill] sm:$0xff]  ;;  %26439 = vmatpush3.bf16.msra.mxu0 %v30484_v50  ;;  %37189 = vst [vmem:[#allocation39_spill] sm:$0xff] %v30586_v54  ;;  %v36442_v9 = vand.u32 4294901760, %v30400_v56  ;;  %v37206_v50 = vld [vmem:[#allocation21_spill] sm:$0xff] }
 0x2b6   : > { %v4911_v29 = vsub.f32 %v30380_v55, %v37181_v12  ;;  %v37184_v46 = vand.u32 4294901760, %v37183_v34  ;;  %v30565_v51 = vpack.c.bf16 %v5024_v53, %v5017_v43  ;;  %v4872_v12 = vsub.f32 %v30532_v41, %v36439_v14  ;;  %v2664_v43 = vld [vmem:[%s29295_s19 + $0xa0] sm:$0xff]  ;;  %26441 = vmatprep.subr.bf16.mxu0 %v30498_v11 }
 0x2b7   : > { %v37192_v14 = vand.u32 4294901760, %v37191_v8  ;;  %v36449_v11 = vand.u32 4294901760, %v30413_v57 }
 0x2b8   : > { %3553 = vmatmul.mubr.f32.vlgmr.msra.gmra.mrb[6].mxu1 %v37184_v46  ;;  %37185 = vst [vmem:[#allocation35_spill] sm:$0xff] %v30565_v51  ;;  %v4912_v34 = vand.u32 4294901760, %v4911_v29  ;;  %v36441_v46 = vand.u32 4294901760, %v30556_v49  ;;  %v4873_v53 = vand.u32 4294901760, %v4872_v12 }
 0x2b9   : > { %26195 = vmatpush3.bf16.msra.mxu1 %v37133_v22  ;;  %3560 = vmatprep.mubr.f32.mxu1 %v37187_v63  ;;  %v5037_v22 = vsub.f32 %v30389_v48, %v36440_v60  ;;  %v5031_v63 = vand.u32 4294901760, %v5030_v5  ;;  %v30599_v60 = vsub.f32 %v2665_v52, %v30586_v54  ;;  %v37195_v5 = vld [vmem:[#allocation26_spill] sm:$0xff] }
 0x2ba   : > { %26197 = vmatprep.subr.bf16.mxu1 %v37134_v38  ;;  %v30589_v21 = vpack.c.bf16 %v4912_v34, %v4905_v13  ;;  %v4878_v29 = vsub.f32 %v30556_v49, %v36441_v46  ;;  %v36447_v38 = vand.u32 4294901760, %v30402_v18  ;;  %26443 = vmatpush3.bf16.msra.mxu0 %v30514_v30  ;;  %v4918_v13 = vsub.f32 %v30400_v56, %v36442_v9 }
 0x2bb   : > { %v5038_v12 = vand.u32 4294901760, %v5037_v22  ;;  %37193 = vst [vmem:[#allocation41_spill] sm:$0xff] %v30599_v60  ;;  %v30604_v34 = vand.u32 4294901760, %v2664_v43  ;;  %v26482_v22 = vpack.c.bf16 %v30380_v55, %v30371_v27  ;;  %26445 = vmatprep.subr.bf16.mxu0 %v30542_v40  ;;  %4874 = vmatprep.mubr.f32.mxu0 %v4873_v53  ;;  %v36450_v30 = vand.u32 4294901760, %v30411_v2 }
 0x2bc   : > { %37190 = vst [vmem:[#allocation83_spill] sm:$0xff] %v30589_v21  ;;  %3564 = vmatmul.mubr.f32.gmra.mrb[8].mxu1 %v37192_v14  ;;  %v4879_v46 = vand.u32 4294901760, %v4878_v29  ;;  %v26480_v14 = vpack.c.bf16 %v30369_v0, %v30360_v6  ;;  %v4925_v52 = vsub.f32 %v30402_v18, %v36447_v38  ;;  %v36456_v53 = vand.u32 4294901760, %v30422_v58  ;;  %v37308_v21 = vld [vmem:[#allocation61_spill] sm:$0xff] }
 0x2bd   : > { %37194 = vst [vmem:[#allocation84_spill] sm:$0xff] %v30604_v34  ;;  %26199 = vmatpush3.bf16.msra.mxu1 %v37138_v20  ;;  %3841 = vmatprep.mubr.f32.mxu1 %v37195_v5  ;;  %v30617_v8 = vpack.c.bf16 %v5038_v12, %v5031_v63  ;;  %v36448_v20 = vand.u32 4294901760, %v30599_v60  ;;  %v4919_v5 = vand.u32 4294901760, %v4918_v13  ;;  %v30621_v29 = vsub.f32 %v2664_v43, %v30604_v34 }
 0x2be   : > { %26201 = vmatprep.subr.bf16.mxu1 %v37142_v19  ;;  %v4926_v9 = vand.u32 4294901760, %v4925_v52  ;;  %26447 = vmatpush3.bf16.msra.mxu0 %v30549_v26  ;;  %v26484_v43 = vpack.c.bf16 %v30389_v48, %v30383_v23  ;;  %v5044_v13 = vsub.f32 %v30411_v2, %v36450_v30  ;;  %v5051_v52 = vsub.f32 %v30413_v57, %v36449_v11 }
 0x2bf   : > { %37196 = vst [vmem:[#allocation26_spill] sm:$0xff] %v30617_v8  ;;  %37197 = vst [vmem:[#allocation85_spill] sm:$0xff] %v30621_v29  ;;  %v4887_v19 = vsub.f32 %v30599_v60, %v36448_v20  ;;  %v36451_v63 = vand.u32 4294901760, %v30621_v29  ;;  %26481 = vmatprep.subr.bf16.mxu0 %v26480_v14  ;;  %v26486_v11 = vpack.c.bf16 %v30402_v18, %v30400_v56 }
 0x2c0   : > { %v30635_v12 = vpack.c.bf16 %v4926_v9, %v4919_v5  ;;  %v37199_v9 = vand.u32 4294901760, %v30417_v1  ;;  %v4939_v5 = vsub.f32 %v30422_v58, %v36456_v53  ;;  %v5045_v30 = vand.u32 4294901760, %v5044_v13 }
 0x2c1   : > { %26203 = vmatpush3.bf16.msra.mxu1 %v37144_v15  ;;  %v4888_v38 = vand.u32 4294901760, %v4887_v19  ;;  %v4893_v15 = vsub.f32 %v30621_v29, %v36451_v63  ;;  %4880 = vmatmul.mubr.f32.vlgmr.msra.gmra.mrb[36].mxu0 %v4879_v46  ;;  %v5052_v20 = vand.u32 4294901760, %v5051_v52  ;;  %v26488_v13 = vpack.c.bf16 %v30413_v57, %v30411_v2 }
 0x2c2   : > { %37198 = vst [vmem:[#allocation86_spill] sm:$0xff] %v30635_v12  ;;  %26205 = vmatprep.subr.bf16.mxu1 %v37146_v31  ;;  %v4932_v14 = vsub.f32 %v30417_v1, %v37199_v9  ;;  %v37200_v31 = vand.u32 4294901760, %v30426_v42  ;;  %26483 = vmatpush3.bf16.msra.mxu0 %v26482_v22  ;;  %v4940_v40 = vand.u32 4294901760, %v4939_v5  ;;  %v36461_v9 = vand.u32 4294901760, %v30435_v61 }
 0x2c3   : > { %4889 = vmatprep.mubr.f32.mxu0 %v4888_v38  ;;  %v4894_v63 = vand.u32 4294901760, %v4893_v15  ;;  %26485 = vmatprep.subr.bf16.mxu0 %v26484_v43  ;;  %v30661_v46 = vpack.c.bf16 %v5052_v20, %v5045_v30  ;;  %v36460_v52 = vand.u32 4294901760, %v30445_v24  ;;  %v36457_v53 = vand.u32 4294901760, %v30447_v39 }
 0x2c4   : > { %v5058_v19 = vsub.f32 %v30426_v42, %v37200_v31  ;;  %v4933_v26 = vand.u32 4294901760, %v4932_v14  ;;  %v26490_v22 = vpack.c.bf16 %v30422_v58, %v30417_v1  ;;  %v26492_v43 = vpack.c.bf16 %v30435_v61, %v30426_v42 }
 0x2c5   : > { %26207 = vmatpush3.bf16.msra.mxu1 %v37149_v62  ;;  %37201 = vst [vmem:[#allocation87_spill] sm:$0xff] %v30661_v46  ;;  %v5065_v62 = vsub.f32 %v30435_v61, %v36461_v9  ;;  %4895 = vmatmul.mubr.f32.gmra.mrb[38].mxu0 %v4894_v63  ;;  %v4946_v30 = vsub.f32 %v30445_v24, %v36460_v52  ;;  %v36464_v14 = vand.u32 4294901760, %v30460_v28  ;;  %v36466_v63 = vand.u32 4294901760, %v30462_v33  ;;  %v37205_v52 = vld [vmem:[#allocation17_spill] sm:$0xff] }
 0x2c6   : > { %26209 = vmatprep.subr.bf16.mxu1 %v37151_v59  ;;  %v30668_v38 = vpack.c.bf16 %v4940_v40, %v4933_v26  ;;  %v5059_v15 = vand.u32 4294901760, %v5058_v19  ;;  %v4953_v20 = vsub.f32 %v30447_v39, %v36457_v53  ;;  %v36458_v26 = vand.u32 4294901760, %v30452_v37  ;;  %26487 = vmatpush3.bf16.msra.mxu0 %v26486_v11 }
 0x2c7   : > { %v36459_v59 = vand.u32 4294901760, %v30454_v17  ;;  %v5066_v40 = vand.u32 4294901760, %v5065_v62  ;;  %5269 = vmatprep.mubr.f32.mxu0 %v30532_v41  ;;  %26489 = vmatprep.subr.bf16.mxu0 %v26488_v13  ;;  %v4947_v5 = vand.u32 4294901760, %v4946_v30  ;;  %v26494_v53 = vpack.c.bf16 %v30447_v39, %v30445_v24 }
 0x2c8   : > { %37202 = vst [vmem:[#allocation88_spill] sm:$0xff] %v30668_v38  ;;  %v4954_v31 = vand.u32 4294901760, %v4953_v20  ;;  %v5072_v19 = vsub.f32 %v30452_v37, %v36458_v26  ;;  %v4967_v13 = vsub.f32 %v30462_v33, %v36466_v63  ;;  %v36471_v9 = vand.u32 4294901760, %v37205_v52  ;;  %v37295_v38 = vld [vmem:[#allocation55_spill] sm:$0xff] }
 0x2c9   : > { %26211 = vmatpush3.bf16.msra.mxu1 %v37154_v4  ;;  %v5079_v11 = vsub.f32 %v30454_v17, %v36459_v59  ;;  %v30696_v62 = vpack.c.bf16 %v5066_v40, %v5059_v15  ;;  %v4960_v4 = vsub.f32 %v30460_v28, %v36464_v14  ;;  %v36465_v59 = vand.u32 4294901760, %v30473_v16 }
 0x2ca   : > { %26213 = vmatprep.subr.bf16.mxu1 %v37156_v45  ;;  %v30706_v30 = vpack.c.bf16 %v4954_v31, %v4947_v5  ;;  %v5073_v20 = vand.u32 4294901760, %v5072_v19  ;;  %26491 = vmatpush3.bf16.msra.mxu0 %v26490_v22  ;;  %v4968_v15 = vand.u32 4294901760, %v4967_v13  ;;  %v36470_v40 = vand.u32 4294901760, %v30475_v36  ;;  %v37208_v19 = vld [vmem:[#allocation18_spill] sm:$0xff] }
 0x2cb   : > { %37203 = vst [vmem:[#allocation89_spill] sm:$0xff] %v30696_v62  ;;  %v5080_v26 = vand.u32 4294901760, %v5079_v11  ;;  %v4961_v45 = vand.u32 4294901760, %v4960_v4  ;;  %26493 = vmatprep.subr.bf16.mxu0 %v26492_v43  ;;  %v26496_v5 = vpack.c.bf16 %v30454_v17, %v30452_v37  ;;  %v5086_v31 = vsub.f32 %v30473_v16, %v36465_v59  ;;  %v37209_v11 = vld [vmem:[#allocation23_spill] sm:$0xff]  ;;  %v37217_v62 = vld [vmem:[#allocation28_spill] sm:$0xff] }
 0x2cc   : > { %37204 = vst [vmem:[#allocation90_spill] sm:$0xff] %v30706_v30  ;;  %v36472_v22 = vand.u32 4294901760, %v37208_v19  ;;  %v26498_v13 = vpack.c.bf16 %v30462_v33, %v30460_v28  ;;  %v37211_v59 = vld [vmem:[#allocation75_spill] sm:$0xff]  ;;  %v36475_v41 = vand.u32 4294901760, %v30529_v10 }
 0x2cd   : > { %26215 = vmatpush3.bf16.msra.mxu1 %v37206_v50  ;;  %v30712_v14 = vpack.c.bf16 %v5080_v26, %v5073_v20  ;;  %v30721_v4 = vpack.c.bf16 %v4968_v15, %v4961_v45  ;;  %v5093_v50 = vsub.f32 %v30475_v36, %v36470_v40  ;;  %v4974_v26 = vsub.f32 %v37205_v52, %v36471_v9  ;;  %v37212_v45 = vld [vmem:[#allocation77_spill] sm:$0xff] }
 0x2ce   : > { %26217 = vmatprep.subr.bf16.mxu1 %v37209_v11  ;;  %v5087_v43 = vand.u32 4294901760, %v5086_v31  ;;  %v4981_v20 = vsub.f32 %v37208_v19, %v36472_v22  ;;  %v36473_v11 = vand.u32 4294901760, %v37211_v59  ;;  %v36474_v15 = vand.u32 4294901760, %v37212_v45  ;;  %26495 = vmatpush3.bf16.msra.mxu0 %v26494_v53 }
 0x2cf   : > { %37207 = vst [vmem:[#allocation17_spill] sm:$0xff] %v30712_v14  ;;  %37210 = vst [vmem:[#allocation21_spill] sm:$0xff] %v30721_v4  ;;  %v5094_v63 = vand.u32 4294901760, %v5093_v50  ;;  %v4975_v35 = vand.u32 4294901760, %v4974_v26  ;;  %v36478_v40 = vand.u32 4294901760, %v30540_v44  ;;  %v37213_v4 = vld [vmem:[#allocation24_spill] sm:$0xff]  ;;  %26497 = vmatprep.subr.bf16.mxu0 %v26496_v5  ;;  %v26500_v31 = vpack.c.bf16 %v30475_v36, %v30473_v16 }
 0x2d0   : > { %v4982_v9 = vand.u32 4294901760, %v4981_v20  ;;  %v5100_v22 = vsub.f32 %v37211_v59, %v36473_v11  ;;  %v5107_v53 = vsub.f32 %v37212_v45, %v36474_v15  ;;  %v37214_v50 = vld [vmem:[#allocation27_spill] sm:$0xff]  ;;  %v4988_v5 = vsub.f32 %v30529_v10, %v36475_v41 }
 0x2d1   : > { %26219 = vmatpush3.bf16.msra.mxu1 %v37213_v4  ;;  %v30748_v26 = vpack.c.bf16 %v5094_v63, %v5087_v43  ;;  %v26502_v4 = vpack.c.bf16 %v37208_v19, %v37205_v52  ;;  %v4995_v20 = vsub.f32 %v30540_v44, %v36478_v40  ;;  %v36477_v15 = vand.u32 4294901760, %v30544_v7  ;;  %v37224_v40 = vld [vmem:[#allocation36_spill] sm:$0xff] }
 0x2d2   : > { %26221 = vmatprep.subr.bf16.mxu1 %v37214_v50  ;;  %v30758_v11 = vpack.c.bf16 %v4982_v9, %v4975_v35  ;;  %v5101_v14 = vand.u32 4294901760, %v5100_v22  ;;  %v5108_v30 = vand.u32 4294901760, %v5107_v53  ;;  %26499 = vmatpush3.bf16.msra.mxu0 %v26498_v13  ;;  %v4989_v63 = vand.u32 4294901760, %v4988_v5  ;;  %v37219_v22 = vld [vmem:[#allocation65_spill] sm:$0xff]  ;;  %v37221_v5 = vld [vmem:[#allocation32_spill] sm:$0xff] }
 0x2d3   : > { %37215 = vst [vmem:[#allocation18_spill] sm:$0xff] %v30748_v26  ;;  %v4996_v43 = vand.u32 4294901760, %v4995_v20  ;;  %v36476_v50 = vand.u32 4294901760, %v30547_v3  ;;  %v5001_v26 = vand.u32 4294901760, %v30563_v32  ;;  %26501 = vmatprep.subr.bf16.mxu0 %v26500_v31  ;;  %v5114_v35 = vsub.f32 %v30544_v7, %v36477_v15 }
 0x2d4   : > { %37216 = vst [vmem:[#allocation23_spill] sm:$0xff] %v30758_v11  ;;  %v30764_v41 = vpack.c.bf16 %v5108_v30, %v5101_v14  ;;  %v36479_v9 = vand.u32 4294901760, %v30574_v47  ;;  %v26504_v53 = vpack.c.bf16 %v37212_v45, %v37211_v59  ;;  %v26506_v20 = vpack.c.bf16 %v30540_v44, %v30529_v10 }
 0x2d5   : > { %26223 = vmatpush3.bf16.msra.mxu1 %v37217_v62  ;;  %v30771_v13 = vpack.c.bf16 %v4996_v43, %v4989_v63  ;;  %v5121_v62 = vsub.f32 %v30547_v3, %v36476_v50  ;;  %v5002_v14 = vsub.f32 %v30563_v32, %v5001_v26  ;;  %v5115_v30 = vand.u32 4294901760, %v5114_v35  ;;  %v37223_v50 = vld [vmem:[#allocation38_spill] sm:$0xff] }
 0x2d6   : > { %37218 = vst [vmem:[#allocation75_spill] sm:$0xff] %v30764_v41  ;;  %26257 = vmatprep.subr.bf16.mxu1 %v37219_v22  ;;  %v5009_v31 = vsub.f32 %v30574_v47, %v36479_v9  ;;  %26503 = vmatpush3.bf16.msra.mxu0 %v26502_v4  ;;  %v37222_v22 = vld [vmem:[#allocation66_spill] sm:$0xff]  ;;  %v26508_v9 = vpack.c.bf16 %v30547_v3, %v30544_v7  ;;  %v37227_v4 = vld [vmem:[#allocation40_spill] sm:$0xff] }
 0x2d7   : > { %37220 = vst [vmem:[#allocation77_spill] sm:$0xff] %v30771_v13  ;;  %v5122_v63 = vand.u32 4294901760, %v5121_v62  ;;  %v5003_v43 = vand.u32 4294901760, %v5002_v14  ;;  %26505 = vmatprep.subr.bf16.mxu0 %v26504_v53  ;;  %v26510_v62 = vpack.c.bf16 %v30574_v47, %v30563_v32  ;;  %v37228_v14 = vld [vmem:[#allocation70_spill] sm:$0xff]  ;;  %v37231_v53 = vand.u32 4294901760, %v30369_v0 }
 0x2d8   : > { %3843 = vmatmul.mubr.f32.vlgmr.msra.gmra.mrb[10].mxu1 %v37221_v5  ;;  %v5010_v15 = vand.u32 4294901760, %v5009_v31  ;;  %v37232_v31 = vld [vmem:[#allocation37_spill] sm:$0xff]  ;;  %v37239_v0 = vand.u32 4294901760, %v30400_v56  ;;  %v37246_v56 = vand.u32 4294901760, %v30422_v58  ;;  %v37254_v58 = vld [vmem:[#allocation60_spill] sm:$0xff] }
 0x2d9   : > { %26259 = vmatpush3.bf16.msra.mxu1 %v37222_v22  ;;  %3848 = vmatprep.mubr.f32.mxu1 %v37223_v50  ;;  %v30790_v35 = vpack.c.bf16 %v5122_v63, %v5115_v30  ;;  %v37229_v50 = vld [vmem:[#allocation57_spill] sm:$0xff]  ;;  %v37236_v22 = vand.u32 4294901760, %v30383_v23  ;;  %v37242_v23 = vand.u32 4294901760, %v30411_v2  ;;  %v37249_v2 = vand.u32 4294901760, %v30426_v42  ;;  %v37257_v42 = vld [vmem:[#allocation14_spill] sm:$0xff] }
 0x2da   : > { %26261 = vmatprep.subr.bf16.mxu1 %v37224_v40  ;;  %v30794_v5 = vpack.c.bf16 %v5010_v15, %v5003_v43  ;;  %26507 = vmatpush3.bf16.msra.mxu0 %v26506_v20  ;;  %v37230_v40 = vand.u32 4294901760, %v30360_v6  ;;  %v37233_v15 = vand.u32 4294901760, %v30371_v27  ;;  %v37234_v20 = vand.u32 4294901760, %v30380_v55  ;;  %v37235_v43 = vld [vmem:[#allocation5_spill] sm:$0xff] }
 0x2db   : > { %37225 = vst [vmem:[#allocation24_spill] sm:$0xff] %v30790_v35  ;;  %26509 = vmatprep.subr.bf16.mxu0 %v26508_v9  ;;  %v37240_v27 = vand.u32 4294901760, %v30402_v18  ;;  %v37241_v9 = vld [vmem:[#allocation71_spill] sm:$0xff]  ;;  %v37247_v18 = vld [vmem:[#allocation20_spill] sm:$0xff] }
 0x2dc   : > { %37226 = vst [vmem:[#allocation27_spill] sm:$0xff] %v30794_v5  ;;  %3850 = vmatmul.mubr.f32.gmra.mrb[12].mxu1 %v37227_v4  ;;  %v26544_v30 = vpack.c.bf16 %v37231_v53, %v37230_v40  ;;  %v26546_v63 = vpack.c.bf16 %v37234_v20, %v37233_v15  ;;  %v37237_v4 = vand.u32 4294901760, %v30389_v48  ;;  %v37243_v48 = vand.u32 4294901760, %v30413_v57  ;;  %v37244_v40 = vld [vmem:[#allocation11_spill] sm:$0xff]  ;;  %v37251_v20 = vld [vmem:[#allocation34_spill] sm:$0xff] }
 0x2dd   : > { %26263 = vmatpush3.bf16.msra.mxu1 %v37228_v14  ;;  %4207 = vmatprep.mubr.f32.mxu1 %v37229_v50  ;;  %v37238_v14 = vld [vmem:[#allocation8_spill] sm:$0xff]  ;;  %v26550_v55 = vpack.c.bf16 %v37240_v27, %v37239_v0  ;;  %v37245_v53 = vand.u32 4294901760, %v30417_v1  ;;  %v37250_v57 = vand.u32 4294901760, %v30435_v61  ;;  %v37253_v1 = vand.u32 4294901760, %v30447_v39  ;;  %v37290_v5 = vld [vmem:[#allocation54_spill] sm:$0xff] }
 0x2de   : > { %26265 = vmatprep.subr.bf16.mxu1 %v37232_v31  ;;  %26511 = vmatpush3.bf16.msra.mxu0 %v26510_v62  ;;  %v26548_v6 = vpack.c.bf16 %v37237_v4, %v37236_v22  ;;  %v26552_v62 = vpack.c.bf16 %v37243_v48, %v37242_v23  ;;  %v37248_v31 = vld [vmem:[#allocation72_spill] sm:$0xff]  ;;  %v37255_v22 = vand.u32 4294901760, %v30452_v37  ;;  %v37256_v4 = vand.u32 4294901760, %v30454_v17  ;;  %v37263_v37 = vld [vmem:[#allocation43_spill] sm:$0xff] }
 0x2df   : > { %26545 = vmatprep.subr.bf16.mxu0 %v26544_v30  ;;  %v26554_v30 = vpack.c.bf16 %v37246_v56, %v37245_v53  ;;  %v26556_v15 = vpack.c.bf16 %v37250_v57, %v37249_v2  ;;  %v37258_v61 = vand.u32 4294901760, %v30460_v28  ;;  %v37261_v39 = vand.u32 4294901760, %v30473_v16  ;;  %v37266_v28 = vld [vmem:[#allocation73_spill] sm:$0xff]  ;;  %v2773_v57 = vld [vmem:[%s36227_s3 + $0x308] sm:$0xff] }
 0x2e0   : > { %v37262_v27 = vand.u32 4294901760, %v30475_v36  ;;  %v37264_v17 = vand.u32 4294901760, %v37205_v52  ;;  %v37268_v48 = vand.u32 4294901760, %v37211_v59  ;;  %v37269_v16 = vand.u32 4294901760, %v37212_v45  ;;  %v2788_v36 = vld [vmem:[%s36227_s3 + $0x380] sm:$0xff]  ;;  %v2789_v52 = vld [vmem:[%s36227_s3 + $0x388] sm:$0xff] }
 0x2e1   : > { %26267 = vmatpush3.bf16.msra.mxu1 %v37235_v43  ;;  %5272 = vmatmul.mubr.f32.vlgmr.msra.gmra.mrb[40].mxu0 %v30556_v49  ;;  %v37272_v53 = vand.u32 4294901760, %v30540_v44  ;;  %v37273_v59 = vld [vmem:[#allocation48_spill] sm:$0xff]  ;;  %v37274_v45 = vld [vmem:[#allocation33_spill] sm:$0xff]  ;;  %v37277_v44 = vand.u32 4294901760, %v30547_v3  ;;  %v2774_v3 = vld [vmem:[%s36227_s3 + $0x310] sm:$0xff] }
 0x2e2   : > { %26269 = vmatprep.subr.bf16.mxu1 %v37238_v14  ;;  %26547 = vmatpush3.bf16.msra.mxu0 %v26546_v63  ;;  %v37252_v63 = vand.u32 4294901760, %v30445_v24  ;;  %v37259_v14 = vand.u32 4294901760, %v30462_v33  ;;  %v37260_v24 = vld [vmem:[#allocation42_spill] sm:$0xff]  ;;  %v37267_v33 = vld [vmem:[#allocation47_spill] sm:$0xff]  ;;  %v2772_v2 = vld [vmem:[%s36227_s3 + $0x300] sm:$0xff] }
 0x2e3   : > { %5278 = vmatprep.mubr.f32.mxu0 %v30599_v60  ;;  %26549 = vmatprep.subr.bf16.mxu0 %v26548_v6  ;;  %v26560_v6 = vpack.c.bf16 %v37256_v4, %v37255_v22  ;;  %v5695_v4 = vand.u32 4294901760, %v2773_v57 }
 0x2e4   : > { %v26558_v43 = vpack.c.bf16 %v37253_v1, %v37252_v63  ;;  %v26562_v0 = vpack.c.bf16 %v37259_v14, %v37258_v61  ;;  %v2790_v63 = vld [vmem:[%s36227_s3 + $0x390] sm:$0xff]  ;;  %v2791_v1 = vld [vmem:[%s36227_s3 + $0x398] sm:$0xff]  ;;  %v37281_v61 = vld [vmem:[#allocation62_spill] sm:$0xff] }
 0x2e5   : > { %26271 = vmatpush3.bf16.msra.mxu1 %v37241_v9  ;;  %5281 = vmatmul.mubr.f32.gmra.mrb[42].mxu0 %v30621_v29  ;;  %v37265_v9 = vand.u32 4294901760, %v37208_v19  ;;  %v37270_v19 = vld [vmem:[#allocation59_spill] sm:$0xff]  ;;  %v37282_v14 = vand.u32 4294901760, %v37281_v61  ;;  %v5746_v32 = vand.u32 4294901760, %v2790_v63 }
 0x2e6   : > { %26273 = vmatprep.subr.bf16.mxu1 %v37244_v40  ;;  %26551 = vmatpush3.bf16.msra.mxu0 %v26550_v55  ;;  %v26564_v55 = vpack.c.bf16 %v37262_v27, %v37261_v39  ;;  %v37271_v40 = vand.u32 4294901760, %v30529_v10  ;;  %v37276_v10 = vand.u32 4294901760, %v30544_v7  ;;  %v5692_v7 = vand.u32 4294901760, %v2772_v2  ;;  %v22854_v39 = vpop.f32.mrb[8].mxu0  ;;  %v2793_v27 = vld [vmem:[%s36227_s3 + $0x3a8] sm:$0xff] }
 0x2e7   : > { %5566 = vmatprep.mubr.f32.mxu0 %v37247_v18  ;;  %26553 = vmatprep.subr.bf16.mxu0 %v26552_v62  ;;  %v26566_v23 = vpack.c.bf16 %v37265_v9, %v37264_v17  ;;  %v26568_v62 = vpack.c.bf16 %v37269_v16, %v37268_v48  ;;  %v2776_v17 = vld [vmem:[%s36227_s3 + $0x320] sm:$0xff]  ;;  %v2777_v9 = vld [vmem:[%s36227_s3 + $0x328] sm:$0xff] }
 0x2e8   : > { %v26570_v56 = vpack.c.bf16 %v37272_v53, %v37271_v40  ;;  %v30933_v48 = vpack.c.bf16 %v5695_v4, %v5692_v7  ;;  %v30937_v40 = vsub.f32 %v2772_v2, %v5692_v7  ;;  %v30939_v53 = vsub.f32 %v2773_v57, %v5695_v4  ;;  %v37288_v2 = vld [vmem:[#allocation19_spill] sm:$0xff]  ;;  %v2779_v4 = vld [vmem:[%s36227_s3 + $0x338] sm:$0xff] }
 0x2e9   : > { %26275 = vmatpush3.bf16.msra.mxu1 %v37248_v31  ;;  %v5743_v31 = vand.u32 4294901760, %v2789_v52  ;;  %v30953_v57 = vsub.f32 %v2790_v63, %v5746_v32  ;;  %v2778_v7 = vld [vmem:[%s36227_s3 + $0x330] sm:$0xff] }
 0x2ea   : > { %26277 = vmatprep.subr.bf16.mxu1 %v37251_v20  ;;  %26555 = vmatpush3.bf16.msra.mxu0 %v26554_v30  ;;  %v5740_v30 = vand.u32 4294901760, %v2788_v36  ;;  %v26572_v20 = vpack.c.bf16 %v37277_v44, %v37276_v10  ;;  %37285 = vst [vmem:[#allocation65_spill] sm:$0xff] %v30933_v48  ;;  %v2795_v10 = vld [vmem:[%s36227_s3 + $0x3b8] sm:$0xff] }
 0x2eb   : > { %26557 = vmatprep.subr.bf16.mxu0 %v26556_v15  ;;  %v37275_v15 = vld [vmem:[#allocation50_spill] sm:$0xff]  ;;  %v5761_v49 = vand.u32 4294901760, %v2795_v10 }
 0x2ed   : > { %26279 = vmatpush3.bf16.msra.mxu1 %v37254_v58  ;;  %v37279_v58 = vand.u32 4294901760, %v30574_v47  ;;  %v5749_v47 = vand.u32 4294901760, %v2791_v1 }
 0x2ee   : > { %26281 = vmatprep.subr.bf16.mxu1 %v37257_v42  ;;  %26559 = vmatpush3.bf16.msra.mxu0 %v26558_v43  ;;  %v37278_v43 = vld [vmem:[#allocation68_spill] sm:$0xff]  ;;  %v37280_v42 = vld [vmem:[#allocation51_spill] sm:$0xff] }
 0x2ef   : > { %26561 = vmatprep.subr.bf16.mxu0 %v26560_v6  ;;  %v26574_v22 = vpack.c.bf16 %v37279_v58, %v5001_v26  ;;  %v2775_v6 = vld [vmem:[%s36227_s3 + $0x318] sm:$0xff]  ;;  %v2792_v26 = vld [vmem:[%s36227_s3 + $0x3a0] sm:$0xff]  ;;  %v5704_v58 = vand.u32 4294901760, %v2776_v17  ;;  %v30962_v61 = vsub.f32 %v2791_v1, %v5749_v47 }
 0x2f0   : > { %v5752_v16 = vand.u32 4294901760, %v2792_v26 }
 0x2f1   : > { %26283 = vmatpush3.bf16.msra.mxu1 %v37260_v24  ;;  %v37284_v24 = vld [vmem:[#allocation52_spill] sm:$0xff]  ;;  %v30996_v35 = vsub.f32 %v2776_v17, %v5704_v58  ;;  %v31007_v17 = vsub.f32 %v2795_v10, %v5761_v49 }
 0x2f2   : > { %26285 = vmatprep.subr.bf16.mxu1 %v37263_v37  ;;  %26563 = vmatpush3.bf16.msra.mxu0 %v26562_v0  ;;  %v30914_v0 = vpack.c.bf16 %v5743_v31, %v5740_v30  ;;  %v5701_v37 = vand.u32 4294901760, %v2775_v6 }
 0x2f3   : > { %26565 = vmatprep.subr.bf16.mxu0 %v26564_v55  ;;  %v5698_v55 = vand.u32 4294901760, %v2774_v3 }
 0x2f4   : > { %37283 = vst [vmem:[#allocation28_spill] sm:$0xff] %v30914_v0 }
 0x2f5   : > { %26287 = vmatpush3.bf16.msra.mxu1 %v37266_v28  ;;  %v30931_v28 = vsub.f32 %v2789_v52, %v5743_v31  ;;  %v5755_v52 = vand.u32 4294901760, %v2793_v27  ;;  %v2794_v31 = vld [vmem:[%s36227_s3 + $0x3b0] sm:$0xff]  ;;  %v30966_v63 = vsub.f32 %v2774_v3, %v5698_v55  ;;  %v30976_v3 = vsub.f32 %v2792_v26, %v5752_v16 }
 0x2f6   : > { %26321 = vmatprep.subr.bf16.mxu1 %v37267_v33  ;;  %26567 = vmatpush3.bf16.msra.mxu0 %v26566_v23  ;;  %v30929_v23 = vsub.f32 %v2788_v36, %v5740_v30  ;;  %v22647_v36 = vld [vmem:[%s36226_s2 + $0xa0] ss:$0 sm:$0xff]  ;;  %v22855_v30 = vpop.f32.mrb[9].mxu0  ;;  %v5758_v60 = vand.u32 4294901760, %v2794_v31 }
 0x2f7   : > { %26569 = vmatprep.subr.bf16.mxu0 %v26568_v62  ;;  %v37286_v62 = vld [vmem:[#allocation53_spill] sm:$0xff]  ;;  %v22856_v44 = vadd.f32 %v22855_v30, %v22854_v39  ;;  %v30974_v1 = vpack.c.bf16 %v5755_v52, %v5752_v16 }
 0x2f8   : > { %4209 = vmatmul.mubr.f32.vlgmr.msra.gmra.mrb[14].mxu1 %v37270_v19 }
 0x2f9   : > { %26323 = vmatpush3.bf16.msra.mxu1 %v37273_v59  ;;  %4214 = vmatprep.mubr.f32.mxu1 %v37274_v45  ;;  %v3046_v30 = vadd.f32 %v22856_v44, %v22647_v36  ;;  %37291 = vst [vmem:[#allocation38_spill] sm:$0xff] %v30974_v1  ;;  %v2797_v44 = vld [vmem:[%s36227_s3 + $0x3c8] sm:$0xff] }
 0x2fa   : > { %26325 = vmatprep.subr.bf16.mxu1 %v37275_v15  ;;  %26571 = vmatpush3.bf16.msra.mxu0 %v26570_v56  ;;  %v30941_v56 = vpack.c.bf16 %v5749_v47, %v5746_v32  ;;  %v30968_v32 = vsub.f32 %v2775_v6, %v5701_v37  ;;  %v5710_v47 = vand.u32 4294901760, %v2778_v7  ;;  %v5767_v41 = vand.u32 4294901760, %v2797_v44 }
 0x2fb   : > { %26573 = vmatprep.subr.bf16.mxu0 %v26572_v20  ;;  %v22857_v20 = vpop.f32.mrb[10].mxu0 }
 0x2fc   : > { %4216 = vmatmul.mubr.f32.gmra.mrb[16].mxu1 %v37278_v43  ;;  %37287 = vst [vmem:[#allocation32_spill] sm:$0xff] %v30941_v56  ;;  %v22858_v39 = vpop.f32.mrb[11].mxu0 }
 0x2fd   : > { %26327 = vmatpush3.bf16.msra.mxu1 %v37280_v42  ;;  %4467 = vmatprep.mubr.f32.mxu1 %v37282_v14  ;;  %v30964_v14 = vpack.c.bf16 %v5701_v37, %v5698_v55  ;;  %v22892_v29 = vpop.f32.mrb[12].mxu0  ;;  %v5713_v55 = vand.u32 4294901760, %v2779_v4  ;;  %v2796_v37 = vld [vmem:[%s36227_s3 + $0x3c0] sm:$0xff] }
 0x2fe   : > { %26329 = vmatprep.subr.bf16.mxu1 %v37284_v24  ;;  %26575 = vmatpush3.bf16.msra.mxu0 %v26574_v22  ;;  %v5707_v22 = vand.u32 4294901760, %v2777_v9  ;;  %v22893_v6 = vpop.f32.mrb[13].mxu0 }
 0x2ff   : > { %26609 = vmatprep.subr.bf16.mxu0 %v30914_v0  ;;  %37289 = vst [vmem:[#allocation66_spill] sm:$0xff] %v30964_v14  ;;  %v22859_v0 = vadd.f32 %v22858_v39, %v22857_v20  ;;  %v37292_v20 = vld [vmem:[#allocation22_spill] sm:$0xff]  ;;  %v30985_v39 = vsub.f32 %v2793_v27, %v5755_v52  ;;  %v22894_v26 = vadd.f32 %v22893_v6, %v22892_v29  ;;  %v22895_v16 = vpop.f32.mrb[14].mxu0  ;;  %v5764_v52 = vand.u32 4294901760, %v2796_v37 }
 0x300   : > { %v30998_v13 = vsub.f32 %v2777_v9, %v5707_v22  ;;  %v22896_v27 = vpop.f32.mrb[15].mxu0  ;;  %v31009_v9 = vpack.c.bf16 %v5713_v55, %v5710_v47 }
 0x301   : > { %26331 = vmatpush3.bf16.msra.mxu1 %v37286_v62  ;;  %5568 = vmatmul.mubr.f32.vlgmr.msra.gmra.mrb[44].mxu0 %v30509_v25  ;;  %v2781_v25 = vld [vmem:[%s36227_s3 + $0x348] sm:$0xff]  ;;  %v3293_v29 = vadd.f32 %v22894_v26, %v3046_v30  ;;  %v22897_v6 = vadd.f32 %v22896_v27, %v22895_v16  ;;  %v22930_v11 = vpop.f32.mrb[16].mxu0  ;;  %v2798_v30 = vld [vmem:[%s36227_s3 + $0x3d0] sm:$0xff]  ;;  %v31018_v26 = vsub.f32 %v2778_v7, %v5710_v47 }
 0x302   : > { %26333 = vmatprep.subr.bf16.mxu1 %v37288_v2  ;;  %26611 = vmatpush3.bf16.msra.mxu0 %v30933_v48  ;;  %v3061_v48 = vadd.f32 %v22859_v0, %v22647_v36  ;;  %v31001_v0 = vpack.c.bf16 %v5761_v49, %v5758_v60  ;;  %v31003_v36 = vsub.f32 %v2794_v31, %v5758_v60  ;;  %v2799_v60 = vld [vmem:[%s36227_s3 + $0x3d8] sm:$0xff]  ;;  %v37297_v31 = vld [vmem:[#allocation25_spill] sm:$0xff]  ;;  %v5770_v12 = vand.u32 4294901760, %v2798_v30 }
 0x303   : > { %5573 = vmatprep.mubr.f32.mxu0 %v30586_v54  ;;  %26613 = vmatprep.subr.bf16.mxu0 %v30941_v56  ;;  %v30987_v56 = vpack.c.bf16 %v5707_v22, %v5704_v58  ;;  %v2780_v54 = vld [vmem:[%s36227_s3 + $0x340] sm:$0xff]  ;;  %37296 = vst [vmem:[#allocation70_spill] sm:$0xff] %v31009_v9  ;;  %v22931_v58 = vpop.f32.mrb[17].mxu0  ;;  %v31020_v16 = vsub.f32 %v2779_v4, %v5713_v55  ;;  %v5773_v43 = vand.u32 4294901760, %v2799_v60  ;;  %v37300_v55 = vld [vmem:[#allocation56_spill] sm:$0xff] }
 0x304   : > { %37294 = vst [vmem:[#allocation40_spill] sm:$0xff] %v31001_v0  ;;  %v5716_v22 = vand.u32 4294901760, %v2780_v54  ;;  %v3300_v49 = vadd.f32 %v22897_v6, %v3061_v48  ;;  %v22932_v10 = vadd.f32 %v22931_v58, %v22930_v11  ;;  %v22933_v27 = vpop.f32.mrb[18].mxu0  ;;  %v31028_v46 = vpack.c.bf16 %v5767_v41, %v5764_v52 }
 0x305   : > { %26335 = vmatpush3.bf16.msra.mxu1 %v37290_v5  ;;  %37293 = vst [vmem:[#allocation36_spill] sm:$0xff] %v30987_v56  ;;  %5575 = vmatmul.mubr.f32.gmra.mrb[46].mxu0 %v30604_v34  ;;  %v5719_v34 = vand.u32 4294901760, %v2781_v25  ;;  %v22934_v18 = vpop.f32.mrb[19].mxu0  ;;  %v31033_v11 = vsub.f32 %v2796_v37, %v5764_v52  ;;  %v31037_v6 = vsub.f32 %v2797_v44, %v5767_v41  ;;  %v37302_v37 = vld [vmem:[#allocation58_spill] sm:$0xff] }
 0x306   : > { %26337 = vmatprep.subr.bf16.mxu1 %v37292_v20  ;;  %26615 = vmatpush3.bf16.msra.mxu0 %v30964_v14  ;;  %v2783_v14 = vld [vmem:[%s36227_s3 + $0x358] sm:$0xff]  ;;  %37298 = vst [vmem:[#allocation57_spill] sm:$0xff] %v31028_v46  ;;  %v31031_v4 = vadd.f32 %v22932_v10, %v3293_v29  ;;  %v22935_v48 = vadd.f32 %v22934_v18, %v22933_v27  ;;  %v2800_v29 = vld [vmem:[%s36227_s3 + $0x3e0] sm:$0xff]  ;;  %v2801_v18 = vld [vmem:[%s36227_s3 + $0x3e8] sm:$0xff] }
 0x307   : > { %26617 = vmatprep.subr.bf16.mxu0 %v30974_v1  ;;  %v2782_v1 = vld [vmem:[%s36227_s3 + $0x350] sm:$0xff]  ;;  %v5725_v47 = vand.u32 4294901760, %v2783_v14  ;;  %v31039_v58 = vpack.c.bf16 %v5719_v34, %v5716_v22  ;;  %v31041_v8 = vsub.f32 %v2780_v54, %v5716_v22  ;;  %v31050_v52 = vsub.f32 %v2781_v25, %v5719_v34  ;;  %v2784_v54 = vld [vmem:[%s36227_s3 + $0x360] sm:$0xff]  ;;  %v2785_v22 = vld [vmem:[%s36227_s3 + $0x368] sm:$0xff] }
 0x308   : > { %v5722_v7 = vand.u32 4294901760, %v2782_v1  ;;  %37299 = vst [vmem:[#allocation37_spill] sm:$0xff] %v31031_v4  ;;  %v31052_v10 = vadd.f32 %v22935_v48, %v3300_v49  ;;  %v5776_v41 = vand.u32 4294901760, %v2800_v29  ;;  %v5779_v44 = vand.u32 4294901760, %v2801_v18  ;;  %v2651_v27 = vld [vmem:[%s29295_s19 + $0x38] sm:$0xff]  ;;  %v2650_v34 = vld [vmem:[%s29295_s19 + $0x30] sm:$0xff] }
 0x309   : > { %26339 = vmatpush3.bf16.msra.mxu1 %v37295_v38  ;;  %37301 = vst [vmem:[#allocation5_spill] sm:$0xff] %v31039_v58  ;;  %v5728_v4 = vand.u32 4294901760, %v2784_v54  ;;  %v5731_v25 = vand.u32 4294901760, %v2785_v22  ;;  %v31071_v45 = vand.u32 4294901760, %v2651_v27  ;;  %v31075_v19 = vsub.f32 %v2798_v30, %v5770_v12  ;;  %v2787_v30 = vld [vmem:[%s36227_s3 + $0x378] sm:$0xff] }
 0x30a   : > { %26341 = vmatprep.subr.bf16.mxu1 %v37297_v31  ;;  %26619 = vmatpush3.bf16.msra.mxu0 %v30987_v56  ;;  %37303 = vst [vmem:[#allocation8_spill] sm:$0xff] %v31052_v10  ;;  %v31063_v56 = vpack.c.bf16 %v5725_v47, %v5722_v7  ;;  %v31067_v49 = vpack.c.bf16 %v5779_v44, %v5776_v41  ;;  %v2803_v10 = vld [vmem:[%s36227_s3 + $0x3f8] sm:$0xff]  ;;  %v31087_v48 = vand.u32 4294901760, %v2650_v34 }
 0x30b   : > { %26621 = vmatprep.subr.bf16.mxu0 %v31001_v0  ;;  %v31061_v0 = vpack.c.bf16 %v5773_v43, %v5770_v12  ;;  %37307 = vst [vmem:[#allocation34_spill] sm:$0xff] %v31071_v45  ;;  %v31077_v51 = vsub.f32 %v2799_v60, %v5773_v43  ;;  %v31092_v12 = vsub.f32 %v2800_v29, %v5776_v41  ;;  %v37316_v41 = vand.u32 4294901760, %v30929_v23 }
 0x30c   : > { %37305 = vst [vmem:[#allocation11_spill] sm:$0xff] %v31063_v56  ;;  %37306 = vst [vmem:[#allocation72_spill] sm:$0xff] %v31067_v49  ;;  %v31094_v43 = vsub.f32 %v2801_v18, %v5779_v44  ;;  %v5737_v18 = vand.u32 4294901760, %v2787_v30 }
 0x30d   : > { %26343 = vmatpush3.bf16.msra.mxu1 %v37300_v55  ;;  %37304 = vst [vmem:[#allocation71_spill] sm:$0xff] %v31061_v0  ;;  %37309 = vst [vmem:[#allocation60_spill] sm:$0xff] %v31087_v48  ;;  %v37310_v55 = vld [vmem:[#allocation63_spill] sm:$0xff]  ;;  %v5934_v44 = vsub.f32 %v30929_v23, %v37316_v41 }
 0x30e   : > { %26345 = vmatprep.subr.bf16.mxu1 %v37302_v37  ;;  %26623 = vmatpush3.bf16.msra.mxu0 %v31009_v9  ;;  %v31079_v37 = vsub.f32 %v2782_v1, %v5722_v7  ;;  %v2802_v9 = vld [vmem:[%s36227_s3 + $0x3f0] sm:$0xff]  ;;  %37312 = vst [vmem:[#allocation42_spill] sm:$0xff] %v31092_v12  ;;  %37313 = vst [vmem:[#allocation43_spill] sm:$0xff] %v31094_v43  ;;  %v31103_v7 = vpack.c.bf16 %v5731_v25, %v5728_v4  ;;  %v37318_v12 = vld [vmem:[#allocation30_spill] sm:$0xff] }
 0x30f   : > { %26625 = vmatprep.subr.bf16.mxu0 %v31028_v46  ;;  %v2786_v1 = vld [vmem:[%s36227_s3 + $0x370] sm:$0xff]  ;;  %v31105_v46 = vsub.f32 %v2784_v54, %v5728_v4  ;;  %v31116_v4 = vsub.f32 %v2785_v22, %v5731_v25  ;;  %v31131_v25 = vsub.f32 %v2651_v27, %v31071_v45  ;;  %v31147_v27 = vsub.f32 %v2650_v34, %v31087_v48 }
 0x310   : > { %37314 = vst [vmem:[#allocation73_spill] sm:$0xff] %v31103_v7  ;;  %v5734_v29 = vand.u32 4294901760, %v2786_v1 }
 0x311   : > { %26347 = vmatpush3.bf16.msra.mxu1 %v37308_v21  ;;  %v31090_v21 = vsub.f32 %v2783_v14, %v5725_v47  ;;  %37315 = vst [vmem:[#allocation47_spill] sm:$0xff] %v31105_v46  ;;  %v5782_v14 = vand.u32 4294901760, %v2802_v9  ;;  %v5785_v47 = vand.u32 4294901760, %v2803_v10  ;;  %v23006_v46 = vpop.f32.mrb[20].mxu0  ;;  %37322 = vst [vmem:[#allocation62_spill] sm:$0xff] %v31131_v25  ;;  %v36519_v34 = vand.u32 4294901760, %v31147_v27 }
 0x312   : > { %26349 = vmatprep.subr.bf16.mxu1 %v37310_v55  ;;  %26627 = vmatpush3.bf16.msra.mxu0 %v31039_v58  ;;  %v37317_v55 = vand.u32 4294901760, %v30931_v28  ;;  %v36517_v58 = vand.u32 4294901760, %v30939_v53  ;;  %37326 = vst [vmem:[#allocation52_spill] sm:$0xff] %v31147_v27 }
 0x313   : > { %37311 = vst [vmem:[#allocation14_spill] sm:$0xff] %v31090_v21  ;;  %26629 = vmatprep.subr.bf16.mxu0 %v31061_v0  ;;  %v31118_v54 = vpack.c.bf16 %v5785_v47, %v5782_v14  ;;  %v31120_v60 = vsub.f32 %v2802_v9, %v5782_v14  ;;  %v31124_v41 = vsub.f32 %v2803_v10, %v5785_v47  ;;  %v23007_v0 = vpop.f32.mrb[21].mxu0  ;;  %v37323_v9 = vand.u32 4294901760, %v30937_v40  ;;  %v37324_v10 = vld [vmem:[#allocation64_spill] sm:$0xff] }
 0x314   : > { %v5941_v43 = vsub.f32 %v30931_v28, %v37317_v55  ;;  %v31126_v21 = vpack.c.bf16 %v5737_v18, %v5734_v29  ;;  %v31128_v55 = vsub.f32 %v2786_v1, %v5734_v29  ;;  %v37325_v47 = vand.u32 4294901760, %v37324_v10  ;;  %v2667_v29 = vld [vmem:[%s29295_s19 + $0xb8] sm:$0xff] }
 0x315   : > { %26351 = vmatpush3.bf16.msra.mxu1 %v37318_v12  ;;  %37319 = vst [vmem:[#allocation48_spill] sm:$0xff] %v31118_v54  ;;  %37320 = vst [vmem:[#allocation50_spill] sm:$0xff] %v31124_v41  ;;  %v5935_v12 = vand.u32 4294901760, %v5934_v44  ;;  %v5822_v14 = vsub.f32 %v30937_v40, %v37323_v9  ;;  %v31141_v41 = vadd.f32 %v23007_v0, %v23006_v46  ;;  %v37327_v44 = vld [vmem:[#allocation67_spill] sm:$0xff]  ;;  %v36518_v46 = vand.u32 4294901760, %v31131_v25 }
 0x316   : > { %26385 = vmatprep.subr.bf16.mxu1 %v37267_v33  ;;  %37321 = vst [vmem:[#allocation51_spill] sm:$0xff] %v31126_v21  ;;  %v5942_v22 = vand.u32 4294901760, %v5941_v43  ;;  %v5829_v33 = vsub.f32 %v30939_v53, %v36517_v58  ;;  %26631 = vmatpush3.bf16.msra.mxu0 %v31063_v56  ;;  %v31144_v1 = vsub.f32 %v2787_v30, %v5737_v18  ;;  %v36516_v43 = vand.u32 4294901760, %v30953_v57  ;;  %v2666_v18 = vld [vmem:[%s29295_s19 + $0xb0] sm:$0xff] }
 0x317   : > { %v37328_v9 = vand.u32 4294901760, %v37327_v44  ;;  %v5823_v0 = vand.u32 4294901760, %v5822_v14  ;;  %26633 = vmatprep.subr.bf16.mxu0 %v31067_v49  ;;  %v26672_v30 = vpack.c.bf16 %v30931_v28, %v30929_v23  ;;  %v37332_v44 = vld [vmem:[#allocation69_spill] sm:$0xff]  ;;  %v37345_v49 = vld [vmem:[#allocation58_spill] sm:$0xff] }
 0x318   : > { %4471 = vmatmul.mubr.f32.vlgmr.msra.gmra.mrb[18].mxu1 %v37325_v47  ;;  %v31154_v10 = vpack.c.bf16 %v5942_v22, %v5935_v12  ;;  %v5830_v47 = vand.u32 4294901760, %v5829_v33  ;;  %v36520_v12 = vand.u32 4294901760, %v30962_v61  ;;  %v5790_v22 = vsub.f32 %v31131_v25, %v36518_v46 }
 0x319   : > { %26387 = vmatpush3.bf16.msra.mxu1 %v37273_v59  ;;  %4478 = vmatprep.mubr.f32.mxu1 %v37328_v9  ;;  %v5948_v59 = vsub.f32 %v30953_v57, %v36516_v43  ;;  %v36521_v33 = vand.u32 4294901760, %v30966_v63  ;;  %v37333_v9 = vand.u32 4294901760, %v37332_v44  ;;  %v5796_v43 = vsub.f32 %v31147_v27, %v36519_v34 }
 0x31a   : > { %37329 = vst [vmem:[#allocation53_spill] sm:$0xff] %v31154_v10  ;;  %26389 = vmatprep.subr.bf16.mxu1 %v37275_v15  ;;  %v31170_v14 = vpack.c.bf16 %v5830_v47, %v5823_v0  ;;  %v31172_v15 = vand.u32 4294901760, %v2667_v29  ;;  %26635 = vmatpush3.bf16.msra.mxu0 %v31103_v7  ;;  %v5955_v46 = vsub.f32 %v30962_v61, %v36520_v12  ;;  %v36526_v0 = vand.u32 4294901760, %v30968_v32 }
 0x31b   : > { %v5949_v58 = vand.u32 4294901760, %v5948_v59  ;;  %v5791_v47 = vand.u32 4294901760, %v5790_v22  ;;  %v31193_v34 = vand.u32 4294901760, %v2666_v18  ;;  %26637 = vmatprep.subr.bf16.mxu0 %v31118_v54  ;;  %v5797_v59 = vand.u32 4294901760, %v5796_v43 }
 0x31c   : > { %37330 = vst [vmem:[#allocation19_spill] sm:$0xff] %v31170_v14  ;;  %37331 = vst [vmem:[#allocation54_spill] sm:$0xff] %v31172_v15  ;;  %4482 = vmatmul.mubr.f32.gmra.mrb[20].mxu1 %v37333_v9  ;;  %v31188_v44 = vsub.f32 %v2667_v29, %v31172_v15  ;;  %v5836_v9 = vsub.f32 %v30966_v63, %v36521_v33  ;;  %v5956_v12 = vand.u32 4294901760, %v5955_v46  ;;  %v36528_v46 = vand.u32 4294901760, %v30976_v3 }
 0x31d   : > { %26391 = vmatpush3.bf16.msra.mxu1 %v37280_v42  ;;  %4759 = vmatprep.mubr.f32.mxu1 %v37229_v50  ;;  %37335 = vst [vmem:[#allocation55_spill] sm:$0xff] %v31193_v34  ;;  %v26674_v42 = vpack.c.bf16 %v30939_v53, %v30937_v40  ;;  %v5843_v50 = vsub.f32 %v30968_v32, %v36526_v0  ;;  %v36529_v7 = vand.u32 4294901760, %v30985_v39  ;;  %v36534_v0 = vand.u32 4294901760, %v30998_v13 }
 0x31e   : > { %37334 = vst [vmem:[#allocation22_spill] sm:$0xff] %v31188_v44  ;;  %26393 = vmatprep.subr.bf16.mxu1 %v37284_v24  ;;  %5792 = vmatprep.mubr.f32.mxu0 %v5791_v47  ;;  %v36527_v29 = vand.u32 4294901760, %v31188_v44  ;;  %v5837_v22 = vand.u32 4294901760, %v5836_v9  ;;  %v31204_v33 = vsub.f32 %v2666_v18, %v31193_v34  ;;  %v26676_v24 = vpack.c.bf16 %v30962_v61, %v30953_v57 }
 0x31f   : > { %26639 = vmatpush3.bf16.msra.mxu0 %v31126_v21  ;;  %v31209_v43 = vpack.c.bf16 %v5956_v12, %v5949_v58  ;;  %v5844_v54 = vand.u32 4294901760, %v5843_v50  ;;  %v36533_v9 = vand.u32 4294901760, %v30996_v35  ;;  %v26678_v12 = vpack.c.bf16 %v30968_v32, %v30966_v63 }
 0x320   : > { %37336 = vst [vmem:[#allocation25_spill] sm:$0xff] %v31204_v33  ;;  %26673 = vmatprep.subr.bf16.mxu0 %v26672_v30  ;;  %v5805_v18 = vsub.f32 %v31188_v44, %v36527_v29  ;;  %v36530_v47 = vand.u32 4294901760, %v31204_v33  ;;  %v5969_v30 = vsub.f32 %v30985_v39, %v36529_v7  ;;  %v26680_v7 = vpack.c.bf16 %v30985_v39, %v30976_v3 }
 0x321   : > { %37337 = vst [vmem:[#allocation64_spill] sm:$0xff] %v31209_v43  ;;  %26395 = vmatpush3.bf16.msra.mxu1 %v37286_v62  ;;  %v31221_v58 = vpack.c.bf16 %v5844_v54, %v5837_v22  ;;  %v5962_v62 = vsub.f32 %v30976_v3, %v36528_v46  ;;  %v5857_v54 = vsub.f32 %v30998_v13, %v36534_v0 }
 0x322   : > { %26397 = vmatprep.subr.bf16.mxu1 %v37288_v2  ;;  %5798 = vmatmul.mubr.f32.vlgmr.msra.gmra.mrb[48].mxu0 %v5797_v59  ;;  %v5806_v50 = vand.u32 4294901760, %v5805_v18  ;;  %v5811_v29 = vsub.f32 %v31204_v33, %v36530_v47  ;;  %v5850_v2 = vsub.f32 %v30996_v35, %v36533_v9  ;;  %v5970_v46 = vand.u32 4294901760, %v5969_v30 }
 0x323   : > { %37338 = vst [vmem:[#allocation67_spill] sm:$0xff] %v31221_v58  ;;  %26675 = vmatpush3.bf16.msra.mxu0 %v26674_v42  ;;  %v5963_v22 = vand.u32 4294901760, %v5962_v62  ;;  %v36538_v59 = vand.u32 4294901760, %v31003_v36  ;;  %v5858_v21 = vand.u32 4294901760, %v5857_v54  ;;  %v36536_v9 = vand.u32 4294901760, %v31007_v17  ;;  %v37357_v58 = vld [vmem:[#allocation35_spill] sm:$0xff] }
 0x324   : > { %5807 = vmatprep.mubr.f32.mxu0 %v5806_v50  ;;  %v5812_v18 = vand.u32 4294901760, %v5811_v29  ;;  %v5851_v47 = vand.u32 4294901760, %v5850_v2  ;;  %26677 = vmatprep.subr.bf16.mxu0 %v26676_v24  ;;  %v36535_v62 = vand.u32 4294901760, %v31018_v26  ;;  %v36537_v30 = vand.u32 4294901760, %v31020_v16 }
 0x325   : > { %26399 = vmatpush3.bf16.msra.mxu1 %v37290_v5  ;;  %v31246_v0 = vpack.c.bf16 %v5970_v46, %v5963_v22  ;;  %v5976_v42 = vsub.f32 %v31003_v36, %v36538_v59  ;;  %v23009_v5 = vpop.f32.mrb[22].mxu0  ;;  %v26682_v50 = vpack.c.bf16 %v30998_v13, %v30996_v35  ;;  %v26684_v24 = vpack.c.bf16 %v31007_v17, %v31003_v36 }
 0x326   : > { %26401 = vmatprep.subr.bf16.mxu1 %v37292_v20  ;;  %5813 = vmatmul.mubr.f32.gmra.mrb[50].mxu0 %v5812_v18  ;;  %v31253_v29 = vpack.c.bf16 %v5858_v21, %v5851_v47  ;;  %v5983_v20 = vsub.f32 %v31007_v17, %v36536_v9  ;;  %v5864_v2 = vsub.f32 %v31018_v26, %v36535_v62  ;;  %v36541_v47 = vand.u32 4294901760, %v31033_v11 }
 0x327   : > { %37339 = vst [vmem:[#allocation69_spill] sm:$0xff] %v31246_v0  ;;  %26679 = vmatpush3.bf16.msra.mxu0 %v26678_v12  ;;  %v5977_v46 = vand.u32 4294901760, %v5976_v42  ;;  %v5871_v21 = vsub.f32 %v31020_v16, %v36537_v30  ;;  %6187 = vmatprep.mubr.f32.mxu0 %v31131_v25  ;;  %v36539_v22 = vand.u32 4294901760, %v31037_v6  ;;  %v36540_v12 = vand.u32 4294901760, %v31041_v8  ;;  %v23010_v42 = vpop.f32.mrb[23].mxu0  ;;  %v37352_v25 = vld [vmem:[#allocation47_spill] sm:$0xff] }
 0x328   : > { %37340 = vst [vmem:[#allocation91_spill] sm:$0xff] %v31253_v29  ;;  %26681 = vmatprep.subr.bf16.mxu0 %v26680_v7  ;;  %v5984_v54 = vand.u32 4294901760, %v5983_v20  ;;  %v36544_v18 = vand.u32 4294901760, %v31050_v52  ;;  %v5865_v62 = vand.u32 4294901760, %v5864_v2  ;;  %v5990_v30 = vsub.f32 %v31033_v11, %v36541_v47 }
 0x329   : > { %26403 = vmatpush3.bf16.msra.mxu1 %v37295_v38  ;;  %v5872_v9 = vand.u32 4294901760, %v5871_v21  ;;  %v31278_v59 = vadd.f32 %v23010_v42, %v23009_v5  ;;  %v5997_v7 = vsub.f32 %v31037_v6, %v36539_v22  ;;  %v5878_v20 = vsub.f32 %v31041_v8, %v36540_v12 }
 0x32a   : > { %26405 = vmatprep.subr.bf16.mxu1 %v37297_v31  ;;  %v31280_v38 = vpack.c.bf16 %v5984_v54, %v5977_v46  ;;  %v5885_v31 = vsub.f32 %v31050_v52, %v36544_v18  ;;  %v26686_v5 = vpack.c.bf16 %v31020_v16, %v31018_v26  ;;  %v5991_v46 = vand.u32 4294901760, %v5990_v30  ;;  %v37344_v54 = vld [vmem:[#allocation56_spill] sm:$0xff] }
 0x32b   : > { %37341 = vst [vmem:[#allocation92_spill] sm:$0xff] %v31278_v59  ;;  %26683 = vmatpush3.bf16.msra.mxu0 %v26682_v50  ;;  %v31291_v2 = vpack.c.bf16 %v5872_v9, %v5865_v62  ;;  %v26688_v21 = vpack.c.bf16 %v31037_v6, %v31033_v11  ;;  %v5998_v42 = vand.u32 4294901760, %v5997_v7  ;;  %v5879_v22 = vand.u32 4294901760, %v5878_v20  ;;  %v37346_v50 = vld [vmem:[#allocation14_spill] sm:$0xff]  ;;  %v37477_v59 = vld [vmem:[#allocation81_spill] sm:$0xff] }
 0x32c   : > { %37342 = vst [vmem:[#allocation93_spill] sm:$0xff] %v31280_v38  ;;  %26685 = vmatprep.subr.bf16.mxu0 %v26684_v24  ;;  %v5886_v12 = vand.u32 4294901760, %v5885_v31  ;;  %v36547_v47 = vand.u32 4294901760, %v31075_v19  ;;  %v26690_v9 = vpack.c.bf16 %v31050_v52, %v31041_v8  ;;  %v36549_v62 = vand.u32 4294901760, %v31077_v51 }
 0x32d   : > { %37343 = vst [vmem:[#allocation94_spill] sm:$0xff] %v31291_v2  ;;  %26407 = vmatpush3.bf16.msra.mxu1 %v37344_v54  ;;  %v36550_v30 = vand.u32 4294901760, %v31079_v37  ;;  %v36551_v18 = vand.u32 4294901760, %v37346_v50  ;;  %v31305_v56 = vpack.c.bf16 %v5998_v42, %v5991_v46  ;;  %v37350_v46 = vld [vmem:[#allocation61_spill] sm:$0xff] }
 0x32e   : > { %26409 = vmatprep.subr.bf16.mxu1 %v37345_v49  ;;  %v31307_v54 = vpack.c.bf16 %v5886_v12, %v5879_v22  ;;  %v6004_v24 = vsub.f32 %v31075_v19, %v36547_v47  ;;  %v26692_v49 = vpack.c.bf16 %v31077_v51, %v31075_v19  ;;  %v6011_v7 = vsub.f32 %v31077_v51, %v36549_v62  ;;  %v37349_v12 = vld [vmem:[#allocation42_spill] sm:$0xff]  ;;  %v37351_v47 = vld [vmem:[#allocation43_spill] sm:$0xff] }
 0x32f   : > { %37347 = vst [vmem:[#allocation56_spill] sm:$0xff] %v31305_v56  ;;  %26687 = vmatpush3.bf16.msra.mxu0 %v26686_v5  ;;  %v5892_v20 = vsub.f32 %v31079_v37, %v36550_v30  ;;  %v5899_v22 = vsub.f32 %v37346_v50, %v36551_v18  ;;  %v36552_v31 = vand.u32 4294901760, %v37349_v12  ;;  %v36553_v5 = vand.u32 4294901760, %v37351_v47  ;;  %v37353_v56 = vld [vmem:[#allocation63_spill] sm:$0xff] }
 0x330   : > { %37348 = vst [vmem:[#allocation58_spill] sm:$0xff] %v31307_v54  ;;  %26689 = vmatprep.subr.bf16.mxu0 %v26688_v21  ;;  %v6005_v42 = vand.u32 4294901760, %v6004_v24  ;;  %v36554_v54 = vand.u32 4294901760, %v37352_v25  ;;  %v36555_v62 = vand.u32 4294901760, %v31116_v4  ;;  %v6012_v2 = vand.u32 4294901760, %v6011_v7 }
 0x331   : > { %26411 = vmatpush3.bf16.msra.mxu1 %v37350_v46  ;;  %v5893_v30 = vand.u32 4294901760, %v5892_v20  ;;  %v5900_v38 = vand.u32 4294901760, %v5899_v22  ;;  %v6018_v18 = vsub.f32 %v37349_v12, %v36552_v31  ;;  %v6025_v21 = vsub.f32 %v37351_v47, %v36553_v5  ;;  %v37356_v31 = vld [vmem:[#allocation30_spill] sm:$0xff] }
 0x332   : > { %26413 = vmatprep.subr.bf16.mxu1 %v37353_v56  ;;  %v5906_v24 = vsub.f32 %v37352_v25, %v36554_v54  ;;  %v5913_v46 = vsub.f32 %v31116_v4, %v36555_v62  ;;  %v31341_v56 = vpack.c.bf16 %v6012_v2, %v6005_v42  ;;  %v26694_v20 = vpack.c.bf16 %v37346_v50, %v31079_v37  ;;  %v23082_v62 = vpop.f32.mrb[24].mxu0 }
 0x333   : > { %26691 = vmatpush3.bf16.msra.mxu0 %v26690_v9  ;;  %v31343_v7 = vpack.c.bf16 %v5900_v38, %v5893_v30  ;;  %v6019_v22 = vand.u32 4294901760, %v6018_v18  ;;  %v6026_v5 = vand.u32 4294901760, %v6025_v21  ;;  %v36556_v54 = vand.u32 4294901760, %v31120_v60  ;;  %v37358_v38 = vld [vmem:[#allocation50_spill] sm:$0xff]  ;;  %v23083_v42 = vpop.f32.mrb[25].mxu0 }
 0x334   : > { %37354 = vst [vmem:[#allocation14_spill] sm:$0xff] %v31341_v56  ;;  %26693 = vmatprep.subr.bf16.mxu0 %v26692_v49  ;;  %v5907_v29 = vand.u32 4294901760, %v5906_v24  ;;  %v5914_v0 = vand.u32 4294901760, %v5913_v46  ;;  %v26696_v2 = vpack.c.bf16 %v37351_v47, %v37349_v12  ;;  %v36557_v9 = vand.u32 4294901760, %v37358_v38  ;;  %v37361_v24 = vld [vmem:[#allocation59_spill] sm:$0xff] }
 0x335   : > { %37355 = vst [vmem:[#allocation42_spill] sm:$0xff] %v31343_v7  ;;  %26415 = vmatpush3.bf16.msra.mxu1 %v37356_v31  ;;  %v36558_v30 = vand.u32 4294901760, %v31128_v55  ;;  %v31355_v31 = vpack.c.bf16 %v6026_v5, %v6019_v22  ;;  %v26698_v21 = vpack.c.bf16 %v31116_v4, %v37352_v25  ;;  %v31365_v46 = vadd.f32 %v23083_v42, %v23082_v62  ;;  %v37364_v5 = vld [vmem:[#allocation33_spill] sm:$0xff]  ;;  %v37366_v62 = vld [vmem:[#allocation26_spill] sm:$0xff] }
 0x336   : > { %26449 = vmatprep.subr.bf16.mxu1 %v37357_v58  ;;  %v31357_v49 = vpack.c.bf16 %v5914_v0, %v5907_v29  ;;  %v6032_v58 = vsub.f32 %v31120_v60, %v36556_v54  ;;  %v6039_v18 = vsub.f32 %v37358_v38, %v36557_v9  ;;  %v37363_v29 = vld [vmem:[#allocation83_spill] sm:$0xff]  ;;  %v37365_v54 = vand.u32 4294901760, %v31144_v1 }
 0x337   : > { %37359 = vst [vmem:[#allocation61_spill] sm:$0xff] %v31355_v31  ;;  %37362 = vst [vmem:[#allocation47_spill] sm:$0xff] %v31365_v46  ;;  %26695 = vmatpush3.bf16.msra.mxu0 %v26694_v20  ;;  %v5920_v0 = vsub.f32 %v31128_v55, %v36558_v30  ;;  %v23085_v20 = vpop.f32.mrb[26].mxu0  ;;  %v26700_v9 = vpack.c.bf16 %v37358_v38, %v31120_v60  ;;  %v37367_v31 = vld [vmem:[#allocation68_spill] sm:$0xff] }
 0x338   : > { %37360 = vst [vmem:[#allocation43_spill] sm:$0xff] %v31357_v49  ;;  %4761 = vmatmul.mubr.f32.vlgmr.msra.gmra.mrb[22].mxu1 %v37361_v24  ;;  %v6033_v22 = vand.u32 4294901760, %v6032_v58  ;;  %v5927_v24 = vsub.f32 %v31144_v1, %v37365_v54  ;;  %26697 = vmatprep.subr.bf16.mxu0 %v26696_v2  ;;  %v6040_v42 = vand.u32 4294901760, %v6039_v18  ;;  %v23086_v46 = vpop.f32.mrb[27].mxu0  ;;  %v26702_v54 = vpack.c.bf16 %v31144_v1, %v31128_v55  ;;  %v37371_v2 = vld [vmem:[#allocation20_spill] sm:$0xff] }
 0x339   : > { %26451 = vmatpush3.bf16.msra.mxu1 %v37363_v29  ;;  %4766 = vmatprep.mubr.f32.mxu1 %v37364_v5  ;;  %v5921_v49 = vand.u32 4294901760, %v5920_v0  ;;  %v31382_v29 = vadd.f32 %v23086_v46, %v23085_v20  ;;  %v37370_v5 = vld [vmem:[#allocation86_spill] sm:$0xff]  ;;  %v37373_v0 = vand.u32 4294901760, %v30929_v23  ;;  %v37377_v46 = vand.u32 4294901760, %v30939_v53  ;;  %v37378_v20 = vld [vmem:[#allocation88_spill] sm:$0xff] }
 0x33a   : > { %26453 = vmatprep.subr.bf16.mxu1 %v37366_v62  ;;  %v5928_v30 = vand.u32 4294901760, %v5927_v24  ;;  %v31384_v58 = vpack.c.bf16 %v6040_v42, %v6033_v22  ;;  %v37374_v24 = vand.u32 4294901760, %v30931_v28  ;;  %v37381_v42 = vld [vmem:[#allocation89_spill] sm:$0xff]  ;;  %v37382_v28 = vand.u32 4294901760, %v30966_v63 }
 0x33b   : > { %37368 = vst [vmem:[#allocation63_spill] sm:$0xff] %v31382_v29  ;;  %26699 = vmatpush3.bf16.msra.mxu0 %v26698_v21  ;;  %v37376_v21 = vand.u32 4294901760, %v30937_v40  ;;  %v37383_v40 = vand.u32 4294901760, %v30968_v32  ;;  %v37389_v63 = vand.u32 4294901760, %v30998_v13  ;;  %v37390_v32 = vld [vmem:[#allocation21_spill] sm:$0xff]  ;;  %v37396_v13 = vld [vmem:[#allocation23_spill] sm:$0xff] }
 0x33c   : > { %4768 = vmatmul.mubr.f32.gmra.mrb[24].mxu1 %v37367_v31  ;;  %37369 = vst [vmem:[#allocation30_spill] sm:$0xff] %v31384_v58  ;;  %v31390_v18 = vpack.c.bf16 %v5928_v30, %v5921_v49  ;;  %v26736_v62 = vpack.c.bf16 %v37374_v24, %v37373_v0  ;;  %v37375_v31 = vld [vmem:[#allocation87_spill] sm:$0xff]  ;;  %26701 = vmatprep.subr.bf16.mxu0 %v26700_v9  ;;  %v37379_v30 = vand.u32 4294901760, %v30953_v57  ;;  %v37380_v49 = vand.u32 4294901760, %v30962_v61  ;;  %v37384_v9 = vld [vmem:[#allocation90_spill] sm:$0xff] }
 0x33d   : > { %26455 = vmatpush3.bf16.msra.mxu1 %v37370_v5  ;;  %5125 = vmatprep.mubr.f32.mxu1 %v37371_v2  ;;  %v26738_v22 = vpack.c.bf16 %v37377_v46, %v37376_v21  ;;  %v26742_v53 = vpack.c.bf16 %v37383_v40, %v37382_v28  ;;  %v37385_v57 = vand.u32 4294901760, %v30976_v3  ;;  %v37386_v61 = vand.u32 4294901760, %v30985_v39  ;;  %v37387_v5 = vld [vmem:[#allocation17_spill] sm:$0xff] }
 0x33e   : > { %37372 = vst [vmem:[#allocation35_spill] sm:$0xff] %v31390_v18  ;;  %26457 = vmatprep.subr.bf16.mxu1 %v37375_v31  ;;  %v26740_v23 = vpack.c.bf16 %v37380_v49, %v37379_v30  ;;  %v37388_v0 = vand.u32 4294901760, %v30996_v35  ;;  %v37391_v3 = vand.u32 4294901760, %v31003_v36  ;;  %v37392_v39 = vand.u32 4294901760, %v31007_v17  ;;  %v37393_v31 = vld [vmem:[#allocation18_spill] sm:$0xff]  ;;  %v37399_v36 = vld [vmem:[#allocation75_spill] sm:$0xff] }
 0x33f   : > { %26703 = vmatpush3.bf16.msra.mxu0 %v26702_v54  ;;  %v26744_v54 = vpack.c.bf16 %v37386_v61, %v37385_v57  ;;  %v37394_v21 = vand.u32 4294901760, %v31018_v26  ;;  %v37395_v35 = vand.u32 4294901760, %v31020_v16  ;;  %v37400_v17 = vand.u32 4294901760, %v31041_v8  ;;  %v37402_v26 = vld [vmem:[#allocation77_spill] sm:$0xff]  ;;  %v37408_v8 = vld [vmem:[#allocation27_spill] sm:$0xff] }
 0x340   : > { %26737 = vmatprep.subr.bf16.mxu0 %v26736_v62  ;;  %v26746_v24 = vpack.c.bf16 %v37389_v63, %v37388_v0  ;;  %v26748_v62 = vpack.c.bf16 %v37392_v39, %v37391_v3  ;;  %v37401_v49 = vand.u32 4294901760, %v31050_v52  ;;  %v37403_v16 = vand.u32 4294901760, %v31075_v19  ;;  %v37409_v52 = vld [vmem:[#allocation49_spill] sm:$0xff]  ;;  %v37416_v63 = vld [vmem:[#allocation44_spill] sm:$0xff] }
 0x341   : > { %26459 = vmatpush3.bf16.msra.mxu1 %v37378_v20  ;;  %v26750_v46 = vpack.c.bf16 %v37395_v35, %v37394_v21  ;;  %v37398_v20 = vand.u32 4294901760, %v31037_v6  ;;  %v37406_v6 = vand.u32 4294901760, %v31079_v37  ;;  %v37407_v40 = vand.u32 4294901760, %v37346_v50  ;;  %v31464_v61 = vld [vmem:[%s36227_s3 + $0x480] sm:$0xff]  ;;  %v31469_v37 = vld [vmem:[%s36227_s3 + $0x488] sm:$0xff] }
 0x342   : > { %26461 = vmatprep.subr.bf16.mxu1 %v37381_v42  ;;  %6190 = vmatmul.mubr.f32.vlgmr.msra.gmra.mrb[52].mxu0 %v31147_v27  ;;  %v37404_v42 = vand.u32 4294901760, %v31077_v51  ;;  %v37410_v57 = vand.u32 4294901760, %v37349_v12  ;;  %v37411_v19 = vand.u32 4294901760, %v37351_v47  ;;  %v37414_v12 = vand.u32 4294901760, %v37352_v25  ;;  %v31485_v39 = vld [vmem:[%s36227_s3 + $0x400] sm:$0xff]  ;;  %v31490_v25 = vld [vmem:[%s36227_s3 + $0x408] sm:$0xff] }
 0x343   : > { %26739 = vmatpush3.bf16.msra.mxu0 %v26738_v22  ;;  %6196 = vmatprep.mubr.f32.mxu0 %v31188_v44  ;;  %v37397_v22 = vand.u32 4294901760, %v31033_v11  ;;  %v37405_v11 = vld [vmem:[#allocation24_spill] sm:$0xff]  ;;  %v37415_v47 = vand.u32 4294901760, %v31116_v4  ;;  %v36564_v3 = vand.u32 4294901760, %v31469_v37  ;;  %v37418_v4 = vld [vmem:[#allocation45_spill] sm:$0xff]  ;;  %v37420_v21 = vand.u32 4294901760, %v37358_v38 }
 0x344   : > { %26741 = vmatprep.subr.bf16.mxu0 %v26740_v23  ;;  %v26754_v23 = vpack.c.bf16 %v37401_v49, %v37400_v17  ;;  %v26756_v28 = vpack.c.bf16 %v37404_v42, %v37403_v16  ;;  %v26760_v51 = vpack.c.bf16 %v37411_v19, %v37410_v57  ;;  %v37424_v38 = vand.u32 4294901760, %v31144_v1  ;;  %v37431_v19 = vld [vmem:[#allocation9_spill] sm:$0xff] }
 0x345   : > { %26463 = vmatpush3.bf16.msra.mxu1 %v37384_v9  ;;  %v26752_v30 = vpack.c.bf16 %v37398_v20, %v37397_v22  ;;  %v26762_v0 = vpack.c.bf16 %v37415_v47, %v37414_v12  ;;  %v37421_v20 = vld [vmem:[#allocation84_spill] sm:$0xff]  ;;  %v6610_v17 = vand.u32 4294901760, %v31485_v39  ;;  %v6613_v49 = vand.u32 4294901760, %v31490_v25  ;;  %v31563_v47 = vld [vmem:[%s36227_s3 + $0x420] sm:$0xff] }
 0x346   : > { %26465 = vmatprep.subr.bf16.mxu1 %v37387_v5  ;;  %6199 = vmatmul.mubr.f32.gmra.mrb[54].mxu0 %v31204_v33  ;;  %v37444_v33 = vand.u32 4294901760, %v31464_v61  ;;  %v37445_v44 = vand.u32 4294901760, %v31469_v37 }
 0x347   : > { %26743 = vmatpush3.bf16.msra.mxu0 %v26742_v53  ;;  %6484 = vmatprep.mubr.f32.mxu0 %v31071_v45  ;;  %v26758_v53 = vpack.c.bf16 %v37407_v40, %v37406_v6  ;;  %v37429_v6 = vld [vmem:[#allocation7_spill] sm:$0xff]  ;;  %v31541_v40 = vld [vmem:[%s36227_s3 + $0x4a0] sm:$0xff] }
 0x348   : > { %26745 = vmatprep.subr.bf16.mxu0 %v26744_v54  ;;  %v37412_v54 = vld [vmem:[#allocation76_spill] sm:$0xff]  ;;  %v31675_v27 = vsub.f32 %v31469_v37, %v37445_v44 }
 0x349   : > { %26467 = vmatpush3.bf16.msra.mxu1 %v37390_v32  ;;  %v36565_v32 = vand.u32 4294901760, %v31464_v61 }
 0x34a   : > { %26469 = vmatprep.subr.bf16.mxu1 %v37393_v31  ;;  %v37419_v31 = vand.u32 4294901760, %v31120_v60  ;;  %v37423_v60 = vand.u32 4294901760, %v31128_v55 }
 0x34b   : > { %26747 = vmatpush3.bf16.msra.mxu0 %v26746_v24  ;;  %v37417_v24 = vld [vmem:[#allocation39_spill] sm:$0xff]  ;;  %v31523_v42 = vpack.c.bf16 %v36564_v3, %v36565_v32  ;;  %v31654_v32 = vld [vmem:[%s36227_s3 + $0x448] sm:$0xff] }
 0x34c   : > { %26749 = vmatprep.subr.bf16.mxu0 %v26748_v62  ;;  %v26764_v35 = vpack.c.bf16 %v37420_v21, %v37419_v31  ;;  %v31574_v31 = vld [vmem:[%s36227_s3 + $0x4b0] sm:$0xff]  ;;  %v31579_v21 = vld [vmem:[%s36227_s3 + $0x4b8] sm:$0xff] }
 0x34d   : > { %26471 = vmatpush3.bf16.msra.mxu1 %v37396_v13  ;;  %v31505_v13 = vld [vmem:[%s36227_s3 + $0x498] sm:$0xff]  ;;  %37428 = vst [vmem:[#allocation83_spill] sm:$0xff] %v31523_v42 }
 0x34e   : > { %26473 = vmatprep.subr.bf16.mxu1 %v37399_v36  ;;  %v26766_v36 = vpack.c.bf16 %v37424_v38, %v37423_v60  ;;  %v36561_v1 = vand.u32 4294901760, %v31505_v13  ;;  %v37435_v38 = vld [vmem:[#allocation31_spill] sm:$0xff] }
 0x34f   : > { %26751 = vmatpush3.bf16.msra.mxu0 %v26750_v46  ;;  %v31500_v46 = vld [vmem:[%s36227_s3 + $0x490] sm:$0xff] }
 0x350   : > { %26753 = vmatprep.subr.bf16.mxu0 %v26752_v30  ;;  %v6664_v55 = vand.u32 4294901760, %v31500_v46 }
 0x351   : > { %26475 = vmatpush3.bf16.msra.mxu1 %v37402_v26  ;;  %v37426_v26 = vld [vmem:[#allocation79_spill] sm:$0xff] }
 0x352   : > { %26477 = vmatprep.subr.bf16.mxu1 %v37405_v11  ;;  %v37427_v16 = vand.u32 4294901760, %v37426_v26  ;;  %v31535_v11 = vld [vmem:[%s36227_s3 + $0x418] sm:$0xff]  ;;  %v37439_v26 = vld [vmem:[#allocation13_spill] sm:$0xff] }
 0x353   : > { %26755 = vmatpush3.bf16.msra.mxu0 %v26754_v23  ;;  %v23158_v9 = vpop.f32.mrb[28].mxu0  ;;  %v37425_v23 = vld [vmem:[#allocation6_spill] sm:$0xff]  ;;  %v36559_v57 = vand.u32 4294901760, %v31535_v11 }
 0x354   : > { %26757 = vmatprep.subr.bf16.mxu0 %v26756_v28  ;;  %v23159_v50 = vpop.f32.mrb[29].mxu0  ;;  %v31530_v28 = vld [vmem:[%s36227_s3 + $0x410] sm:$0xff] }
 0x355   : > { %26479 = vmatpush3.bf16.msra.mxu1 %v37408_v8  ;;  %v31472_v5 = vadd.f32 %v23159_v50, %v23158_v9  ;;  %v31548_v8 = vpack.c.bf16 %v6613_v49, %v6610_v17  ;;  %v36560_v9 = vand.u32 4294901760, %v31530_v28  ;;  %v36563_v50 = vand.u32 4294901760, %v31541_v40 }
 0x356   : > { %26513 = vmatprep.subr.bf16.mxu1 %v37409_v52 }
 0x357   : > { %37413 = vst [vmem:[#allocation50_spill] sm:$0xff] %v31472_v5  ;;  %26759 = vmatpush3.bf16.msra.mxu0 %v26758_v53  ;;  %v23161_v62 = vpop.f32.mrb[30].mxu0  ;;  %v31546_v53 = vld [vmem:[%s36227_s3 + $0x4a8] sm:$0xff]  ;;  %37430 = vst [vmem:[#allocation33_spill] sm:$0xff] %v31548_v8 }
 0x358   : > { %5127 = vmatmul.mubr.f32.vlgmr.msra.gmra.mrb[26].mxu1 %v37412_v54  ;;  %26761 = vmatprep.subr.bf16.mxu0 %v26760_v51  ;;  %v23162_v22 = vpop.f32.mrb[31].mxu0  ;;  %v31556_v51 = vpack.c.bf16 %v36561_v1, %v6664_v55  ;;  %v36562_v12 = vand.u32 4294901760, %v31546_v53  ;;  %v37437_v1 = vld [vmem:[#allocation12_spill] sm:$0xff]  ;;  %v37468_v54 = vand.u32 4294901760, %v31546_v53 }
 0x359   : > { %26515 = vmatpush3.bf16.msra.mxu1 %v37416_v63  ;;  %5132 = vmatprep.mubr.f32.mxu1 %v37417_v24  ;;  %v31508_v30 = vadd.f32 %v23162_v22, %v23161_v62  ;;  %v37433_v62 = vld [vmem:[#allocation10_spill] sm:$0xff]  ;;  %v36575_v22 = vand.u32 4294901760, %v31563_v47 }
 0x35a   : > { %26517 = vmatprep.subr.bf16.mxu1 %v37418_v4  ;;  %37432 = vst [vmem:[#allocation26_spill] sm:$0xff] %v31556_v51  ;;  %v31767_v10 = vsub.f32 %v31546_v53, %v37468_v54 }
 0x35b   : > { %37422 = vst [vmem:[#allocation59_spill] sm:$0xff] %v31508_v30  ;;  %26763 = vmatpush3.bf16.msra.mxu0 %v26762_v0  ;;  %v31568_v0 = vld [vmem:[%s36227_s3 + $0x428] sm:$0xff]  ;;  %v31678_v30 = vsub.f32 %v31485_v39, %v6610_v17  ;;  %v31698_v39 = vld [vmem:[%s36227_s3 + $0x450] sm:$0xff]  ;;  %v37449_v17 = vld [vmem:[#allocation16_spill] sm:$0xff] }
 0x35c   : > { %5134 = vmatmul.mubr.f32.gmra.mrb[28].mxu1 %v37421_v20  ;;  %26765 = vmatprep.subr.bf16.mxu0 %v26764_v35  ;;  %v31588_v35 = vpack.c.bf16 %v36559_v57, %v36560_v9  ;;  %v36574_v60 = vand.u32 4294901760, %v31568_v0  ;;  %v31605_v57 = vld [vmem:[%s36227_s3 + $0x430] sm:$0xff]  ;;  %v31610_v9 = vld [vmem:[%s36227_s3 + $0x438] sm:$0xff] }
 0x35d   : > { %26519 = vmatpush3.bf16.msra.mxu1 %v37425_v23  ;;  %5385 = vmatprep.mubr.f32.mxu1 %v37427_v16  ;;  %v31649_v16 = vld [vmem:[%s36227_s3 + $0x440] sm:$0xff] }
 0x35e   : > { %26521 = vmatprep.subr.bf16.mxu1 %v37429_v6  ;;  %37434 = vst [vmem:[#allocation68_spill] sm:$0xff] %v31588_v35  ;;  %v31629_v3 = vpack.c.bf16 %v36574_v60, %v36575_v22  ;;  %v31670_v22 = vld [vmem:[%s36227_s3 + $0x4d8] sm:$0xff]  ;;  %v6634_v44 = vand.u32 4294901760, %v31649_v16 }
 0x35f   : > { %26767 = vmatpush3.bf16.msra.mxu0 %v26766_v36  ;;  %v31598_v36 = vpack.c.bf16 %v36562_v12, %v36563_v50  ;;  %v31616_v12 = vld [vmem:[%s36227_s3 + $0x4c0] sm:$0xff]  ;;  %v31621_v50 = vld [vmem:[%s36227_s3 + $0x4c8] sm:$0xff] }
 0x360   : > { %26801 = vmatprep.subr.bf16.mxu0 %v31523_v42  ;;  %37438 = vst [vmem:[#allocation20_spill] sm:$0xff] %v31629_v3 }
 0x361   : > { %26523 = vmatpush3.bf16.msra.mxu1 %v37431_v19  ;;  %37436 = vst [vmem:[#allocation86_spill] sm:$0xff] %v31598_v36 }
 0x362   : > { %26525 = vmatprep.subr.bf16.mxu1 %v37433_v62  ;;  %6486 = vmatmul.mubr.f32.vlgmr.msra.gmra.mrb[56].mxu0 %v31087_v48  ;;  %v37447_v48 = vand.u32 4294901760, %v31610_v9 }
 0x363   : > { %26803 = vmatpush3.bf16.msra.mxu0 %v31548_v8  ;;  %6491 = vmatprep.mubr.f32.mxu0 %v31172_v15  ;;  %v37441_v8 = vand.u32 4294901760, %v31579_v21  ;;  %v37446_v15 = vand.u32 4294901760, %v31605_v57 }
 0x364   : > { %26805 = vmatprep.subr.bf16.mxu0 %v31556_v51  ;;  %v22646_v51 = vld [vmem:[%s36226_s2 + $0x98] ss:$0 sm:$0xff] }
 0x365   : > { %26527 = vmatpush3.bf16.msra.mxu1 %v37435_v38  ;;  %v31691_v18 = vpack.c.bf16 %v37447_v48, %v37446_v15  ;;  %v37450_v48 = vand.u32 4294901760, %v31616_v12  ;;  %v37451_v15 = vand.u32 4294901760, %v31621_v50 }
 0x366   : > { %26529 = vmatprep.subr.bf16.mxu1 %v37437_v1  ;;  %6493 = vmatmul.mubr.f32.gmra.mrb[58].mxu0 %v31193_v34 }
 0x367   : > { %26807 = vmatpush3.bf16.msra.mxu0 %v31588_v35  ;;  %v37440_v35 = vand.u32 4294901760, %v31574_v31  ;;  %37448 = vst [vmem:[#allocation88_spill] sm:$0xff] %v31691_v18 }
 0x368   : > { %26809 = vmatprep.subr.bf16.mxu0 %v31598_v36  ;;  %v37443_v36 = vld [vmem:[#allocation15_spill] sm:$0xff] }
 0x369   : > { %26531 = vmatpush3.bf16.msra.mxu1 %v37439_v26  ;;  %v31642_v42 = vpack.c.bf16 %v37441_v8, %v37440_v35  ;;  %v31660_v8 = vsub.f32 %v31464_v61, %v37444_v33  ;;  %v31665_v35 = vld [vmem:[%s36227_s3 + $0x4d0] sm:$0xff]  ;;  %v31681_v33 = vsub.f32 %v31490_v25, %v6613_v49  ;;  %v31684_v61 = vsub.f32 %v31500_v46, %v6664_v55  ;;  %v31703_v25 = vld [vmem:[%s36227_s3 + $0x458] sm:$0xff] }
 0x36a   : > { %26533 = vmatprep.subr.bf16.mxu1 %v37443_v36  ;;  %v25230_v60 = vpop.f32.mrb[2].mxu1  ;;  %v31711_v49 = vpack.c.bf16 %v37451_v15, %v37450_v48  ;;  %v6688_v55 = vand.u32 4294901760, %v31665_v35  ;;  %v37456_v48 = vand.u32 4294901760, %v31535_v11 }
 0x36b   : > { %37442 = vst [vmem:[#allocation87_spill] sm:$0xff] %v31642_v42  ;;  %v28226_v5 = vadd.f32 %v25230_v60, %v22646_v51  ;;  %v2622_v34 = vpop.f32.mrb[3].mxu1  ;;  %26811 = vmatpush3.bf16.msra.mxu0 %v31629_v3  ;;  %v6691_v60 = vand.u32 4294901760, %v31670_v22  ;;  %v37453_v3 = vld [vmem:[#allocation74_spill] sm:$0xff] }
 0x36c   : > { %v28227_v46 = vadd.f32 %v22646_v51, %v2622_v34  ;;  %26813 = vmatprep.subr.bf16.mxu0 %v31642_v42  ;;  %37452 = vst [vmem:[#allocation89_spill] sm:$0xff] %v31711_v49  ;;  %v37454_v34 = vand.u32 4294901760, %v31505_v13  ;;  %v37455_v42 = vand.u32 4294901760, %v31530_v28  ;;  %v31730_v15 = vsub.f32 %v31535_v11, %v37456_v48 }
 0x36d   : > { %26535 = vmatpush3.bf16.msra.mxu1 %v37449_v17  ;;  %v10897_v37 = vsel %vm818_vm1, %v28226_v5, 0  ;;  %v37459_v48 = vand.u32 4294901760, %v31654_v32 }
 0x36e   : > { %26537 = vmatprep.subr.bf16.mxu1 %v37453_v3  ;;  %v31720_v29 = vsub.f32 %v31505_v13, %v37454_v34  ;;  %v31725_v58 = vsub.f32 %v31530_v28, %v37455_v42  ;;  %v10903_v7 = vand.u32 4294901760, %v10897_v37  ;;  %v10894_v56 = vsel %vm818_vm1, %v28227_v46, 0  ;;  %v25233_v45 = vpop.f32.mrb[4].mxu1  ;;  %11370 = vrot.lane.b32.xlu1 %v28227_v46, %s28763_s10  ;;  %v2832_v46 = vld [vmem:[%s36227_s3 + $0x4e0] sm:$0xff] }
 0x36f   : > { %v6640_v13 = vand.u32 4294901760, %v31698_v39  ;;  %v6643_v34 = vand.u32 4294901760, %v31703_v25  ;;  %v10900_v20 = vand.u32 4294901760, %v10894_v56  ;;  %v31736_v43 = vadd.f32 %v25233_v45, %v22646_v51  ;;  %v2634_v42 = vpop.f32.mrb[5].mxu1  ;;  %26815 = vmatpush3.bf16.msra.mxu0 %v31691_v18 }
 0x370   : > { %v37458_v28 = vand.u32 4294901760, %v31541_v40  ;;  %v31746_v24 = vpack.c.bf16 %v37459_v48, %v6634_v44  ;;  %v31751_v14 = vsub.f32 %v10897_v37, %v10903_v7  ;;  %v31753_v45 = vadd.f32 %v22646_v51, %v2634_v42  ;;  %26817 = vmatprep.subr.bf16.mxu0 %v31711_v49  ;;  %v37467_v48 = vld [vmem:[#allocation80_spill] sm:$0xff]  ;;  %v2833_v42 = vld [vmem:[%s36227_s3 + $0x4e8] sm:$0xff] }
 0x371   : > { %37457 = vst [vmem:[#allocation90_spill] sm:$0xff] %v31736_v43  ;;  %v37463_v43 = vld [vmem:[#allocation78_spill] sm:$0xff]  ;;  %v31761_v18 = vsub.f32 %v10894_v56, %v10900_v20  ;;  %v37469_v51 = vand.u32 4294901760, %v31563_v47  ;;  %v37470_v56 = vand.u32 4294901760, %v31568_v0  ;;  %v31784_v54 = vpack.c.bf16 %v6643_v34, %v6640_v13 }
 0x372   : > { %v31741_v11 = vsub.f32 %v31541_v40, %v37458_v28  ;;  %37460 = vst [vmem:[#allocation17_spill] sm:$0xff] %v31746_v24  ;;  %37461 = vst [vmem:[#allocation21_spill] sm:$0xff] %v31751_v14  ;;  %26539 = vmatpush3.bf16.msra.mxu1 %v37463_v43  ;;  %v31757_v40 = vpack.c.bf16 %v6691_v60, %v6688_v55  ;;  %v31759_v28 = vpack.c.bf16 %v10903_v7, %v10900_v20 }
 0x373   : > { %37462 = vst [vmem:[#allocation18_spill] sm:$0xff] %v31753_v45  ;;  %37466 = vst [vmem:[#allocation77_spill] sm:$0xff] %v31761_v18  ;;  %26541 = vmatprep.subr.bf16.mxu1 %v37467_v48  ;;  %v31772_v37 = vsub.f32 %v31563_v47, %v37469_v51  ;;  %11372 = vrot.lane.b32.xlu1 %v28226_v5, %s28763_s10  ;;  %v31782_v20 = vsub.f32 %v31568_v0, %v37470_v56  ;;  %v6694_v53 = vand.u32 4294901760, %v2832_v46  ;;  %v2816_v47 = vld [vmem:[%s36227_s3 + $0x460] sm:$0xff] }
 0x374   : > { %37464 = vst [vmem:[#allocation23_spill] sm:$0xff] %v31757_v40  ;;  %37465 = vst [vmem:[#allocation75_spill] sm:$0xff] %v31759_v28  ;;  %v37472_v45 = vand.u32 4294901760, %v31574_v31  ;;  %v37473_v5 = vand.u32 4294901760, %v31579_v21  ;;  %v37474_v0 = vand.u32 4294901760, %v31605_v57  ;;  %26819 = vmatpush3.bf16.msra.mxu0 %v31746_v24  ;;  %v37475_v49 = vand.u32 4294901760, %v31751_v14 }
 0x375   : > { %37471 = vst [vmem:[#allocation24_spill] sm:$0xff] %v31784_v54  ;;  %26821 = vmatprep.subr.bf16.mxu0 %v31757_v40  ;;  %v6646_v40 = vand.u32 4294901760, %v2816_v47 }
 0x376   : > { %v31793_v7 = vsub.f32 %v31574_v31, %v37472_v45  ;;  %v31798_v28 = vsub.f32 %v31579_v21, %v37473_v5  ;;  %v31803_v56 = vsub.f32 %v31605_v57, %v37474_v0  ;;  %v31809_v51 = vsub.f32 %v31751_v14, %v37475_v49  ;;  %26543 = vmatpush3.bf16.msra.mxu1 %v37477_v59  ;;  %v2817_v49 = vld [vmem:[%s36227_s3 + $0x468] sm:$0xff]  ;;  %v2834_v14 = vld [vmem:[%s36227_s3 + $0x4f0] sm:$0xff] }
 0x377   : > { %v37478_v31 = vand.u32 4294901760, %v31610_v9  ;;  %v37479_v21 = vand.u32 4294901760, %v31616_v12  ;;  %v6697_v57 = vand.u32 4294901760, %v2833_v42  ;;  %v37481_v0 = vand.u32 4294901760, %v31761_v18  ;;  %26577 = vmatprep.subr.bf16.mxu1 %v37409_v52  ;;  %v2818_v59 = vld [vmem:[%s36227_s3 + $0x470] sm:$0xff] }
 0x378   : > { %37476 = vst [vmem:[#allocation27_spill] sm:$0xff] %v31809_v51  ;;  %v37485_v52 = vand.u32 4294901760, %v31654_v32  ;;  %26823 = vmatpush3.bf16.msra.mxu0 %v31784_v54 }
 0x379   : > { %v31815_v45 = vsub.f32 %v31610_v9, %v37478_v31  ;;  %v31820_v5 = vsub.f32 %v31616_v12, %v37479_v21  ;;  %v31829_v24 = vsub.f32 %v31761_v18, %v37481_v0  ;;  %v37482_v9 = vand.u32 4294901760, %v31621_v50  ;;  %v23234_v21 = vpop.f32.mrb[32].mxu0  ;;  %v2835_v0 = vld [vmem:[%s36227_s3 + $0x4f8] sm:$0xff] }
 0x37a   : > { %v31838_v12 = vsub.f32 %v31649_v16, %v6634_v44  ;;  %v31849_v18 = vsub.f32 %v31654_v32, %v37485_v52  ;;  %v31855_v16 = vsub.f32 %v31670_v22, %v6691_v60  ;;  %v31857_v44 = vpack.c.bf16 %v6697_v57, %v6694_v53  ;;  %v37490_v60 = vld [vmem:[#allocation41_spill] sm:$0xff] }
 0x37b   : > { %37480 = vst [vmem:[#allocation49_spill] sm:$0xff] %v31820_v5  ;;  %v31835_v31 = vsub.f32 %v31621_v50, %v37482_v9  ;;  %v23235_v50 = vpop.f32.mrb[33].mxu0  ;;  %v31852_v9 = vsub.f32 %v31665_v35, %v6688_v55  ;;  %v31868_v32 = vsub.f32 %v31698_v39, %v6640_v13  ;;  %v31871_v35 = vsub.f32 %v31703_v25, %v6643_v34  ;;  %v2819_v39 = vld [vmem:[%s36227_s3 + $0x478] sm:$0xff]  ;;  %v2652_v25 = vld [vmem:[%s29295_s19 + $0x40] sm:$0xff] }
 0x37c   : > { %37484 = vst [vmem:[#allocation45_spill] sm:$0xff] %v31838_v12  ;;  %37486 = vst [vmem:[#allocation6_spill] sm:$0xff] %v31857_v44  ;;  %v37487_v12 = vld [vmem:[#allocation82_spill] sm:$0xff]  ;;  %v31864_v5 = vadd.f32 %v23235_v50, %v23234_v21  ;;  %v6649_v22 = vand.u32 4294901760, %v2817_v49  ;;  %v37491_v52 = vand.u32 4294901760, %v37490_v60  ;;  %v6703_v21 = vand.u32 4294901760, %v2835_v0  ;;  %26825 = vmatprep.subr.bf16.mxu0 %v31857_v44 }
 0x37d   : > { %37483 = vst [vmem:[#allocation44_spill] sm:$0xff] %v31835_v31  ;;  %v37488_v31 = vand.u32 4294901760, %v37487_v12  ;;  %v6700_v12 = vand.u32 4294901760, %v2834_v14  ;;  %v23237_v13 = vpop.f32.mrb[34].mxu0  ;;  %v31890_v60 = vsub.f32 %v2816_v47, %v6646_v40 }
 0x37e   : > { %37489 = vst [vmem:[#allocation79_spill] sm:$0xff] %v31864_v5  ;;  %v31887_v34 = vpack.c.bf16 %v6649_v22, %v6646_v40  ;;  %v23238_v50 = vpop.f32.mrb[35].mxu0  ;;  %v36618_v40 = vand.u32 4294901760, %v31675_v27 }
 0x37f   : > { %5389 = vmatmul.mubr.f32.vlgmr.msra.gmra.mrb[30].mxu1 %v37488_v31  ;;  %v31877_v31 = vsub.f32 %v2832_v46, %v6694_v53  ;;  %v6652_v46 = vand.u32 4294901760, %v2818_v59  ;;  %v2653_v53 = vld [vmem:[%s29295_s19 + $0x48] sm:$0xff]  ;;  %v31894_v55 = vpack.c.bf16 %v6703_v21, %v6700_v12  ;;  %v31896_v54 = vsub.f32 %v2834_v14, %v6700_v12 }
 0x380   : > { %26579 = vmatpush3.bf16.msra.mxu1 %v37416_v63  ;;  %5396 = vmatprep.mubr.f32.mxu1 %v37491_v52  ;;  %v31885_v63 = vsub.f32 %v2833_v42, %v6697_v57  ;;  %37492 = vst [vmem:[#allocation7_spill] sm:$0xff] %v31887_v34  ;;  %v31892_v52 = vsub.f32 %v2817_v49, %v6649_v22  ;;  %v6655_v57 = vand.u32 4294901760, %v2819_v39  ;;  %v36619_v14 = vand.u32 4294901760, %v31660_v8 }
 0x381   : > { %26581 = vmatprep.subr.bf16.mxu1 %v37418_v4  ;;  %37493 = vst [vmem:[#allocation9_spill] sm:$0xff] %v31894_v55  ;;  %v37494_v4 = vld [vmem:[#allocation85_spill] sm:$0xff]  ;;  %v31901_v44 = vadd.f32 %v23238_v50, %v23237_v13  ;;  %26827 = vmatpush3.bf16.msra.mxu0 %v31887_v34  ;;  %v31904_v42 = vsub.f32 %v2835_v0, %v6703_v21  ;;  %v31912_v47 = vand.u32 4294901760, %v2653_v53 }
 0x382   : > { %v37495_v5 = vand.u32 4294901760, %v37494_v4  ;;  %v31906_v51 = vsub.f32 %v2818_v59, %v6652_v46  ;;  %26829 = vmatprep.subr.bf16.mxu0 %v31894_v55  ;;  %v31917_v49 = vpack.c.bf16 %v6655_v57, %v6652_v46  ;;  %v31919_v59 = vsub.f32 %v2819_v39, %v6655_v57 }
 0x383   : > { %37496 = vst [vmem:[#allocation10_spill] sm:$0xff] %v31901_v44  ;;  %37497 = vst [vmem:[#allocation31_spill] sm:$0xff] %v31912_v47  ;;  %v6852_v0 = vsub.f32 %v31660_v8, %v36619_v14  ;;  %v6859_v22 = vsub.f32 %v31675_v27, %v36618_v40  ;;  %v26864_v13 = vpack.c.bf16 %v31675_v27, %v31660_v8  ;;  %v36624_v40 = vand.u32 4294901760, %v31684_v61 }
 0x384   : > { %5400 = vmatmul.mubr.f32.gmra.mrb[32].mxu1 %v37495_v5  ;;  %v36616_v5 = vand.u32 4294901760, %v31678_v30  ;;  %37498 = vst [vmem:[#allocation12_spill] sm:$0xff] %v31917_v49  ;;  %v26866_v46 = vpack.c.bf16 %v31681_v33, %v31678_v30  ;;  %v36630_v14 = vand.u32 4294901760, %v31720_v29 }
 0x385   : > { %26583 = vmatpush3.bf16.msra.mxu1 %v37425_v23  ;;  %5677 = vmatprep.mubr.f32.mxu1 %v37371_v2  ;;  %v36617_v23 = vand.u32 4294901760, %v31681_v33  ;;  %v31922_v2 = vand.u32 4294901760, %v2652_v25  ;;  %v6853_v50 = vand.u32 4294901760, %v6852_v0  ;;  %v6860_v4 = vand.u32 4294901760, %v6859_v22 }
 0x386   : > { %26585 = vmatprep.subr.bf16.mxu1 %v37429_v6  ;;  %v31931_v6 = vsub.f32 %v2653_v53, %v31912_v47  ;;  %v6740_v12 = vsub.f32 %v31678_v30, %v36616_v5  ;;  %26831 = vmatpush3.bf16.msra.mxu0 %v31917_v49  ;;  %v2669_v53 = vld [vmem:[%s29295_s19 + $0xc8] sm:$0xff]  ;;  %v36629_v22 = vand.u32 4294901760, %v31725_v58 }
 0x387   : > { %37499 = vst [vmem:[#allocation13_spill] sm:$0xff] %v31922_v2  ;;  %v6747_v21 = vsub.f32 %v31681_v33, %v36617_v23  ;;  %v31941_v39 = vsub.f32 %v2652_v25, %v31922_v2  ;;  %26865 = vmatprep.subr.bf16.mxu0 %v26864_v13  ;;  %v31954_v49 = vpack.c.bf16 %v6860_v4, %v6853_v50  ;;  %v31959_v0 = vand.u32 4294901760, %v2669_v53 }
 0x388   : > { %37500 = vst [vmem:[#allocation15_spill] sm:$0xff] %v31931_v6  ;;  %v36622_v57 = vand.u32 4294901760, %v31931_v6  ;;  %v6741_v5 = vand.u32 4294901760, %v6740_v12  ;;  %v2668_v12 = vld [vmem:[%s29295_s19 + $0xc0] sm:$0xff]  ;;  %v6866_v13 = vsub.f32 %v31684_v61, %v36624_v40  ;;  %v6873_v50 = vsub.f32 %v31720_v29, %v36630_v14 }
 0x389   : > { %37501 = vst [vmem:[#allocation16_spill] sm:$0xff] %v31941_v39  ;;  %26587 = vmatpush3.bf16.msra.mxu1 %v37431_v19  ;;  %v6748_v23 = vand.u32 4294901760, %v6747_v21  ;;  %v36623_v25 = vand.u32 4294901760, %v31941_v39  ;;  %37502 = vst [vmem:[#allocation74_spill] sm:$0xff] %v31954_v49  ;;  %v31983_v34 = vand.u32 4294901760, %v2668_v12  ;;  %v37511_v49 = vld [vmem:[#allocation37_spill] sm:$0xff] }
 0x38a   : > { %26589 = vmatprep.subr.bf16.mxu1 %v37433_v62  ;;  %v6708_v19 = vsub.f32 %v31931_v6, %v36622_v57  ;;  %37503 = vst [vmem:[#allocation78_spill] sm:$0xff] %v31959_v0  ;;  %v31976_v57 = vsub.f32 %v2669_v53, %v31959_v0  ;;  %v6867_v40 = vand.u32 4294901760, %v6866_v13  ;;  %v6874_v55 = vand.u32 4294901760, %v6873_v50 }
 0x38b   : > { %v31963_v62 = vpack.c.bf16 %v6748_v23, %v6741_v5  ;;  %v6714_v21 = vsub.f32 %v31941_v39, %v36623_v25  ;;  %v6754_v5 = vsub.f32 %v31725_v58, %v36629_v22  ;;  %v36632_v23 = vand.u32 4294901760, %v31730_v15  ;;  %37506 = vst [vmem:[#allocation41_spill] sm:$0xff] %v31983_v34 }
 0x38c   : > { %v6709_v4 = vand.u32 4294901760, %v6708_v19  ;;  %37505 = vst [vmem:[#allocation82_spill] sm:$0xff] %v31976_v57  ;;  %v26868_v22 = vpack.c.bf16 %v31720_v29, %v31684_v61  ;;  %v31991_v14 = vpack.c.bf16 %v6874_v55, %v6867_v40  ;;  %v36633_v13 = vand.u32 4294901760, %v31741_v11 }
 0x38d   : > { %37504 = vst [vmem:[#allocation80_spill] sm:$0xff] %v31963_v62  ;;  %26591 = vmatpush3.bf16.msra.mxu1 %v37435_v38  ;;  %v6715_v25 = vand.u32 4294901760, %v6714_v21  ;;  %v36631_v38 = vand.u32 4294901760, %v31976_v57  ;;  %v6755_v19 = vand.u32 4294901760, %v6754_v5  ;;  %v6761_v53 = vsub.f32 %v31730_v15, %v36632_v23  ;;  %v22968_v5 = vpop.f32.mrb[6].mxu1 }
 0x38e   : > { %26593 = vmatprep.subr.bf16.mxu1 %v37437_v1  ;;  %6710 = vmatprep.mubr.f32.mxu0 %v6709_v4  ;;  %37507 = vst [vmem:[#allocation85_spill] sm:$0xff] %v31991_v14  ;;  %v31994_v1 = vsub.f32 %v2668_v12, %v31983_v34  ;;  %v26870_v21 = vpack.c.bf16 %v31730_v15, %v31725_v58  ;;  %v36635_v55 = vand.u32 4294901760, %v31772_v37  ;;  %v22969_v23 = vpop.f32.mrb[7].mxu1  ;;  %v37510_v14 = vand.u32 4294901760, %v31782_v20 }
 0x38f   : > { %6716 = vmatmul.mubr.f32.vlgmr.msra.gmra.mrb[60].mxu0 %v6715_v25  ;;  %v6723_v50 = vsub.f32 %v31976_v57, %v36631_v38  ;;  %v6762_v4 = vand.u32 4294901760, %v6761_v53  ;;  %v36634_v25 = vand.u32 4294901760, %v31767_v10  ;;  %v6880_v12 = vsub.f32 %v31741_v11, %v36633_v13  ;;  %v22971_v34 = vpop.f32.mrb[8].mxu1 }
 0x390   : > { %37508 = vst [vmem:[#allocation95_spill] sm:$0xff] %v31994_v1  ;;  %26867 = vmatpush3.bf16.msra.mxu0 %v26866_v46  ;;  %v36636_v40 = vand.u32 4294901760, %v31994_v1  ;;  %v26872_v46 = vpack.c.bf16 %v31767_v10, %v31741_v11 }
 0x391   : > { %26595 = vmatpush3.bf16.msra.mxu1 %v37439_v26  ;;  %26869 = vmatprep.subr.bf16.mxu0 %v26868_v22  ;;  %v6724_v53 = vand.u32 4294901760, %v6723_v50  ;;  %v32013_v38 = vpack.c.bf16 %v6762_v4, %v6755_v19  ;;  %v6768_v22 = vsub.f32 %v31772_v37, %v36635_v55  ;;  %v6881_v26 = vand.u32 4294901760, %v6880_v12 }
 0x392   : > { %26597 = vmatprep.subr.bf16.mxu1 %v37443_v36  ;;  %v6887_v36 = vsub.f32 %v31767_v10, %v36634_v25  ;;  %v6729_v13 = vsub.f32 %v31994_v1, %v36636_v40  ;;  %v6775_v50 = vsub.f32 %v31782_v20, %v37510_v14  ;;  %v26874_v19 = vpack.c.bf16 %v31782_v20, %v31772_v37 }
 0x393   : > { %37509 = vst [vmem:[#allocation96_spill] sm:$0xff] %v32013_v38  ;;  %v22970_v4 = vadd.f32 %v22969_v23, %v22968_v5  ;;  %6725 = vmatprep.mubr.f32.mxu0 %v6724_v53  ;;  %v6769_v38 = vand.u32 4294901760, %v6768_v22  ;;  %v36646_v55 = vand.u32 4294901760, %v31793_v7  ;;  %v36645_v40 = vand.u32 4294901760, %v31798_v28 }
 0x394   : > { %v6888_v25 = vand.u32 4294901760, %v6887_v36  ;;  %v6730_v62 = vand.u32 4294901760, %v6729_v13  ;;  %26871 = vmatpush3.bf16.msra.mxu0 %v26870_v21  ;;  %v6776_v12 = vand.u32 4294901760, %v6775_v50  ;;  %v36642_v14 = vand.u32 4294901760, %v31803_v56  ;;  %v37515_v50 = vld [vmem:[#allocation8_spill] sm:$0xff] }
 0x395   : > { %26599 = vmatpush3.bf16.msra.mxu1 %v37449_v17  ;;  %v3555_v44 = vadd.f32 %v22970_v4, %v37511_v49  ;;  %26873 = vmatprep.subr.bf16.mxu0 %v26872_v46  ;;  %v6894_v17 = vsub.f32 %v31793_v7, %v36646_v55  ;;  %v36639_v5 = vand.u32 4294901760, %v31815_v45  ;;  %v6901_v13 = vsub.f32 %v31798_v28, %v36645_v40  ;;  %v37516_v4 = vld [vmem:[#allocation44_spill] sm:$0xff] }
 0x396   : > { %26601 = vmatprep.subr.bf16.mxu1 %v37453_v3  ;;  %v32035_v23 = vpack.c.bf16 %v6888_v25, %v6881_v26  ;;  %v22972_v3 = vpop.f32.mrb[9].mxu1  ;;  %6731 = vmatmul.mubr.f32.gmra.mrb[62].mxu0 %v6730_v62  ;;  %v32041_v21 = vpack.c.bf16 %v6776_v12, %v6769_v38  ;;  %v6782_v49 = vsub.f32 %v31803_v56, %v36642_v14  ;;  %v36641_v12 = vand.u32 4294901760, %v37516_v4 }
 0x397   : > { %v26876_v25 = vpack.c.bf16 %v31798_v28, %v31793_v7  ;;  %v32052_v26 = vadd.f32 %v31141_v41, %v3555_v44  ;;  %v22973_v46 = vadd.f32 %v22972_v3, %v22971_v34  ;;  %v6895_v62 = vand.u32 4294901760, %v6894_v17  ;;  %7105 = vmatprep.mubr.f32.mxu0 %v31931_v6  ;;  %v37514_v41 = vld [vmem:[#allocation49_spill] sm:$0xff]  ;;  %v37525_v6 = vld [vmem:[#allocation19_spill] sm:$0xff] }
 0x398   : > { %37512 = vst [vmem:[#allocation37_spill] sm:$0xff] %v32035_v23  ;;  %37513 = vst [vmem:[#allocation97_spill] sm:$0xff] %v32041_v21  ;;  %v6789_v38 = vsub.f32 %v31815_v45, %v36639_v5  ;;  %26875 = vmatpush3.bf16.msra.mxu0 %v26874_v19  ;;  %v6902_v53 = vand.u32 4294901760, %v6901_v13  ;;  %v6783_v36 = vand.u32 4294901760, %v6782_v49  ;;  %v26878_v22 = vpack.c.bf16 %v31815_v45, %v31803_v56  ;;  %v37517_v17 = vld [vmem:[#allocation45_spill] sm:$0xff] }
 0x399   : > { %26603 = vmatpush3.bf16.msra.mxu1 %v37463_v43  ;;  %v36640_v44 = vand.u32 4294901760, %v37514_v41  ;;  %v3566_v43 = vadd.f32 %v22973_v46, %v37515_v50  ;;  %26877 = vmatprep.subr.bf16.mxu0 %v26876_v25  ;;  %v36643_v3 = vand.u32 4294901760, %v37517_v17  ;;  %v36644_v19 = vand.u32 4294901760, %v31849_v18  ;;  %v37519_v49 = vld [vmem:[#allocation81_spill] sm:$0xff]  ;;  %v37520_v46 = vld [vmem:[#allocation92_spill] sm:$0xff] }
 0x39a   : > { %26605 = vmatprep.subr.bf16.mxu1 %v37467_v48  ;;  %v6790_v34 = vand.u32 4294901760, %v6789_v38  ;;  %v32066_v5 = vpack.c.bf16 %v6902_v53, %v6895_v62  ;;  %v26880_v13 = vpack.c.bf16 %v37516_v4, %v37514_v41  ;;  %v6915_v62 = vsub.f32 %v37516_v4, %v36641_v12  ;;  %v37522_v50 = vld [vmem:[#allocation53_spill] sm:$0xff] }
 0x39b   : > { %v6908_v48 = vsub.f32 %v37514_v41, %v36640_v44  ;;  %v32076_v38 = vadd.f32 %v37520_v46, %v3566_v43  ;;  %v6796_v53 = vsub.f32 %v37517_v17, %v36643_v3  ;;  %v36648_v43 = vand.u32 4294901760, %v31852_v9 }
 0x39c   : > { %37518 = vst [vmem:[#allocation49_spill] sm:$0xff] %v32066_v5  ;;  %v32078_v25 = vpack.c.bf16 %v6790_v34, %v6783_v36  ;;  %26879 = vmatpush3.bf16.msra.mxu0 %v26878_v22  ;;  %v26882_v36 = vpack.c.bf16 %v31849_v18, %v37517_v17  ;;  %v23310_v34 = vpop.f32.mrb[36].mxu0  ;;  %v6916_v46 = vand.u32 4294901760, %v6915_v62  ;;  %v36649_v14 = vand.u32 4294901760, %v31855_v16  ;;  %v37523_v22 = vld [vmem:[#allocation76_spill] sm:$0xff]  ;;  %v37526_v62 = vld [vmem:[#allocation39_spill] sm:$0xff] }
 0x39d   : > { %26607 = vmatpush3.bf16.msra.mxu1 %v37519_v49  ;;  %v6909_v44 = vand.u32 4294901760, %v6908_v48  ;;  %v6803_v49 = vsub.f32 %v31849_v18, %v36644_v19  ;;  %v6797_v12 = vand.u32 4294901760, %v6796_v53  ;;  %26881 = vmatprep.subr.bf16.mxu0 %v26880_v13  ;;  %v36650_v3 = vand.u32 4294901760, %v31868_v32 }
 0x39e   : > { %37521 = vst [vmem:[#allocation8_spill] sm:$0xff] %v32078_v25  ;;  %26641 = vmatprep.subr.bf16.mxu1 %v37522_v50  ;;  %v23311_v50 = vpop.f32.mrb[37].mxu0  ;;  %v6922_v19 = vsub.f32 %v31852_v9, %v36648_v43  ;;  %v36651_v40 = vand.u32 4294901760, %v31871_v35  ;;  %v6929_v53 = vsub.f32 %v31855_v16, %v36649_v14  ;;  %v37528_v43 = vld [vmem:[#allocation64_spill] sm:$0xff] }
 0x39f   : > { %v6804_v48 = vand.u32 4294901760, %v6803_v49  ;;  %v32100_v55 = vadd.f32 %v23311_v50, %v23310_v34  ;;  %v32104_v13 = vpack.c.bf16 %v6916_v46, %v6909_v44  ;;  %v6810_v49 = vsub.f32 %v31868_v32, %v36650_v3  ;;  %v23313_v50 = vpop.f32.mrb[38].mxu0 }
 0x3a0   : > { %5679 = vmatmul.mubr.f32.vlgmr.msra.gmra.mrb[34].mxu1 %v37523_v22  ;;  %v36652_v22 = vand.u32 4294901760, %v31877_v31  ;;  %26883 = vmatpush3.bf16.msra.mxu0 %v26882_v36  ;;  %v6817_v44 = vsub.f32 %v31871_v35, %v36651_v40  ;;  %v26884_v46 = vpack.c.bf16 %v31855_v16, %v31852_v9  ;;  %v26886_v3 = vpack.c.bf16 %v31871_v35, %v31868_v32  ;;  %v37530_v36 = vld [vmem:[#allocation84_spill] sm:$0xff] }
 0x3a1   : > { %37524 = vst [vmem:[#allocation44_spill] sm:$0xff] %v32100_v55  ;;  %26643 = vmatpush3.bf16.msra.mxu1 %v37525_v6  ;;  %5684 = vmatprep.mubr.f32.mxu1 %v37526_v62  ;;  %37527 = vst [vmem:[#allocation45_spill] sm:$0xff] %v32104_v13  ;;  %v32114_v34 = vpack.c.bf16 %v6804_v48, %v6797_v12  ;;  %v6923_v6 = vand.u32 4294901760, %v6922_v19  ;;  %v6930_v62 = vand.u32 4294901760, %v6929_v53  ;;  %v6811_v14 = vand.u32 4294901760, %v6810_v49  ;;  %v37531_v53 = vld [vmem:[#allocation67_spill] sm:$0xff] }
 0x3a2   : > { %26645 = vmatprep.subr.bf16.mxu1 %v37528_v43  ;;  %v6936_v12 = vsub.f32 %v31877_v31, %v36652_v22  ;;  %v23314_v43 = vpop.f32.mrb[39].mxu0  ;;  %v6818_v19 = vand.u32 4294901760, %v6817_v44  ;;  %26885 = vmatprep.subr.bf16.mxu0 %v26884_v46  ;;  %v36654_v48 = vand.u32 4294901760, %v31885_v63  ;;  %v36653_v40 = vand.u32 4294901760, %v31890_v60  ;;  %v37532_v49 = vld [vmem:[#allocation34_spill] sm:$0xff]  ;;  %v37535_v44 = vld [vmem:[#allocation69_spill] sm:$0xff] }
 0x3a3   : > { %37529 = vst [vmem:[#allocation81_spill] sm:$0xff] %v32114_v34  ;;  %v36655_v55 = vand.u32 4294901760, %v31892_v52  ;;  %v32132_v34 = vpack.c.bf16 %v6930_v62, %v6923_v6  ;;  %v32134_v25 = vadd.f32 %v23314_v43, %v23313_v50  ;;  %v36656_v62 = vand.u32 4294901760, %v31896_v54 }
 0x3a4   : > { %5686 = vmatmul.mubr.f32.gmra.mrb[36].mxu1 %v37530_v36  ;;  %v6937_v13 = vand.u32 4294901760, %v6936_v12  ;;  %v26888_v36 = vpack.c.bf16 %v31885_v63, %v31877_v31  ;;  %v32139_v46 = vpack.c.bf16 %v6818_v19, %v6811_v14  ;;  %26887 = vmatpush3.bf16.msra.mxu0 %v26886_v3  ;;  %v6943_v22 = vsub.f32 %v31885_v63, %v36654_v48 }
 0x3a5   : > { %26647 = vmatpush3.bf16.msra.mxu1 %v37531_v53  ;;  %6043 = vmatprep.mubr.f32.mxu1 %v37532_v49  ;;  %37533 = vst [vmem:[#allocation92_spill] sm:$0xff] %v32132_v34  ;;  %37534 = vst [vmem:[#allocation53_spill] sm:$0xff] %v32134_v25  ;;  %v6824_v6 = vsub.f32 %v31890_v60, %v36653_v40  ;;  %v6831_v50 = vsub.f32 %v31892_v52, %v36655_v55  ;;  %v36657_v3 = vand.u32 4294901760, %v31904_v42  ;;  %v37537_v40 = vld [vmem:[#allocation91_spill] sm:$0xff] }
 0x3a6   : > { %26649 = vmatprep.subr.bf16.mxu1 %v37535_v44  ;;  %37536 = vst [vmem:[#allocation76_spill] sm:$0xff] %v32139_v46  ;;  %26889 = vmatprep.subr.bf16.mxu0 %v26888_v36  ;;  %v26890_v14 = vpack.c.bf16 %v31892_v52, %v31890_v60  ;;  %v36658_v12 = vand.u32 4294901760, %v31906_v51  ;;  %v6944_v43 = vand.u32 4294901760, %v6943_v22  ;;  %v6950_v53 = vsub.f32 %v31896_v54, %v36656_v62 }
 0x3a7   : > { %v6825_v19 = vand.u32 4294901760, %v6824_v6  ;;  %v36659_v44 = vand.u32 4294901760, %v31919_v59  ;;  %v6832_v48 = vand.u32 4294901760, %v6831_v50  ;;  %v6957_v36 = vsub.f32 %v31904_v42, %v36657_v3  ;;  %v37538_v6 = vld [vmem:[#allocation93_spill] sm:$0xff] }
 0x3a8   : > { %v6838_v55 = vsub.f32 %v31906_v51, %v36658_v12  ;;  %v26892_v22 = vpack.c.bf16 %v31904_v42, %v31896_v54  ;;  %v32169_v25 = vpack.c.bf16 %v6944_v43, %v6937_v13  ;;  %26891 = vmatpush3.bf16.msra.mxu0 %v26890_v14  ;;  %v6951_v62 = vand.u32 4294901760, %v6950_v53  ;;  %v37543_v14 = vld [vmem:[#allocation94_spill] sm:$0xff] }
 0x3a9   : > { %26651 = vmatpush3.bf16.msra.mxu1 %v37537_v40  ;;  %v6845_v40 = vsub.f32 %v31919_v59, %v36659_v44  ;;  %v26894_v50 = vpack.c.bf16 %v31919_v59, %v31906_v51  ;;  %v32176_v3 = vpack.c.bf16 %v6832_v48, %v6825_v19  ;;  %v6958_v46 = vand.u32 4294901760, %v6957_v36  ;;  %v37550_v36 = vld [vmem:[#allocation27_spill] sm:$0xff] }
 0x3aa   : > { %26653 = vmatprep.subr.bf16.mxu1 %v37538_v6  ;;  %37539 = vst [vmem:[#allocation19_spill] sm:$0xff] %v32169_v25  ;;  %v6839_v12 = vand.u32 4294901760, %v6838_v55  ;;  %26893 = vmatprep.subr.bf16.mxu0 %v26892_v22  ;;  %v37541_v34 = vand.u32 4294901760, %v31660_v8  ;;  %v37542_v6 = vand.u32 4294901760, %v31675_v27  ;;  %v37545_v25 = vld [vmem:[#allocation56_spill] sm:$0xff]  ;;  %v37547_v48 = vand.u32 4294901760, %v31678_v30 }
 0x3ab   : > { %37540 = vst [vmem:[#allocation39_spill] sm:$0xff] %v32176_v3  ;;  %v6846_v43 = vand.u32 4294901760, %v6845_v40  ;;  %v32183_v53 = vpack.c.bf16 %v6958_v46, %v6951_v62  ;;  %v37548_v55 = vand.u32 4294901760, %v31681_v33  ;;  %v37549_v8 = vand.u32 4294901760, %v31829_v24  ;;  %v37556_v22 = vld [vmem:[#allocation21_spill] sm:$0xff]  ;;  %v37560_v24 = vld [vmem:[#allocation58_spill] sm:$0xff] }
 0x3ac   : > { %v26928_v13 = vpack.c.bf16 %v37542_v6, %v37541_v34  ;;  %26895 = vmatpush3.bf16.msra.mxu0 %v26894_v50  ;;  %v37551_v27 = vand.u32 4294901760, %v37550_v36  ;;  %v37553_v46 = vand.u32 4294901760, %v31684_v61  ;;  %v37554_v62 = vand.u32 4294901760, %v31720_v29  ;;  %v37561_v6 = vld [vmem:[#allocation14_spill] sm:$0xff] }
 0x3ad   : > { %26655 = vmatpush3.bf16.msra.mxu1 %v37543_v14  ;;  %37544 = vst [vmem:[#allocation64_spill] sm:$0xff] %v32183_v53  ;;  %v32186_v44 = vpack.c.bf16 %v6846_v43, %v6839_v12  ;;  %v26930_v19 = vpack.c.bf16 %v37548_v55, %v37547_v48  ;;  %v37555_v12 = vld [vmem:[#allocation77_spill] sm:$0xff]  ;;  %v37558_v33 = vand.u32 4294901760, %v37556_v22  ;;  %v37562_v61 = vand.u32 4294901760, %v31725_v58  ;;  %v23044_v43 = vpop.f32.mrb[10].mxu1 }
 0x3ae   : > { %26657 = vmatprep.subr.bf16.mxu1 %v37545_v25  ;;  %v32196_v34 = vpack.c.bf16 %v37551_v27, %v37549_v8  ;;  %26929 = vmatprep.subr.bf16.mxu0 %v26928_v13  ;;  %v26932_v25 = vpack.c.bf16 %v37554_v62, %v37553_v46  ;;  %v37557_v30 = vand.u32 4294901760, %v37555_v12  ;;  %v37563_v29 = vand.u32 4294901760, %v31730_v15  ;;  %v23045_v8 = vpop.f32.mrb[11].mxu1  ;;  %v37566_v27 = vld [vmem:[#allocation42_spill] sm:$0xff]  ;;  %v37613_v12 = vld [vmem:[#allocation57_spill] sm:$0xff] }
 0x3af   : > { %37546 = vst [vmem:[#allocation84_spill] sm:$0xff] %v32186_v44  ;;  %7108 = vmatmul.mubr.f32.vlgmr.msra.gmra.mrb[64].mxu0 %v31941_v39  ;;  %v37564_v14 = vand.u32 4294901760, %v31741_v11  ;;  %v37565_v48 = vand.u32 4294901760, %v31767_v10  ;;  %v23046_v36 = vadd.f32 %v23045_v8, %v23044_v43  ;;  %v37568_v58 = vand.u32 4294901760, %v31772_v37  ;;  %v23047_v11 = vpop.f32.mrb[12].mxu1  ;;  %v37573_v37 = vld [vmem:[#allocation43_spill] sm:$0xff] }
 0x3b0   : > { %37552 = vst [vmem:[#allocation67_spill] sm:$0xff] %v32196_v34  ;;  %v32208_v50 = vpack.c.bf16 %v37558_v33, %v37557_v30  ;;  %26931 = vmatpush3.bf16.msra.mxu0 %v26930_v19  ;;  %v26934_v13 = vpack.c.bf16 %v37563_v29, %v37562_v61  ;;  %7114 = vmatprep.mubr.f32.mxu0 %v31976_v57  ;;  %v37567_v19 = vld [vmem:[#allocation61_spill] sm:$0xff]  ;;  %v37569_v15 = vand.u32 4294901760, %v31782_v20  ;;  %v37570_v10 = vand.u32 4294901760, %v31793_v7  ;;  %v23048_v33 = vpop.f32.mrb[13].mxu1  ;;  %v37574_v20 = vld [vmem:[#allocation30_spill] sm:$0xff] }
 0x3b1   : > { %26659 = vmatpush3.bf16.msra.mxu1 %v37560_v24  ;;  %26933 = vmatprep.subr.bf16.mxu0 %v26932_v25  ;;  %v26936_v55 = vpack.c.bf16 %v37565_v48, %v37564_v14  ;;  %v3845_v62 = vadd.f32 %v23046_v36, %v32052_v26  ;;  %v37571_v25 = vand.u32 4294901760, %v31798_v28  ;;  %v37572_v24 = vld [vmem:[#allocation47_spill] sm:$0xff]  ;;  %v23049_v61 = vadd.f32 %v23048_v33, %v23047_v11  ;;  %v37581_v36 = vld [vmem:[#allocation28_spill] sm:$0xff]  ;;  %v37589_v11 = vld [vmem:[#allocation54_spill] sm:$0xff] }
 0x3b2   : > { %37559 = vst [vmem:[#allocation34_spill] sm:$0xff] %v32208_v50  ;;  %26661 = vmatprep.subr.bf16.mxu1 %v37561_v6  ;;  %v26938_v46 = vpack.c.bf16 %v37569_v15, %v37568_v58  ;;  %v37575_v26 = vand.u32 4294901760, %v31803_v56  ;;  %v37576_v29 = vand.u32 4294901760, %v31815_v45  ;;  %v37578_v43 = vand.u32 4294901760, %v37516_v4  ;;  %v37579_v48 = vld [vmem:[#allocation63_spill] sm:$0xff]  ;;  %v37586_v15 = vld [vmem:[#allocation60_spill] sm:$0xff] }
 0x3b3   : > { %7117 = vmatmul.mubr.f32.gmra.mrb[66].mxu0 %v31994_v1  ;;  %v26940_v30 = vpack.c.bf16 %v37571_v25, %v37570_v10  ;;  %v32236_v6 = vadd.f32 %v37572_v24, %v3845_v62  ;;  %v3852_v28 = vadd.f32 %v23049_v61, %v32076_v38  ;;  %v37580_v8 = vld [vmem:[#allocation35_spill] sm:$0xff]  ;;  %v37582_v56 = vand.u32 4294901760, %v37517_v17  ;;  %v37588_v62 = vld [vmem:[#allocation65_spill] sm:$0xff]  ;;  %v37590_v17 = vld [vmem:[#allocation32_spill] sm:$0xff] }
 0x3b4   : > { %26935 = vmatpush3.bf16.msra.mxu0 %v26934_v13  ;;  %7402 = vmatprep.mubr.f32.mxu0 %v31912_v47  ;;  %v26942_v7 = vpack.c.bf16 %v37576_v29, %v37575_v26  ;;  %v37577_v13 = vand.u32 4294901760, %v37514_v41  ;;  %v37583_v45 = vand.u32 4294901760, %v31849_v18  ;;  %v23386_v38 = vpop.f32.mrb[40].mxu0  ;;  %v37584_v41 = vand.u32 4294901760, %v31852_v9  ;;  %v2852_v61 = vld [vmem:[%s36227_s3 + $0x580] sm:$0xff]  ;;  %v37598_v26 = vld [vmem:[#allocation62_spill] sm:$0xff] }
 0x3b5   : > { %26663 = vmatpush3.bf16.msra.mxu1 %v37566_v27  ;;  %26937 = vmatprep.subr.bf16.mxu0 %v26936_v55  ;;  %v32250_v55 = vadd.f32 %v37579_v48, %v3852_v28  ;;  %v37585_v4 = vand.u32 4294901760, %v31855_v16  ;;  %v37591_v18 = vand.u32 4294901760, %v31868_v32  ;;  %v37592_v10 = vand.u32 4294901760, %v31871_v35  ;;  %v2853_v32 = vld [vmem:[%s36227_s3 + $0x588] sm:$0xff]  ;;  %v2836_v35 = vld [vmem:[%s36227_s3 + $0x500] sm:$0xff]  ;;  %v2862_v44 = vld [vmem:[%s36227_s3 + $0x5d0] sm:$0xff] }
 0x3b6   : > { %26665 = vmatprep.subr.bf16.mxu1 %v37567_v19  ;;  %v26944_v14 = vpack.c.bf16 %v37578_v43, %v37577_v13  ;;  %v26946_v27 = vpack.c.bf16 %v37583_v45, %v37582_v56  ;;  %v23387_v19 = vpop.f32.mrb[41].mxu0  ;;  %v37594_v33 = vand.u32 4294901760, %v31885_v63  ;;  %v37597_v63 = vld [vmem:[#allocation66_spill] sm:$0xff]  ;;  %v37599_v29 = vand.u32 4294901760, %v37598_v26  ;;  %v2854_v56 = vld [vmem:[%s36227_s3 + $0x590] sm:$0xff]  ;;  %v2855_v45 = vld [vmem:[%s36227_s3 + $0x598] sm:$0xff] }
 0x3b7   : > { %v26948_v58 = vpack.c.bf16 %v37585_v4, %v37584_v41  ;;  %v26950_v25 = vpack.c.bf16 %v37592_v10, %v37591_v18  ;;  %v37601_v28 = vand.u32 4294901760, %v31890_v60  ;;  %v37602_v13 = vand.u32 4294901760, %v31892_v52  ;;  %v2839_v52 = vld [vmem:[%s36227_s3 + $0x518] sm:$0xff]  ;;  %v2857_v18 = vld [vmem:[%s36227_s3 + $0x5a8] sm:$0xff]  ;;  %v2840_v10 = vld [vmem:[%s36227_s3 + $0x520] sm:$0xff] }
 0x3b8   : > { %26939 = vmatpush3.bf16.msra.mxu0 %v26938_v46  ;;  %v32263_v46 = vadd.f32 %v23387_v19, %v23386_v38  ;;  %v23389_v9 = vpop.f32.mrb[42].mxu0  ;;  %v37604_v48 = vand.u32 4294901760, %v31904_v42  ;;  %v7579_v38 = vand.u32 4294901760, %v2853_v32  ;;  %v7528_v60 = vand.u32 4294901760, %v2836_v35  ;;  %v2856_v42 = vld [vmem:[%s36227_s3 + $0x5a0] sm:$0xff]  ;;  %v37605_v41 = vld [vmem:[#allocation36_spill] sm:$0xff] }
 0x3b9   : > { %26667 = vmatpush3.bf16.msra.mxu1 %v37573_v37  ;;  %26941 = vmatprep.subr.bf16.mxu0 %v26940_v30  ;;  %v23390_v16 = vpop.f32.mrb[43].mxu0  ;;  %v37593_v30 = vand.u32 4294901760, %v31877_v31  ;;  %v37595_v37 = vld [vmem:[#allocation55_spill] sm:$0xff]  ;;  %v2837_v31 = vld [vmem:[%s36227_s3 + $0x508] sm:$0xff]  ;;  %v26954_v43 = vpack.c.bf16 %v37602_v13, %v37601_v28  ;;  %v7582_v4 = vand.u32 4294901760, %v2854_v56  ;;  %v7537_v26 = vand.u32 4294901760, %v2839_v52 }
 0x3ba   : > { %26669 = vmatprep.subr.bf16.mxu1 %v37574_v20  ;;  %37587 = vst [vmem:[#allocation69_spill] sm:$0xff] %v32263_v46  ;;  %v32280_v20 = vadd.f32 %v23390_v16, %v23389_v9  ;;  %v7531_v19 = vand.u32 4294901760, %v2837_v31  ;;  %v37606_v9 = vld [vmem:[#allocation40_spill] sm:$0xff]  ;;  %v37607_v16 = vand.u32 4294901760, %v31906_v51  ;;  %v32337_v13 = vsub.f32 %v2853_v32, %v7579_v38 }
 0x3bb   : > { %v26952_v24 = vpack.c.bf16 %v37594_v33, %v37593_v30  ;;  %v37608_v30 = vand.u32 4294901760, %v31919_v59  ;;  %v2859_v51 = vld [vmem:[%s36227_s3 + $0x5b8] sm:$0xff]  ;;  %v7588_v59 = vand.u32 4294901760, %v2856_v42  ;;  %v32360_v50 = vsub.f32 %v2854_v56, %v7582_v4 }
 0x3bc   : > { %26943 = vmatpush3.bf16.msra.mxu0 %v26942_v7  ;;  %37596 = vst [vmem:[#allocation91_spill] sm:$0xff] %v32280_v20  ;;  %v37600_v7 = vld [vmem:[#allocation38_spill] sm:$0xff]  ;;  %v2843_v32 = vld [vmem:[%s36227_s3 + $0x538] sm:$0xff]  ;;  %v7597_v57 = vand.u32 4294901760, %v2859_v51 }
 0x3bd   : > { %26671 = vmatpush3.bf16.msra.mxu1 %v37580_v8  ;;  %26945 = vmatprep.subr.bf16.mxu0 %v26944_v14  ;;  %v37603_v14 = vand.u32 4294901760, %v31896_v54  ;;  %v2838_v54 = vld [vmem:[%s36227_s3 + $0x510] sm:$0xff]  ;;  %v26958_v33 = vpack.c.bf16 %v37608_v30, %v37607_v16  ;;  %v7540_v16 = vand.u32 4294901760, %v2840_v10  ;;  %v32356_v30 = vsub.f32 %v2837_v31, %v7531_v19  ;;  %v2861_v31 = vld [vmem:[%s36227_s3 + $0x5c8] sm:$0xff] }
 0x3be   : > { %26705 = vmatprep.subr.bf16.mxu1 %v37581_v36  ;;  %v32386_v39 = vsub.f32 %v2856_v42, %v7588_v59  ;;  %v7603_v46 = vand.u32 4294901760, %v2861_v31  ;;  %v2863_v42 = vld [vmem:[%s36227_s3 + $0x5d8] sm:$0xff] }
 0x3bf   : > { %v26956_v8 = vpack.c.bf16 %v37604_v48, %v37603_v14  ;;  %v32339_v14 = vpack.c.bf16 %v7531_v19, %v7528_v60  ;;  %v7591_v48 = vand.u32 4294901760, %v2857_v18  ;;  %v7549_v19 = vand.u32 4294901760, %v2843_v32 }
 0x3c0   : > { %6045 = vmatmul.mubr.f32.vlgmr.msra.gmra.mrb[38].mxu1 %v37586_v15  ;;  %26947 = vmatpush3.bf16.msra.mxu0 %v26946_v27  ;;  %v7576_v27 = vand.u32 4294901760, %v2852_v61  ;;  %v7609_v53 = vand.u32 4294901760, %v2863_v42 }
 0x3c1   : > { %26707 = vmatpush3.bf16.msra.mxu1 %v37588_v62  ;;  %6050 = vmatprep.mubr.f32.mxu1 %v37589_v11  ;;  %37610 = vst [vmem:[#allocation94_spill] sm:$0xff] %v32339_v14  ;;  %v32388_v20 = vsub.f32 %v2857_v18, %v7591_v48  ;;  %v37618_v18 = vld [vmem:[#allocation71_spill] sm:$0xff]  ;;  %v32426_v21 = vsub.f32 %v2843_v32, %v7549_v19  ;;  %v2865_v32 = vld [vmem:[%s36227_s3 + $0x5e8] sm:$0xff] }
 0x3c2   : > { %26709 = vmatprep.subr.bf16.mxu1 %v37590_v17  ;;  %26949 = vmatprep.subr.bf16.mxu0 %v26948_v58  ;;  %v7585_v58 = vand.u32 4294901760, %v2855_v45  ;;  %v32335_v28 = vsub.f32 %v2852_v61, %v7576_v27  ;;  %v2842_v61 = vld [vmem:[%s36227_s3 + $0x530] sm:$0xff] }
 0x3c3   : > { %37622 = vst [vmem:[#allocation43_spill] sm:$0xff] %v32426_v21  ;;  %v37623_v11 = vld [vmem:[#allocation11_spill] sm:$0xff]  ;;  %v2867_v21 = vld [vmem:[%s36227_s3 + $0x5f8] sm:$0xff] }
 0x3c4   : > { %6052 = vmatmul.mubr.f32.gmra.mrb[40].mxu1 %v37595_v37  ;;  %26951 = vmatpush3.bf16.msra.mxu0 %v26950_v25  ;;  %v2841_v25 = vld [vmem:[%s36227_s3 + $0x528] sm:$0xff]  ;;  %v32358_v40 = vpack.c.bf16 %v7585_v58, %v7582_v4  ;;  %v32363_v22 = vsub.f32 %v2855_v45, %v7585_v58  ;;  %v7546_v45 = vand.u32 4294901760, %v2842_v61  ;;  %v2844_v4 = vld [vmem:[%s36227_s3 + $0x540] sm:$0xff] }
 0x3c5   : > { %26711 = vmatpush3.bf16.msra.mxu1 %v37597_v63  ;;  %6303 = vmatprep.mubr.f32.mxu1 %v37599_v29  ;;  %v32333_v29 = vpack.c.bf16 %v7579_v38, %v7576_v27  ;;  %v37611_v27 = vld [vmem:[#allocation70_spill] sm:$0xff]  ;;  %v32354_v38 = vsub.f32 %v2836_v35, %v7528_v60  ;;  %v2860_v35 = vld [vmem:[%s36227_s3 + $0x5c0] sm:$0xff]  ;;  %v32376_v60 = vsub.f32 %v2839_v52, %v7537_v26 }
 0x3c6   : > { %26713 = vmatprep.subr.bf16.mxu1 %v37600_v7  ;;  %26953 = vmatprep.subr.bf16.mxu0 %v26952_v24  ;;  %v7534_v24 = vand.u32 4294901760, %v2838_v54  ;;  %37612 = vst [vmem:[#allocation56_spill] sm:$0xff] %v32358_v40  ;;  %v2845_v58 = vld [vmem:[%s36227_s3 + $0x548] sm:$0xff]  ;;  %v37617_v52 = vld [vmem:[#allocation5_spill] sm:$0xff]  ;;  %v32424_v5 = vsub.f32 %v2842_v61, %v7546_v45 }
 0x3c7   : > { %37609 = vst [vmem:[#allocation93_spill] sm:$0xff] %v32333_v29  ;;  %v2864_v61 = vld [vmem:[%s36227_s3 + $0x5e0] sm:$0xff] }
 0x3c8   : > { %26955 = vmatpush3.bf16.msra.mxu0 %v26954_v43  ;;  %v2858_v43 = vld [vmem:[%s36227_s3 + $0x5b0] sm:$0xff]  ;;  %v32365_v34 = vpack.c.bf16 %v7537_v26, %v7534_v24  ;;  %v32374_v56 = vsub.f32 %v2838_v54, %v7534_v24  ;;  %v32394_v24 = vsub.f32 %v2840_v10, %v7540_v16  ;;  %37621 = vst [vmem:[#allocation47_spill] sm:$0xff] %v32424_v5 }
 0x3c9   : > { %26715 = vmatpush3.bf16.msra.mxu1 %v37605_v41  ;;  %26957 = vmatprep.subr.bf16.mxu0 %v26956_v8  ;;  %v7543_v8 = vand.u32 4294901760, %v2841_v25  ;;  %v7594_v1 = vand.u32 4294901760, %v2858_v43 }
 0x3ca   : > { %26717 = vmatprep.subr.bf16.mxu1 %v37606_v9  ;;  %37614 = vst [vmem:[#allocation27_spill] sm:$0xff] %v32365_v34 }
 0x3cb   : > { %v32390_v54 = vpack.c.bf16 %v7543_v8, %v7540_v16  ;;  %v32396_v26 = vsub.f32 %v2841_v25, %v7543_v8  ;;  %v32408_v10 = vsub.f32 %v2858_v43, %v7594_v1  ;;  %v7552_v25 = vand.u32 4294901760, %v2844_v4  ;;  %v2846_v16 = vld [vmem:[%s36227_s3 + $0x550] sm:$0xff]  ;;  %v32416_v8 = vld [vmem:[%s36227_s3 + $0x558] sm:$0xff] }
 0x3cc   : > { %26959 = vmatpush3.bf16.msra.mxu0 %v26958_v33  ;;  %v32384_v33 = vpack.c.bf16 %v7591_v48, %v7588_v59  ;;  %v32406_v59 = vpack.c.bf16 %v7597_v57, %v7594_v1  ;;  %v7555_v48 = vand.u32 4294901760, %v2845_v58  ;;  %v32422_v1 = vpack.c.bf16 %v7549_v19, %v7546_v45  ;;  %v37627_v45 = vld [vmem:[#allocation72_spill] sm:$0xff] }
 0x3cd   : > { %26719 = vmatpush3.bf16.msra.mxu1 %v37611_v27  ;;  %26993 = vmatprep.subr.bf16.mxu0 %v32333_v29  ;;  %37616 = vst [vmem:[#allocation14_spill] sm:$0xff] %v32390_v54  ;;  %v7600_v29 = vand.u32 4294901760, %v2860_v35  ;;  %v7606_v43 = vand.u32 4294901760, %v2862_v44  ;;  %v7558_v23 = vand.u32 4294901760, %v2846_v16  ;;  %v7561_v47 = vand.u32 4294901760, %v32416_v8 }
 0x3ce   : > { %26721 = vmatprep.subr.bf16.mxu1 %v37613_v12  ;;  %37615 = vst [vmem:[#allocation58_spill] sm:$0xff] %v32384_v33  ;;  %37619 = vst [vmem:[#allocation42_spill] sm:$0xff] %v32406_v59  ;;  %v7612_v19 = vand.u32 4294901760, %v2864_v61 }
 0x3cf   : > { %7404 = vmatmul.mubr.f32.vlgmr.msra.gmra.mrb[68].mxu0 %v31922_v2  ;;  %v23120_v2 = vpop.f32.mrb[14].mxu1  ;;  %37620 = vst [vmem:[#allocation61_spill] sm:$0xff] %v32422_v1 }
 0x3d0   : > { %26995 = vmatpush3.bf16.msra.mxu0 %v32339_v14  ;;  %7409 = vmatprep.mubr.f32.mxu0 %v31959_v0  ;;  %v32420_v14 = vsub.f32 %v2859_v51, %v7597_v57  ;;  %v23121_v3 = vpop.f32.mrb[15].mxu1  ;;  %v37624_v0 = vld [vmem:[#allocation41_spill] sm:$0xff]  ;;  %v32431_v57 = vpack.c.bf16 %v7603_v46, %v7600_v29  ;;  %v32433_v51 = vsub.f32 %v2860_v35, %v7600_v29  ;;  %v7615_v29 = vand.u32 4294901760, %v2865_v32 }
 0x3d1   : > { %26723 = vmatpush3.bf16.msra.mxu1 %v37617_v52  ;;  %26997 = vmatprep.subr.bf16.mxu0 %v32358_v40  ;;  %v23122_v37 = vadd.f32 %v23121_v3, %v23120_v2  ;;  %v32443_v2 = vsub.f32 %v2861_v31, %v7603_v46  ;;  %v32445_v3 = vpack.c.bf16 %v7555_v48, %v7552_v25  ;;  %v2848_v35 = vld [vmem:[%s36227_s3 + $0x560] sm:$0xff]  ;;  %v2849_v40 = vld [vmem:[%s36227_s3 + $0x568] sm:$0xff] }
 0x3d2   : > { %26725 = vmatprep.subr.bf16.mxu1 %v37618_v18  ;;  %37625 = vst [vmem:[#allocation30_spill] sm:$0xff] %v32431_v57  ;;  %37626 = vst [vmem:[#allocation63_spill] sm:$0xff] %v32433_v51  ;;  %v32456_v46 = vsub.f32 %v2844_v4, %v7552_v25  ;;  %v32458_v31 = vsub.f32 %v2845_v58, %v7555_v48  ;;  %v32463_v51 = vpack.c.bf16 %v7561_v47, %v7558_v23  ;;  %v37637_v4 = vld [vmem:[#allocation73_spill] sm:$0xff]  ;;  %v2866_v48 = vld [vmem:[%s36227_s3 + $0x5f0] sm:$0xff] }
 0x3d3   : > { %7411 = vmatmul.mubr.f32.gmra.mrb[70].mxu0 %v37624_v0  ;;  %37628 = vst [vmem:[#allocation35_spill] sm:$0xff] %v32443_v2  ;;  %37629 = vst [vmem:[#allocation28_spill] sm:$0xff] %v32445_v3  ;;  %v2655_v0 = vld [vmem:[%s29295_s19 + $0x58] sm:$0xff]  ;;  %v4211_v15 = vadd.f32 %v23122_v37, %v32236_v6  ;;  %v2654_v2 = vld [vmem:[%s29295_s19 + $0x50] sm:$0xff]  ;;  %v7564_v58 = vand.u32 4294901760, %v2848_v35  ;;  %v7567_v25 = vand.u32 4294901760, %v2849_v40  ;;  %v32481_v18 = vsub.f32 %v2862_v44, %v7606_v43 }
 0x3d4   : > { %26999 = vmatpush3.bf16.msra.mxu0 %v32365_v34  ;;  %37630 = vst [vmem:[#allocation65_spill] sm:$0xff] %v32456_v46  ;;  %37631 = vst [vmem:[#allocation32_spill] sm:$0xff] %v32458_v31  ;;  %v32460_v34 = vpack.c.bf16 %v7609_v53, %v7606_v43  ;;  %v32467_v5 = vand.u32 4294901760, %v2655_v0  ;;  %v37635_v6 = vld [vmem:[#allocation50_spill] sm:$0xff]  ;;  %v37638_v31 = vld [vmem:[#allocation48_spill] sm:$0xff]  ;;  %v32499_v44 = vsub.f32 %v2846_v16, %v7558_v23  ;;  %v37643_v43 = vand.u32 4294901760, %v32335_v28 }
 0x3d5   : > { %26727 = vmatpush3.bf16.msra.mxu1 %v37623_v11  ;;  %27001 = vmatprep.subr.bf16.mxu0 %v32384_v33  ;;  %37633 = vst [vmem:[#allocation62_spill] sm:$0xff] %v32463_v51  ;;  %v32470_v37 = vadd.f32 %v37635_v6, %v4211_v15  ;;  %37639 = vst [vmem:[#allocation40_spill] sm:$0xff] %v32481_v18  ;;  %v32483_v15 = vsub.f32 %v2863_v42, %v7609_v53  ;;  %v32493_v6 = vld [vmem:[%s36227_s3 + $0x578] sm:$0xff]  ;;  %v7618_v53 = vand.u32 4294901760, %v2866_v48  ;;  %v37647_v23 = vld [vmem:[#allocation51_spill] sm:$0xff] }
 0x3d6   : > { %26729 = vmatprep.subr.bf16.mxu1 %v37627_v45  ;;  %v23123_v45 = vpop.f32.mrb[16].mxu1  ;;  %37632 = vst [vmem:[#allocation66_spill] sm:$0xff] %v32460_v34  ;;  %37634 = vst [vmem:[#allocation38_spill] sm:$0xff] %v32467_v5  ;;  %v7621_v42 = vand.u32 4294901760, %v2867_v21  ;;  %v32516_v16 = vsub.f32 %v32416_v8, %v7561_v47  ;;  %v32523_v46 = vsub.f32 %v2865_v32, %v7615_v29 }
 0x3d7   : > { %v23124_v11 = vpop.f32.mrb[17].mxu1  ;;  %37636 = vst [vmem:[#allocation36_spill] sm:$0xff] %v32470_v37  ;;  %37640 = vst [vmem:[#allocation70_spill] sm:$0xff] %v32483_v15  ;;  %v37644_v15 = vand.u32 4294901760, %v32337_v13  ;;  %v32508_v37 = vsub.f32 %v2655_v0, %v32467_v5  ;;  %v32521_v0 = vsub.f32 %v2864_v61, %v7612_v19  ;;  %v32528_v8 = vsub.f32 %v2848_v35, %v7564_v58  ;;  %v2671_v35 = vld [vmem:[%s29295_s19 + $0xd8] sm:$0xff] }
 0x3d8   : > { %v23125_v33 = vadd.f32 %v23124_v11, %v23123_v45  ;;  %27003 = vmatpush3.bf16.msra.mxu0 %v32390_v54  ;;  %v32485_v11 = vpack.c.bf16 %v7615_v29, %v7612_v19  ;;  %v2850_v45 = vld [vmem:[%s36227_s3 + $0x570] sm:$0xff]  ;;  %v7770_v54 = vsub.f32 %v32335_v28, %v37643_v43  ;;  %v7573_v43 = vand.u32 4294901760, %v32493_v6 }
 0x3d9   : > { %26731 = vmatpush3.bf16.msra.mxu1 %v37637_v4  ;;  %v32495_v4 = vand.u32 4294901760, %v2654_v2  ;;  %27005 = vmatprep.subr.bf16.mxu0 %v32406_v59  ;;  %v7777_v18 = vsub.f32 %v32337_v13, %v37644_v15  ;;  %37645 = vst [vmem:[#allocation50_spill] sm:$0xff] %v32508_v37  ;;  %v7570_v59 = vand.u32 4294901760, %v2850_v45  ;;  %v23462_v15 = vpop.f32.mrb[44].mxu0  ;;  %v32530_v5 = vsub.f32 %v2849_v40, %v7567_v25  ;;  %v37655_v40 = vld [vmem:[#allocation22_spill] sm:$0xff] }
 0x3da   : > { %26733 = vmatprep.subr.bf16.mxu1 %v37638_v31  ;;  %37641 = vst [vmem:[#allocation57_spill] sm:$0xff] %v32485_v11  ;;  %v4218_v31 = vadd.f32 %v23125_v33, %v32250_v55  ;;  %v37646_v55 = vld [vmem:[#allocation59_spill] sm:$0xff]  ;;  %v23463_v47 = vpop.f32.mrb[45].mxu0  ;;  %v36698_v19 = vand.u32 4294901760, %v32508_v37 }
 0x3db   : > { %37642 = vst [vmem:[#allocation5_spill] sm:$0xff] %v32495_v4  ;;  %37648 = vst [vmem:[#allocation59_spill] sm:$0xff] %v32516_v16  ;;  %v32538_v61 = vadd.f32 %v23463_v47, %v23462_v15  ;;  %v7778_v32 = vand.u32 4294901760, %v7777_v18  ;;  %v32554_v18 = vsub.f32 %v2654_v2, %v32495_v4  ;;  %v36700_v47 = vand.u32 4294901760, %v32363_v22 }
 0x3dc   : > { %v32512_v33 = vadd.f32 %v37646_v55, %v4218_v31  ;;  %27007 = vmatpush3.bf16.msra.mxu0 %v32422_v1  ;;  %v32525_v31 = vpack.c.bf16 %v7567_v25, %v7564_v58  ;;  %v7771_v55 = vand.u32 4294901760, %v7770_v54  ;;  %v37651_v1 = vld [vmem:[#allocation52_spill] sm:$0xff]  ;;  %v37654_v54 = vand.u32 4294901760, %v32354_v38 }
 0x3dd   : > { %26735 = vmatpush3.bf16.msra.mxu1 %v37647_v23  ;;  %27009 = vmatprep.subr.bf16.mxu0 %v32431_v57  ;;  %v32532_v23 = vpack.c.bf16 %v7621_v42, %v7618_v53  ;;  %v37652_v16 = vand.u32 4294901760, %v37651_v1  ;;  %37653 = vst [vmem:[#allocation52_spill] sm:$0xff] %v32538_v61  ;;  %v37656_v58 = vand.u32 4294901760, %v37655_v40  ;;  %v32548_v25 = vsub.f32 %v2867_v21, %v7621_v42  ;;  %v37685_v57 = vld [vmem:[#allocation35_spill] sm:$0xff] }
 0x3de   : > { %26769 = vmatprep.subr.bf16.mxu1 %v37581_v36  ;;  %37649 = vst [vmem:[#allocation98_spill] sm:$0xff] %v32525_v31  ;;  %v32534_v36 = vsub.f32 %v2866_v48, %v7618_v53  ;;  %v7658_v29 = vsub.f32 %v32354_v38, %v37654_v54  ;;  %v32550_v48 = vpack.c.bf16 %v7573_v43, %v7570_v59  ;;  %v36699_v1 = vand.u32 4294901760, %v32356_v30  ;;  %v23465_v53 = vpop.f32.mrb[46].mxu0 }
 0x3df   : > { %37650 = vst [vmem:[#allocation99_spill] sm:$0xff] %v32532_v23  ;;  %37658 = vst [vmem:[#allocation100_spill] sm:$0xff] %v32554_v18  ;;  %v7626_v21 = vsub.f32 %v32508_v37, %v36698_v19  ;;  %v36702_v42 = vand.u32 4294901760, %v32360_v50  ;;  %v23466_v15 = vpop.f32.mrb[47].mxu0 }
 0x3e0   : > { %6307 = vmatmul.mubr.f32.vlgmr.msra.gmra.mrb[42].mxu1 %v37652_v16  ;;  %37657 = vst [vmem:[#allocation22_spill] sm:$0xff] %v32550_v48  ;;  %27011 = vmatpush3.bf16.msra.mxu0 %v32445_v3  ;;  %v32558_v16 = vsub.f32 %v2850_v45, %v7570_v59  ;;  %v7659_v2 = vand.u32 4294901760, %v7658_v29  ;;  %v32571_v59 = vand.u32 4294901760, %v2671_v35  ;;  %v2670_v45 = vld [vmem:[%s29295_s19 + $0xd0] sm:$0xff]  ;;  %v32576_v54 = vadd.f32 %v23466_v15, %v23465_v53 }
 0x3e1   : > { %26771 = vmatpush3.bf16.msra.mxu1 %v37588_v62  ;;  %6314 = vmatprep.mubr.f32.mxu1 %v37656_v58  ;;  %v32560_v62 = vpack.c.bf16 %v7778_v32, %v7771_v55  ;;  %v37661_v55 = vld [vmem:[#allocation25_spill] sm:$0xff]  ;;  %v7627_v40 = vand.u32 4294901760, %v7626_v21  ;;  %v7784_v58 = vsub.f32 %v32360_v50, %v36702_v42  ;;  %v36701_v29 = vand.u32 4294901760, %v32374_v56 }
 0x3e2   : > { %26773 = vmatprep.subr.bf16.mxu1 %v37590_v17  ;;  %27013 = vmatprep.subr.bf16.mxu0 %v32460_v34  ;;  %v7665_v17 = vsub.f32 %v32356_v30, %v36699_v1  ;;  %37660 = vst [vmem:[#allocation102_spill] sm:$0xff] %v32571_v59  ;;  %v37662_v32 = vand.u32 4294901760, %v37661_v55  ;;  %37663 = vst [vmem:[#allocation25_spill] sm:$0xff] %v32576_v54  ;;  %v36703_v1 = vand.u32 4294901760, %v32554_v18  ;;  %v32597_v15 = vand.u32 4294901760, %v2670_v45  ;;  %v37684_v34 = vld [vmem:[#allocation11_spill] sm:$0xff] }
 0x3e3   : > { %37659 = vst [vmem:[#allocation101_spill] sm:$0xff] %v32560_v62  ;;  %v7791_v55 = vsub.f32 %v32363_v22, %v36700_v47  ;;  %v32589_v53 = vsub.f32 %v2671_v35, %v32571_v59  ;;  %v7785_v21 = vand.u32 4294901760, %v7784_v58  ;;  %7628 = vmatprep.mubr.f32.mxu0 %v7627_v40  ;;  %v27056_v58 = vpack.c.bf16 %v32337_v13, %v32335_v28  ;;  %v37700_v62 = vld [vmem:[#allocation70_spill] sm:$0xff] }
 0x3e4   : > { %6318 = vmatmul.mubr.f32.gmra.mrb[44].mxu1 %v37662_v32  ;;  %v7666_v19 = vand.u32 4294901760, %v7665_v17  ;;  %27015 = vmatpush3.bf16.msra.mxu0 %v32463_v51  ;;  %37665 = vst [vmem:[#allocation104_spill] sm:$0xff] %v32597_v15  ;;  %v32601_v17 = vsub.f32 %v32493_v6, %v7573_v43  ;;  %v32612_v42 = vsub.f32 %v2670_v45, %v32597_v15  ;;  %v32615_v6 = vpop.permute.xlu1 %11370  ;;  %v36708_v40 = vand.u32 4294901760, %v32386_v39 }
 0x3e5   : > { %26775 = vmatpush3.bf16.msra.mxu1 %v37597_v63  ;;  %6595 = vmatprep.mubr.f32.mxu1 %v37532_v49  ;;  %37664 = vst [vmem:[#allocation103_spill] sm:$0xff] %v32589_v53  ;;  %v7672_v63 = vsub.f32 %v32374_v56, %v36701_v29  ;;  %v36704_v49 = vand.u32 4294901760, %v32376_v60  ;;  %v36705_v32 = vand.u32 4294901760, %v32589_v53  ;;  %37668 = vst [vmem:[#allocation107_spill] sm:$0xff] %v32615_v6  ;;  %v37713_v54 = vand.u32 4294901760, %v32528_v8 }
 0x3e6   : > { %26777 = vmatprep.subr.bf16.mxu1 %v37600_v7  ;;  %27017 = vmatprep.subr.bf16.mxu0 %v32485_v11  ;;  %v32603_v35 = vpack.c.bf16 %v7666_v19, %v7659_v2  ;;  %v7792_v7 = vand.u32 4294901760, %v7791_v55  ;;  %37667 = vst [vmem:[#allocation106_spill] sm:$0xff] %v32612_v42  ;;  %v7632_v43 = vsub.f32 %v32554_v18, %v36703_v1  ;;  %v36711_v55 = vand.u32 4294901760, %v32615_v6 }
 0x3e7   : > { %v7673_v47 = vand.u32 4294901760, %v7672_v63  ;;  %v7679_v29 = vsub.f32 %v32376_v60, %v36704_v49  ;;  %v27058_v19 = vpack.c.bf16 %v32356_v30, %v32354_v38  ;;  %v36712_v45 = vand.u32 4294901760, %v32612_v42 }
 0x3e8   : > { %37666 = vst [vmem:[#allocation105_spill] sm:$0xff] %v32603_v35  ;;  %v32622_v2 = vpack.c.bf16 %v7792_v7, %v7785_v21  ;;  %27019 = vmatpush3.bf16.msra.mxu0 %v32525_v31  ;;  %v7641_v21 = vsub.f32 %v32589_v53, %v36705_v32  ;;  %v7798_v7 = vsub.f32 %v32386_v39, %v36708_v40  ;;  %v37672_v32 = vand.u32 4294901760, %v32388_v20  ;;  %v32653_v40 = vpop.permute.xlu1 %11372  ;;  %v37692_v35 = vld [vmem:[#allocation32_spill] sm:$0xff] }
 0x3e9   : > { %26779 = vmatpush3.bf16.msra.mxu1 %v37605_v41  ;;  %v7680_v41 = vand.u32 4294901760, %v7679_v29  ;;  %27021 = vmatprep.subr.bf16.mxu0 %v32532_v23  ;;  %v32642_v29 = vsub.f32 %v32615_v6, %v36711_v55  ;;  %v7647_v63 = vsub.f32 %v32612_v42, %v36712_v45  ;;  %37673 = vst [vmem:[#allocation111_spill] sm:$0xff] %v32653_v40  ;;  %v37674_v31 = vand.u32 4294901760, %v32394_v24 }
 0x3ea   : > { %37669 = vst [vmem:[#allocation108_spill] sm:$0xff] %v32622_v2  ;;  %26781 = vmatprep.subr.bf16.mxu1 %v37606_v9  ;;  %v7805_v23 = vsub.f32 %v32388_v20, %v37672_v32  ;;  %v7633_v9 = vand.u32 4294901760, %v7632_v43  ;;  %v7799_v1 = vand.u32 4294901760, %v7798_v7  ;;  %v36720_v45 = vand.u32 4294901760, %v32653_v40 }
 0x3eb   : > { %37670 = vst [vmem:[#allocation109_spill] sm:$0xff] %v32642_v29  ;;  %v32644_v49 = vpack.c.bf16 %v7680_v41, %v7673_v47  ;;  %v7686_v55 = vsub.f32 %v32394_v24, %v37674_v31  ;;  %v37675_v47 = vand.u32 4294901760, %v32396_v26  ;;  %v27062_v32 = vpack.c.bf16 %v32376_v60, %v32374_v56 }
 0x3ec   : > { %27023 = vmatpush3.bf16.msra.mxu0 %v32550_v48  ;;  %v7806_v43 = vand.u32 4294901760, %v7805_v23  ;;  %v7642_v7 = vand.u32 4294901760, %v7641_v21  ;;  %v36721_v11 = vand.u32 4294901760, %v32408_v10  ;;  %v7648_v48 = vand.u32 4294901760, %v7647_v63  ;;  %v37679_v21 = vld [vmem:[#allocation47_spill] sm:$0xff] }
 0x3ed   : > { %37671 = vst [vmem:[#allocation110_spill] sm:$0xff] %v32644_v49  ;;  %26783 = vmatpush3.bf16.msra.mxu1 %v37611_v27  ;;  %v7693_v41 = vsub.f32 %v32396_v26, %v37675_v47  ;;  %v27060_v27 = vpack.c.bf16 %v32363_v22, %v32360_v50  ;;  %27057 = vmatprep.subr.bf16.mxu0 %v27056_v58  ;;  %v7687_v31 = vand.u32 4294901760, %v7686_v55  ;;  %v36723_v55 = vand.u32 4294901760, %v32420_v14  ;;  %v37687_v49 = vld [vmem:[#allocation72_spill] sm:$0xff] }
 0x3ee   : > { %26785 = vmatprep.subr.bf16.mxu1 %v37613_v12  ;;  %v32673_v12 = vsub.f32 %v32653_v40, %v36720_v45  ;;  %v32675_v51 = vpack.c.bf16 %v7806_v43, %v7799_v1  ;;  %v7812_v58 = vsub.f32 %v32408_v10, %v36721_v11  ;;  %v37680_v1 = vld [vmem:[#allocation71_spill] sm:$0xff]  ;;  %v23196_v43 = vpop.f32.mrb[18].mxu1  ;;  %v37691_v2 = vand.u32 4294901760, %v37685_v57 }
 0x3ef   : > { %v7694_v6 = vand.u32 4294901760, %v7693_v41  ;;  %7634 = vmatmul.mubr.f32.vlgmr.msra.gmra.mrb[72].mxu0 %v7633_v9  ;;  %v36726_v41 = vand.u32 4294901760, %v37679_v21  ;;  %v7819_v11 = vsub.f32 %v32420_v14, %v36723_v55  ;;  %v23197_v47 = vpop.f32.mrb[19].mxu1 }
 0x3f0   : > { %37676 = vst [vmem:[#allocation112_spill] sm:$0xff] %v32673_v12  ;;  %37677 = vst [vmem:[#allocation113_spill] sm:$0xff] %v32675_v51  ;;  %27059 = vmatpush3.bf16.msra.mxu0 %v27058_v19  ;;  %7643 = vmatprep.mubr.f32.mxu0 %v7642_v7  ;;  %v7813_v45 = vand.u32 4294901760, %v7812_v58  ;;  %v27068_v7 = vpack.c.bf16 %v32420_v14, %v32408_v10  ;;  %v37683_v58 = vld [vmem:[#allocation63_spill] sm:$0xff]  ;;  %v23198_v55 = vadd.f32 %v23197_v47, %v23196_v43  ;;  %v37688_v43 = vld [vmem:[#allocation65_spill] sm:$0xff] }
 0x3f1   : > { %26787 = vmatpush3.bf16.msra.mxu1 %v37617_v52  ;;  %v32678_v23 = vpack.c.bf16 %v7694_v6, %v7687_v31  ;;  %v27064_v52 = vpack.c.bf16 %v32388_v20, %v32386_v39  ;;  %v37681_v6 = vld [vmem:[#allocation43_spill] sm:$0xff]  ;;  %27061 = vmatprep.subr.bf16.mxu0 %v27060_v27  ;;  %v27066_v31 = vpack.c.bf16 %v32396_v26, %v32394_v24  ;;  %v36732_v40 = vand.u32 4294901760, %v37683_v58 }
 0x3f2   : > { %26789 = vmatprep.subr.bf16.mxu1 %v37680_v1  ;;  %v36731_v9 = vand.u32 4294901760, %v37681_v6  ;;  %v7700_v19 = vsub.f32 %v37679_v21, %v36726_v41  ;;  %v37682_v1 = vand.u32 4294901760, %v32642_v29  ;;  %v7820_v41 = vand.u32 4294901760, %v7819_v11 }
 0x3f3   : > { %37678 = vst [vmem:[#allocation114_spill] sm:$0xff] %v32678_v23  ;;  %7649 = vmatmul.mubr.f32.gmra.mrb[74].mxu0 %v7648_v48  ;;  %v7826_v47 = vsub.f32 %v37683_v58, %v36732_v40  ;;  %v37689_v48 = vld [vmem:[#allocation36_spill] sm:$0xff]  ;;  %v27070_v40 = vpack.c.bf16 %v37681_v6, %v37679_v21 }
 0x3f4   : > { %v32703_v63 = vsub.f32 %v32642_v29, %v37682_v1  ;;  %v7707_v27 = vsub.f32 %v37681_v6, %v36731_v9  ;;  %v7701_v3 = vand.u32 4294901760, %v7700_v19  ;;  %v37686_v1 = vand.u32 4294901760, %v32673_v12  ;;  %27063 = vmatpush3.bf16.msra.mxu0 %v27062_v32  ;;  %v23199_v19 = vpop.f32.mrb[20].mxu1  ;;  %8023 = vmatprep.mubr.f32.mxu0 %v32508_v37 }
 0x3f5   : > { %26791 = vmatpush3.bf16.msra.mxu1 %v37684_v34  ;;  %v4473_v11 = vadd.f32 %v23198_v55, %v37689_v48  ;;  %27065 = vmatprep.subr.bf16.mxu0 %v27064_v52  ;;  %v32724_v23 = vpack.c.bf16 %v7820_v41, %v7813_v45  ;;  %v23200_v32 = vpop.f32.mrb[21].mxu1  ;;  %v7827_v34 = vand.u32 4294901760, %v7826_v47  ;;  %v37694_v55 = vand.u32 4294901760, %v37688_v43  ;;  %v37695_v41 = vld [vmem:[#allocation79_spill] sm:$0xff] }
 0x3f6   : > { %v32716_v51 = vsub.f32 %v32673_v12, %v37686_v1  ;;  %26793 = vmatprep.subr.bf16.mxu1 %v37687_v49  ;;  %v7708_v9 = vand.u32 4294901760, %v7707_v27  ;;  %v7833_v1 = vsub.f32 %v37685_v57, %v37691_v2  ;;  %v23201_v48 = vadd.f32 %v23200_v32, %v23199_v19  ;;  %v37696_v2 = vld [vmem:[#allocation73_spill] sm:$0xff] }
 0x3f7   : > { %37690 = vst [vmem:[#allocation47_spill] sm:$0xff] %v32724_v23  ;;  %v7714_v45 = vsub.f32 %v37688_v43, %v37694_v55  ;;  %v32739_v52 = vadd.f32 %v37695_v41, %v4473_v11  ;;  %v37697_v37 = vand.u32 4294901760, %v37692_v35  ;;  %v27072_v47 = vpack.c.bf16 %v37685_v57, %v37683_v58  ;;  %v37699_v23 = vld [vmem:[#allocation40_spill] sm:$0xff] }
 0x3f8   : > { %v32731_v27 = vpack.c.bf16 %v7708_v9, %v7701_v3  ;;  %v7834_v49 = vand.u32 4294901760, %v7833_v1  ;;  %v37698_v9 = vld [vmem:[#allocation48_spill] sm:$0xff]  ;;  %27067 = vmatpush3.bf16.msra.mxu0 %v27066_v31  ;;  %v36734_v55 = vand.u32 4294901760, %v37699_v23  ;;  %v36735_v11 = vand.u32 4294901760, %v37700_v62 }
 0x3f9   : > { %26795 = vmatpush3.bf16.msra.mxu1 %v37696_v2  ;;  %v7721_v3 = vsub.f32 %v37692_v35, %v37697_v37  ;;  %v4484_v19 = vadd.f32 %v23201_v48, %v32512_v33  ;;  %27069 = vmatprep.subr.bf16.mxu0 %v27068_v7  ;;  %v36736_v41 = vand.u32 4294901760, %v32499_v44  ;;  %v27074_v37 = vpack.c.bf16 %v37692_v35, %v37688_v43  ;;  %v37702_v2 = vld [vmem:[#allocation59_spill] sm:$0xff]  ;;  %v37703_v33 = vld [vmem:[#allocation10_spill] sm:$0xff] }
 0x3fa   : > { %37693 = vst [vmem:[#allocation71_spill] sm:$0xff] %v32731_v27  ;;  %26797 = vmatprep.subr.bf16.mxu1 %v37698_v9  ;;  %v7715_v27 = vand.u32 4294901760, %v7714_v45  ;;  %v32751_v32 = vpack.c.bf16 %v7834_v49, %v7827_v34  ;;  %v7840_v31 = vsub.f32 %v37699_v23, %v36734_v55  ;;  %v7847_v45 = vsub.f32 %v37700_v62, %v36735_v11  ;;  %v37704_v34 = vld [vmem:[#allocation51_spill] sm:$0xff]  ;;  %v37706_v55 = vld [vmem:[#allocation74_spill] sm:$0xff]  ;;  %v23538_v9 = vpop.f32.mrb[48].mxu0 }
 0x3fb   : > { %v7722_v1 = vand.u32 4294901760, %v7721_v3  ;;  %v32764_v7 = vadd.f32 %v37703_v33, %v4484_v19  ;;  %v7728_v48 = vsub.f32 %v32499_v44, %v36736_v41  ;;  %v27076_v3 = vpack.c.bf16 %v37700_v62, %v37699_v23 }
 0x3fc   : > { %37701 = vst [vmem:[#allocation43_spill] sm:$0xff] %v32751_v32  ;;  %27071 = vmatpush3.bf16.msra.mxu0 %v27070_v40  ;;  %v7841_v11 = vand.u32 4294901760, %v7840_v31  ;;  %v7848_v32 = vand.u32 4294901760, %v7847_v45  ;;  %v37707_v19 = vand.u32 4294901760, %v37702_v2  ;;  %v36737_v41 = vand.u32 4294901760, %v32523_v46 }
 0x3fd   : > { %26799 = vmatpush3.bf16.msra.mxu1 %v37704_v34  ;;  %v32767_v49 = vpack.c.bf16 %v7722_v1, %v7715_v27  ;;  %v36738_v27 = vand.u32 4294901760, %v32521_v0  ;;  %27073 = vmatprep.subr.bf16.mxu0 %v27072_v47  ;;  %v7729_v1 = vand.u32 4294901760, %v7728_v48  ;;  %v23539_v34 = vpop.f32.mrb[49].mxu0  ;;  %v37711_v47 = vld [vmem:[#allocation80_spill] sm:$0xff]  ;;  %v37712_v48 = vld [vmem:[#allocation54_spill] sm:$0xff] }
 0x3fe   : > { %26833 = vmatprep.subr.bf16.mxu1 %v37706_v55  ;;  %v7735_v33 = vsub.f32 %v37702_v2, %v37707_v19  ;;  %v37708_v55 = vld [vmem:[#allocation60_spill] sm:$0xff]  ;;  %v32783_v40 = vpack.c.bf16 %v7848_v32, %v7841_v11  ;;  %v32785_v45 = vadd.f32 %v23539_v34, %v23538_v9  ;;  %v7742_v11 = vsub.f32 %v32528_v8, %v37713_v54  ;;  %v37715_v34 = vld [vmem:[#allocation85_spill] sm:$0xff] }
 0x3ff   : > { %37705 = vst [vmem:[#allocation63_spill] sm:$0xff] %v32767_v49  ;;  %v7854_v19 = vsub.f32 %v32521_v0, %v36738_v27  ;;  %v7861_v49 = vsub.f32 %v32523_v46, %v36737_v41  ;;  %v37714_v32 = vand.u32 4294901760, %v32530_v5  ;;  %v23541_v41 = vpop.f32.mrb[50].mxu0  ;;  %v27080_v27 = vpack.c.bf16 %v32523_v46, %v32521_v0 }
 0x400   : > { %6597 = vmatmul.mubr.f32.vlgmr.msra.gmra.mrb[46].mxu1 %v37708_v55  ;;  %37709 = vst [vmem:[#allocation11_spill] sm:$0xff] %v32783_v40  ;;  %v7736_v31 = vand.u32 4294901760, %v7735_v33  ;;  %37710 = vst [vmem:[#allocation35_spill] sm:$0xff] %v32785_v45  ;;  %v36739_v33 = vand.u32 4294901760, %v32534_v36  ;;  %27075 = vmatpush3.bf16.msra.mxu0 %v27074_v37  ;;  %v7743_v45 = vand.u32 4294901760, %v7742_v11  ;;  %v37717_v37 = vld [vmem:[#allocation55_spill] sm:$0xff] }
 0x401   : > { %26835 = vmatpush3.bf16.msra.mxu1 %v37711_v47  ;;  %6602 = vmatprep.mubr.f32.mxu1 %v37712_v48  ;;  %v7749_v9 = vsub.f32 %v32530_v5, %v37714_v32  ;;  %v27078_v47 = vpack.c.bf16 %v37702_v2, %v32499_v44  ;;  %v7855_v48 = vand.u32 4294901760, %v7854_v19  ;;  %v7862_v54 = vand.u32 4294901760, %v7861_v49  ;;  %v23542_v32 = vpop.f32.mrb[51].mxu0  ;;  %v37719_v49 = vld [vmem:[#allocation96_spill] sm:$0xff]  ;;  %v37720_v11 = vld [vmem:[#allocation31_spill] sm:$0xff] }
 0x402   : > { %26837 = vmatprep.subr.bf16.mxu1 %v37715_v34  ;;  %v32803_v55 = vpack.c.bf16 %v7736_v31, %v7729_v1  ;;  %27077 = vmatprep.subr.bf16.mxu0 %v27076_v3  ;;  %v7868_v34 = vsub.f32 %v32534_v36, %v36739_v33  ;;  %v32813_v1 = vadd.f32 %v23542_v32, %v23541_v41  ;;  %v36740_v31 = vand.u32 4294901760, %v32548_v25  ;;  %v37723_v32 = vld [vmem:[#allocation37_spill] sm:$0xff] }
 0x403   : > { %v7750_v40 = vand.u32 4294901760, %v7749_v9  ;;  %v36741_v19 = vand.u32 4294901760, %v32558_v16  ;;  %v11468_v3 = vand.u32 4294901760, %v32716_v51  ;;  %v32821_v9 = vpack.c.bf16 %v7862_v54, %v7855_v48 }
 0x404   : > { %37716 = vst [vmem:[#allocation72_spill] sm:$0xff] %v32803_v55  ;;  %6604 = vmatmul.mubr.f32.gmra.mrb[48].mxu1 %v37717_v37  ;;  %37718 = vst [vmem:[#allocation65_spill] sm:$0xff] %v32813_v1  ;;  %v36742_v55 = vand.u32 4294901760, %v32601_v17  ;;  %v27082_v41 = vpack.c.bf16 %v32530_v5, %v32528_v8  ;;  %27079 = vmatpush3.bf16.msra.mxu0 %v27078_v47  ;;  %v7869_v37 = vand.u32 4294901760, %v7868_v34 }
 0x405   : > { %26839 = vmatpush3.bf16.msra.mxu1 %v37719_v49  ;;  %6961 = vmatprep.mubr.f32.mxu1 %v37720_v11  ;;  %37721 = vst [vmem:[#allocation36_spill] sm:$0xff] %v32821_v9  ;;  %v32823_v61 = vpack.c.bf16 %v7750_v40, %v7743_v45  ;;  %v7875_v33 = vsub.f32 %v32548_v25, %v36740_v31  ;;  %v11461_v45 = vand.u32 4294901760, %v32703_v63  ;;  %v37724_v49 = vld [vmem:[#allocation97_spill] sm:$0xff]  ;;  %v37726_v31 = vand.u32 4294901760, %v32642_v29 }
 0x406   : > { %26841 = vmatprep.subr.bf16.mxu1 %v37723_v32  ;;  %v7756_v51 = vsub.f32 %v32558_v16, %v36741_v19  ;;  %v7763_v40 = vsub.f32 %v32601_v17, %v36742_v55  ;;  %27081 = vmatprep.subr.bf16.mxu0 %v27080_v27  ;;  %v27084_v48 = vpack.c.bf16 %v32548_v25, %v32534_v36  ;;  %v37727_v19 = vand.u32 4294901760, %v32673_v12  ;;  %v37729_v55 = vld [vmem:[#allocation49_spill] sm:$0xff] }
 0x407   : > { %37722 = vst [vmem:[#allocation32_spill] sm:$0xff] %v32823_v61  ;;  %v7876_v47 = vand.u32 4294901760, %v7875_v33  ;;  %v32841_v32 = vpack.c.bf16 %v11468_v3, %v11461_v45  ;;  %v27086_v33 = vpack.c.bf16 %v32601_v17, %v32558_v16  ;;  %v37732_v3 = vand.u32 4294901760, %v32335_v28  ;;  %v37734_v45 = vld [vmem:[#allocation8_spill] sm:$0xff]  ;;  %v37740_v28 = vld [vmem:[#allocation81_spill] sm:$0xff] }
 0x408   : > { %v7757_v54 = vand.u32 4294901760, %v7756_v51  ;;  %v7764_v34 = vand.u32 4294901760, %v7763_v40  ;;  %v32847_v1 = vpack.c.bf16 %v37727_v19, %v37726_v31  ;;  %27083 = vmatpush3.bf16.msra.mxu0 %v27082_v41  ;;  %v37733_v51 = vand.u32 4294901760, %v32337_v13  ;;  %v37735_v31 = vld [vmem:[#allocation45_spill] sm:$0xff]  ;;  %v37741_v13 = vld [vmem:[#allocation92_spill] sm:$0xff] }
 0x409   : > { %26843 = vmatpush3.bf16.msra.mxu1 %v37724_v49  ;;  %37725 = vst [vmem:[#allocation79_spill] sm:$0xff] %v32841_v32  ;;  %v32850_v63 = vpack.c.bf16 %v7876_v47, %v7869_v37  ;;  %27085 = vmatprep.subr.bf16.mxu0 %v27084_v48  ;;  %v37737_v19 = vand.u32 4294901760, %v32356_v30  ;;  %v37738_v37 = vand.u32 4294901760, %v32360_v50  ;;  %v37739_v48 = vand.u32 4294901760, %v32363_v22 }
 0x40a   : > { %37728 = vst [vmem:[#allocation73_spill] sm:$0xff] %v32847_v1  ;;  %26845 = vmatprep.subr.bf16.mxu1 %v37729_v55  ;;  %v32852_v27 = vpack.c.bf16 %v7764_v34, %v7757_v54  ;;  %v27120_v40 = vpack.c.bf16 %v37733_v51, %v37732_v3  ;;  %v37736_v55 = vand.u32 4294901760, %v32354_v38  ;;  %v37742_v54 = vand.u32 4294901760, %v32374_v56  ;;  %v37746_v51 = vld [vmem:[#allocation76_spill] sm:$0xff] }
 0x40b   : > { %37730 = vst [vmem:[#allocation48_spill] sm:$0xff] %v32850_v63  ;;  %v27124_v47 = vpack.c.bf16 %v37739_v48, %v37738_v37  ;;  %v37743_v38 = vand.u32 4294901760, %v32376_v60  ;;  %v23272_v30 = vpop.f32.mrb[22].mxu1  ;;  %v37744_v50 = vand.u32 4294901760, %v32386_v39  ;;  %v37745_v22 = vand.u32 4294901760, %v32388_v20  ;;  %v37753_v48 = vld [vmem:[#allocation44_spill] sm:$0xff] }
 0x40c   : > { %37731 = vst [vmem:[#allocation40_spill] sm:$0xff] %v32852_v27  ;;  %27087 = vmatpush3.bf16.msra.mxu0 %v27086_v33  ;;  %v27122_v41 = vpack.c.bf16 %v37737_v19, %v37736_v55  ;;  %v23273_v33 = vpop.f32.mrb[23].mxu1  ;;  %v37748_v56 = vand.u32 4294901760, %v32394_v24  ;;  %v37749_v60 = vand.u32 4294901760, %v32396_v26  ;;  %v37750_v20 = vand.u32 4294901760, %v32408_v10  ;;  %v37754_v24 = vld [vmem:[#allocation39_spill] sm:$0xff] }
 0x40d   : > { %26847 = vmatpush3.bf16.msra.mxu1 %v37734_v45  ;;  %27121 = vmatprep.subr.bf16.mxu0 %v27120_v40  ;;  %v27126_v34 = vpack.c.bf16 %v37743_v38, %v37742_v54  ;;  %v27128_v49 = vpack.c.bf16 %v37745_v22, %v37744_v50  ;;  %v23274_v3 = vadd.f32 %v23273_v33, %v23272_v30  ;;  %v37747_v40 = vld [vmem:[#allocation19_spill] sm:$0xff]  ;;  %v37751_v55 = vand.u32 4294901760, %v32420_v14  ;;  %v37755_v26 = vld [vmem:[#allocation64_spill] sm:$0xff]  ;;  %v37760_v30 = vld [vmem:[#allocation53_spill] sm:$0xff] }
 0x40e   : > { %26849 = vmatprep.subr.bf16.mxu1 %v37735_v31  ;;  %v27130_v45 = vpack.c.bf16 %v37749_v60, %v37748_v56  ;;  %v37758_v54 = vand.u32 4294901760, %v37683_v58  ;;  %v37759_v38 = vand.u32 4294901760, %v37685_v57  ;;  %v37761_v22 = vld [vmem:[#allocation84_spill] sm:$0xff]  ;;  %v37765_v58 = vand.u32 4294901760, %v37699_v23  ;;  %v37769_v60 = vld [vmem:[#allocation33_spill] sm:$0xff] }
 0x40f   : > { %8026 = vmatmul.mubr.f32.vlgmr.msra.gmra.mrb[76].mxu0 %v32554_v18  ;;  %v4763_v31 = vadd.f32 %v23274_v3, %v32739_v52  ;;  %v23275_v39 = vpop.f32.mrb[24].mxu1  ;;  %v27132_v19 = vpack.c.bf16 %v37751_v55, %v37750_v20  ;;  %v37756_v52 = vand.u32 4294901760, %v37679_v21  ;;  %v37763_v21 = vand.u32 4294901760, %v37688_v43  ;;  %v37771_v43 = vld [vmem:[#allocation26_spill] sm:$0xff]  ;;  %v2895_v18 = vld [vmem:[%s36227_s3 + $0x6d8] sm:$0xff] }
 0x410   : > { %27123 = vmatpush3.bf16.msra.mxu0 %v27122_v41  ;;  %8032 = vmatprep.mubr.f32.mxu0 %v32589_v53  ;;  %v37752_v41 = vld [vmem:[#allocation38_spill] sm:$0xff]  ;;  %v23276_v37 = vpop.f32.mrb[25].mxu1  ;;  %v37766_v57 = vand.u32 4294901760, %v37700_v62  ;;  %v2884_v62 = vld [vmem:[%s36227_s3 + $0x680] sm:$0xff] }
 0x411   : > { %26851 = vmatpush3.bf16.msra.mxu1 %v37740_v28  ;;  %27125 = vmatprep.subr.bf16.mxu0 %v27124_v47  ;;  %v32896_v47 = vadd.f32 %v37753_v48, %v4763_v31  ;;  %v23277_v28 = vadd.f32 %v23276_v37, %v23275_v39  ;;  %v37773_v31 = vand.u32 4294901760, %v37702_v2  ;;  %v2885_v20 = vld [vmem:[%s36227_s3 + $0x688] sm:$0xff]  ;;  %v37775_v37 = vand.u32 4294901760, %v32523_v46  ;;  %v37798_v53 = vld [vmem:[#allocation17_spill] sm:$0xff] }
 0x412   : > { %26853 = vmatprep.subr.bf16.mxu1 %v37741_v13  ;;  %v37757_v13 = vand.u32 4294901760, %v37681_v6  ;;  %v37764_v6 = vand.u32 4294901760, %v37692_v35  ;;  %v37772_v35 = vand.u32 4294901760, %v32499_v44  ;;  %v37776_v44 = vld [vmem:[#allocation41_spill] sm:$0xff]  ;;  %v2869_v46 = vld [vmem:[%s36227_s3 + $0x608] sm:$0xff] }
 0x413   : > { %8035 = vmatmul.mubr.f32.gmra.mrb[78].mxu0 %v32612_v42  ;;  %v4770_v14 = vadd.f32 %v23277_v28, %v32764_v7  ;;  %v2868_v28 = vld [vmem:[%s36227_s3 + $0x600] sm:$0xff] }
 0x414   : > { %27127 = vmatpush3.bf16.msra.mxu0 %v27126_v34  ;;  %8320 = vmatprep.mubr.f32.mxu0 %v37752_v41  ;;  %v27134_v10 = vpack.c.bf16 %v37757_v13, %v37756_v52  ;;  %v27136_v34 = vpack.c.bf16 %v37759_v38, %v37758_v54  ;;  %v27138_v33 = vpack.c.bf16 %v37764_v6, %v37763_v21  ;;  %v8494_v13 = vand.u32 4294901760, %v2884_v62  ;;  %v37781_v54 = vld [vmem:[#allocation86_spill] sm:$0xff] }
 0x415   : > { %26855 = vmatpush3.bf16.msra.mxu1 %v37746_v51  ;;  %27129 = vmatprep.subr.bf16.mxu0 %v27128_v49  ;;  %v32910_v50 = vadd.f32 %v37760_v30, %v4770_v14  ;;  %v37762_v49 = vld [vmem:[#allocation83_spill] sm:$0xff]  ;;  %v23614_v7 = vpop.f32.mrb[52].mxu0  ;;  %v27140_v51 = vpack.c.bf16 %v37766_v57, %v37765_v58  ;;  %v27142_v39 = vpack.c.bf16 %v37773_v31, %v37772_v35  ;;  %v2887_v14 = vld [vmem:[%s36227_s3 + $0x698] sm:$0xff]  ;;  %v37782_v38 = vand.u32 4294901760, %v32528_v8 }
 0x416   : > { %26857 = vmatprep.subr.bf16.mxu1 %v37747_v40  ;;  %v23615_v3 = vpop.f32.mrb[53].mxu0  ;;  %v37767_v40 = vld [vmem:[#allocation13_spill] sm:$0xff]  ;;  %v37785_v21 = vand.u32 4294901760, %v32548_v25  ;;  %v8449_v8 = vand.u32 4294901760, %v2869_v46  ;;  %v8503_v57 = vand.u32 4294901760, %v2887_v14  ;;  %v37786_v35 = vld [vmem:[#allocation20_spill] sm:$0xff] }
 0x417   : > { %v32923_v56 = vadd.f32 %v23615_v3, %v23614_v7  ;;  %v2870_v7 = vld [vmem:[%s36227_s3 + $0x610] sm:$0xff]  ;;  %v2871_v3 = vld [vmem:[%s36227_s3 + $0x618] sm:$0xff]  ;;  %v2872_v25 = vld [vmem:[%s36227_s3 + $0x620] sm:$0xff]  ;;  %v37787_v31 = vand.u32 4294901760, %v32558_v16 }
 0x418   : > { %27131 = vmatpush3.bf16.msra.mxu0 %v27130_v45  ;;  %v37770_v45 = vld [vmem:[#allocation78_spill] sm:$0xff]  ;;  %v2891_v16 = vld [vmem:[%s36227_s3 + $0x6b8] sm:$0xff] }
 0x419   : > { %26859 = vmatpush3.bf16.msra.mxu1 %v37754_v24  ;;  %27133 = vmatprep.subr.bf16.mxu0 %v27132_v19  ;;  %37768 = vst [vmem:[#allocation70_spill] sm:$0xff] %v32923_v56  ;;  %v23617_v23 = vpop.f32.mrb[54].mxu0  ;;  %v37774_v19 = vand.u32 4294901760, %v32521_v0  ;;  %v37778_v24 = vld [vmem:[#allocation68_spill] sm:$0xff]  ;;  %v2886_v0 = vld [vmem:[%s36227_s3 + $0x690] sm:$0xff]  ;;  %v8515_v29 = vand.u32 4294901760, %v2891_v16 }
 0x41a   : > { %26861 = vmatprep.subr.bf16.mxu1 %v37755_v26  ;;  %v23618_v55 = vpop.f32.mrb[55].mxu0  ;;  %v37779_v26 = vld [vmem:[#allocation15_spill] sm:$0xff]  ;;  %v8500_v58 = vand.u32 4294901760, %v2886_v0 }
 0x41b   : > { %v27144_v48 = vpack.c.bf16 %v37775_v37, %v37774_v19  ;;  %v32943_v2 = vadd.f32 %v23618_v55, %v23617_v23  ;;  %v37780_v52 = vand.u32 4294901760, %v37779_v26  ;;  %v37790_v19 = vld [vmem:[#allocation87_spill] sm:$0xff]  ;;  %v32995_v37 = vsub.f32 %v2884_v62, %v8494_v13 }
 0x41c   : > { %27135 = vmatpush3.bf16.msra.mxu0 %v27134_v10  ;;  %v8497_v10 = vand.u32 4294901760, %v2885_v20  ;;  %v8452_v26 = vand.u32 4294901760, %v2870_v7 }
 0x41d   : > { %26863 = vmatpush3.bf16.msra.mxu1 %v37761_v22  ;;  %27137 = vmatprep.subr.bf16.mxu0 %v27136_v34  ;;  %37777 = vst [vmem:[#allocation59_spill] sm:$0xff] %v32943_v2  ;;  %v37783_v34 = vand.u32 4294901760, %v32530_v5  ;;  %v37784_v22 = vand.u32 4294901760, %v32534_v36  ;;  %v2888_v5 = vld [vmem:[%s36227_s3 + $0x6a0] sm:$0xff]  ;;  %v2889_v36 = vld [vmem:[%s36227_s3 + $0x6a8] sm:$0xff]  ;;  %v37800_v2 = vld [vmem:[#allocation23_spill] sm:$0xff] }
 0x41e   : > { %26897 = vmatprep.subr.bf16.mxu1 %v37762_v49  ;;  %v32992_v55 = vpack.c.bf16 %v8497_v10, %v8494_v13  ;;  %v33011_v13 = vpack.c.bf16 %v8503_v57, %v8500_v58 }
 0x41f   : > { %v27146_v30 = vpack.c.bf16 %v37783_v34, %v37782_v38  ;;  %v27148_v6 = vpack.c.bf16 %v37785_v21, %v37784_v22  ;;  %v2890_v38 = vld [vmem:[%s36227_s3 + $0x6b0] sm:$0xff]  ;;  %v8509_v34 = vand.u32 4294901760, %v2889_v36  ;;  %v8458_v22 = vand.u32 4294901760, %v2872_v25 }
 0x420   : > { %6963 = vmatmul.mubr.f32.vlgmr.msra.gmra.mrb[50].mxu1 %v37767_v40  ;;  %27139 = vmatpush3.bf16.msra.mxu0 %v27138_v33  ;;  %v8446_v33 = vand.u32 4294901760, %v2868_v28  ;;  %37789 = vst [vmem:[#allocation10_spill] sm:$0xff] %v32992_v55  ;;  %37792 = vst [vmem:[#allocation74_spill] sm:$0xff] %v33011_v13  ;;  %v8512_v1 = vand.u32 4294901760, %v2890_v38  ;;  %v2896_v40 = vld [vmem:[%s36227_s3 + $0x6e0] sm:$0xff] }
 0x421   : > { %26899 = vmatpush3.bf16.msra.mxu1 %v37769_v60  ;;  %6968 = vmatprep.mubr.f32.mxu1 %v37770_v45  ;;  %v33042_v32 = vsub.f32 %v2889_v36, %v8509_v34  ;;  %v37803_v45 = vld [vmem:[#allocation24_spill] sm:$0xff] }
 0x422   : > { %26901 = vmatprep.subr.bf16.mxu1 %v37771_v43  ;;  %27141 = vmatprep.subr.bf16.mxu0 %v27140_v51  ;;  %v2873_v51 = vld [vmem:[%s36227_s3 + $0x628] sm:$0xff]  ;;  %v33007_v62 = vsub.f32 %v2868_v28, %v8446_v33  ;;  %v2875_v28 = vld [vmem:[%s36227_s3 + $0x638] sm:$0xff]  ;;  %v33068_v56 = vsub.f32 %v2890_v38, %v8512_v1 }
 0x423   : > { %v8461_v21 = vand.u32 4294901760, %v2873_v51 }
 0x424   : > { %6970 = vmatmul.mubr.f32.gmra.mrb[52].mxu1 %v37776_v44  ;;  %27143 = vmatpush3.bf16.msra.mxu0 %v27142_v39  ;;  %v37788_v39 = vand.u32 4294901760, %v32601_v17  ;;  %v8506_v17 = vand.u32 4294901760, %v2888_v5 }
 0x425   : > { %26903 = vmatpush3.bf16.msra.mxu1 %v37778_v24  ;;  %7221 = vmatprep.mubr.f32.mxu1 %v37780_v52  ;;  %v8455_v52 = vand.u32 4294901760, %v2871_v3  ;;  %v33044_v42 = vpack.c.bf16 %v8461_v21, %v8458_v22  ;;  %v33056_v36 = vsub.f32 %v2873_v51, %v8461_v21  ;;  %v2878_v21 = vld [vmem:[%s36227_s3 + $0x650] sm:$0xff] }
 0x426   : > { %26905 = vmatprep.subr.bf16.mxu1 %v37781_v54  ;;  %27145 = vmatprep.subr.bf16.mxu0 %v27144_v48  ;;  %v27150_v23 = vpack.c.bf16 %v37788_v39, %v37787_v31  ;;  %v32997_v48 = vsub.f32 %v2885_v20, %v8497_v10  ;;  %v33009_v20 = vsub.f32 %v2869_v46, %v8449_v8  ;;  %v2874_v10 = vld [vmem:[%s36227_s3 + $0x630] sm:$0xff]  ;;  %v37793_v31 = vld [vmem:[#allocation88_spill] sm:$0xff]  ;;  %v2892_v46 = vld [vmem:[%s36227_s3 + $0x6c0] sm:$0xff]  ;;  %v8476_v38 = vand.u32 4294901760, %v2878_v21 }
 0x427   : > { %v33017_v39 = vsub.f32 %v2886_v0, %v8500_v58  ;;  %v33031_v0 = vpack.c.bf16 %v8455_v52, %v8452_v26  ;;  %v33035_v58 = vsub.f32 %v2871_v3, %v8455_v52  ;;  %v33040_v12 = vsub.f32 %v2888_v5, %v8506_v17  ;;  %37797 = vst [vmem:[#allocation54_spill] sm:$0xff] %v33044_v42 }
 0x428   : > { %27147 = vmatpush3.bf16.msra.mxu0 %v27146_v30  ;;  %v33005_v30 = vpack.c.bf16 %v8449_v8, %v8446_v33  ;;  %v2893_v33 = vld [vmem:[%s36227_s3 + $0x6c8] sm:$0xff]  ;;  %v37794_v8 = vld [vmem:[#allocation89_spill] sm:$0xff]  ;;  %v8464_v3 = vand.u32 4294901760, %v2874_v10  ;;  %v8518_v52 = vand.u32 4294901760, %v2892_v46  ;;  %v33054_v5 = vsub.f32 %v2872_v25, %v8458_v22 }
 0x429   : > { %26907 = vmatpush3.bf16.msra.mxu1 %v37786_v35  ;;  %27149 = vmatprep.subr.bf16.mxu0 %v27148_v6  ;;  %v33019_v6 = vsub.f32 %v2887_v14, %v8503_v57  ;;  %37795 = vst [vmem:[#allocation60_spill] sm:$0xff] %v33031_v0  ;;  %v33033_v14 = vsub.f32 %v2870_v7, %v8452_v26  ;;  %v2877_v7 = vld [vmem:[%s36227_s3 + $0x648] sm:$0xff]  ;;  %v8467_v26 = vand.u32 4294901760, %v2875_v28 }
 0x42a   : > { %26909 = vmatprep.subr.bf16.mxu1 %v37790_v19  ;;  %37791 = vst [vmem:[#allocation51_spill] sm:$0xff] %v33005_v30  ;;  %v33038_v57 = vpack.c.bf16 %v8509_v34, %v8506_v17  ;;  %v33058_v17 = vpack.c.bf16 %v8515_v29, %v8512_v1  ;;  %v2894_v34 = vld [vmem:[%s36227_s3 + $0x6d0] sm:$0xff]  ;;  %v33070_v25 = vsub.f32 %v2891_v16, %v8515_v29  ;;  %v8473_v22 = vand.u32 4294901760, %v2877_v7 }
 0x42b   : > { %v23348_v27 = vpop.f32.mrb[26].mxu1  ;;  %v8527_v1 = vand.u32 4294901760, %v2895_v18  ;;  %v33080_v63 = vpack.c.bf16 %v8467_v26, %v8464_v3  ;;  %v33082_v61 = vsub.f32 %v2874_v10, %v8464_v3  ;;  %v33084_v9 = vsub.f32 %v2875_v28, %v8467_v26  ;;  %v2897_v10 = vld [vmem:[%s36227_s3 + $0x6e8] sm:$0xff] }
 0x42c   : > { %27151 = vmatpush3.bf16.msra.mxu0 %v27150_v23  ;;  %37796 = vst [vmem:[#allocation80_spill] sm:$0xff] %v33038_v57  ;;  %v2876_v23 = vld [vmem:[%s36227_s3 + $0x640] sm:$0xff]  ;;  %37799 = vst [vmem:[#allocation85_spill] sm:$0xff] %v33058_v17  ;;  %v23349_v16 = vpop.f32.mrb[27].mxu1  ;;  %v37806_v28 = vld [vmem:[#allocation6_spill] sm:$0xff] }
 0x42d   : > { %26911 = vmatpush3.bf16.msra.mxu1 %v37793_v31  ;;  %27185 = vmatprep.subr.bf16.mxu0 %v32992_v55  ;;  %v8521_v55 = vand.u32 4294901760, %v2893_v33  ;;  %v8470_v51 = vand.u32 4294901760, %v2876_v23  ;;  %37801 = vst [vmem:[#allocation55_spill] sm:$0xff] %v33080_v63  ;;  %v23350_v44 = vadd.f32 %v23349_v16, %v23348_v27  ;;  %v2881_v26 = vld [vmem:[%s36227_s3 + $0x668] sm:$0xff] }
 0x42e   : > { %26913 = vmatprep.subr.bf16.mxu1 %v37794_v8 }
 0x42f   : > { %8322 = vmatmul.mubr.f32.vlgmr.msra.gmra.mrb[80].mxu0 %v32495_v4  ;;  %v2879_v4 = vld [vmem:[%s36227_s3 + $0x658] sm:$0xff]  ;;  %v33086_v41 = vpack.c.bf16 %v8521_v55, %v8518_v52  ;;  %v33102_v27 = vpack.c.bf16 %v8473_v22, %v8470_v51  ;;  %v33104_v3 = vsub.f32 %v2876_v23, %v8470_v51  ;;  %v5129_v16 = vadd.f32 %v23350_v44, %v32896_v47 }
 0x430   : > { %27187 = vmatpush3.bf16.msra.mxu0 %v33005_v30  ;;  %8327 = vmatprep.mubr.f32.mxu0 %v32571_v59  ;;  %v8524_v30 = vand.u32 4294901760, %v2894_v34  ;;  %v8479_v29 = vand.u32 4294901760, %v2879_v4  ;;  %v33092_v59 = vsub.f32 %v2893_v33, %v8521_v55  ;;  %v8533_v55 = vand.u32 4294901760, %v2897_v10  ;;  %v2880_v33 = vld [vmem:[%s36227_s3 + $0x660] sm:$0xff] }
 0x431   : > { %26915 = vmatpush3.bf16.msra.mxu1 %v37798_v53  ;;  %27189 = vmatprep.subr.bf16.mxu0 %v33011_v13  ;;  %37802 = vst [vmem:[#allocation96_spill] sm:$0xff] %v33086_v41  ;;  %v33090_v13 = vsub.f32 %v2892_v46, %v8518_v52  ;;  %37807 = vst [vmem:[#allocation97_spill] sm:$0xff] %v33102_v27  ;;  %v8530_v46 = vand.u32 4294901760, %v2896_v40  ;;  %v2657_v52 = vld [vmem:[%s29295_s19 + $0x68] sm:$0xff]  ;;  %v37813_v53 = vld [vmem:[#allocation69_spill] sm:$0xff] }
 0x432   : > { %26917 = vmatprep.subr.bf16.mxu1 %v37800_v2  ;;  %37805 = vst [vmem:[#allocation37_spill] sm:$0xff] %v33092_v59  ;;  %37808 = vst [vmem:[#allocation49_spill] sm:$0xff] %v33104_v3  ;;  %v33117_v23 = vpack.c.bf16 %v8527_v1, %v8524_v30  ;;  %v33119_v51 = vpack.c.bf16 %v8479_v29, %v8476_v38  ;;  %v8482_v3 = vand.u32 4294901760, %v2880_v33  ;;  %v33124_v2 = vand.u32 4294901760, %v2657_v52  ;;  %v2899_v59 = vld [vmem:[%s36227_s3 + $0x6f8] sm:$0xff] }
 0x433   : > { %8329 = vmatmul.mubr.f32.gmra.mrb[82].mxu0 %v32597_v15  ;;  %37804 = vst [vmem:[#allocation31_spill] sm:$0xff] %v33090_v13  ;;  %v23351_v15 = vpop.f32.mrb[28].mxu1  ;;  %v33127_v47 = vadd.f32 %v37813_v53, %v5129_v16  ;;  %v37817_v13 = vld [vmem:[#allocation9_spill] sm:$0xff]  ;;  %v33140_v53 = vsub.f32 %v2894_v34, %v8524_v30  ;;  %v2882_v16 = vld [vmem:[%s36227_s3 + $0x670] sm:$0xff]  ;;  %v33156_v30 = vsub.f32 %v2879_v4, %v8479_v29  ;;  %v8539_v34 = vand.u32 4294901760, %v2899_v59  ;;  %v37828_v4 = vld [vmem:[#allocation12_spill] sm:$0xff] }
 0x434   : > { %27191 = vmatpush3.bf16.msra.mxu0 %v33031_v0  ;;  %v33115_v0 = vsub.f32 %v2877_v7, %v8473_v22  ;;  %37810 = vst [vmem:[#allocation45_spill] sm:$0xff] %v33117_v23  ;;  %37811 = vst [vmem:[#allocation81_spill] sm:$0xff] %v33119_v51  ;;  %v33130_v7 = vpack.c.bf16 %v8533_v55, %v8530_v46  ;;  %v8485_v22 = vand.u32 4294901760, %v2881_v26 }
 0x435   : > { %26919 = vmatpush3.bf16.msra.mxu1 %v37803_v45  ;;  %27193 = vmatprep.subr.bf16.mxu0 %v33038_v57  ;;  %v23352_v45 = vpop.f32.mrb[29].mxu1  ;;  %37812 = vst [vmem:[#allocation92_spill] sm:$0xff] %v33124_v2  ;;  %37814 = vst [vmem:[#allocation76_spill] sm:$0xff] %v33127_v47  ;;  %v37815_v57 = vld [vmem:[#allocation7_spill] sm:$0xff] }
 0x436   : > { %26921 = vmatprep.subr.bf16.mxu1 %v37806_v28  ;;  %37809 = vst [vmem:[#allocation8_spill] sm:$0xff] %v33115_v0  ;;  %v2656_v28 = vld [vmem:[%s29295_s19 + $0x60] sm:$0xff]  ;;  %v23353_v44 = vadd.f32 %v23352_v45, %v23351_v15  ;;  %37816 = vst [vmem:[#allocation19_spill] sm:$0xff] %v33130_v7  ;;  %v2898_v0 = vld [vmem:[%s36227_s3 + $0x6f0] sm:$0xff]  ;;  %v33142_v15 = vsub.f32 %v2895_v18, %v8527_v1  ;;  %v33144_v45 = vsub.f32 %v2878_v21, %v8476_v38 }
 0x437   : > { %37818 = vst [vmem:[#allocation44_spill] sm:$0xff] %v33140_v53  ;;  %v33152_v47 = vand.u32 4294901760, %v2656_v28  ;;  %37822 = vst [vmem:[#allocation84_spill] sm:$0xff] %v33156_v30  ;;  %v8536_v18 = vand.u32 4294901760, %v2898_v0  ;;  %v37823_v21 = vand.u32 4294901760, %v32995_v37  ;;  %v37824_v38 = vand.u32 4294901760, %v32997_v48 }
 0x438   : > { %27195 = vmatpush3.bf16.msra.mxu0 %v33044_v42  ;;  %37819 = vst [vmem:[#allocation39_spill] sm:$0xff] %v33142_v15  ;;  %37820 = vst [vmem:[#allocation64_spill] sm:$0xff] %v33144_v45  ;;  %v33165_v45 = vsub.f32 %v2657_v52, %v33124_v2  ;;  %v33172_v29 = vpack.c.bf16 %v8485_v22, %v8482_v3  ;;  %v33178_v52 = vsub.f32 %v2897_v10, %v8533_v55 }
 0x439   : > { %26923 = vmatpush3.bf16.msra.mxu1 %v37815_v57  ;;  %v2883_v57 = vld [vmem:[%s36227_s3 + $0x678] sm:$0xff]  ;;  %37821 = vst [vmem:[#allocation53_spill] sm:$0xff] %v33152_v47  ;;  %27197 = vmatprep.subr.bf16.mxu0 %v33058_v17  ;;  %v8688_v1 = vsub.f32 %v32995_v37, %v37823_v21  ;;  %v8695_v42 = vsub.f32 %v32997_v48, %v37824_v38  ;;  %v8488_v17 = vand.u32 4294901760, %v2882_v16  ;;  %v23690_v21 = vpop.f32.mrb[56].mxu0 }
 0x43a   : > { %26925 = vmatprep.subr.bf16.mxu1 %v37817_v13  ;;  %v5136_v13 = vadd.f32 %v23353_v44, %v32910_v50  ;;  %37825 = vst [vmem:[#allocation83_spill] sm:$0xff] %v33165_v45  ;;  %v37826_v50 = vld [vmem:[#allocation91_spill] sm:$0xff]  ;;  %37829 = vst [vmem:[#allocation26_spill] sm:$0xff] %v33172_v29  ;;  %v8491_v30 = vand.u32 4294901760, %v2883_v57  ;;  %v33176_v38 = vsub.f32 %v2896_v40, %v8530_v46  ;;  %v37834_v46 = vand.u32 4294901760, %v33007_v62 }
 0x43b   : > { %v33180_v15 = vsub.f32 %v2880_v33, %v8482_v3  ;;  %v33183_v2 = vsub.f32 %v2881_v26, %v8485_v22  ;;  %v8696_v10 = vand.u32 4294901760, %v8695_v42  ;;  %v36780_v3 = vand.u32 4294901760, %v33165_v45  ;;  %v2673_v33 = vld [vmem:[%s29295_s19 + $0xe8] sm:$0xff] }
 0x43c   : > { %v33169_v44 = vadd.f32 %v37826_v50, %v5136_v13  ;;  %27199 = vmatpush3.bf16.msra.mxu0 %v33080_v63  ;;  %v8689_v13 = vand.u32 4294901760, %v8688_v1  ;;  %v23691_v50 = vpop.f32.mrb[57].mxu0  ;;  %v37831_v63 = vld [vmem:[#allocation16_spill] sm:$0xff]  ;;  %v8576_v55 = vsub.f32 %v33007_v62, %v37834_v46  ;;  %v37835_v26 = vld [vmem:[#allocation82_spill] sm:$0xff]  ;;  %v33205_v22 = vsub.f32 %v2882_v16, %v8488_v17 }
 0x43d   : > { %26927 = vmatpush3.bf16.msra.mxu1 %v37828_v4  ;;  %27201 = vmatprep.subr.bf16.mxu0 %v33086_v41  ;;  %v33185_v4 = vpack.c.bf16 %v8539_v34, %v8536_v18  ;;  %v37832_v53 = vand.u32 4294901760, %v37831_v63  ;;  %v33193_v40 = vadd.f32 %v23691_v50, %v23690_v21  ;;  %v36781_v63 = vand.u32 4294901760, %v33009_v20  ;;  %v37841_v50 = vld [vmem:[#allocation95_spill] sm:$0xff] }
 0x43e   : > { %37827 = vst [vmem:[#allocation33_spill] sm:$0xff] %v33169_v44  ;;  %26961 = vmatprep.subr.bf16.mxu1 %v37762_v49  ;;  %v33187_v44 = vsub.f32 %v2898_v0, %v8536_v18  ;;  %v33189_v49 = vsub.f32 %v2899_v59, %v8539_v34  ;;  %v37836_v0 = vand.u32 4294901760, %v37835_v26  ;;  %v33203_v59 = vpack.c.bf16 %v8491_v30, %v8488_v17 }
 0x43f   : > { %37830 = vst [vmem:[#allocation68_spill] sm:$0xff] %v33185_v4  ;;  %37833 = vst [vmem:[#allocation15_spill] sm:$0xff] %v33193_v40  ;;  %v33209_v42 = vsub.f32 %v2656_v28, %v33152_v47  ;;  %v33213_v18 = vpack.c.bf16 %v8696_v10, %v8689_v13  ;;  %v8577_v34 = vand.u32 4294901760, %v8576_v55  ;;  %v36788_v17 = vand.u32 4294901760, %v33017_v39  ;;  %v2672_v13 = vld [vmem:[%s29295_s19 + $0xe0] sm:$0xff] }
 0x440   : > { %7225 = vmatmul.mubr.f32.vlgmr.msra.gmra.mrb[54].mxu1 %v37832_v53  ;;  %37837 = vst [vmem:[#allocation86_spill] sm:$0xff] %v33203_v59  ;;  %27203 = vmatpush3.bf16.msra.mxu0 %v33102_v27  ;;  %v23693_v53 = vpop.f32.mrb[58].mxu0  ;;  %v8583_v28 = vsub.f32 %v33009_v20, %v36781_v63  ;;  %v36786_v1 = vand.u32 4294901760, %v33019_v6  ;;  %v33225_v21 = vand.u32 4294901760, %v2673_v33  ;;  %v37842_v10 = vand.u32 4294901760, %v37841_v50  ;;  %v37857_v27 = vld [vmem:[#allocation8_spill] sm:$0xff] }
 0x441   : > { %26963 = vmatpush3.bf16.msra.mxu1 %v37769_v60  ;;  %7232 = vmatprep.mubr.f32.mxu1 %v37836_v0  ;;  %37838 = vst [vmem:[#allocation20_spill] sm:$0xff] %v33209_v42  ;;  %37839 = vst [vmem:[#allocation87_spill] sm:$0xff] %v33213_v18  ;;  %v8544_v60 = vsub.f32 %v33165_v45, %v36780_v3  ;;  %v23694_v16 = vpop.f32.mrb[59].mxu0  ;;  %v8702_v26 = vsub.f32 %v33017_v39, %v36788_v17  ;;  %v36782_v0 = vand.u32 4294901760, %v33033_v14  ;;  %v2928_v40 = vld [vmem:[%s36227_s3 + $0x7e0] sm:$0xff] }
 0x442   : > { %26965 = vmatprep.subr.bf16.mxu1 %v37771_v43  ;;  %27205 = vmatprep.subr.bf16.mxu0 %v33117_v23  ;;  %v36783_v43 = vand.u32 4294901760, %v33209_v42  ;;  %37840 = vst [vmem:[#allocation88_spill] sm:$0xff] %v33225_v21  ;;  %v33230_v46 = vadd.f32 %v23694_v16, %v23693_v53  ;;  %v33238_v3 = vsub.f32 %v2883_v57, %v8491_v30  ;;  %v8584_v63 = vand.u32 4294901760, %v8583_v28 }
 0x443   : > { %v8545_v55 = vand.u32 4294901760, %v8544_v60  ;;  %v8709_v50 = vsub.f32 %v33019_v6, %v36786_v1  ;;  %v33244_v53 = vsub.f32 %v2673_v33, %v33225_v21  ;;  %v8703_v60 = vand.u32 4294901760, %v8702_v26 }
 0x444   : > { %7236 = vmatmul.mubr.f32.gmra.mrb[56].mxu1 %v37842_v10  ;;  %37843 = vst [vmem:[#allocation89_spill] sm:$0xff] %v33230_v46  ;;  %27207 = vmatpush3.bf16.msra.mxu0 %v33119_v51  ;;  %v33252_v57 = vand.u32 4294901760, %v2672_v13  ;;  %v33255_v30 = vpack.c.bf16 %v8584_v63, %v8577_v34  ;;  %v27248_v28 = vpack.c.bf16 %v32997_v48, %v32995_v37  ;;  %v37967_v46 = vld [vmem:[#allocation62_spill] sm:$0xff] }
 0x445   : > { %26967 = vmatpush3.bf16.msra.mxu1 %v37778_v24  ;;  %7513 = vmatprep.mubr.f32.mxu1 %v37720_v11  ;;  %37844 = vst [vmem:[#allocation69_spill] sm:$0xff] %v33244_v53  ;;  %v8590_v24 = vsub.f32 %v33033_v14, %v36782_v0  ;;  %v36785_v11 = vand.u32 4294901760, %v33035_v58  ;;  %v8710_v33 = vand.u32 4294901760, %v8709_v50  ;;  %v36784_v16 = vand.u32 4294901760, %v33244_v53 }
 0x446   : > { %26969 = vmatprep.subr.bf16.mxu1 %v37781_v54  ;;  %37845 = vst [vmem:[#allocation91_spill] sm:$0xff] %v33252_v57  ;;  %27209 = vmatprep.subr.bf16.mxu0 %v33130_v7  ;;  %37846 = vst [vmem:[#allocation16_spill] sm:$0xff] %v33255_v30  ;;  %v8550_v54 = vsub.f32 %v33209_v42, %v36783_v43  ;;  %v33267_v0 = vsub.f32 %v2672_v13, %v33252_v57  ;;  %v36787_v50 = vand.u32 4294901760, %v33040_v12 }
 0x447   : > { %8546 = vmatprep.mubr.f32.mxu0 %v8545_v55  ;;  %v8591_v10 = vand.u32 4294901760, %v8590_v24  ;;  %v8597_v26 = vsub.f32 %v33035_v58, %v36785_v11  ;;  %v27250_v63 = vpack.c.bf16 %v33009_v20, %v33007_v62  ;;  %v33272_v34 = vpack.c.bf16 %v8710_v33, %v8703_v60 }
 0x448   : > { %37847 = vst [vmem:[#allocation82_spill] sm:$0xff] %v33267_v0  ;;  %v8559_v55 = vsub.f32 %v33244_v53, %v36784_v16  ;;  %27211 = vmatpush3.bf16.msra.mxu0 %v33172_v29  ;;  %v36789_v13 = vand.u32 4294901760, %v33267_v0  ;;  %v36793_v43 = vand.u32 4294901760, %v33054_v5  ;;  %v8551_v60 = vand.u32 4294901760, %v8550_v54 }
 0x449   : > { %26971 = vmatpush3.bf16.msra.mxu1 %v37786_v35  ;;  %37848 = vst [vmem:[#allocation95_spill] sm:$0xff] %v33272_v34  ;;  %v8598_v24 = vand.u32 4294901760, %v8597_v26  ;;  %v36790_v35 = vand.u32 4294901760, %v33042_v32  ;;  %27213 = vmatprep.subr.bf16.mxu0 %v33185_v4  ;;  %v27252_v33 = vpack.c.bf16 %v33019_v6, %v33017_v39  ;;  %v8716_v16 = vsub.f32 %v33040_v12, %v36787_v50 }
 0x44a   : > { %26973 = vmatprep.subr.bf16.mxu1 %v37790_v19  ;;  %v36796_v19 = vand.u32 4294901760, %v33056_v36  ;;  %v8565_v26 = vsub.f32 %v33267_v0, %v36789_v13  ;;  %v8604_v54 = vsub.f32 %v33054_v5, %v36793_v43  ;;  %v27254_v50 = vpack.c.bf16 %v33035_v58, %v33033_v14 }
 0x44b   : > { %v33290_v11 = vpack.c.bf16 %v8598_v24, %v8591_v10  ;;  %v8723_v1 = vsub.f32 %v33042_v32, %v36790_v35  ;;  %v8717_v17 = vand.u32 4294901760, %v8716_v16  ;;  %v36801_v24 = vand.u32 4294901760, %v33068_v56 }
 0x44c   : > { %v8611_v10 = vsub.f32 %v33056_v36, %v36796_v19  ;;  %27215 = vmatpush3.bf16.msra.mxu0 %v33203_v59  ;;  %v8560_v13 = vand.u32 4294901760, %v8559_v55  ;;  %v8605_v4 = vand.u32 4294901760, %v8604_v54  ;;  %v36802_v43 = vand.u32 4294901760, %v33070_v25  ;;  %v37855_v59 = vld [vmem:[#allocation37_spill] sm:$0xff] }
 0x44d   : > { %37849 = vst [vmem:[#allocation115_spill] sm:$0xff] %v33290_v11  ;;  %26975 = vmatpush3.bf16.msra.mxu1 %v37793_v31  ;;  %v8724_v35 = vand.u32 4294901760, %v8723_v1  ;;  %27249 = vmatprep.subr.bf16.mxu0 %v27248_v28  ;;  %v8730_v16 = vsub.f32 %v33068_v56, %v36801_v24  ;;  %v36805_v29 = vand.u32 4294901760, %v33082_v61  ;;  %v36810_v19 = vand.u32 4294901760, %v33084_v9  ;;  %v37851_v28 = vld [vmem:[#allocation17_spill] sm:$0xff]  ;;  %v37854_v24 = vld [vmem:[#allocation31_spill] sm:$0xff] }
 0x44e   : > { %26977 = vmatprep.subr.bf16.mxu1 %v37794_v8  ;;  %v8612_v31 = vand.u32 4294901760, %v8611_v10  ;;  %v8566_v7 = vand.u32 4294901760, %v8565_v26  ;;  %v27256_v8 = vpack.c.bf16 %v33042_v32, %v33040_v12  ;;  %v8737_v1 = vsub.f32 %v33070_v25, %v36802_v43  ;;  %v37869_v11 = vld [vmem:[#allocation7_spill] sm:$0xff] }
 0x44f   : > { %v33316_v51 = vpack.c.bf16 %v8724_v35, %v8717_v17  ;;  %8552 = vmatmul.mubr.f32.vlgmr.msra.gmra.mrb[84].mxu0 %v8551_v60  ;;  %v8731_v54 = vand.u32 4294901760, %v8730_v16  ;;  %v8618_v10 = vsub.f32 %v33082_v61, %v36805_v29  ;;  %v8625_v17 = vsub.f32 %v33084_v9, %v36810_v19  ;;  %v37853_v35 = vld [vmem:[#allocation23_spill] sm:$0xff]  ;;  %v37856_v60 = vld [vmem:[#allocation49_spill] sm:$0xff] }
 0x450   : > { %v33324_v55 = vpack.c.bf16 %v8612_v31, %v8605_v4  ;;  %27251 = vmatpush3.bf16.msra.mxu0 %v27250_v63  ;;  %v8738_v26 = vand.u32 4294901760, %v8737_v1  ;;  %v36813_v43 = vand.u32 4294901760, %v37854_v24  ;;  %v36815_v4 = vand.u32 4294901760, %v37856_v60  ;;  %8561 = vmatprep.mubr.f32.mxu0 %v8560_v13 }
 0x451   : > { %37850 = vst [vmem:[#allocation116_spill] sm:$0xff] %v33316_v51  ;;  %26979 = vmatpush3.bf16.msra.mxu1 %v37851_v28  ;;  %v36814_v28 = vand.u32 4294901760, %v37855_v59  ;;  %27253 = vmatprep.subr.bf16.mxu0 %v27252_v33  ;;  %v27258_v16 = vpack.c.bf16 %v33056_v36, %v33054_v5  ;;  %v8619_v29 = vand.u32 4294901760, %v8618_v10  ;;  %v8626_v23 = vand.u32 4294901760, %v8625_v17  ;;  %v37859_v10 = vld [vmem:[#allocation24_spill] sm:$0xff] }
 0x452   : > { %37852 = vst [vmem:[#allocation17_spill] sm:$0xff] %v33324_v55  ;;  %26981 = vmatprep.subr.bf16.mxu1 %v37853_v35  ;;  %v23424_v31 = vpop.f32.mrb[30].mxu1  ;;  %v36816_v19 = vand.u32 4294901760, %v37857_v27  ;;  %v33339_v35 = vpack.c.bf16 %v8738_v26, %v8731_v54  ;;  %v8744_v63 = vsub.f32 %v37854_v24, %v36813_v43  ;;  %v8632_v13 = vsub.f32 %v37856_v60, %v36815_v4  ;;  %v37861_v26 = vld [vmem:[#allocation44_spill] sm:$0xff] }
 0x453   : > { %v23425_v41 = vpop.f32.mrb[31].mxu1  ;;  %v8751_v1 = vsub.f32 %v37855_v59, %v36814_v28  ;;  %8567 = vmatmul.mubr.f32.gmra.mrb[86].mxu0 %v8566_v7  ;;  %v33351_v17 = vpack.c.bf16 %v8626_v23, %v8619_v29  ;;  %v36817_v43 = vand.u32 4294901760, %v37861_v26  ;;  %v27260_v28 = vpack.c.bf16 %v33070_v25, %v33068_v56 }
 0x454   : > { %37858 = vst [vmem:[#allocation23_spill] sm:$0xff] %v33339_v35  ;;  %v23426_v33 = vadd.f32 %v23425_v41, %v23424_v31  ;;  %v8639_v54 = vsub.f32 %v37857_v27, %v36816_v19  ;;  %v37862_v35 = vld [vmem:[#allocation6_spill] sm:$0xff]  ;;  %27255 = vmatpush3.bf16.msra.mxu0 %v27254_v50  ;;  %v8745_v55 = vand.u32 4294901760, %v8744_v63  ;;  %v8633_v41 = vand.u32 4294901760, %v8632_v13  ;;  %v37863_v31 = vld [vmem:[#allocation76_spill] sm:$0xff]  ;;  %v37864_v19 = vld [vmem:[#allocation39_spill] sm:$0xff]  ;;  %8941 = vmatprep.mubr.f32.mxu0 %v33165_v45 }
 0x455   : > { %26983 = vmatpush3.bf16.msra.mxu1 %v37859_v10  ;;  %37860 = vst [vmem:[#allocation31_spill] sm:$0xff] %v33351_v17  ;;  %v8752_v4 = vand.u32 4294901760, %v8751_v1  ;;  %27257 = vmatprep.subr.bf16.mxu0 %v27256_v8  ;;  %v8758_v29 = vsub.f32 %v37861_v26, %v36817_v43  ;;  %v37866_v1 = vld [vmem:[#allocation64_spill] sm:$0xff]  ;;  %v37871_v45 = vld [vmem:[#allocation9_spill] sm:$0xff]  ;;  %v37872_v34 = vand.u32 4294901760, %v37864_v19 }
 0x456   : > { %26985 = vmatprep.subr.bf16.mxu1 %v37862_v35  ;;  %v5391_v10 = vadd.f32 %v23426_v33, %v37863_v31  ;;  %v8640_v23 = vand.u32 4294901760, %v8639_v54  ;;  %v27262_v35 = vpack.c.bf16 %v33084_v9, %v33082_v61  ;;  %v36820_v13 = vand.u32 4294901760, %v37866_v1  ;;  %v37867_v33 = vld [vmem:[#allocation84_spill] sm:$0xff] }
 0x457   : > { %v23427_v7 = vpop.f32.mrb[32].mxu1  ;;  %v33368_v63 = vpack.c.bf16 %v8752_v4, %v8745_v55  ;;  %v36819_v31 = vand.u32 4294901760, %v37867_v33  ;;  %v37868_v8 = vld [vmem:[#allocation52_spill] sm:$0xff]  ;;  %v8759_v17 = vand.u32 4294901760, %v8758_v29  ;;  %v8765_v55 = vsub.f32 %v37864_v19, %v37872_v34 }
 0x458   : > { %v23428_v50 = vpop.f32.mrb[33].mxu1  ;;  %v33373_v54 = vadd.f32 %v37868_v8, %v5391_v10  ;;  %v33376_v43 = vpack.c.bf16 %v8640_v23, %v8633_v41  ;;  %27259 = vmatpush3.bf16.msra.mxu0 %v27258_v16  ;;  %v8646_v4 = vsub.f32 %v37866_v1, %v36820_v13  ;;  %v37873_v41 = vld [vmem:[#allocation33_spill] sm:$0xff]  ;;  %v36821_v16 = vand.u32 4294901760, %v33178_v52 }
 0x459   : > { %37865 = vst [vmem:[#allocation37_spill] sm:$0xff] %v33368_v63  ;;  %v23429_v51 = vadd.f32 %v23428_v50, %v23427_v7  ;;  %26987 = vmatpush3.bf16.msra.mxu1 %v37869_v11  ;;  %v8653_v10 = vsub.f32 %v37867_v33, %v36819_v31  ;;  %v36822_v11 = vand.u32 4294901760, %v33176_v38  ;;  %27261 = vmatprep.subr.bf16.mxu0 %v27260_v28  ;;  %v36823_v34 = vand.u32 4294901760, %v33180_v15  ;;  %v37874_v31 = vld [vmem:[#allocation25_spill] sm:$0xff] }
 0x45a   : > { %37870 = vst [vmem:[#allocation49_spill] sm:$0xff] %v33376_v43  ;;  %26989 = vmatprep.subr.bf16.mxu1 %v37871_v45  ;;  %v27264_v45 = vpack.c.bf16 %v37855_v59, %v37854_v24  ;;  %v8766_v23 = vand.u32 4294901760, %v8765_v55  ;;  %v8647_v29 = vand.u32 4294901760, %v8646_v4  ;;  %v37875_v43 = vld [vmem:[#allocation12_spill] sm:$0xff]  ;;  %v36824_v55 = vand.u32 4294901760, %v33183_v2  ;;  %v37876_v4 = vld [vmem:[#allocation101_spill] sm:$0xff] }
 0x45b   : > { %v5402_v7 = vadd.f32 %v23429_v51, %v37873_v41  ;;  %v8654_v50 = vand.u32 4294901760, %v8653_v10  ;;  %v8772_v8 = vsub.f32 %v33176_v38, %v36822_v11  ;;  %v8779_v51 = vsub.f32 %v33178_v52, %v36821_v16 }
 0x45c   : > { %v8660_v28 = vsub.f32 %v33180_v15, %v36823_v34  ;;  %27263 = vmatpush3.bf16.msra.mxu0 %v27262_v35  ;;  %v27266_v10 = vpack.c.bf16 %v37857_v27, %v37856_v60  ;;  %v8667_v34 = vsub.f32 %v33183_v2, %v36824_v55  ;;  %v36825_v35 = vand.u32 4294901760, %v33187_v44  ;;  %v37883_v55 = vld [vmem:[#allocation108_spill] sm:$0xff] }
 0x45d   : > { %v33398_v13 = vadd.f32 %v37874_v31, %v5402_v7  ;;  %26991 = vmatpush3.bf16.msra.mxu1 %v37875_v43  ;;  %v33411_v31 = vpack.c.bf16 %v8766_v23, %v8759_v17  ;;  %v33413_v41 = vpack.c.bf16 %v8654_v50, %v8647_v29  ;;  %v8773_v43 = vand.u32 4294901760, %v8772_v8  ;;  %27265 = vmatprep.subr.bf16.mxu0 %v27264_v45  ;;  %v37880_v45 = vld [vmem:[#allocation105_spill] sm:$0xff]  ;;  %v37881_v50 = vld [vmem:[#allocation78_spill] sm:$0xff] }
 0x45e   : > { %27025 = vmatprep.subr.bf16.mxu1 %v37876_v4  ;;  %v27268_v7 = vpack.c.bf16 %v37864_v19, %v37861_v26  ;;  %v8780_v16 = vand.u32 4294901760, %v8779_v51  ;;  %v8661_v11 = vand.u32 4294901760, %v8660_v28  ;;  %v37879_v4 = vld [vmem:[#allocation13_spill] sm:$0xff]  ;;  %v36826_v17 = vand.u32 4294901760, %v33189_v49 }
 0x45f   : > { %37877 = vst [vmem:[#allocation8_spill] sm:$0xff] %v33411_v31  ;;  %37878 = vst [vmem:[#allocation24_spill] sm:$0xff] %v33413_v41  ;;  %v36827_v23 = vand.u32 4294901760, %v33205_v22  ;;  %v27270_v8 = vpack.c.bf16 %v37867_v33, %v37866_v1  ;;  %v8668_v28 = vand.u32 4294901760, %v8667_v34  ;;  %v27272_v34 = vpack.c.bf16 %v33178_v52, %v33176_v38  ;;  %v37887_v31 = vld [vmem:[#allocation110_spill] sm:$0xff] }
 0x460   : > { %7515 = vmatmul.mubr.f32.vlgmr.msra.gmra.mrb[58].mxu1 %v37879_v4  ;;  %v33429_v51 = vpack.c.bf16 %v8780_v16, %v8773_v43  ;;  %27267 = vmatpush3.bf16.msra.mxu0 %v27266_v10  ;;  %v8786_v4 = vsub.f32 %v33187_v44, %v36825_v35  ;;  %v8793_v29 = vsub.f32 %v33189_v49, %v36826_v17  ;;  %v37886_v43 = vld [vmem:[#allocation41_spill] sm:$0xff] }
 0x461   : > { %27027 = vmatpush3.bf16.msra.mxu1 %v37880_v45  ;;  %7520 = vmatprep.mubr.f32.mxu1 %v37881_v50  ;;  %v8674_v45 = vsub.f32 %v33205_v22, %v36827_v23  ;;  %v33441_v16 = vpack.c.bf16 %v8668_v28, %v8661_v11  ;;  %v37888_v23 = vld [vmem:[#allocation38_spill] sm:$0xff]  ;;  %v37890_v28 = vld [vmem:[#allocation113_spill] sm:$0xff] }
 0x462   : > { %37882 = vst [vmem:[#allocation44_spill] sm:$0xff] %v33429_v51  ;;  %27029 = vmatprep.subr.bf16.mxu1 %v37883_v55  ;;  %v23766_v50 = vpop.f32.mrb[60].mxu0  ;;  %27269 = vmatprep.subr.bf16.mxu0 %v27268_v7  ;;  %v37885_v55 = vand.u32 4294901760, %v33238_v3  ;;  %v8787_v51 = vand.u32 4294901760, %v8786_v4  ;;  %v8794_v17 = vand.u32 4294901760, %v8793_v29  ;;  %v27276_v29 = vpack.c.bf16 %v33189_v49, %v33187_v44  ;;  %v37894_v4 = vld [vmem:[#allocation47_spill] sm:$0xff] }
 0x463   : > { %37884 = vst [vmem:[#allocation6_spill] sm:$0xff] %v33441_v16  ;;  %v23767_v35 = vpop.f32.mrb[61].mxu0  ;;  %v8675_v41 = vand.u32 4294901760, %v8674_v45  ;;  %v27274_v16 = vpack.c.bf16 %v33183_v2, %v33180_v15  ;;  %v37895_v45 = vand.u32 4294901760, %v32995_v37  ;;  %v37903_v37 = vand.u32 4294901760, %v33019_v6 }
 0x464   : > { %v8681_v10 = vsub.f32 %v33238_v3, %v37885_v55  ;;  %7522 = vmatmul.mubr.f32.gmra.mrb[60].mxu1 %v37886_v43  ;;  %v33451_v7 = vadd.f32 %v23767_v35, %v23766_v50  ;;  %27271 = vmatpush3.bf16.msra.mxu0 %v27270_v8  ;;  %v33456_v55 = vpack.c.bf16 %v8794_v17, %v8787_v51  ;;  %v37896_v17 = vand.u32 4294901760, %v32997_v48  ;;  %v37897_v50 = vld [vmem:[#allocation71_spill] sm:$0xff] }
 0x465   : > { %27031 = vmatpush3.bf16.msra.mxu1 %v37887_v31  ;;  %7879 = vmatprep.mubr.f32.mxu1 %v37888_v23  ;;  %v37893_v31 = vld [vmem:[#allocation114_spill] sm:$0xff]  ;;  %v27278_v35 = vpack.c.bf16 %v33238_v3, %v33205_v22  ;;  %v37909_v6 = vand.u32 4294901760, %v33042_v32  ;;  %v37914_v32 = vand.u32 4294901760, %v33068_v56 }
 0x466   : > { %37889 = vst [vmem:[#allocation76_spill] sm:$0xff] %v33451_v7  ;;  %v8682_v11 = vand.u32 4294901760, %v8681_v10  ;;  %27033 = vmatprep.subr.bf16.mxu1 %v37890_v28  ;;  %37891 = vst [vmem:[#allocation39_spill] sm:$0xff] %v33456_v55  ;;  %27273 = vmatprep.subr.bf16.mxu0 %v27272_v34  ;;  %v27312_v51 = vpack.c.bf16 %v37896_v17, %v37895_v45  ;;  %v37899_v10 = vld [vmem:[#allocation43_spill] sm:$0xff]  ;;  %v2927_v55 = vld [vmem:[%s36227_s3 + $0x7d8] sm:$0xff] }
 0x467   : > { %v37964_v7 = vld [vmem:[#allocation66_spill] sm:$0xff] }
 0x468   : > { %v33458_v43 = vpack.c.bf16 %v8682_v11, %v8675_v41  ;;  %27275 = vmatpush3.bf16.msra.mxu0 %v27274_v16  ;;  %v37900_v16 = vand.u32 4294901760, %v33007_v62  ;;  %v37901_v11 = vand.u32 4294901760, %v33009_v20  ;;  %v37907_v62 = vand.u32 4294901760, %v33035_v58 }
 0x469   : > { %27035 = vmatpush3.bf16.msra.mxu1 %v37893_v31  ;;  %v23769_v8 = vpop.f32.mrb[62].mxu0  ;;  %27277 = vmatprep.subr.bf16.mxu0 %v27276_v29  ;;  %v37902_v29 = vand.u32 4294901760, %v33017_v39  ;;  %v37904_v31 = vld [vmem:[#allocation63_spill] sm:$0xff]  ;;  %v37908_v39 = vand.u32 4294901760, %v33040_v12  ;;  %v37913_v58 = vand.u32 4294901760, %v33056_v36  ;;  %v37919_v36 = vld [vmem:[#allocation48_spill] sm:$0xff] }
 0x46a   : > { %37892 = vst [vmem:[#allocation64_spill] sm:$0xff] %v33458_v43  ;;  %27037 = vmatprep.subr.bf16.mxu1 %v37894_v4  ;;  %v23770_v41 = vpop.f32.mrb[63].mxu0  ;;  %v27314_v28 = vpack.c.bf16 %v37901_v11, %v37900_v16  ;;  %v37905_v4 = vld [vmem:[#allocation11_spill] sm:$0xff]  ;;  %v37915_v11 = vand.u32 4294901760, %v33070_v25 }
 0x46b   : > { %v33471_v34 = vadd.f32 %v23770_v41, %v23769_v8  ;;  %v27316_v48 = vpack.c.bf16 %v37903_v37, %v37902_v29  ;;  %v27320_v45 = vpack.c.bf16 %v37909_v6, %v37908_v39  ;;  %v37910_v41 = vld [vmem:[#allocation72_spill] sm:$0xff]  ;;  %v37924_v39 = vld [vmem:[#allocation65_spill] sm:$0xff] }
 0x46c   : > { %27279 = vmatpush3.bf16.msra.mxu0 %v27278_v35  ;;  %v37906_v35 = vand.u32 4294901760, %v33033_v14  ;;  %v37912_v14 = vand.u32 4294901760, %v33054_v5  ;;  %v37916_v29 = vld [vmem:[#allocation92_spill] sm:$0xff] }
 0x46d   : > { %27039 = vmatpush3.bf16.msra.mxu1 %v37897_v50  ;;  %37898 = vst [vmem:[#allocation84_spill] sm:$0xff] %v33471_v34  ;;  %27313 = vmatprep.subr.bf16.mxu0 %v27312_v51  ;;  %v37911_v50 = vld [vmem:[#allocation36_spill] sm:$0xff] }
 0x46e   : > { %27041 = vmatprep.subr.bf16.mxu1 %v37899_v10  ;;  %v27318_v8 = vpack.c.bf16 %v37907_v62, %v37906_v35  ;;  %v27322_v10 = vpack.c.bf16 %v37913_v58, %v37912_v14  ;;  %v37918_v5 = vld [vmem:[#allocation32_spill] sm:$0xff]  ;;  %v37921_v35 = vand.u32 4294901760, %v33084_v9  ;;  %v37922_v62 = vand.u32 4294901760, %v37854_v24  ;;  %v37933_v14 = vld [vmem:[#allocation102_spill] sm:$0xff] }
 0x46f   : > { %8944 = vmatmul.mubr.f32.vlgmr.msra.gmra.mrb[88].mxu0 %v33209_v42  ;;  %v37928_v9 = vand.u32 4294901760, %v37857_v27  ;;  %v37930_v24 = vand.u32 4294901760, %v37864_v19  ;;  %v37934_v58 = vld [vmem:[#allocation56_spill] sm:$0xff]  ;;  %v37936_v27 = vand.u32 4294901760, %v37867_v33  ;;  %v2917_v19 = vld [vmem:[%s36227_s3 + $0x788] sm:$0xff]  ;;  %v2900_v33 = vld [vmem:[%s36227_s3 + $0x700] sm:$0xff] }
 0x470   : > { %27315 = vmatpush3.bf16.msra.mxu0 %v27314_v28  ;;  %8950 = vmatprep.mubr.f32.mxu0 %v33244_v53  ;;  %v27324_v28 = vpack.c.bf16 %v37915_v11, %v37914_v32  ;;  %v37939_v11 = vld [vmem:[#allocation104_spill] sm:$0xff] }
 0x471   : > { %27043 = vmatpush3.bf16.msra.mxu1 %v37904_v31  ;;  %27317 = vmatprep.subr.bf16.mxu0 %v27316_v48  ;;  %v37917_v48 = vld [vmem:[#allocation35_spill] sm:$0xff]  ;;  %v37962_v34 = vld [vmem:[#allocation28_spill] sm:$0xff] }
 0x472   : > { %27045 = vmatprep.subr.bf16.mxu1 %v37905_v4 }
 0x473   : > { %v23500_v20 = vpop.f32.mrb[34].mxu1  ;;  %8953 = vmatmul.mubr.f32.gmra.mrb[90].mxu0 %v33267_v0 }
 0x474   : > { %v23501_v17 = vpop.f32.mrb[35].mxu1  ;;  %27319 = vmatpush3.bf16.msra.mxu0 %v27318_v8  ;;  %9238 = vmatprep.mubr.f32.mxu0 %v37916_v29  ;;  %v37923_v8 = vand.u32 4294901760, %v37855_v59 }
 0x475   : > { %v23502_v51 = vadd.f32 %v23501_v17, %v23500_v20  ;;  %27047 = vmatpush3.bf16.msra.mxu1 %v37910_v41  ;;  %27321 = vmatprep.subr.bf16.mxu0 %v27320_v45  ;;  %v37925_v45 = vld [vmem:[#allocation40_spill] sm:$0xff]  ;;  %v37926_v17 = vld [vmem:[#allocation93_spill] sm:$0xff] }
 0x476   : > { %27049 = vmatprep.subr.bf16.mxu1 %v37911_v50  ;;  %v27328_v20 = vpack.c.bf16 %v37923_v8, %v37922_v62  ;;  %v37931_v41 = vld [vmem:[#allocation5_spill] sm:$0xff]  ;;  %v37932_v50 = vld [vmem:[#allocation94_spill] sm:$0xff]  ;;  %v37946_v62 = vand.u32 4294901760, %v33183_v2 }
 0x477   : > { %v5681_v16 = vadd.f32 %v23502_v51, %v33373_v54  ;;  %v23503_v12 = vpop.f32.mrb[36].mxu1  ;;  %v37920_v54 = vand.u32 4294901760, %v33082_v61  ;;  %v37927_v61 = vand.u32 4294901760, %v37856_v60  ;;  %v37935_v60 = vand.u32 4294901760, %v37866_v1  ;;  %v2920_v2 = vld [vmem:[%s36227_s3 + $0x7a0] sm:$0xff] }
 0x478   : > { %v23504_v37 = vpop.f32.mrb[37].mxu1  ;;  %27323 = vmatpush3.bf16.msra.mxu0 %v27322_v10 }
 0x479   : > { %v33508_v31 = vadd.f32 %v37917_v48, %v5681_v16  ;;  %v23505_v4 = vadd.f32 %v23504_v37, %v23503_v12  ;;  %27051 = vmatpush3.bf16.msra.mxu1 %v37918_v5  ;;  %v27326_v56 = vpack.c.bf16 %v37921_v35, %v37920_v54  ;;  %27325 = vmatprep.subr.bf16.mxu0 %v27324_v28  ;;  %v37937_v16 = vand.u32 4294901760, %v33176_v38  ;;  %v2901_v28 = vld [vmem:[%s36227_s3 + $0x708] sm:$0xff]  ;;  %v37940_v37 = vld [vmem:[#allocation27_spill] sm:$0xff]  ;;  %v2919_v54 = vld [vmem:[%s36227_s3 + $0x798] sm:$0xff] }
 0x47a   : > { %27053 = vmatprep.subr.bf16.mxu1 %v37919_v36  ;;  %v27330_v51 = vpack.c.bf16 %v37928_v9, %v37927_v61  ;;  %v27334_v10 = vpack.c.bf16 %v37936_v27, %v37935_v60  ;;  %v37938_v12 = vand.u32 4294901760, %v33178_v52  ;;  %v37941_v48 = vld [vmem:[#allocation50_spill] sm:$0xff]  ;;  %v9415_v52 = vand.u32 4294901760, %v2917_v19  ;;  %v2918_v36 = vld [vmem:[%s36227_s3 + $0x790] sm:$0xff] }
 0x47b   : > { %v5688_v25 = vadd.f32 %v23505_v4, %v33398_v13  ;;  %v37929_v13 = vand.u32 4294901760, %v37861_v26  ;;  %v2916_v26 = vld [vmem:[%s36227_s3 + $0x780] sm:$0xff]  ;;  %v37942_v4 = vand.u32 4294901760, %v37941_v48  ;;  %v37943_v35 = vld [vmem:[#allocation58_spill] sm:$0xff]  ;;  %v9364_v61 = vand.u32 4294901760, %v2900_v33 }
 0x47c   : > { %27327 = vmatpush3.bf16.msra.mxu0 %v27326_v56  ;;  %v27336_v32 = vpack.c.bf16 %v37938_v12, %v37937_v16  ;;  %v9412_v5 = vand.u32 4294901760, %v2916_v26  ;;  %v9367_v9 = vand.u32 4294901760, %v2901_v28  ;;  %v2905_v60 = vld [vmem:[%s36227_s3 + $0x728] sm:$0xff]  ;;  %v37950_v16 = vand.u32 4294901760, %v33205_v22  ;;  %v2922_v22 = vld [vmem:[%s36227_s3 + $0x7b0] sm:$0xff] }
 0x47d   : > { %v33522_v6 = vadd.f32 %v37924_v39, %v5688_v25  ;;  %27055 = vmatpush3.bf16.msra.mxu1 %v37925_v45  ;;  %27329 = vmatprep.subr.bf16.mxu0 %v27328_v20  ;;  %v27332_v59 = vpack.c.bf16 %v37930_v24, %v37929_v13  ;;  %v37945_v25 = vand.u32 4294901760, %v33180_v15  ;;  %v37947_v20 = vand.u32 4294901760, %v33187_v44  ;;  %v2903_v13 = vld [vmem:[%s36227_s3 + $0x718] sm:$0xff]  ;;  %v37949_v27 = vld [vmem:[#allocation14_spill] sm:$0xff] }
 0x47e   : > { %27089 = vmatprep.subr.bf16.mxu1 %v37926_v17  ;;  %v37948_v39 = vand.u32 4294901760, %v33189_v49  ;;  %v9418_v24 = vand.u32 4294901760, %v2918_v36  ;;  %v9421_v44 = vand.u32 4294901760, %v2919_v54  ;;  %v2921_v49 = vld [vmem:[%s36227_s3 + $0x7a8] sm:$0xff]  ;;  %v37951_v12 = vand.u32 4294901760, %v33238_v3  ;;  %v2923_v3 = vld [vmem:[%s36227_s3 + $0x7b8] sm:$0xff] }
 0x47f   : > { %v27338_v8 = vpack.c.bf16 %v37946_v62, %v37945_v25  ;;  %v33604_v48 = vsub.f32 %v2916_v26, %v9412_v5  ;;  %v33609_v25 = vsub.f32 %v2917_v19, %v9415_v52  ;;  %v9424_v26 = vand.u32 4294901760, %v2920_v2 }
 0x480   : > { %7881 = vmatmul.mubr.f32.vlgmr.msra.gmra.mrb[62].mxu1 %v37931_v41  ;;  %27331 = vmatpush3.bf16.msra.mxu0 %v27330_v51  ;;  %v27340_v45 = vpack.c.bf16 %v37948_v39, %v37947_v20  ;;  %v2902_v51 = vld [vmem:[%s36227_s3 + $0x710] sm:$0xff]  ;;  %v9373_v20 = vand.u32 4294901760, %v2903_v13  ;;  %v33621_v19 = vsub.f32 %v2901_v28, %v9367_v9  ;;  %v33629_v0 = vsub.f32 %v2918_v36, %v9418_v24  ;;  %v2924_v28 = vld [vmem:[%s36227_s3 + $0x7c0] sm:$0xff] }
 0x481   : > { %27091 = vmatpush3.bf16.msra.mxu1 %v37932_v50  ;;  %7886 = vmatprep.mubr.f32.mxu1 %v37933_v14  ;;  %v9370_v62 = vand.u32 4294901760, %v2902_v51  ;;  %v9430_v53 = vand.u32 4294901760, %v2922_v22  ;;  %v9433_v42 = vand.u32 4294901760, %v2923_v3 }
 0x482   : > { %27093 = vmatprep.subr.bf16.mxu1 %v37934_v58  ;;  %27333 = vmatprep.subr.bf16.mxu0 %v27332_v59  ;;  %v23842_v1 = vpop.f32.mrb[64].mxu0  ;;  %v2904_v59 = vld [vmem:[%s36227_s3 + $0x720] sm:$0xff] }
 0x483   : > { %v23843_v38 = vpop.f32.mrb[65].mxu0  ;;  %v9376_v39 = vand.u32 4294901760, %v2904_v59  ;;  %v33643_v36 = vpack.c.bf16 %v9373_v20, %v9370_v62  ;;  %v33680_v63 = vsub.f32 %v2922_v22, %v9430_v53 }
 0x484   : > { %7888 = vmatmul.mubr.f32.gmra.mrb[64].mxu1 %v37939_v11  ;;  %v33569_v56 = vadd.f32 %v23843_v38, %v23842_v1  ;;  %27335 = vmatpush3.bf16.msra.mxu0 %v27334_v10  ;;  %v33602_v1 = vpack.c.bf16 %v9415_v52, %v9412_v5  ;;  %v9427_v5 = vand.u32 4294901760, %v2921_v49  ;;  %v33623_v52 = vpack.c.bf16 %v9421_v44, %v9418_v24 }
 0x485   : > { %27095 = vmatpush3.bf16.msra.mxu1 %v37940_v37  ;;  %8139 = vmatprep.mubr.f32.mxu1 %v37942_v4  ;;  %v37953_v4 = vld [vmem:[#allocation42_spill] sm:$0xff]  ;;  %37959 = vst [vmem:[#allocation12_spill] sm:$0xff] %v33643_v36  ;;  %v33647_v24 = vsub.f32 %v2903_v13, %v9373_v20  ;;  %v9436_v20 = vand.u32 4294901760, %v2924_v28 }
 0x486   : > { %27097 = vmatprep.subr.bf16.mxu1 %v37943_v35  ;;  %37944 = vst [vmem:[#allocation52_spill] sm:$0xff] %v33569_v56  ;;  %27337 = vmatprep.subr.bf16.mxu0 %v27336_v32  ;;  %v23845_v15 = vpop.f32.mrb[66].mxu0  ;;  %v27342_v32 = vpack.c.bf16 %v37951_v12, %v37950_v16  ;;  %37952 = vst [vmem:[#allocation7_spill] sm:$0xff] %v33602_v1  ;;  %v9379_v16 = vand.u32 4294901760, %v2905_v60  ;;  %v37957_v12 = vld [vmem:[#allocation61_spill] sm:$0xff]  ;;  %v33654_v56 = vsub.f32 %v2921_v49, %v9427_v5 }
 0x487   : > { %v23846_v10 = vpop.f32.mrb[67].mxu0  ;;  %37956 = vst [vmem:[#allocation25_spill] sm:$0xff] %v33623_v52 }
 0x488   : > { %v33607_v38 = vadd.f32 %v23846_v10, %v23845_v15  ;;  %27339 = vmatpush3.bf16.msra.mxu0 %v27338_v8  ;;  %v33617_v15 = vpack.c.bf16 %v9367_v9, %v9364_v61  ;;  %v33619_v8 = vsub.f32 %v2900_v33, %v9364_v61  ;;  %v2906_v10 = vld [vmem:[%s36227_s3 + $0x730] sm:$0xff]  ;;  %v2907_v33 = vld [vmem:[%s36227_s3 + $0x738] sm:$0xff]  ;;  %v2925_v61 = vld [vmem:[%s36227_s3 + $0x7c8] sm:$0xff]  ;;  %v33656_v43 = vpack.c.bf16 %v9379_v16, %v9376_v39 }
 0x489   : > { %27099 = vmatpush3.bf16.msra.mxu1 %v37949_v27  ;;  %27341 = vmatprep.subr.bf16.mxu0 %v27340_v45  ;;  %v33631_v45 = vsub.f32 %v2919_v54, %v9421_v44  ;;  %v37958_v9 = vld [vmem:[#allocation30_spill] sm:$0xff]  ;;  %v33645_v54 = vsub.f32 %v2902_v51, %v9370_v62  ;;  %v33650_v44 = vpack.c.bf16 %v9427_v5, %v9424_v26  ;;  %v9382_v13 = vand.u32 4294901760, %v2906_v10  ;;  %v2926_v5 = vld [vmem:[%s36227_s3 + $0x7d0] sm:$0xff] }
 0x48a   : > { %27101 = vmatprep.subr.bf16.mxu1 %v37953_v4  ;;  %37954 = vst [vmem:[#allocation9_spill] sm:$0xff] %v33607_v38  ;;  %37955 = vst [vmem:[#allocation33_spill] sm:$0xff] %v33617_v15  ;;  %v33652_v38 = vsub.f32 %v2920_v2, %v9424_v26  ;;  %v2909_v51 = vld [vmem:[%s36227_s3 + $0x748] sm:$0xff]  ;;  %v9385_v62 = vand.u32 4294901760, %v2907_v33  ;;  %v33666_v2 = vsub.f32 %v2904_v59, %v9376_v39 }
 0x48b   : > { %37960 = vst [vmem:[#allocation101_spill] sm:$0xff] %v33650_v44  ;;  %37961 = vst [vmem:[#allocation13_spill] sm:$0xff] %v33656_v43  ;;  %v33668_v49 = vsub.f32 %v2905_v60, %v9379_v16  ;;  %v33670_v26 = vpack.c.bf16 %v9433_v42, %v9430_v53  ;;  %v33682_v59 = vsub.f32 %v2923_v3, %v9433_v42  ;;  %v9391_v39 = vand.u32 4294901760, %v2909_v51  ;;  %v2910_v16 = vld [vmem:[%s36227_s3 + $0x750] sm:$0xff] }
 0x48c   : > { %27343 = vmatpush3.bf16.msra.mxu0 %v27342_v32  ;;  %v2908_v32 = vld [vmem:[%s36227_s3 + $0x740] sm:$0xff]  ;;  %v9445_v53 = vand.u32 4294901760, %v2927_v55  ;;  %v9394_v22 = vand.u32 4294901760, %v2910_v16  ;;  %v33692_v11 = vpack.c.bf16 %v9385_v62, %v9382_v13  ;;  %v33694_v14 = vsub.f32 %v2906_v10, %v9382_v13  ;;  %v2929_v10 = vld [vmem:[%s36227_s3 + $0x7e8] sm:$0xff] }
 0x48d   : > { %27103 = vmatpush3.bf16.msra.mxu1 %v37957_v12  ;;  %27377 = vmatprep.subr.bf16.mxu0 %v33602_v1  ;;  %v9439_v1 = vand.u32 4294901760, %v2925_v61  ;;  %37963 = vst [vmem:[#allocation105_spill] sm:$0xff] %v33670_v26  ;;  %v9388_v60 = vand.u32 4294901760, %v2908_v32  ;;  %v33696_v30 = vsub.f32 %v2907_v33, %v9385_v62  ;;  %v37970_v33 = vld [vmem:[#allocation57_spill] sm:$0xff]  ;;  %v2913_v62 = vld [vmem:[%s36227_s3 + $0x768] sm:$0xff] }
 0x48e   : > { %27105 = vmatprep.subr.bf16.mxu1 %v37958_v9  ;;  %37965 = vst [vmem:[#allocation78_spill] sm:$0xff] %v33692_v11 }
 0x48f   : > { %9240 = vmatmul.mubr.f32.vlgmr.msra.gmra.mrb[92].mxu0 %v33152_v47  ;;  %v2911_v47 = vld [vmem:[%s36227_s3 + $0x758] sm:$0xff]  ;;  %v33698_v41 = vpack.c.bf16 %v9439_v1, %v9436_v20  ;;  %v33716_v13 = vsub.f32 %v2908_v32, %v9388_v60 }
 0x490   : > { %27379 = vmatpush3.bf16.msra.mxu0 %v33617_v15  ;;  %9245 = vmatprep.mubr.f32.mxu0 %v33225_v21  ;;  %v9442_v15 = vand.u32 4294901760, %v2926_v5  ;;  %v9397_v42 = vand.u32 4294901760, %v2911_v47  ;;  %v33704_v21 = vsub.f32 %v2925_v61, %v9439_v1  ;;  %v9451_v1 = vand.u32 4294901760, %v2929_v10  ;;  %v2912_v61 = vld [vmem:[%s36227_s3 + $0x760] sm:$0xff] }
 0x491   : > { %27107 = vmatpush3.bf16.msra.mxu1 %v37962_v34  ;;  %27381 = vmatprep.subr.bf16.mxu0 %v33623_v52  ;;  %37966 = vst [vmem:[#allocation108_spill] sm:$0xff] %v33698_v41  ;;  %v33702_v52 = vsub.f32 %v2924_v28, %v9436_v20  ;;  %37972 = vst [vmem:[#allocation113_spill] sm:$0xff] %v33716_v13  ;;  %v9448_v28 = vand.u32 4294901760, %v2928_v40  ;;  %v2659_v20 = vld [vmem:[%s29295_s19 + $0x78] sm:$0xff]  ;;  %v9400_v13 = vand.u32 4294901760, %v2912_v61  ;;  %v37977_v34 = vld [vmem:[#allocation70_spill] sm:$0xff] }
 0x492   : > { %27109 = vmatprep.subr.bf16.mxu1 %v37964_v7  ;;  %37969 = vst [vmem:[#allocation110_spill] sm:$0xff] %v33704_v21  ;;  %v33729_v32 = vpack.c.bf16 %v9445_v53, %v9442_v15  ;;  %v33736_v7 = vand.u32 4294901760, %v2659_v20  ;;  %v2931_v21 = vld [vmem:[%s36227_s3 + $0x7f8] sm:$0xff] }
 0x493   : > { %v23576_v29 = vpop.f32.mrb[38].mxu1  ;;  %9247 = vmatmul.mubr.f32.gmra.mrb[94].mxu0 %v33252_v57  ;;  %37968 = vst [vmem:[#allocation41_spill] sm:$0xff] %v33702_v52  ;;  %v37981_v52 = vld [vmem:[#allocation99_spill] sm:$0xff] }
 0x494   : > { %v23577_v3 = vpop.f32.mrb[39].mxu1  ;;  %27383 = vmatpush3.bf16.msra.mxu0 %v33643_v36  ;;  %v33727_v36 = vsub.f32 %v2909_v51, %v9391_v39  ;;  %37974 = vst [vmem:[#allocation47_spill] sm:$0xff] %v33729_v32  ;;  %37976 = vst [vmem:[#allocation43_spill] sm:$0xff] %v33736_v7  ;;  %v33742_v51 = vpack.c.bf16 %v9451_v1, %v9448_v28 }
 0x495   : > { %v23578_v18 = vadd.f32 %v23577_v3, %v23576_v29  ;;  %27111 = vmatpush3.bf16.msra.mxu1 %v37967_v46  ;;  %v33714_v29 = vpack.c.bf16 %v9391_v39, %v9388_v60  ;;  %27385 = vmatprep.subr.bf16.mxu0 %v33650_v44  ;;  %v33731_v60 = vpack.c.bf16 %v9397_v42, %v9394_v22  ;;  %v37979_v44 = vld [vmem:[#allocation98_spill] sm:$0xff]  ;;  %v9403_v39 = vand.u32 4294901760, %v2913_v62 }
 0x496   : > { %27113 = vmatprep.subr.bf16.mxu1 %v37970_v33  ;;  %37973 = vst [vmem:[#allocation114_spill] sm:$0xff] %v33727_v36  ;;  %v2658_v33 = vld [vmem:[%s29295_s19 + $0x70] sm:$0xff]  ;;  %37980 = vst [vmem:[#allocation11_spill] sm:$0xff] %v33742_v51 }
 0x497   : > { %37971 = vst [vmem:[#allocation38_spill] sm:$0xff] %v33714_v29  ;;  %v6047_v3 = vadd.f32 %v23578_v18, %v33508_v31  ;;  %v23579_v57 = vpop.f32.mrb[40].mxu1  ;;  %37975 = vst [vmem:[#allocation71_spill] sm:$0xff] %v33731_v60  ;;  %v2930_v36 = vld [vmem:[%s36227_s3 + $0x7f0] sm:$0xff] }
 0x498   : > { %v23580_v46 = vpop.f32.mrb[41].mxu1  ;;  %27387 = vmatpush3.bf16.msra.mxu0 %v33656_v43 }
 0x499   : > { %v33739_v18 = vadd.f32 %v37977_v34, %v6047_v3  ;;  %v23581_v31 = vadd.f32 %v23580_v46, %v23579_v57  ;;  %27115 = vmatpush3.bf16.msra.mxu1 %v37979_v44  ;;  %v33752_v34 = vsub.f32 %v2926_v5, %v9442_v15  ;;  %v33754_v46 = vsub.f32 %v2927_v55, %v9445_v53  ;;  %v2914_v3 = vld [vmem:[%s36227_s3 + $0x770] sm:$0xff]  ;;  %v2915_v44 = vld [vmem:[%s36227_s3 + $0x778] sm:$0xff] }
 0x49a   : > { %27117 = vmatprep.subr.bf16.mxu1 %v37981_v52  ;;  %v33756_v57 = vsub.f32 %v2910_v16, %v9394_v22  ;;  %27389 = vmatprep.subr.bf16.mxu0 %v33670_v26  ;;  %v33768_v15 = vsub.f32 %v2911_v47, %v9397_v42  ;;  %v9454_v55 = vand.u32 4294901760, %v2930_v36  ;;  %v9457_v5 = vand.u32 4294901760, %v2931_v21  ;;  %v37990_v47 = vld [vmem:[#allocation22_spill] sm:$0xff] }
 0x49b   : > { %37978 = vst [vmem:[#allocation63_spill] sm:$0xff] %v33739_v18  ;;  %37982 = vst [vmem:[#allocation72_spill] sm:$0xff] %v33754_v46  ;;  %v33764_v18 = vand.u32 4294901760, %v2658_v33  ;;  %v6054_v52 = vadd.f32 %v23581_v31, %v33522_v6  ;;  %v37985_v16 = vand.u32 4294901760, %v33604_v48  ;;  %v37986_v22 = vand.u32 4294901760, %v33609_v25  ;;  %v37988_v6 = vld [vmem:[#allocation59_spill] sm:$0xff] }
 0x49c   : > { %37983 = vst [vmem:[#allocation36_spill] sm:$0xff] %v33756_v57  ;;  %37984 = vst [vmem:[#allocation35_spill] sm:$0xff] %v33768_v15  ;;  %v33777_v57 = vsub.f32 %v2659_v20, %v33736_v7  ;;  %v33784_v42 = vpack.c.bf16 %v9403_v39, %v9400_v13  ;;  %v9406_v26 = vand.u32 4294901760, %v2914_v3  ;;  %v9409_v15 = vand.u32 4294901760, %v2915_v44  ;;  %27391 = vmatpush3.bf16.msra.mxu0 %v33692_v11 }
 0x49d   : > { %v9606_v53 = vsub.f32 %v33604_v48, %v37985_v16  ;;  %v9613_v43 = vsub.f32 %v33609_v25, %v37986_v22  ;;  %v33781_v31 = vadd.f32 %v37988_v6, %v6054_v52  ;;  %27119 = vmatpush3.bf16.msra.mxu1 %v37990_v47  ;;  %v33788_v16 = vsub.f32 %v2928_v40, %v9448_v28  ;;  %v38011_v11 = vld [vmem:[#allocation114_spill] sm:$0xff] }
 0x49e   : > { %37987 = vst [vmem:[#allocation32_spill] sm:$0xff] %v33777_v57  ;;  %37991 = vst [vmem:[#allocation65_spill] sm:$0xff] %v33784_v42  ;;  %27153 = vmatprep.subr.bf16.mxu1 %v37926_v17  ;;  %v33790_v20 = vsub.f32 %v2929_v10, %v9451_v1  ;;  %v33792_v22 = vsub.f32 %v2912_v61, %v9400_v13  ;;  %27393 = vmatprep.subr.bf16.mxu0 %v33698_v41  ;;  %v37993_v17 = vld [vmem:[#allocation100_spill] sm:$0xff]  ;;  %v36860_v10 = vand.u32 4294901760, %v33777_v57 }
 0x49f   : > { %37989 = vst [vmem:[#allocation48_spill] sm:$0xff] %v33781_v31  ;;  %v9607_v46 = vand.u32 4294901760, %v9606_v53  ;;  %v33795_v52 = vsub.f32 %v2913_v62, %v9403_v39  ;;  %v33797_v6 = vpack.c.bf16 %v9457_v5, %v9454_v55  ;;  %v33799_v7 = vsub.f32 %v2930_v36, %v9454_v55  ;;  %v2675_v61 = vld [vmem:[%s29295_s19 + $0xf8] sm:$0xff]  ;;  %v37996_v62 = vld [vmem:[#allocation103_spill] sm:$0xff] }
 0x4a0   : > { %v33801_v47 = vsub.f32 %v2931_v21, %v9457_v5  ;;  %v37994_v31 = vand.u32 4294901760, %v37993_v17  ;;  %v9614_v40 = vand.u32 4294901760, %v9613_v43  ;;  %v37995_v13 = vand.u32 4294901760, %v33619_v8  ;;  %27395 = vmatpush3.bf16.msra.mxu0 %v33714_v29  ;;  %v37999_v17 = vld [vmem:[#allocation106_spill] sm:$0xff] }
 0x4a1   : > { %37992 = vst [vmem:[#allocation40_spill] sm:$0xff] %v33797_v6  ;;  %v36862_v1 = vand.u32 4294901760, %v33621_v19  ;;  %v37997_v36 = vand.u32 4294901760, %v37996_v62  ;;  %v33814_v21 = vpack.c.bf16 %v9409_v15, %v9406_v26  ;;  %v33816_v39 = vsub.f32 %v2914_v3, %v9406_v26  ;;  %27397 = vmatprep.subr.bf16.mxu0 %v33729_v32 }
 0x4a2   : > { %8143 = vmatmul.mubr.f32.vlgmr.msra.gmra.mrb[66].mxu1 %v37994_v31  ;;  %v9494_v28 = vsub.f32 %v33619_v8, %v37995_v13  ;;  %v33819_v43 = vsub.f32 %v2658_v33, %v33764_v18  ;;  %v36861_v55 = vand.u32 4294901760, %v33629_v0  ;;  %v33824_v5 = vpack.c.bf16 %v9614_v40, %v9607_v46  ;;  %v2674_v31 = vld [vmem:[%s29295_s19 + $0xf0] sm:$0xff]  ;;  %v23918_v13 = vpop.f32.mrb[68].mxu0  ;;  %s34693_s19 = scalar_lea.vmem [#allocation2], %s22634_s20 }
 0x4a3   : > { %27155 = vmatpush3.bf16.msra.mxu1 %v37932_v50  ;;  %8150 = vmatprep.mubr.f32.mxu1 %v37997_v36  ;;  %37998 = vst [vmem:[#allocation93_spill] sm:$0xff] %v33814_v21  ;;  %v9462_v50 = vsub.f32 %v33777_v57, %v36860_v10  ;;  %v9501_v26 = vsub.f32 %v33621_v19, %v36862_v1  ;;  %v36865_v46 = vand.u32 4294901760, %v33631_v45  ;;  %v33838_v3 = vand.u32 4294901760, %v2675_v61  ;;  %s22526_s11 = sshll.u32 %s34693_s19, 4  ;;  %s36111_s11 = int_to_ptr.vmem [resolvable:$true] %s22526_s11 }
 0x4a4   : > { %27157 = vmatprep.subr.bf16.mxu1 %v37934_v58  ;;  %v9495_v53 = vand.u32 4294901760, %v9494_v28  ;;  %v9620_v58 = vsub.f32 %v33629_v0, %v36861_v55  ;;  %v38000_v40 = vand.u32 4294901760, %v37999_v17  ;;  %v36864_v36 = vand.u32 4294901760, %v33645_v54  ;;  %v23919_v55 = vpop.f32.mrb[69].mxu0  ;;  %27399 = vmatpush3.bf16.msra.mxu0 %v33731_v60  ;;  %s28699_s13 = scalar_lea.vmem %s36111_s11, 512 }
 0x4a5   : > { %v9463_v28 = vand.u32 4294901760, %v9462_v50  ;;  %v9502_v62 = vand.u32 4294901760, %v9501_v26  ;;  %v36863_v10 = vand.u32 4294901760, %v33647_v24  ;;  %v33847_v1 = vsub.f32 %v2915_v44, %v9409_v15  ;;  %27401 = vmatprep.subr.bf16.mxu0 %v33742_v51  ;;  %p28700_p11 = scmp.ne.s32.totalorder %s36111_s11, %s28699_s13 }
 0x4a6   : > { %8154 = vmatmul.mubr.f32.gmra.mrb[68].mxu1 %v38000_v40  ;;  %v9621_v33 = vand.u32 4294901760, %v9620_v58  ;;  %v9627_v17 = vsub.f32 %v33631_v45, %v36865_v46  ;;  %v33853_v40 = vsub.f32 %v2675_v61, %v33838_v3  ;;  %v33856_v50 = vadd.f32 %v23919_v55, %v23918_v13  ;;  %v23921_v26 = vpop.f32.mrb[70].mxu0 }
 0x4a7   : > { %27159 = vmatpush3.bf16.msra.mxu1 %v37940_v37  ;;  %8431 = vmatprep.mubr.f32.mxu1 %v37888_v23  ;;  %v33859_v37 = vpack.c.bf16 %v9502_v62, %v9495_v53  ;;  %v9508_v23 = vsub.f32 %v33645_v54, %v36864_v36  ;;  %v33864_v44 = vand.u32 4294901760, %v2674_v31  ;;  %v38001_v15 = vand.u32 4294901760, %v33819_v43  ;;  %p28701_p12 = pnand %p28700_p11, %p28843_p5 }
 0x4a8   : > { %27161 = vmatprep.subr.bf16.mxu1 %v37943_v35  ;;  %9464 = vmatprep.mubr.f32.mxu0 %v9463_v28  ;;  %v9628_v35 = vand.u32 4294901760, %v9627_v17  ;;  %v36868_v55 = vand.u32 4294901760, %v33853_v40  ;;  %v9515_v53 = vsub.f32 %v33647_v24, %v36863_v10  ;;  %v27440_v58 = vpack.c.bf16 %v33609_v25, %v33604_v48  ;;  %v23922_v17 = vpop.f32.mrb[71].mxu0 }
 0x4a9   : > { %v9468_v61 = vsub.f32 %v33819_v43, %v38001_v15  ;;  %v27442_v13 = vpack.c.bf16 %v33621_v19, %v33619_v8  ;;  %v9509_v62 = vand.u32 4294901760, %v9508_v23  ;;  %v33879_v28 = vsub.f32 %v2674_v31, %v33864_v44  ;;  %27403 = vmatpush3.bf16.msra.mxu0 %v33784_v42  ;;  %p28702_p13 = pneg %p28701_p12 }
 0x4aa   : > { %v33882_v15 = vpack.c.bf16 %v9628_v35, %v9621_v33  ;;  %v9477_v10 = vsub.f32 %v33853_v40, %v36868_v55  ;;  %v9516_v36 = vand.u32 4294901760, %v9515_v53  ;;  %v36870_v46 = vand.u32 4294901760, %v33652_v38  ;;  %27405 = vmatprep.subr.bf16.mxu0 %v33797_v6 }
 0x4ab   : > { %27163 = vmatpush3.bf16.msra.mxu1 %v37949_v27  ;;  %v33889_v51 = vadd.f32 %v23922_v17, %v23921_v26  ;;  %v36869_v31 = vand.u32 4294901760, %v33879_v28  ;;  %v36871_v27 = vand.u32 4294901760, %v33654_v56  ;;  %v36876_v33 = vand.u32 4294901760, %v33666_v2 }
 0x4ac   : > { %38002 = vst [vmem:[#allocation94_spill] sm:$0xff] %v33882_v15  ;;  %27165 = vmatprep.subr.bf16.mxu1 %v37953_v4  ;;  %v9469_v23 = vand.u32 4294901760, %v9468_v61  ;;  %v33896_v35 = vpack.c.bf16 %v9516_v36, %v9509_v62  ;;  %v9634_v53 = vsub.f32 %v33652_v38, %v36870_v46  ;;  %v36879_v4 = vand.u32 4294901760, %v33668_v49 }
 0x4ad   : > { %v9483_v26 = vsub.f32 %v33879_v28, %v36869_v31  ;;  %v27444_v17 = vpack.c.bf16 %v33631_v45, %v33629_v0  ;;  %v9641_v55 = vsub.f32 %v33654_v56, %v36871_v27  ;;  %v9522_v36 = vsub.f32 %v33666_v2, %v36876_v33  ;;  %27407 = vmatpush3.bf16.msra.mxu0 %v33814_v21  ;;  %v38009_v21 = vld [vmem:[#allocation110_spill] sm:$0xff] }
 0x4ae   : > { %38003 = vst [vmem:[#allocation56_spill] sm:$0xff] %v33896_v35  ;;  %v27446_v61 = vpack.c.bf16 %v33647_v24, %v33645_v54  ;;  %v9635_v62 = vand.u32 4294901760, %v9634_v53  ;;  %v9529_v31 = vsub.f32 %v33668_v49, %v36879_v4  ;;  %v36884_v46 = vand.u32 4294901760, %v33680_v63  ;;  %27441 = vmatprep.subr.bf16.mxu0 %v27440_v58  ;;  %v38021_v35 = vld [vmem:[#allocation98_spill] sm:$0xff] }
 0x4af   : > { %27167 = vmatpush3.bf16.msra.mxu1 %v37957_v12  ;;  %v9478_v27 = vand.u32 4294901760, %v9477_v10  ;;  %v9642_v6 = vand.u32 4294901760, %v9641_v55  ;;  %v9523_v42 = vand.u32 4294901760, %v9522_v36  ;;  %v36885_v33 = vand.u32 4294901760, %v33682_v59  ;;  %v38005_v55 = vld [vmem:[#allocation28_spill] sm:$0xff] }
 0x4b0   : > { %27169 = vmatprep.subr.bf16.mxu1 %v37958_v9  ;;  %v9530_v12 = vand.u32 4294901760, %v9529_v31  ;;  %v9648_v53 = vsub.f32 %v33680_v63, %v36884_v46  ;;  %v36888_v60 = vand.u32 4294901760, %v33694_v14  ;;  %v36893_v4 = vand.u32 4294901760, %v33696_v30  ;;  %9470 = vmatmul.mubr.f32.vlgmr.msra.gmra.mrb[96].mxu0 %v9469_v23  ;;  %v38008_v46 = vld [vmem:[#allocation41_spill] sm:$0xff] }
 0x4b1   : > { %v9484_v32 = vand.u32 4294901760, %v9483_v26  ;;  %v33928_v29 = vpack.c.bf16 %v9642_v6, %v9635_v62  ;;  %v27448_v9 = vpack.c.bf16 %v33654_v56, %v33652_v38  ;;  %v9655_v10 = vsub.f32 %v33682_v59, %v36885_v33  ;;  %v38007_v26 = vld [vmem:[#allocation66_spill] sm:$0xff]  ;;  %27443 = vmatpush3.bf16.msra.mxu0 %v27442_v13  ;;  %v38010_v23 = vld [vmem:[#allocation113_spill] sm:$0xff]  ;;  %9479 = vmatprep.mubr.f32.mxu0 %v9478_v27 }
 0x4b2   : > { %v33936_v58 = vpack.c.bf16 %v9530_v12, %v9523_v42  ;;  %v9649_v31 = vand.u32 4294901760, %v9648_v53  ;;  %v9536_v36 = vsub.f32 %v33694_v14, %v36888_v60  ;;  %v9543_v6 = vsub.f32 %v33696_v30, %v36893_v4  ;;  %27445 = vmatprep.subr.bf16.mxu0 %v27444_v17 }
 0x4b3   : > { %38004 = vst [vmem:[#allocation27_spill] sm:$0xff] %v33928_v29  ;;  %27171 = vmatpush3.bf16.msra.mxu1 %v38005_v55  ;;  %v9656_v62 = vand.u32 4294901760, %v9655_v10  ;;  %v36894_v33 = vand.u32 4294901760, %v38008_v46  ;;  %v36895_v55 = vand.u32 4294901760, %v38009_v21  ;;  %v36896_v42 = vand.u32 4294901760, %v38010_v23  ;;  %v23652_v12 = vpop.f32.mrb[42].mxu1 }
 0x4b4   : > { %38006 = vst [vmem:[#allocation50_spill] sm:$0xff] %v33936_v58  ;;  %27173 = vmatprep.subr.bf16.mxu1 %v38007_v26  ;;  %v27450_v53 = vpack.c.bf16 %v33668_v49, %v33666_v2  ;;  %v9537_v60 = vand.u32 4294901760, %v9536_v36  ;;  %v9544_v41 = vand.u32 4294901760, %v9543_v6  ;;  %v36897_v4 = vand.u32 4294901760, %v38011_v11  ;;  %v23653_v58 = vpop.f32.mrb[43].mxu1  ;;  %v38013_v36 = vld [vmem:[#allocation62_spill] sm:$0xff]  ;;  %9485 = vmatmul.mubr.f32.gmra.mrb[98].mxu0 %v9484_v32 }
 0x4b5   : > { %v33951_v26 = vpack.c.bf16 %v9656_v62, %v9649_v31  ;;  %v9662_v13 = vsub.f32 %v38008_v46, %v36894_v33  ;;  %v9669_v10 = vsub.f32 %v38009_v21, %v36895_v55  ;;  %v9550_v27 = vsub.f32 %v38010_v23, %v36896_v42  ;;  %v38015_v33 = vld [vmem:[#allocation57_spill] sm:$0xff]  ;;  %27447 = vmatpush3.bf16.msra.mxu0 %v27446_v61 }
 0x4b6   : > { %v23654_v17 = vadd.f32 %v23653_v58, %v23652_v12  ;;  %v33963_v6 = vpack.c.bf16 %v9544_v41, %v9537_v60  ;;  %v9557_v31 = vsub.f32 %v38011_v11, %v36897_v4  ;;  %v36898_v62 = vand.u32 4294901760, %v33752_v34  ;;  %v38016_v12 = vld [vmem:[#allocation63_spill] sm:$0xff]  ;;  %27449 = vmatprep.subr.bf16.mxu0 %v27448_v9  ;;  %v38017_v4 = vld [vmem:[#allocation72_spill] sm:$0xff]  ;;  %9859 = vmatprep.mubr.f32.mxu0 %v33777_v57 }
 0x4b7   : > { %38012 = vst [vmem:[#allocation58_spill] sm:$0xff] %v33951_v26  ;;  %27175 = vmatpush3.bf16.msra.mxu1 %v38013_v36  ;;  %v27452_v55 = vpack.c.bf16 %v33682_v59, %v33680_v63  ;;  %v9663_v26 = vand.u32 4294901760, %v9662_v13  ;;  %v9670_v42 = vand.u32 4294901760, %v9669_v10  ;;  %v9551_v58 = vand.u32 4294901760, %v9550_v27  ;;  %v23655_v32 = vpop.f32.mrb[44].mxu1  ;;  %v38018_v10 = vld [vmem:[#allocation36_spill] sm:$0xff] }
 0x4b8   : > { %38014 = vst [vmem:[#allocation14_spill] sm:$0xff] %v33963_v6  ;;  %27177 = vmatprep.subr.bf16.mxu1 %v38015_v33  ;;  %v6309_v36 = vadd.f32 %v23654_v17, %v38016_v12  ;;  %v9558_v41 = vand.u32 4294901760, %v9557_v31  ;;  %v9676_v60 = vsub.f32 %v33752_v34, %v36898_v62  ;;  %v23656_v33 = vpop.f32.mrb[45].mxu1  ;;  %v27454_v61 = vpack.c.bf16 %v33696_v30, %v33694_v14  ;;  %v38019_v17 = vld [vmem:[#allocation35_spill] sm:$0xff] }
 0x4b9   : > { %v33980_v13 = vpack.c.bf16 %v9670_v42, %v9663_v26  ;;  %v36901_v27 = vand.u32 4294901760, %v38018_v10  ;;  %v36900_v12 = vand.u32 4294901760, %v38019_v17  ;;  %v38020_v9 = vld [vmem:[#allocation15_spill] sm:$0xff]  ;;  %v23657_v29 = vadd.f32 %v23656_v33, %v23655_v32  ;;  %27451 = vmatpush3.bf16.msra.mxu0 %v27450_v53 }
 0x4ba   : > { %v33985_v31 = vadd.f32 %v38020_v9, %v6309_v36  ;;  %v33988_v62 = vpack.c.bf16 %v9558_v41, %v9551_v58  ;;  %v9677_v6 = vand.u32 4294901760, %v9676_v60  ;;  %v38023_v57 = vld [vmem:[#allocation99_spill] sm:$0xff]  ;;  %v38024_v15 = vand.u32 4294901760, %v38017_v4  ;;  %v38025_v58 = vld [vmem:[#allocation48_spill] sm:$0xff]  ;;  %27453 = vmatprep.subr.bf16.mxu0 %v27452_v55 }
 0x4bb   : > { %27179 = vmatpush3.bf16.msra.mxu1 %v38021_v35  ;;  %v9564_v26 = vsub.f32 %v38018_v10, %v36901_v27  ;;  %v9571_v36 = vsub.f32 %v38019_v17, %v36900_v12  ;;  %v36903_v35 = vand.u32 4294901760, %v33788_v16  ;;  %v6320_v32 = vadd.f32 %v23657_v29, %v38025_v58  ;;  %v38026_v12 = vld [vmem:[#allocation89_spill] sm:$0xff] }
 0x4bc   : > { %38022 = vst [vmem:[#allocation42_spill] sm:$0xff] %v33988_v62  ;;  %27181 = vmatprep.subr.bf16.mxu1 %v38023_v57  ;;  %v9683_v42 = vsub.f32 %v38017_v4, %v38024_v15  ;;  %v27456_v57 = vpack.c.bf16 %v38009_v21, %v38008_v46  ;;  %v36902_v53 = vand.u32 4294901760, %v33790_v20  ;;  %v36904_v15 = vand.u32 4294901760, %v33792_v22  ;;  %v38027_v62 = vld [vmem:[#allocation22_spill] sm:$0xff] }
 0x4bd   : > { %v9565_v60 = vand.u32 4294901760, %v9564_v26  ;;  %v9572_v33 = vand.u32 4294901760, %v9571_v36  ;;  %v9690_v9 = vsub.f32 %v33788_v16, %v36903_v35  ;;  %v34010_v27 = vadd.f32 %v38026_v12, %v6320_v32  ;;  %v38028_v26 = vld [vmem:[#allocation87_spill] sm:$0xff]  ;;  %27455 = vmatpush3.bf16.msra.mxu0 %v27454_v61 }
 0x4be   : > { %v9684_v41 = vand.u32 4294901760, %v9683_v42  ;;  %v9697_v29 = vsub.f32 %v33790_v20, %v36902_v53  ;;  %v9578_v55 = vsub.f32 %v33792_v22, %v36904_v15  ;;  %v36905_v42 = vand.u32 4294901760, %v33795_v52  ;;  %27457 = vmatprep.subr.bf16.mxu0 %v27456_v57  ;;  %v38032_v57 = vld [vmem:[#allocation16_spill] sm:$0xff] }
 0x4bf   : > { %27183 = vmatpush3.bf16.msra.mxu1 %v38027_v62  ;;  %v27458_v36 = vpack.c.bf16 %v38011_v11, %v38010_v23  ;;  %v34025_v58 = vpack.c.bf16 %v9572_v33, %v9565_v60  ;;  %v9691_v62 = vand.u32 4294901760, %v9690_v9  ;;  %v27460_v32 = vpack.c.bf16 %v38017_v4, %v33752_v34  ;;  %v38033_v33 = vld [vmem:[#allocation102_spill] sm:$0xff] }
 0x4c0   : > { %27217 = vmatprep.subr.bf16.mxu1 %v38028_v26  ;;  %v34023_v12 = vpack.c.bf16 %v9684_v41, %v9677_v6  ;;  %v9698_v53 = vand.u32 4294901760, %v9697_v29  ;;  %v9579_v35 = vand.u32 4294901760, %v9578_v55  ;;  %v9585_v15 = vsub.f32 %v33795_v52, %v36905_v42  ;;  %v38031_v26 = vld [vmem:[#allocation5_spill] sm:$0xff]  ;;  %v38035_v42 = vld [vmem:[#allocation95_spill] sm:$0xff] }
 0x4c1   : > { %38030 = vst [vmem:[#allocation30_spill] sm:$0xff] %v34025_v58  ;;  %v36906_v61 = vand.u32 4294901760, %v33799_v7  ;;  %v36907_v6 = vand.u32 4294901760, %v33801_v47  ;;  %v36908_v41 = vand.u32 4294901760, %v33816_v39  ;;  %v27462_v9 = vpack.c.bf16 %v38019_v17, %v38018_v10  ;;  %27459 = vmatpush3.bf16.msra.mxu0 %v27458_v36  ;;  %v38038_v36 = vld [vmem:[#allocation104_spill] sm:$0xff]  ;;  %v38039_v58 = vld [vmem:[#allocation115_spill] sm:$0xff] }
 0x4c2   : > { %38029 = vst [vmem:[#allocation61_spill] sm:$0xff] %v34023_v12  ;;  %8433 = vmatmul.mubr.f32.vlgmr.msra.gmra.mrb[70].mxu1 %v38031_v26  ;;  %v34041_v29 = vpack.c.bf16 %v9698_v53, %v9691_v62  ;;  %v9586_v55 = vand.u32 4294901760, %v9585_v15  ;;  %27461 = vmatprep.subr.bf16.mxu0 %v27460_v32  ;;  %v27464_v53 = vpack.c.bf16 %v33790_v20, %v33788_v16  ;;  %v38037_v15 = vand.u32 4294901760, %v33847_v1  ;;  %v23994_v62 = vpop.f32.mrb[72].mxu0  ;;  %v38040_v12 = vld [vmem:[#allocation92_spill] sm:$0xff] }
 0x4c3   : > { %27219 = vmatpush3.bf16.msra.mxu1 %v38032_v57  ;;  %8438 = vmatprep.mubr.f32.mxu1 %v38033_v33  ;;  %v9704_v26 = vsub.f32 %v33799_v7, %v36906_v61  ;;  %v9711_v60 = vsub.f32 %v33801_v47, %v36907_v6  ;;  %v9592_v57 = vsub.f32 %v33816_v39, %v36908_v41  ;;  %v23995_v32 = vpop.f32.mrb[73].mxu0 }
 0x4c4   : > { %38034 = vst [vmem:[#allocation70_spill] sm:$0xff] %v34041_v29  ;;  %27221 = vmatprep.subr.bf16.mxu1 %v38035_v42  ;;  %v34053_v33 = vpack.c.bf16 %v9586_v55, %v9579_v35  ;;  %v9599_v42 = vsub.f32 %v33847_v1, %v38037_v15  ;;  %v38041_v55 = vld [vmem:[#allocation116_spill] sm:$0xff]  ;;  %v34064_v41 = vadd.f32 %v23995_v32, %v23994_v62  ;;  %v38047_v32 = vld [vmem:[#allocation37_spill] sm:$0xff] }
 0x4c5   : > { %v9705_v61 = vand.u32 4294901760, %v9704_v26  ;;  %v9712_v29 = vand.u32 4294901760, %v9711_v60  ;;  %v9593_v6 = vand.u32 4294901760, %v9592_v57  ;;  %27463 = vmatpush3.bf16.msra.mxu0 %v27462_v9  ;;  %v27466_v15 = vpack.c.bf16 %v33795_v52, %v33792_v22  ;;  %v38042_v57 = vld [vmem:[#allocation17_spill] sm:$0xff] }
 0x4c6   : > { %38036 = vst [vmem:[#allocation59_spill] sm:$0xff] %v34053_v33  ;;  %8440 = vmatmul.mubr.f32.gmra.mrb[72].mxu1 %v38038_v36  ;;  %v9600_v35 = vand.u32 4294901760, %v9599_v42  ;;  %27465 = vmatprep.subr.bf16.mxu0 %v27464_v53  ;;  %v23997_v60 = vpop.f32.mrb[74].mxu0  ;;  %v38043_v36 = vld [vmem:[#allocation23_spill] sm:$0xff]  ;;  %v27470_v9 = vpack.c.bf16 %v33847_v1, %v33816_v39 }
 0x4c7   : > { %27223 = vmatpush3.bf16.msra.mxu1 %v38039_v58  ;;  %8797 = vmatprep.mubr.f32.mxu1 %v38040_v12  ;;  %v34068_v33 = vpack.c.bf16 %v9712_v29, %v9705_v61  ;;  %v27468_v58 = vpack.c.bf16 %v33801_v47, %v33799_v7  ;;  %v23998_v42 = vpop.f32.mrb[75].mxu0  ;;  %v38044_v61 = vand.u32 4294901760, %v33604_v48  ;;  %v38046_v53 = vld [vmem:[#allocation31_spill] sm:$0xff]  ;;  %v38052_v48 = vld [vmem:[#allocation49_spill] sm:$0xff] }
 0x4c8   : > { %27225 = vmatprep.subr.bf16.mxu1 %v38041_v55  ;;  %v34070_v26 = vpack.c.bf16 %v9600_v35, %v9593_v6  ;;  %v34076_v62 = vadd.f32 %v23998_v42, %v23997_v60  ;;  %v38045_v6 = vand.u32 4294901760, %v33609_v25  ;;  %v38048_v35 = vand.u32 4294901760, %v33619_v8  ;;  %v38053_v25 = vld [vmem:[#allocation8_spill] sm:$0xff] }
 0x4c9   : > { %27467 = vmatpush3.bf16.msra.mxu0 %v27466_v15  ;;  %v38049_v55 = vand.u32 4294901760, %v33621_v19  ;;  %v38050_v15 = vand.u32 4294901760, %v33629_v0  ;;  %v38054_v42 = vand.u32 4294901760, %v33645_v54  ;;  %v38055_v8 = vand.u32 4294901760, %v33647_v24 }
 0x4ca   : > { %27469 = vmatprep.subr.bf16.mxu0 %v27468_v58  ;;  %v27504_v29 = vpack.c.bf16 %v38045_v6, %v38044_v61  ;;  %v38051_v58 = vand.u32 4294901760, %v33631_v45  ;;  %v38056_v0 = vand.u32 4294901760, %v33652_v38  ;;  %v38057_v45 = vand.u32 4294901760, %v33654_v56 }
 0x4cb   : > { %27227 = vmatpush3.bf16.msra.mxu1 %v38042_v57  ;;  %v27506_v60 = vpack.c.bf16 %v38049_v55, %v38048_v35  ;;  %v38060_v54 = vand.u32 4294901760, %v33666_v2  ;;  %v38061_v24 = vand.u32 4294901760, %v33668_v49  ;;  %v38062_v56 = vand.u32 4294901760, %v33680_v63  ;;  %v38067_v2 = vld [vmem:[#allocation39_spill] sm:$0xff] }
 0x4cc   : > { %27229 = vmatprep.subr.bf16.mxu1 %v38043_v36  ;;  %v27508_v57 = vpack.c.bf16 %v38051_v58, %v38050_v15  ;;  %v27510_v36 = vpack.c.bf16 %v38055_v8, %v38054_v42  ;;  %v38063_v55 = vand.u32 4294901760, %v33682_v59  ;;  %v38064_v15 = vld [vmem:[#allocation43_spill] sm:$0xff]  ;;  %v38066_v42 = vld [vmem:[#allocation6_spill] sm:$0xff]  ;;  %v38068_v49 = vand.u32 4294901760, %v33694_v14 }
 0x4cd   : > { %27471 = vmatpush3.bf16.msra.mxu0 %v27470_v9  ;;  %v27512_v9 = vpack.c.bf16 %v38057_v45, %v38056_v0  ;;  %v38070_v59 = vand.u32 4294901760, %v38008_v46  ;;  %v38072_v0 = vld [vmem:[#allocation84_spill] sm:$0xff]  ;;  %v38075_v14 = vand.u32 4294901760, %v38010_v23  ;;  %v38078_v46 = vand.u32 4294901760, %v38017_v4 }
 0x4ce   : > { %27505 = vmatprep.subr.bf16.mxu0 %v27504_v29  ;;  %v38058_v29 = vld [vmem:[#allocation24_spill] sm:$0xff]  ;;  %v38083_v23 = vand.u32 4294901760, %v38018_v10  ;;  %v38086_v4 = vand.u32 4294901760, %v33790_v20 }
 0x4cf   : > { %27231 = vmatpush3.bf16.msra.mxu1 %v38046_v53  ;;  %v38059_v53 = vld [vmem:[#allocation44_spill] sm:$0xff] }
 0x4d0   : > { %27233 = vmatprep.subr.bf16.mxu1 %v38047_v32  ;;  %9862 = vmatmul.mubr.f32.vlgmr.msra.gmra.mrb[100].mxu0 %v33819_v43  ;;  %v27514_v32 = vpack.c.bf16 %v38061_v24, %v38060_v54  ;;  %v38081_v54 = vld [vmem:[#allocation88_spill] sm:$0xff]  ;;  %v38082_v24 = vld [vmem:[#allocation74_spill] sm:$0xff] }
 0x4d1   : > { %27507 = vmatpush3.bf16.msra.mxu0 %v27506_v60  ;;  %9868 = vmatprep.mubr.f32.mxu0 %v33853_v40  ;;  %v27516_v60 = vpack.c.bf16 %v38063_v55, %v38062_v56  ;;  %v38088_v55 = vld [vmem:[#allocation60_spill] sm:$0xff] }
 0x4d2   : > { %27509 = vmatprep.subr.bf16.mxu0 %v27508_v57  ;;  %v38065_v57 = vld [vmem:[#allocation76_spill] sm:$0xff] }
 0x4d3   : > { %27235 = vmatpush3.bf16.msra.mxu1 %v38052_v48  ;;  %v23728_v19 = vpop.f32.mrb[46].mxu1 }
 0x4d4   : > { %27237 = vmatprep.subr.bf16.mxu1 %v38053_v25  ;;  %v23729_v61 = vpop.f32.mrb[47].mxu1  ;;  %9871 = vmatmul.mubr.f32.gmra.mrb[102].mxu0 %v33879_v28 }
 0x4d5   : > { %v23730_v6 = vadd.f32 %v23729_v61, %v23728_v19  ;;  %27511 = vmatpush3.bf16.msra.mxu0 %v27510_v36  ;;  %10156 = vmatprep.mubr.f32.mxu0 %v38064_v15  ;;  %v38071_v36 = vand.u32 4294901760, %v38009_v21  ;;  %v38074_v61 = vld [vmem:[#allocation10_spill] sm:$0xff]  ;;  %v38079_v21 = vld [vmem:[#allocation53_spill] sm:$0xff] }
 0x4d6   : > { %27513 = vmatprep.subr.bf16.mxu0 %v27512_v9  ;;  %v38073_v9 = vld [vmem:[#allocation64_spill] sm:$0xff] }
 0x4d7   : > { %27239 = vmatpush3.bf16.msra.mxu1 %v38058_v29  ;;  %v6599_v35 = vadd.f32 %v23730_v6, %v33985_v31  ;;  %v23731_v38 = vpop.f32.mrb[48].mxu1  ;;  %v38069_v31 = vand.u32 4294901760, %v33696_v30  ;;  %v27520_v19 = vpack.c.bf16 %v38071_v36, %v38070_v59  ;;  %v38076_v30 = vand.u32 4294901760, %v38011_v11  ;;  %v38097_v59 = vld [vmem:[#allocation85_spill] sm:$0xff] }
 0x4d8   : > { %27241 = vmatprep.subr.bf16.mxu1 %v38059_v53  ;;  %v23732_v58 = vpop.f32.mrb[49].mxu1  ;;  %v38080_v53 = vld [vmem:[#allocation51_spill] sm:$0xff]  ;;  %v38084_v11 = vand.u32 4294901760, %v38019_v17  ;;  %v38092_v17 = vand.u32 4294901760, %v33792_v22  ;;  %v38098_v22 = vand.u32 4294901760, %v33816_v39 }
 0x4d9   : > { %v6718_v48 = vadd.f32 %v38065_v57, %v6599_v35  ;;  %v23733_v25 = vadd.f32 %v23732_v58, %v23731_v38  ;;  %27515 = vmatpush3.bf16.msra.mxu0 %v27514_v32  ;;  %v27518_v8 = vpack.c.bf16 %v38069_v31, %v38068_v49  ;;  %v27522_v6 = vpack.c.bf16 %v38076_v30, %v38075_v14  ;;  %v38087_v38 = vld [vmem:[#allocation91_spill] sm:$0xff] }
 0x4da   : > { %27517 = vmatprep.subr.bf16.mxu0 %v27516_v60  ;;  %v27526_v32 = vpack.c.bf16 %v38084_v11, %v38083_v23  ;;  %v38089_v60 = vld [vmem:[#allocation83_spill] sm:$0xff]  ;;  %v38106_v23 = vld [vmem:[#allocation52_spill] sm:$0xff] }
 0x4db   : > { %27243 = vmatpush3.bf16.msra.mxu1 %v38066_v42  ;;  %v6606_v63 = vadd.f32 %v23733_v25, %v34010_v27  ;;  %v38077_v27 = vand.u32 4294901760, %v33752_v34  ;;  %v38085_v34 = vand.u32 4294901760, %v33788_v16  ;;  %v38090_v58 = vand.u32 4294901760, %v38089_v60  ;;  %v38091_v25 = vld [vmem:[#allocation80_spill] sm:$0xff] }
 0x4dc   : > { %27245 = vmatprep.subr.bf16.mxu1 %v38067_v2  ;;  %v38093_v16 = vand.u32 4294901760, %v33795_v52  ;;  %v38094_v42 = vand.u32 4294901760, %v33799_v7  ;;  %v38095_v2 = vand.u32 4294901760, %v33801_v47  ;;  %v38099_v52 = vand.u32 4294901760, %v33847_v1  ;;  %v38101_v7 = vld [vmem:[#allocation96_spill] sm:$0xff]  ;;  %v38102_v47 = vld [vmem:[#allocation97_spill] sm:$0xff] }
 0x4dd   : > { %v6733_v45 = vadd.f32 %v38072_v0, %v6606_v63  ;;  %27519 = vmatpush3.bf16.msra.mxu0 %v27518_v8  ;;  %v27524_v29 = vpack.c.bf16 %v38078_v46, %v38077_v27  ;;  %v27528_v35 = vpack.c.bf16 %v38086_v4, %v38085_v34  ;;  %v38096_v8 = vld [vmem:[#allocation54_spill] sm:$0xff]  ;;  %v38100_v0 = vld [vmem:[#allocation55_spill] sm:$0xff]  ;;  %v38108_v4 = vld [vmem:[#allocation68_spill] sm:$0xff] }
 0x4de   : > { %27521 = vmatprep.subr.bf16.mxu0 %v27520_v19  ;;  %v27530_v20 = vpack.c.bf16 %v38093_v16, %v38092_v17  ;;  %v27532_v49 = vpack.c.bf16 %v38095_v2, %v38094_v42  ;;  %v27534_v19 = vpack.c.bf16 %v38099_v52, %v38098_v22  ;;  %v38105_v1 = vld [vmem:[#allocation19_spill] sm:$0xff]  ;;  %v38107_v34 = vld [vmem:[#allocation26_spill] sm:$0xff] }
 0x4df   : > { %27247 = vmatpush3.bf16.msra.mxu1 %v38073_v9  ;;  %v38103_v9 = vld [vmem:[#allocation45_spill] sm:$0xff] }
 0x4e0   : > { %27281 = vmatprep.subr.bf16.mxu1 %v38074_v61 }
 0x4e1   : > { %27523 = vmatpush3.bf16.msra.mxu0 %v27522_v6  ;;  %v38104_v6 = vld [vmem:[#allocation81_spill] sm:$0xff] }
 0x4e2   : > { %8799 = vmatmul.mubr.f32.vlgmr.msra.gmra.mrb[74].mxu1 %v38079_v21  ;;  %27525 = vmatprep.subr.bf16.mxu0 %v27524_v29  ;;  %v24070_v56 = vpop.f32.mrb[76].mxu0 }
 0x4e3   : > { %27283 = vmatpush3.bf16.msra.mxu1 %v38080_v53  ;;  %8804 = vmatprep.mubr.f32.mxu1 %v38081_v54  ;;  %v24071_v57 = vpop.f32.mrb[77].mxu0 }
 0x4e4   : > { %27285 = vmatprep.subr.bf16.mxu1 %v38082_v24  ;;  %v34159_v10 = vadd.f32 %v24071_v57, %v24070_v56  ;;  %v38109_v56 = vld [vmem:[#allocation9_spill] sm:$0xff]  ;;  %v38111_v57 = vld [vmem:[#allocation20_spill] sm:$0xff] }
 0x4e5   : > { %27527 = vmatpush3.bf16.msra.mxu0 %v27526_v32  ;;  %v38112_v17 = vand.u32 4294901760, %v38111_v57  ;;  %v38130_v57 = vld [vmem:[#allocation25_spill] sm:$0xff] }
 0x4e6   : > { %8806 = vmatmul.mubr.f32.gmra.mrb[76].mxu1 %v38087_v38  ;;  %27529 = vmatprep.subr.bf16.mxu0 %v27528_v35  ;;  %v24073_v31 = vpop.f32.mrb[78].mxu0 }
 0x4e7   : > { %27287 = vmatpush3.bf16.msra.mxu1 %v38088_v55  ;;  %9057 = vmatprep.mubr.f32.mxu1 %v38090_v58  ;;  %v24074_v63 = vpop.f32.mrb[79].mxu0  ;;  %v38110_v58 = vld [vmem:[#allocation86_spill] sm:$0xff] }
 0x4e8   : > { %27289 = vmatprep.subr.bf16.mxu1 %v38091_v25  ;;  %v34171_v36 = vadd.f32 %v24074_v63, %v24073_v31 }
 0x4e9   : > { %27531 = vmatpush3.bf16.msra.mxu0 %v27530_v20  ;;  %v38115_v20 = vld [vmem:[#allocation82_spill] sm:$0xff] }
 0x4ea   : > { %27533 = vmatprep.subr.bf16.mxu0 %v27532_v49  ;;  %v38116_v42 = vand.u32 4294901760, %v38115_v20 }
 0x4eb   : > { %27291 = vmatpush3.bf16.msra.mxu1 %v38096_v8 }
 0x4ec   : > { %27293 = vmatprep.subr.bf16.mxu1 %v38097_v59 }
 0x4ed   : > { %27535 = vmatpush3.bf16.msra.mxu0 %v27534_v19 }
 0x4ef   : > { %27295 = vmatpush3.bf16.msra.mxu1 %v38100_v0 }
 0x4f0   : > { %27297 = vmatprep.subr.bf16.mxu1 %v38101_v7  ;;  %10158 = vmatmul.mubr.f32.vlgmr.msra.gmra.mrb[104].mxu0 %v33764_v18 }
 0x4f1   : > { %10163 = vmatprep.mubr.f32.mxu0 %v33838_v3 }
 0x4f3   : > { %27299 = vmatpush3.bf16.msra.mxu1 %v38102_v47  ;;  %v23804_v14 = vpop.f32.mrb[50].mxu1 }
 0x4f4   : > { %27301 = vmatprep.subr.bf16.mxu1 %v38103_v9  ;;  %v23805_v30 = vpop.f32.mrb[51].mxu1  ;;  %10165 = vmatmul.mubr.f32.gmra.mrb[106].mxu0 %v33864_v44 }
 0x4f5   : > { %v23806_v39 = vadd.f32 %v23805_v30, %v23804_v14  ;;  %v38121_v14 = vld [vmem:[#allocation58_spill] sm:$0xff] }
 0x4f6   : > { %v38122_v30 = vld [vmem:[#allocation14_spill] sm:$0xff] }
 0x4f7   : > { %27303 = vmatpush3.bf16.msra.mxu1 %v38104_v6  ;;  %v6965_v27 = vadd.f32 %v23806_v39, %v6718_v48  ;;  %v23807_v46 = vpop.f32.mrb[52].mxu1  ;;  %v38113_v48 = vld [vmem:[#allocation69_spill] sm:$0xff] }
 0x4f8   : > { %27305 = vmatprep.subr.bf16.mxu1 %v38105_v1  ;;  %v23808_v29 = vpop.f32.mrb[53].mxu1  ;;  %v38114_v16 = vand.u32 4294901760, %v38113_v48  ;;  %v38124_v39 = vld [vmem:[#allocation61_spill] sm:$0xff] }
 0x4f9   : > { %v7110_v11 = vadd.f32 %v38106_v23, %v6965_v27  ;;  %v23809_v32 = vadd.f32 %v23808_v29, %v23807_v46  ;;  %v38125_v46 = vld [vmem:[#allocation30_spill] sm:$0xff] }
 0x4fa   : > { %v38126_v29 = vld [vmem:[#allocation70_spill] sm:$0xff] }
 0x4fb   : > { %27307 = vmatpush3.bf16.msra.mxu1 %v38107_v34  ;;  %v6972_v35 = vadd.f32 %v23809_v32, %v6733_v45 }
 0x4fc   : > { %27309 = vmatprep.subr.bf16.mxu1 %v38108_v4 }
 0x4fd   : > { %v7119_v60 = vadd.f32 %v38109_v56, %v6972_v35  ;;  %v38127_v35 = vld [vmem:[#allocation59_spill] sm:$0xff] }
 0x4ff   : > { %27311 = vmatpush3.bf16.msra.mxu1 %v38110_v58 }
 0x500   : > { %27345 = vmatprep.subr.bf16.mxu1 %v38074_v61 }
 0x502   : > { %9061 = vmatmul.mubr.f32.vlgmr.msra.gmra.mrb[78].mxu1 %v38112_v17  ;;  %v24146_v45 = vpop.f32.mrb[80].mxu0  ;;  %v38131_v17 = vld [vmem:[#allocation12_spill] sm:$0xff] }
 0x503   : > { %27347 = vmatpush3.bf16.msra.mxu1 %v38080_v53  ;;  %9068 = vmatprep.mubr.f32.mxu1 %v38114_v16  ;;  %v24147_v2 = vpop.f32.mrb[81].mxu0 }
 0x504   : > { %27349 = vmatprep.subr.bf16.mxu1 %v38082_v24  ;;  %v34203_v61 = vadd.f32 %v24147_v2, %v24146_v45  ;;  %v38136_v2 = vld [vmem:[#allocation105_spill] sm:$0xff] }
 0x506   : > { %9072 = vmatmul.mubr.f32.gmra.mrb[80].mxu1 %v38116_v42  ;;  %v24149_v49 = vpop.f32.mrb[82].mxu0  ;;  %v38135_v42 = vld [vmem:[#allocation13_spill] sm:$0xff] }
 0x507   : > { %27351 = vmatpush3.bf16.msra.mxu1 %v38088_v55  ;;  %9349 = vmatprep.mubr.f32.mxu1 %v38040_v12  ;;  %v24150_v53 = vpop.f32.mrb[83].mxu0 }
 0x508   : > { %27353 = vmatprep.subr.bf16.mxu1 %v38091_v25  ;;  %v34207_v24 = vadd.f32 %v24150_v53, %v24149_v49  ;;  %v38137_v53 = vld [vmem:[#allocation78_spill] sm:$0xff] }
 0x50b   : > { %27355 = vmatpush3.bf16.msra.mxu1 %v38096_v8 }
 0x50c   : > { %27357 = vmatprep.subr.bf16.mxu1 %v38097_v59 }
 0x50f   : > { %27359 = vmatpush3.bf16.msra.mxu1 %v38100_v0  ;;  %v38117_v0 = vld [vmem:[#allocation94_spill] sm:$0xff] }
 0x510   : > { %27361 = vmatprep.subr.bf16.mxu1 %v38101_v7  ;;  %v38118_v7 = vld [vmem:[#allocation56_spill] sm:$0xff] }
 0x513   : > { %27363 = vmatpush3.bf16.msra.mxu1 %v38102_v47  ;;  %v23880_v12 = vpop.f32.mrb[54].mxu1  ;;  %v38119_v47 = vld [vmem:[#allocation27_spill] sm:$0xff] }
 0x514   : > { %27365 = vmatprep.subr.bf16.mxu1 %v38103_v9  ;;  %v23881_v55 = vpop.f32.mrb[55].mxu1 }
 0x515   : > { %v23882_v25 = vadd.f32 %v23881_v55, %v23880_v12  ;;  %v38138_v12 = vld [vmem:[#allocation108_spill] sm:$0xff]  ;;  %v38139_v55 = vld [vmem:[#allocation38_spill] sm:$0xff] }
 0x517   : > { %27367 = vmatpush3.bf16.msra.mxu1 %v38104_v6  ;;  %v7227_v31 = vadd.f32 %v23882_v25, %v7110_v11  ;;  %v23883_v8 = vpop.f32.mrb[56].mxu1  ;;  %v38140_v25 = vld [vmem:[#allocation47_spill] sm:$0xff] }
 0x518   : > { %27369 = vmatprep.subr.bf16.mxu1 %v38105_v1  ;;  %v23884_v63 = vpop.f32.mrb[57].mxu1 }
 0x519   : > { %v7406_v59 = vadd.f32 %v33856_v50, %v7227_v31  ;;  %v23885_v22 = vadd.f32 %v23884_v63, %v23883_v8 }
 0x51b   : > { %27371 = vmatpush3.bf16.msra.mxu1 %v38107_v34  ;;  %v7238_v52 = vadd.f32 %v23885_v22, %v7119_v60  ;;  %v38128_v60 = vld [vmem:[#allocation7_spill] sm:$0xff] }
 0x51c   : > { %27373 = vmatprep.subr.bf16.mxu1 %v38108_v4  ;;  %v38142_v22 = vld [vmem:[#allocation11_spill] sm:$0xff] }
 0x51d   : > { %v7413_v19 = vadd.f32 %v33889_v51, %v7238_v52 }
 0x51f   : > { %27375 = vmatpush3.bf16.msra.mxu1 %v38110_v58  ;;  %v38129_v58 = vld [vmem:[#allocation33_spill] sm:$0xff] }
 0x520   : > { %27409 = vmatprep.subr.bf16.mxu1 %v33824_v5 }
 0x522   : > { %9351 = vmatmul.mubr.f32.vlgmr.msra.gmra.mrb[82].mxu1 %v38079_v21  ;;  %v24222_v50 = vpop.f32.mrb[84].mxu0  ;;  %v38120_v21 = vld [vmem:[#allocation50_spill] sm:$0xff] }
 0x523   : > { %27411 = vmatpush3.bf16.msra.mxu1 %v33859_v37  ;;  %9356 = vmatprep.mubr.f32.mxu1 %v38081_v54  ;;  %v24223_v51 = vpop.f32.mrb[85].mxu0 }
 0x524   : > { %27413 = vmatprep.subr.bf16.mxu1 %v38117_v0  ;;  %v34229_v9 = vadd.f32 %v24223_v51, %v24222_v50  ;;  %v38143_v51 = vld [vmem:[#allocation65_spill] sm:$0xff] }
 0x526   : > { %9358 = vmatmul.mubr.f32.gmra.mrb[84].mxu1 %v38087_v38  ;;  %v24225_v5 = vpop.f32.mrb[86].mxu0  ;;  %v38123_v38 = vld [vmem:[#allocation42_spill] sm:$0xff] }
 0x527   : > { %27415 = vmatpush3.bf16.msra.mxu1 %v38118_v7  ;;  %9715 = vmatprep.mubr.f32.mxu1 %v38064_v15  ;;  %v24226_v37 = vpop.f32.mrb[87].mxu0 }
 0x528   : > { %27417 = vmatprep.subr.bf16.mxu1 %v38119_v47  ;;  %v34233_v54 = vadd.f32 %v24226_v37, %v24225_v5  ;;  %v38144_v47 = vld [vmem:[#allocation40_spill] sm:$0xff]  ;;  %v38145_v37 = vld [vmem:[#allocation93_spill] sm:$0xff] }
 0x52b   : > { %27419 = vmatpush3.bf16.msra.mxu1 %v38120_v21 }
 0x52c   : > { %27421 = vmatprep.subr.bf16.mxu1 %v38121_v14  ;;  %v38146_v14 = vand.u32 4294901760, %v33819_v43 }
 0x52f   : > { %27423 = vmatpush3.bf16.msra.mxu1 %v38122_v30  ;;  %v38147_v30 = vand.u32 4294901760, %v33853_v40 }
 0x530   : > { %27425 = vmatprep.subr.bf16.mxu1 %v33980_v13 }
 0x533   : > { %27427 = vmatpush3.bf16.msra.mxu1 %v38123_v38  ;;  %v23956_v6 = vpop.f32.mrb[58].mxu1 }
 0x534   : > { %27429 = vmatprep.subr.bf16.mxu1 %v38124_v39  ;;  %v23957_v1 = vpop.f32.mrb[59].mxu1 }
 0x535   : > { %v23958_v27 = vadd.f32 %v23957_v1, %v23956_v6  ;;  %v38149_v1 = vld [vmem:[#allocation46_spill] sm:$0xff] }
 0x537   : > { %27431 = vmatpush3.bf16.msra.mxu1 %v38125_v46  ;;  %v7517_v23 = vadd.f32 %v23958_v27, %v7406_v59  ;;  %v23959_v11 = vpop.f32.mrb[60].mxu1  ;;  %v38141_v59 = vld [vmem:[#allocation71_spill] sm:$0xff] }
 0x538   : > { %27433 = vmatprep.subr.bf16.mxu1 %v38126_v29  ;;  %v23960_v32 = vpop.f32.mrb[61].mxu1 }
 0x539   : > { %v7636_v34 = vadd.f32 %v34064_v41, %v7517_v23  ;;  %v23961_v4 = vadd.f32 %v23960_v32, %v23959_v11 }
 0x53b   : > { %27435 = vmatpush3.bf16.msra.mxu1 %v38127_v35  ;;  %v7524_v13 = vadd.f32 %v23961_v4, %v7413_v19 }
 0x53c   : > { %27437 = vmatprep.subr.bf16.mxu1 %v34068_v33  ;;  %v38132_v33 = vld [vmem:[#allocation32_spill] sm:$0xff] }
 0x53d   : > { %v7651_v56 = vadd.f32 %v34076_v62, %v7524_v13  ;;  %v38133_v48 = vand.u32 4294901760, %v38132_v33  ;;  %v38150_v33 = vld [vmem:[#allocation75_spill] sm:$0xff] }
 0x53f   : > { %27439 = vmatpush3.bf16.msra.mxu1 %v34070_v26  ;;  %v38134_v26 = vld [vmem:[#allocation101_spill] sm:$0xff] }
 0x540   : > { %27473 = vmatprep.subr.bf16.mxu1 %v38128_v60 }
 0x542   : > { %9717 = vmatmul.mubr.f32.vlgmr.msra.gmra.mrb[86].mxu1 %v33764_v18  ;;  %v24298_v41 = vpop.f32.mrb[88].mxu0 }
 0x543   : > { %27475 = vmatpush3.bf16.msra.mxu1 %v38129_v58  ;;  %9722 = vmatprep.mubr.f32.mxu1 %v33838_v3  ;;  %v24299_v62 = vpop.f32.mrb[89].mxu0 }
 0x544   : > { %27477 = vmatprep.subr.bf16.mxu1 %v38130_v57  ;;  %v34256_v16 = vadd.f32 %v24299_v62, %v24298_v41 }
 0x546   : > { %9724 = vmatmul.mubr.f32.gmra.mrb[88].mxu1 %v33864_v44  ;;  %v24301_v20 = vpop.f32.mrb[90].mxu0 }
 0x547   : > { %27479 = vmatpush3.bf16.msra.mxu1 %v38131_v17  ;;  %9975 = vmatprep.mubr.f32.mxu1 %v38133_v48  ;;  %v24302_v45 = vpop.f32.mrb[91].mxu0 }
 0x548   : > { %27481 = vmatprep.subr.bf16.mxu1 %v38134_v26  ;;  %v34260_v49 = vadd.f32 %v24302_v45, %v24301_v20 }
 0x54b   : > { %27483 = vmatpush3.bf16.msra.mxu1 %v38135_v42 }
 0x54c   : > { %27485 = vmatprep.subr.bf16.mxu1 %v38136_v2 }
 0x54f   : > { %27487 = vmatpush3.bf16.msra.mxu1 %v38137_v53 }
 0x550   : > { %27489 = vmatprep.subr.bf16.mxu1 %v38138_v12 }
 0x553   : > { %27491 = vmatpush3.bf16.msra.mxu1 %v38139_v55  ;;  %v24032_v31 = vpop.f32.mrb[62].mxu1 }
 0x554   : > { %27493 = vmatprep.subr.bf16.mxu1 %v38140_v25  ;;  %v24033_v8 = vpop.f32.mrb[63].mxu1 }
 0x555   : > { %v24034_v63 = vadd.f32 %v24033_v8, %v24032_v31 }
 0x557   : > { %27495 = vmatpush3.bf16.msra.mxu1 %v38141_v59  ;;  %v7883_v52 = vadd.f32 %v24034_v63, %v7636_v34  ;;  %v24035_v19 = vpop.f32.mrb[64].mxu1 }
 0x558   : > { %27497 = vmatprep.subr.bf16.mxu1 %v38142_v22  ;;  %v24036_v0 = vpop.f32.mrb[65].mxu1 }
 0x559   : > { %v8028_v50 = vadd.f32 %v34159_v10, %v7883_v52  ;;  %v24037_v7 = vadd.f32 %v24036_v0, %v24035_v19  ;;  %v38148_v10 = vand.u32 4294901760, %v33879_v28  ;;  %v34296_v28 = vld [vmem:[%s36226_s2 + $0x38] sm:$0xff] }
 0x55a   : > { %v34302_v27 = vmul.f32 %v38149_v1, %v34296_v28 }
 0x55b   : > { %27499 = vmatpush3.bf16.msra.mxu1 %v38143_v51  ;;  %v7890_v5 = vadd.f32 %v24037_v7, %v7651_v56 }
 0x55c   : > { %27501 = vmatprep.subr.bf16.mxu1 %v38144_v47  ;;  %v10891_v32 = vsel %vm818_vm1, %v34302_v27, 0 }
 0x55d   : > { %v8037_v21 = vadd.f32 %v34171_v36, %v7890_v5  ;;  %v34311_v13 = vand.u32 4294901760, %v10891_v32  ;;  %v38156_v5 = vld [vmem:[#allocation107_spill] sm:$0xff] }
 0x55f   : > { %27503 = vmatpush3.bf16.msra.mxu1 %v38145_v37 }
 0x560   : > { %27537 = vmatprep.subr.bf16.mxu1 %v38128_v60 }
 0x562   : > { %9979 = vmatmul.mubr.f32.vlgmr.msra.gmra.mrb[90].mxu1 %v38146_v14  ;;  %v24374_v38 = vpop.f32.mrb[92].mxu0 }
 0x563   : > { %27539 = vmatpush3.bf16.msra.mxu1 %v38129_v58  ;;  %9986 = vmatprep.mubr.f32.mxu1 %v38147_v30  ;;  %v24375_v36 = vpop.f32.mrb[93].mxu0  ;;  %v28764_v58 = vmov 0.0|0.0  }
 0x564   : > { %27541 = vmatprep.subr.bf16.mxu1 %v38130_v57  ;;  %v34285_v43 = vadd.f32 %v24375_v36, %v24374_v38  ;;  %v10967_v57 = vsub.f32 %v10891_v32, %v34311_v13 }
 0x566   : > { %9990 = vmatmul.mubr.f32.gmra.mrb[92].mxu1 %v38148_v10  ;;  %v24377_v39 = vpop.f32.mrb[94].mxu0 }
 0x567   : > { %27543 = vmatpush3.bf16.msra.mxu1 %v38131_v17  ;;  %10267 = vmatprep.mubr.f32.mxu1 %v38064_v15  ;;  %v24378_v40 = vpop.f32.mrb[95].mxu0  ;;  %v28766_v17 = vmov 0.0  }
 0x568   : > { %27545 = vmatprep.subr.bf16.mxu1 %v38134_v26  ;;  %v34289_v6 = vadd.f32 %v24378_v40, %v24377_v39 }
 0x56b   : > { %27547 = vmatpush3.bf16.msra.mxu1 %v38135_v42 }
 0x56c   : > { %27549 = vmatprep.subr.bf16.mxu1 %v38136_v2 }
 0x56f   : > { %27551 = vmatpush3.bf16.msra.mxu1 %v38137_v53  ;;  %v38152_v53 = vld [vmem:[#allocation21_spill] sm:$0xff] }
 0x570   : > { %27553 = vmatprep.subr.bf16.mxu1 %v38138_v12  ;;  %v38153_v12 = vld [vmem:[#allocation77_spill] sm:$0xff] }
 0x573   : > { %27555 = vmatpush3.bf16.msra.mxu1 %v38139_v55  ;;  %v38154_v55 = vpack.c.bf16 %v38152_v53, %v38153_v12 }
 0x574   : > { %27557 = vmatprep.subr.bf16.mxu1 %v38140_v25 }
 0x575   : > { %v24108_v15 = vpop.f32.mrb[66].mxu1 }
 0x576   : > { %v24109_v46 = vpop.f32.mrb[67].mxu1 }
 0x577   : > { %v24110_v29 = vadd.f32 %v24109_v46, %v24108_v15  ;;  %27559 = vmatpush3.bf16.msra.mxu1 %v38141_v59 }
 0x578   : > { %27561 = vmatprep.subr.bf16.mxu1 %v38142_v22 }
 0x579   : > { %v8145_v23 = vadd.f32 %v24110_v29, %v8028_v50  ;;  %v24111_v11 = vpop.f32.mrb[68].mxu1  ;;  %v38155_v50 = vld [vmem:[#allocation34_spill] sm:$0xff] }
 0x57a   : > { %v24112_v34 = vpop.f32.mrb[69].mxu1 }
 0x57b   : > { %v8324_v4 = vadd.f32 %v34203_v61, %v8145_v23  ;;  %v24113_v35 = vadd.f32 %v24112_v34, %v24111_v11  ;;  %27563 = vmatpush3.bf16.msra.mxu1 %v38143_v51  ;;  %v10968_v61 = vand.u32 4294901760, %v10967_v57 }
 0x57c   : > { %27565 = vmatprep.subr.bf16.mxu1 %v38144_v47 }
 0x57d   : > { %v8156_v56 = vadd.f32 %v24113_v35, %v8037_v21  ;;  %v10969_v62 = vsub.f32 %v10967_v57, %v10968_v61  ;;  %v38157_v21 = vand.u32 4294901760, %v38156_v5 }
 0x57f   : > { %v8331_v60 = vadd.f32 %v34207_v24, %v8156_v56  ;;  %27567 = vmatpush3.bf16.msra.mxu1 %v38145_v37  ;;  %v10970_v20 = vand.u32 4294901760, %v10969_v62  ;;  %v38158_v37 = vld [vmem:[#allocation111_spill] sm:$0xff]  ;;  %v10283_v62 = vld [vmem:[%s36226_s2 + $0xa8] sm:$0xff] }
 0x580   : > { %27664 = vmatprep.subr.bf16.mxu1 %v28764_v58  ;;  %v38159_v14 = vand.u32 4294901760, %v38158_v37 }
 0x582   : > { %10269 = vmatmul.mubr.f32.vlgmr.msra.gmra.mrb[94].mxu1 %v33764_v18  ;;  %v34362_v30 = vpack.c.bf16 %v38159_v14, %v38157_v21 }
 0x583   : > { %10274 = vmatprep.mubr.f32.mxu1 %v33838_v3  ;;  %v24450_v41 = vpop.f32.mrb[96].mxu0 }
 0x584   : > { %v24451_v24 = vpop.f32.mrb[97].mxu0 }
 0x585   : > { %v34323_v48 = vadd.f32 %v24451_v24, %v24450_v41 }
 0x586   : > { %10276 = vmatmul.mubr.f32.gmra.mrb[96].mxu1 %v33864_v44  ;;  %v38151_v44 = vld [vmem:[#allocation67_spill] sm:$0xff] }
 0x587   : > { %25352 = vmatprep.mubr.msk.f32.mxu1 %vm28765_vm3, %v28766_v17  ;;  %v24453_v18 = vpop.f32.mrb[98].mxu0 }
 0x588   : > { %27666 = vmatpush3.bf16.xpose.msra.mxu1 %v38150_v33  ;;  %v24454_v26 = vpop.f32.mrb[99].mxu0 }
 0x589   : > { %27667 = vmatprep.subr.bf16.mxu1 %v28764_v58  ;;  %v34326_v3 = vadd.f32 %v24454_v26, %v24453_v18  ;;  %v10284_v18 = vld [vmem:[%s36226_s2 + $0xb0] sm:$0xff]  ;;  %v10285_v26 = vld [vmem:[%s36226_s2 + $0xb8] sm:$0xff] }
 0x58f   : > { %25353 = vmatmul.mubr.f32.vlgmr.msra.gmra.mrb[98].mxu1 %v10970_v20  ;;  %v10303_v20 = vand.u32 4294901760, %v10283_v62 }
 0x590   : > { %27669 = vmatpush3.bf16.xpose.msra.mxu1 %v38151_v44  ;;  %25359 = vmatprep.mubr.msk.f32.mxu1 %vm28765_vm3, %v28766_v17  ;;  %v10306_v44 = vand.u32 4294901760, %v10284_v18 }
 0x591   : > { %27670 = vmatprep.subr.bf16.mxu1 %v28764_v58 }
 0x595   : > { %v24184_v42 = vpop.f32.mrb[70].mxu1 }
 0x596   : > { %v24185_v45 = vpop.f32.mrb[71].mxu1 }
 0x597   : > { %v24186_v2 = vadd.f32 %v24185_v45, %v24184_v42  ;;  %25360 = vmatmul.mubr.f32.vlgmr.msra.gmra.mrb[98].mxu1 %v34311_v13  ;;  %v10287_v42 = vld [vmem:[%s36226_s2 + $0xc8] sm:$0xff]  ;;  %v10288_v45 = vld [vmem:[%s36226_s2 + $0xd0] sm:$0xff] }
 0x598   : > { %27672 = vmatpush3.bf16.xpose.msra.mxu1 %v38154_v55  ;;  %25366 = vmatprep.mubr.msk.f32.mxu1 %vm28765_vm3, %v28766_v17  ;;  %v10315_v53 = vand.u32 4294901760, %v10287_v42  ;;  %v10318_v12 = vand.u32 4294901760, %v10288_v45  ;;  %v10289_v55 = vld [vmem:[%s36226_s2 + $0xd8] sm:$0xff] }
 0x599   : > { %v8435_v25 = vadd.f32 %v24186_v2, %v8324_v4  ;;  %v24187_v31 = vpop.f32.mrb[72].mxu1  ;;  %27673 = vmatprep.subr.bf16.mxu1 %v28764_v58 }
 0x59a   : > { %v24188_v8 = vpop.f32.mrb[73].mxu1  ;;  %v10425_v37 = vsub.f32 %v10287_v42, %v10315_v53  ;;  %v10432_v14 = vsub.f32 %v10288_v45, %v10318_v12 }
 0x59b   : > { %v8554_v63 = vadd.f32 %v34229_v9, %v8435_v25  ;;  %v24189_v59 = vadd.f32 %v24188_v8, %v24187_v31  ;;  %v34400_v25 = vpack.c.bf16 %v10306_v44, %v10303_v20  ;;  %v10290_v31 = vld [vmem:[%s36226_s2 + $0xe0] sm:$0xff]  ;;  %v34405_v8 = vsub.f32 %v10283_v62, %v10303_v20 }
 0x59d   : > { %v8442_v22 = vadd.f32 %v24189_v59, %v8331_v60  ;;  %v34409_v59 = vsub.f32 %v10284_v18, %v10306_v44  ;;  %27569 = vmatprep.subr.bf16.mxu0 %v34400_v25 }
 0x59e   : > { %27571 = vmatpush3.bf16.msra.mxu0 %v34400_v25 }
 0x59f   : > { %v8569_v52 = vadd.f32 %v34233_v54, %v8442_v22  ;;  %25367 = vmatmul.mubr.f32.vlgmr.msra.gmra.mrb[98].mxu1 %v10967_v57 }
 0x5a0   : > { %27675 = vmatpush3.bf16.xpose.msra.mxu1 %v38150_v33  ;;  %25373 = vmatprep.mubr.msk.f32.mxu1 %vm28765_vm3, %v28766_v17 }
 0x5a1   : > { %27676 = vmatprep.subr.bf16.mxu1 %v28764_v58 }
 0x5a3   : > { %v24526_v19 = vpop.f32.mrb[100].mxu0 }
 0x5a4   : > { %v24527_v0 = vpop.f32.mrb[101].mxu0 }
 0x5a5   : > { %v34348_v9 = vadd.f32 %v24527_v0, %v24526_v19  ;;  %v10398_v19 = vand.u32 4294901760, %v34405_v8 }
 0x5a7   : > { %25374 = vmatmul.mubr.f32.vlgmr.msra.gmra.mrb[98].mxu1 %v10968_v61  ;;  %v24529_v54 = vpop.f32.mrb[102].mxu0  ;;  %v10399_v5 = vsub.f32 %v34405_v8, %v10398_v19 }
 0x5a8   : > { %27678 = vmatpush3.bf16.xpose.msra.mxu1 %v38155_v50  ;;  %25380 = vmatprep.mubr.msk.f32.mxu1 %vm28765_vm3, %v28766_v17  ;;  %v24530_v7 = vpop.f32.mrb[103].mxu0  ;;  %v34418_v50 = vpack.c.bf16 %v10318_v12, %v10315_v53 }
 0x5a9   : > { %27679 = vmatprep.subr.bf16.mxu1 %v28764_v58  ;;  %v34351_v51 = vadd.f32 %v24530_v7, %v24529_v54  ;;  %v10324_v54 = vand.u32 4294901760, %v10290_v31  ;;  %v10405_v7 = vand.u32 4294901760, %v34409_v59 }
 0x5af   : > { %25381 = vmatmul.mubr.f32.vlgmr.msra.gmra.mrb[98].mxu1 %v34311_v13 }
 0x5b0   : > { %27681 = vmatpush3.bf16.xpose.msra.mxu1 %v38150_v33  ;;  %25387 = vmatprep.mubr.msk.f32.mxu1 %vm28765_vm3, %v28766_v17 }
 0x5b1   : > { %27682 = vmatprep.subr.bf16.mxu1 %v28764_v58 }
 0x5b5   : > { %v24260_v47 = vpop.f32.mrb[74].mxu1 }
 0x5b6   : > { %v24261_v10 = vpop.f32.mrb[75].mxu1 }
 0x5b7   : > { %v24262_v38 = vadd.f32 %v24261_v10, %v24260_v47  ;;  %25388 = vmatmul.mubr.f32.vlgmr.msra.gmra.mrb[98].mxu1 %v34311_v13  ;;  %v10406_v10 = vsub.f32 %v34409_v59, %v10405_v7 }
 0x5b8   : > { %27684 = vmatpush3.bf16.msra.mxu1 %v34362_v30  ;;  %25394 = vmatprep.mubr.msk.f32.mxu1 %vm28765_vm3, %v28766_v17 }
 0x5b9   : > { %v8801_v36 = vadd.f32 %v24262_v38, %v8554_v63  ;;  %v24263_v39 = vpop.f32.mrb[76].mxu1  ;;  %27685 = vmatprep.subr.bf16.mxu1 %v28764_v58 }
 0x5ba   : > { %v24264_v40 = vpop.f32.mrb[77].mxu1 }
 0x5bb   : > { %v8946_v15 = vadd.f32 %v34256_v16, %v8801_v36  ;;  %v24265_v1 = vadd.f32 %v24264_v40, %v24263_v39  ;;  %v10426_v39 = vand.u32 4294901760, %v10425_v37  ;;  %v10433_v40 = vand.u32 4294901760, %v10432_v14 }
 0x5bd   : > { %v8808_v46 = vadd.f32 %v24265_v1, %v8569_v52  ;;  %v10321_v52 = vand.u32 4294901760, %v10289_v55  ;;  %v10400_v1 = vand.u32 4294901760, %v10399_v5 }
 0x5bf   : > { %v8955_v29 = vadd.f32 %v34260_v49, %v8808_v46  ;;  %v10407_v46 = vand.u32 4294901760, %v10406_v10 }
 0x5c1   : > { %v34438_v20 = vpack.c.bf16 %v10407_v46, %v10400_v1 }
 0x5c3   : > { %v24602_v23 = vpop.f32.mrb[104].mxu0 }
 0x5c4   : > { %v24603_v11 = vpop.f32.mrb[105].mxu0 }
 0x5c5   : > { %v34371_v32 = vadd.f32 %v24603_v11, %v24602_v23 }
 0x5c7   : > { %v24605_v34 = vpop.f32.mrb[106].mxu0 }
 0x5c8   : > { %v24606_v4 = vpop.f32.mrb[107].mxu0 }
 0x5c9   : > { %v34373_v35 = vadd.f32 %v24606_v4, %v24605_v34  ;;  %v10427_v34 = vsub.f32 %v10425_v37, %v10426_v39  ;;  %v10434_v4 = vsub.f32 %v10432_v14, %v10433_v40 }
 0x5d5   : > { %v24336_v13 = vpop.f32.mrb[78].mxu1 }
 0x5d6   : > { %v24337_v56 = vpop.f32.mrb[79].mxu1 }
 0x5d7   : > { %v24338_v60 = vadd.f32 %v24337_v56, %v24336_v13  ;;  %v10439_v13 = vsub.f32 %v10289_v55, %v10321_v52 }
 0x5d9   : > { %v9063_v57 = vadd.f32 %v24338_v60, %v8946_v15  ;;  %v24339_v61 = vpop.f32.mrb[80].mxu1  ;;  %v34431_v15 = vpack.c.bf16 %v10324_v54, %v10321_v52  ;;  %v10446_v60 = vsub.f32 %v10290_v31, %v10324_v54  ;;  %v34455_v54 = vpack.c.bf16 %v10432_v14, %v10425_v37 }
 0x5da   : > { %v24340_v41 = vpop.f32.mrb[81].mxu1  ;;  %v34467_v37 = vpack.c.bf16 %v10433_v40, %v10426_v39 }
 0x5db   : > { %v9242_v16 = vadd.f32 %v34285_v43, %v9063_v57  ;;  %v24341_v24 = vadd.f32 %v24340_v41, %v24339_v61  ;;  %v10286_v43 = vld [vmem:[%s36226_s2 + $0xc0] sm:$0xff]  ;;  %v10428_v41 = vand.u32 4294901760, %v10427_v34  ;;  %v10447_v62 = vand.u32 4294901760, %v10446_v60 }
 0x5dc   : > { %v10312_v2 = vand.u32 4294901760, %v10286_v43  ;;  %v34457_v5 = vpack.c.bf16 %v10446_v60, %v10439_v13 }
 0x5dd   : > { %v9074_v33 = vadd.f32 %v24341_v24, %v8955_v29  ;;  %v10435_v24 = vand.u32 4294901760, %v10434_v4  ;;  %v10448_v42 = vsub.f32 %v10446_v60, %v10447_v62 }
 0x5de   : > { %v34415_v0 = vsub.f32 %v10286_v43, %v10312_v2 }
 0x5df   : > { %v34377_v49 = vadd.f32 %v34289_v6, %v9074_v33  ;;  %v10309_v6 = vand.u32 4294901760, %v10285_v26  ;;  %v10440_v33 = vand.u32 4294901760, %v10439_v13  ;;  %v34440_v44 = vpack.c.bf16 %v10435_v24, %v10428_v41 }
 0x5e0   : > { %v10419_v21 = vand.u32 4294901760, %v34415_v0  ;;  %v10449_v12 = vand.u32 4294901760, %v10448_v42 }
 0x5e1   : > { %v34407_v63 = vpack.c.bf16 %v10312_v2, %v10309_v6  ;;  %v34411_v22 = vsub.f32 %v10285_v26, %v10309_v6  ;;  %v10441_v6 = vsub.f32 %v10439_v13, %v10440_v33  ;;  %v34469_v14 = vpack.c.bf16 %v10447_v62, %v10440_v33 }
 0x5e2   : > { %v10420_v36 = vsub.f32 %v34415_v0, %v10419_v21 }
 0x5e3   : > { %v10412_v47 = vand.u32 4294901760, %v34411_v22  ;;  %27573 = vmatprep.subr.bf16.mxu0 %v34407_v63  ;;  %v10442_v53 = vand.u32 4294901760, %v10441_v6  ;;  %v34452_v31 = vpack.c.bf16 %v34415_v0, %v34411_v22 }
 0x5e4   : > { %27575 = vmatpush3.bf16.msra.mxu0 %v34407_v63  ;;  %v10421_v11 = vand.u32 4294901760, %v10420_v36 }
 0x5e5   : > { %v10413_v38 = vsub.f32 %v34411_v22, %v10412_v47  ;;  %27577 = vmatprep.subr.bf16.mxu0 %v34418_v50  ;;  %v27596_v52 = vpack.c.bf16 %v10449_v12, %v10442_v53  ;;  %v34462_v22 = vpack.c.bf16 %v10405_v7, %v10398_v19 }
 0x5e7   : > { %v10414_v29 = vand.u32 4294901760, %v10413_v38 }
 0x5e8   : > { %27579 = vmatpush3.bf16.msra.mxu0 %v34418_v50 }
 0x5e9   : > { %v34434_v61 = vpack.c.bf16 %v10421_v11, %v10414_v29  ;;  %27581 = vmatprep.subr.bf16.mxu0 %v34431_v15 }
 0x5ec   : > { %27583 = vmatpush3.bf16.msra.mxu0 %v34431_v15 }
 0x5ed   : > { %27585 = vmatprep.subr.bf16.mxu0 %v34438_v20 }
 0x5f5   : > { %v24412_v23 = vpop.f32.mrb[82].mxu1 }
 0x5f6   : > { %v24413_v56 = vpop.f32.mrb[83].mxu1 }
 0x5f7   : > { %v24414_v57 = vadd.f32 %v24413_v56, %v24412_v23  ;;  %v34464_v23 = vpack.c.bf16 %v10419_v21, %v10412_v47 }
 0x5f9   : > { %v9353_v18 = vadd.f32 %v24414_v57, %v9242_v16  ;;  %v24415_v26 = vpop.f32.mrb[84].mxu1  ;;  %v34446_v16 = vpack.c.bf16 %v34409_v59, %v34405_v8 }
 0x5fa   : > { %v24416_v43 = vpop.f32.mrb[85].mxu1 }
 0x5fb   : > { %v9472_v45 = vadd.f32 %v34323_v48, %v9353_v18  ;;  %v24417_v2 = vadd.f32 %v24416_v43, %v24415_v26 }
 0x5fd   : > { %v9360_v55 = vadd.f32 %v24417_v2, %v34377_v49 }
 0x5ff   : > { %v9487_v48 = vadd.f32 %v34326_v3, %v9360_v55 }
 0x615   : > { %v24488_v10 = vpop.f32.mrb[86].mxu1 }
 0x616   : > { %v24489_v38 = vpop.f32.mrb[87].mxu1 }
 0x617   : > { %v24490_v36 = vadd.f32 %v24489_v38, %v24488_v10 }
 0x619   : > { %v9719_v59 = vadd.f32 %v24490_v36, %v9472_v45  ;;  %v24491_v1 = vpop.f32.mrb[88].mxu1 }
 0x61a   : > { %v24492_v46 = vpop.f32.mrb[89].mxu1 }
 0x61b   : > { %v9864_v49 = vadd.f32 %v34348_v9, %v9719_v59  ;;  %v24493_v29 = vadd.f32 %v24492_v46, %v24491_v1 }
 0x61d   : > { %v9726_v0 = vadd.f32 %v24493_v29, %v9487_v48  ;;  %v38160_v29 = vld [vmem:[#allocation79_spill] sm:$0xff] }
 0x61f   : > { %v9873_v3 = vadd.f32 %v34351_v51, %v9726_v0  ;;  %v38162_v0 = vld [vmem:[#allocation109_spill] sm:$0xff] }
 0x635   : > { %v24564_v11 = vpop.f32.mrb[90].mxu1 }
 0x636   : > { %v24565_v34 = vpop.f32.mrb[91].mxu1 }
 0x637   : > { %v24566_v4 = vadd.f32 %v24565_v34, %v24564_v11 }
 0x639   : > { %v9981_v13 = vadd.f32 %v24566_v4, %v9864_v49  ;;  %v24567_v56 = vpop.f32.mrb[92].mxu1 }
 0x63a   : > { %v24568_v9 = vpop.f32.mrb[93].mxu1 }
 0x63b   : > { %v10160_v60 = vadd.f32 %v34371_v32, %v9981_v13  ;;  %v24569_v8 = vadd.f32 %v24568_v9, %v24567_v56  ;;  %v10883_v56 = vld [vmem:[%s36226_s2 + $0x120] sm:$0xff] }
 0x63c   : > { %v11843_v9 = vsel %vm309_vm0, %v10883_v56, 0 }
 0x63d   : > { %v9992_v19 = vadd.f32 %v24569_v8, %v9873_v3  ;;  %v38164_v3 = vld [vmem:[#allocation73_spill] sm:$0xff] }
 0x63f   : > { %v10167_v7 = vadd.f32 %v34373_v35, %v9992_v19 }
 0x655   : > { %v24640_v47 = vpop.f32.mrb[94].mxu1 }
 0x656   : > { %v24641_v21 = vpop.f32.mrb[95].mxu1 }
 0x657   : > { %v24642_v57 = vadd.f32 %v24641_v21, %v24640_v47 }
 0x659   : > { %v10271_v51 = vadd.f32 %v24642_v57, %v10160_v60  ;;  %v24643_v39 = vpop.f32.mrb[96].mxu1  ;;  %v34569_v60 = vand.u32 4294901760, %v11843_v9 }
 0x65a   : > { %v24644_v40 = vpop.f32.mrb[97].mxu1 }
 0x65b   : > { %v10281_v41 = vmax.f32 %v10271_v51, 0.0  ;;  %v24645_v24 = vadd.f32 %v24644_v40, %v24643_v39  ;;  %v34572_v8 = vsub.f32 %v11843_v9, %v34569_v60 }
 0x65d   : > { %v10297_v33 = vsel %vm1965_vm2, %v10281_v41, 0  ;;  %v10278_v62 = vadd.f32 %v24645_v24, %v10167_v7  ;;  %v34575_v19 = vand.u32 4294901760, %v34572_v8 }
 0x65e   : > { %v10375_v18 = vand.u32 4294901760, %v10297_v33 }
 0x65f   : > { %v10282_v26 = vmax.f32 %v10278_v62, 0.0  ;;  %v11924_v7 = vsub.f32 %v34572_v8, %v34575_v19 }
 0x660   : > { %v10376_v43 = vsub.f32 %v10297_v33, %v10375_v18 }
 0x661   : > { %v10300_v32 = vsel %vm1965_vm2, %v10282_v26, 0  ;;  %v34580_v39 = vand.u32 4294901760, %v11924_v7 }
 0x662   : > { %v10385_v6 = vand.u32 4294901760, %v10300_v32  ;;  %v10377_v42 = vand.u32 4294901760, %v10376_v43 }
 0x664   : > { %v10386_v45 = vsub.f32 %v10300_v32, %v10385_v6  ;;  %v10378_v35 = vsub.f32 %v10376_v43, %v10377_v42 }
 0x666   : > { %v10387_v2 = vand.u32 4294901760, %v10386_v45  ;;  %v10379_v53 = vand.u32 4294901760, %v10378_v35 }
 0x668   : > { %v10388_v12 = vsub.f32 %v10386_v45, %v10387_v2  ;;  %25250 = vmatprep.mubr.f32.mxu0 %v10379_v53 }
 0x66a   : > { %v10389_v55 = vand.u32 4294901760, %v10388_v12 }
 0x66c   : > { %25251 = vmatmul.mubr.f32.vlgmr.msra.gmra.mrb[108].mxu0 %v10389_v55 }
 0x66d   : > { %27587 = vmatpush3.bf16.msra.mxu0 %v34438_v20  ;;  %25269 = vmatprep.mubr.f32.mxu0 %v10375_v18 }
 0x66e   : > { %27589 = vmatprep.subr.bf16.mxu0 %v34434_v61 }
 0x671   : > { %27591 = vmatpush3.bf16.msra.mxu0 %v34434_v61 }
 0x672   : > { %27593 = vmatprep.subr.bf16.mxu0 %v34440_v44 }
 0x675   : > { %27595 = vmatpush3.bf16.msra.mxu0 %v34440_v44 }
 0x676   : > { %27597 = vmatprep.subr.bf16.mxu0 %v27596_v52 }
 0x679   : > { %27599 = vmatpush3.bf16.msra.mxu0 %v27596_v52 }
 0x67a   : > { %27601 = vmatprep.subr.bf16.mxu0 %v34446_v16 }
 0x67c   : > { %25270 = vmatmul.mubr.f32.vlgmr.msra.gmra.mrb[108].mxu0 %v10385_v6 }
 0x67d   : > { %27603 = vmatpush3.bf16.msra.mxu0 %v34446_v16  ;;  %25288 = vmatprep.mubr.f32.mxu0 %v10376_v43 }
 0x67e   : > { %27605 = vmatprep.subr.bf16.mxu0 %v34452_v31 }
 0x681   : > { %27607 = vmatpush3.bf16.msra.mxu0 %v34452_v31 }
 0x682   : > { %27609 = vmatprep.subr.bf16.mxu0 %v34455_v54 }
 0x685   : > { %27611 = vmatpush3.bf16.msra.mxu0 %v34455_v54 }
 0x686   : > { %27613 = vmatprep.subr.bf16.mxu0 %v34457_v5 }
 0x689   : > { %27615 = vmatpush3.bf16.msra.mxu0 %v34457_v5 }
 0x68a   : > { %v11354_v61 = vpop.f32.mrb[98].mxu1  ;;  %27617 = vmatprep.subr.bf16.mxu0 %v34400_v25 }
 0x68b   : > { %v25389_v20 = vpop.f32.mrb[99].mxu1  ;;  %v11359_v44 = vsel %vm11358_vm4, %v11354_v61, -inf }
 0x68c   : > { %25289 = vmatmul.mubr.f32.vlgmr.msra.gmra.mrb[108].mxu0 %v10386_v45  ;;  %11360 = vmax.xlane.f32.xlu0 %v11359_v44  ;;  %v10886_v20 = vld [vmem:[%s36226_s2 + $0xf8] sm:$0xff]  ;;  %v10887_v44 = vld [vmem:[%s36226_s2 + $0x100] sm:$0xff] }
 0x68d   : > { %27619 = vmatpush3.bf16.msra.mxu0 %v34400_v25  ;;  %25307 = vmatprep.mubr.f32.mxu0 %v10377_v42 }
 0x68e   : > { %27621 = vmatprep.subr.bf16.mxu0 %v34407_v63 }
 0x691   : > { %27623 = vmatpush3.bf16.msra.mxu0 %v34407_v63 }
 0x692   : > { %27625 = vmatprep.subr.bf16.mxu0 %v34418_v50 }
 0x695   : > { %27627 = vmatpush3.bf16.msra.mxu0 %v34418_v50 }
 0x696   : > { %27629 = vmatprep.subr.bf16.mxu0 %v34431_v15 }
 0x699   : > { %27631 = vmatpush3.bf16.msra.mxu0 %v34431_v15 }
 0x69a   : > { %27633 = vmatprep.subr.bf16.mxu0 %v34462_v22 }
 0x69c   : > { %25308 = vmatmul.mubr.f32.vlgmr.msra.gmra.mrb[108].mxu0 %v10387_v2 }
 0x69d   : > { %27635 = vmatpush3.bf16.msra.mxu0 %v34462_v22  ;;  %25326 = vmatprep.mubr.f32.mxu0 %v10375_v18  ;;  %v38161_v22 = vld [vmem:[#allocation112_spill] sm:$0xff] }
 0x69e   : > { %27637 = vmatprep.subr.bf16.mxu0 %v34464_v23 }
 0x6a1   : > { %27639 = vmatpush3.bf16.msra.mxu0 %v34464_v23  ;;  %v38163_v23 = vpack.c.bf16 %v38161_v22, %v38162_v0 }
 0x6a2   : > { %27641 = vmatprep.subr.bf16.mxu0 %v34467_v37 }
 0x6a5   : > { %27643 = vmatpush3.bf16.msra.mxu0 %v34467_v37  ;;  %v10882_v37 = vld [vmem:[%s36226_s2 + $0x118] sm:$0xff] }
 0x6a6   : > { %27645 = vmatprep.subr.bf16.mxu0 %v34469_v14 }
 0x6a9   : > { %27647 = vmatpush3.bf16.msra.mxu0 %v34469_v14  ;;  %v11840_v14 = vsel %vm309_vm0, %v10882_v37, 0 }
 0x6aa   : > { %27649 = vmatprep.subr.bf16.mxu0 %v34400_v25  ;;  %v34552_v11 = vand.u32 4294901760, %v11840_v14 }
 0x6ac   : > { %25327 = vmatmul.mubr.f32.vlgmr.msra.gmra.mrb[108].mxu0 %v10385_v6  ;;  %v34555_v34 = vsub.f32 %v11840_v14, %v34552_v11 }
 0x6ad   : > { %27651 = vmatpush3.bf16.msra.mxu0 %v34400_v25  ;;  %25345 = vmatprep.mubr.f32.mxu0 %v10375_v18 }
 0x6ae   : > { %27653 = vmatprep.subr.bf16.mxu0 %v34407_v63  ;;  %v34558_v4 = vand.u32 4294901760, %v34555_v34 }
 0x6b1   : > { %27655 = vmatpush3.bf16.msra.mxu0 %v34407_v63  ;;  %v34519_v63 = vld [vmem:[%s36226_s2 + $0xe8] ss:$0 sm:$0xff] }
 0x6b2   : > { %27657 = vmatprep.subr.bf16.mxu0 %v34418_v50 }
 0x6b5   : > { %27659 = vmatpush3.bf16.msra.mxu0 %v34418_v50 }
 0x6b6   : > { %27661 = vmatprep.subr.bf16.mxu0 %v34431_v15 }
 0x6b9   : > { %27663 = vmatpush3.bf16.msra.mxu0 %v34431_v15 }
 0x6bc   : > { %25346 = vmatmul.mubr.f32.vlgmr.msra.gmra.mrb[108].mxu0 %v10385_v6 }
 0x719   : > { %v11361_v16 = vpop.xlane.xlu0 %11360 }
 0x71a   : > { %v11362_v31 = vsub.f32 %v11354_v61, %v11361_v16  ;;  %v10885_v61 = vld [vmem:[%s36226_s2 + $0xf0] sm:$0xff] }
 0x71b   : > { %v12345_v16 = vand.u32 4294901760, %v10885_v61 }
 0x71c   : > { %v11363_v52 = vmul.f32 1.442695, %v11362_v31  ;;  %v12348_v31 = vand.u32 4294901760, %v10886_v20 }
 0x71e   : > { %28682 = vpow2.f32 %v11363_v52  ;;  %v10888_v52 = vld [vmem:[%s36226_s2 + $0x108] sm:$0xff] }
 0x728   : > { %v28683_v48 = vpop.eup %28682 }
 0x729   : > { %v11365_v25 = vsel %vm11358_vm4, %v28683_v48, 0.0 }
 0x72a   : > { %11366 = vadd.xlane.f32.xlu0 %v11365_v25  ;;  %v12354_v25 = vand.u32 4294901760, %v10888_v52 }
 0x740   : > { %12874 = vrot.lane.b32.xlu0 %v34302_v27, %s28763_s10 }
 0x78f   : > { %v25347_v50 = vpop.f32.mrb[108].mxu0 }
 0x790   : > { %v34522_v15 = vadd.f32 %v25347_v50, %v34519_v63  ;;  %v34524_v54 = vpop.f32.mrb[109].mxu0 }
 0x7b7   : > { %v11367_v5 = vpop.xlane.xlu0 %11366 }
 0x7b8   : > { %28684 = vrcp.f32 %v11367_v5  ;;  %v12442_v5 = vsub.f32 %v10886_v20, %v12348_v31 }
 0x7bb   : > { %v12875_v62 = vpop.permute.xlu0 %12874 }
 0x7bc   : > { %v12876_v18 = vsel %vm818_vm1, %v12875_v62, 0 }
 0x7bd   : > { %v12947_v43 = vand.u32 4294901760, %v12876_v18 }
 0x7bf   : > { %v12948_v6 = vsub.f32 %v12876_v18, %v12947_v43 }
 0x7c1   : > { %v12949_v45 = vand.u32 4294901760, %v12948_v6 }
 0x7c2   : > { %v28685_v10 = vpop.eup %28684 }
 0x7c3   : > { %v11369_v38 = vmul.f32 %v28685_v10, %v28683_v48  ;;  %v12950_v2 = vsub.f32 %v12948_v6, %v12949_v45  ;;  %v12351_v48 = vand.u32 4294901760, %v10887_v44 }
 0x7c5   : > { %v11377_v36 = vsel %vm11358_vm4, %v11369_v38, 0  ;;  %v12951_v12 = vand.u32 4294901760, %v12950_v2  ;;  %v34635_v50 = vpack.c.bf16 %v12354_v25, %v12351_v48  ;;  %v12449_v10 = vsub.f32 %v10887_v44, %v12351_v48 }
 0x7c6   : > { %v11446_v59 = vand.u32 4294901760, %v11377_v36  ;;  %v12456_v38 = vsub.f32 %v10888_v52, %v12354_v25 }
 0x7c8   : > { %v11447_v1 = vsub.f32 %v11377_v36, %v11446_v59  ;;  %v34647_v9 = vpack.c.bf16 %v12456_v38, %v12449_v10 }
 0x7ca   : > { %v11448_v27 = vand.u32 4294901760, %v11447_v1 }
 0x7cc   : > { %v11449_v46 = vsub.f32 %v11447_v1, %v11448_v27 }
 0x7ce   : > { %v11450_v49 = vand.u32 4294901760, %v11449_v46 }
 0x7d0   : > { %25395 = vmatmul.mubr.f32.vlgmr.msra.gmra.mrb[100].mxu1 %v11450_v49 }
 0x7d1   : > { %27687 = vmatpush3.bf16.msra.mxu1 %v38160_v29  ;;  %25401 = vmatprep.mubr.msk.f32.mxu1 %vm28765_vm3, %v28766_v17 }
 0x7d2   : > { %27688 = vmatprep.subr.bf16.mxu1 %v28764_v58 }
 0x7d8   : > { %25402 = vmatmul.mubr.f32.vlgmr.msra.gmra.mrb[100].mxu1 %v11446_v59 }
 0x7d9   : > { %27690 = vmatpush3.bf16.msra.mxu1 %v38163_v23  ;;  %25408 = vmatprep.mubr.msk.f32.mxu1 %vm28765_vm3, %v28766_v17 }
 0x7da   : > { %27691 = vmatprep.subr.bf16.mxu1 %v28764_v58 }
 0x7e0   : > { %25409 = vmatmul.mubr.f32.vlgmr.msra.gmra.mrb[100].mxu1 %v11447_v1  ;;  %v12450_v1 = vand.u32 4294901760, %v12449_v10 }
 0x7e1   : > { %27693 = vmatpush3.bf16.msra.mxu1 %v34362_v30  ;;  %25415 = vmatprep.mubr.msk.f32.mxu1 %vm28765_vm3, %v28766_v17 }
 0x7e2   : > { %27694 = vmatprep.subr.bf16.mxu1 %v28764_v58  ;;  %v12451_v29 = vsub.f32 %v12449_v10, %v12450_v1 }
 0x7e8   : > { %25416 = vmatmul.mubr.f32.vlgmr.msra.gmra.mrb[100].mxu1 %v11448_v27  ;;  %v12457_v27 = vand.u32 4294901760, %v12456_v38 }
 0x7e9   : > { %27696 = vmatpush3.bf16.msra.mxu1 %v38164_v3  ;;  %25422 = vmatprep.mubr.msk.f32.mxu1 %vm28765_vm3, %v28766_v17  ;;  %v12452_v3 = vand.u32 4294901760, %v12451_v29 }
 0x7ea   : > { %27697 = vmatprep.subr.bf16.mxu1 %v28764_v58  ;;  %v12458_v22 = vsub.f32 %v12456_v38, %v12457_v27 }
 0x7ec   : > { %v12459_v37 = vand.u32 4294901760, %v12458_v22 }
 0x7ee   : > { %v34645_v56 = vpack.c.bf16 %v12459_v37, %v12452_v3  ;;  %v38165_v3 = vld [vmem:[#allocation29_spill] sm:$0xff] }
 0x7f0   : > { %25423 = vmatmul.mubr.f32.vlgmr.msra.gmra.mrb[100].mxu1 %v11446_v59 }
 0x7f1   : > { %27699 = vmatpush3.bf16.msra.mxu1 %v34362_v30  ;;  %25429 = vmatprep.mubr.msk.f32.mxu1 %vm28765_vm3, %v28766_v17  ;;  %v11914_v30 = vsub.f32 %v34555_v34, %v34558_v4 }
 0x7f3   : > { %v34562_v13 = vand.u32 4294901760, %v11914_v30 }
 0x7f8   : > { %25430 = vmatmul.mubr.f32.vlgmr.msra.gmra.mrb[100].mxu1 %v11446_v59  ;;  %v12443_v59 = vand.u32 4294901760, %v12442_v5 }
 0x7f9   : > { %25434 = vmatprep.mubr.f32.mxu1 %v34562_v13 }
 0x7fa   : > { %v12444_v49 = vsub.f32 %v12442_v5, %v12443_v59 }
 0x7fc   : > { %v12445_v23 = vand.u32 4294901760, %v12444_v49 }
 0x8cb   : > { %v11834_v47 = vpop.f32.mrb[100].mxu1 }
 0x8cc   : > { %v11838_v21 = vmul.f32 %v11834_v47, %v34296_v28  ;;  %v25431_v57 = vpop.f32.mrb[101].mxu1  ;;  %v34590_v28 = vadd.f32 %v34519_v63, %v34524_v54  ;;  %v34633_v63 = vpack.c.bf16 %v12348_v31, %v12345_v16  ;;  %v12435_v54 = vsub.f32 %v10885_v61, %v12345_v16 }
 0x8cd   : > { %v34652_v47 = vpack.c.bf16 %v12457_v27, %v12450_v1 }
 0x8ce   : > { %v11846_v51 = vand.u32 4294901760, %v11838_v21  ;;  %v12879_v26 = vsel %vm818_vm1, %v34590_v28, 0  ;;  %27701 = vmatprep.subr.bf16.mxu0 %v34633_v63  ;;  %v12436_v36 = vand.u32 4294901760, %v12435_v54  ;;  %v34643_v30 = vpack.c.bf16 %v12442_v5, %v12435_v54 }
 0x8cf   : > { %v12882_v32 = vand.u32 4294901760, %v12879_v26  ;;  %27703 = vmatpush3.bf16.msra.mxu0 %v34633_v63 }
 0x8d0   : > { %v11933_v40 = vsub.f32 %v11838_v21, %v11846_v51  ;;  %25432 = vmatprep.subr.mxu1 %v11846_v51  ;;  %27705 = vmatprep.subr.bf16.mxu0 %v34635_v50  ;;  %v12437_v46 = vsub.f32 %v12435_v54, %v12436_v36  ;;  %v34650_v7 = vpack.c.bf16 %v12443_v59, %v12436_v36 }
 0x8d1   : > { %25433 = vmatpush3.msra.mxu1 %v11846_v51  ;;  %v12959_v42 = vsub.f32 %v12879_v26, %v12882_v32 }
 0x8d2   : > { %25435 = vmatmul.mubr.f32.vlgmr.msra.gmra.mrb[102].mxu1 %v34580_v39  ;;  %v11934_v41 = vand.u32 4294901760, %v11933_v40  ;;  %v12438_v0 = vand.u32 4294901760, %v12437_v46 }
 0x8d3   : > { %25439 = vmatprep.mubr.f32.mxu1 %v34552_v11  ;;  %v12960_v35 = vand.u32 4294901760, %v12959_v42  ;;  %27707 = vmatpush3.bf16.msra.mxu0 %v34635_v50 }
 0x8d4   : > { %v11935_v24 = vsub.f32 %v11933_v40, %v11934_v41  ;;  %v34641_v14 = vpack.c.bf16 %v12445_v23, %v12438_v0  ;;  %v808_v23 = vld [vmem:[%s36226_s2 + $0x40] sm:$0xff] }
 0x8d5   : > { %v12961_v53 = vsub.f32 %v12959_v42, %v12960_v35  ;;  %v34713_v37 = vmul.f32 %v38165_v3, %v808_v23 }
 0x8d6   : > { %v11936_v33 = vand.u32 4294901760, %v11935_v24  ;;  %27709 = vmatprep.subr.bf16.mxu0 %v34641_v14 }
 0x8d7   : > { %v12962_v55 = vand.u32 4294901760, %v12961_v53 }
 0x8d8   : > { %25437 = vmatprep.subr.mxu1 %v11936_v33 }
 0x8d9   : > { %25438 = vmatpush3.msra.mxu1 %v11936_v33 }
 0x8da   : > { %25440 = vmatmul.mubr.f32.vlgmr.msra.gmra.mrb[102].mxu1 %v34569_v60  ;;  %25442 = vmatprep.subr.mxu1 %v11933_v40 }
 0x8db   : > { %25443 = vmatpush3.msra.mxu1 %v11933_v40  ;;  %25444 = vmatprep.mubr.f32.mxu1 %v34555_v34 }
 0x8dc   : > { %25447 = vmatprep.subr.mxu1 %v11846_v51 }
 0x8e2   : > { %25445 = vmatmul.mubr.f32.vlgmr.msra.gmra.mrb[102].mxu1 %v34572_v8 }
 0x8e3   : > { %25448 = vmatpush3.msra.mxu1 %v11846_v51  ;;  %25449 = vmatprep.mubr.f32.mxu1 %v34558_v4 }
 0x8e4   : > { %25452 = vmatprep.subr.mxu1 %v11934_v41 }
 0x8ea   : > { %25450 = vmatmul.mubr.f32.vlgmr.msra.gmra.mrb[102].mxu1 %v34575_v19 }
 0x8eb   : > { %25453 = vmatpush3.msra.mxu1 %v11934_v41  ;;  %25454 = vmatprep.mubr.f32.mxu1 %v34552_v11 }
 0x8ec   : > { %25457 = vmatprep.subr.mxu1 %v11846_v51 }
 0x8f2   : > { %25455 = vmatmul.mubr.f32.vlgmr.msra.gmra.mrb[102].mxu1 %v34569_v60 }
 0x8f3   : > { %25458 = vmatpush3.msra.mxu1 %v11846_v51  ;;  %25459 = vmatprep.mubr.f32.mxu1 %v34552_v11 }
 0x8f4   : > { %25528 = vmatprep.subr.mxu1 %v28766_v17 }
 0x8fa   : > { %25460 = vmatmul.mubr.f32.vlgmr.msra.gmra.mrb[102].mxu1 %v34569_v60 }
 0x8fb   : > { %25529 = vmatpush3.xpose.msra.mxu1 %v12882_v32  ;;  %25530 = vmatprep.mubr.msk.f32.mxu1 %vm28765_vm3, %v28766_v17 }
 0x8fc   : > { %25533 = vmatprep.subr.mxu1 %v28766_v17 }
 0x8fe   : > { %25531 = vmatmul.mubr.f32.vlgmr.msra.gmra.mrb[104].mxu1 %v12951_v12 }
 0x8ff   : > { %25534 = vmatpush3.xpose.msra.mxu1 %v12962_v55  ;;  %25535 = vmatprep.mubr.msk.f32.mxu1 %vm28765_vm3, %v28766_v17 }
 0x900   : > { %25538 = vmatprep.subr.mxu1 %v28766_v17 }
 0x906   : > { %25536 = vmatmul.mubr.f32.vlgmr.msra.gmra.mrb[104].mxu1 %v12947_v43 }
 0x907   : > { %25539 = vmatpush3.xpose.msra.mxu1 %v12959_v42  ;;  %25540 = vmatprep.mubr.msk.f32.mxu1 %vm28765_vm3, %v28766_v17 }
 0x908   : > { %25543 = vmatprep.subr.mxu1 %v28766_v17 }
 0x90e   : > { %25541 = vmatmul.mubr.f32.vlgmr.msra.gmra.mrb[104].mxu1 %v12948_v6 }
 0x90f   : > { %25544 = vmatpush3.xpose.msra.mxu1 %v12882_v32  ;;  %25545 = vmatprep.mubr.msk.f32.mxu1 %vm28765_vm3, %v28766_v17 }
 0x910   : > { %25548 = vmatprep.subr.mxu1 %v28766_v17 }
 0x916   : > { %25546 = vmatmul.mubr.f32.vlgmr.msra.gmra.mrb[104].mxu1 %v12949_v45 }
 0x917   : > { %25549 = vmatpush3.xpose.msra.mxu1 %v12960_v35  ;;  %25550 = vmatprep.mubr.msk.f32.mxu1 %vm28765_vm3, %v28766_v17 }
 0x918   : > { %25553 = vmatprep.subr.mxu1 %v28766_v17 }
 0x91e   : > { %25551 = vmatmul.mubr.f32.vlgmr.msra.gmra.mrb[104].mxu1 %v12947_v43 }
 0x91f   : > { %25554 = vmatpush3.xpose.msra.mxu1 %v12882_v32  ;;  %25555 = vmatprep.mubr.msk.f32.mxu1 %vm28765_vm3, %v28766_v17 }
 0x920   : > { %25558 = vmatprep.subr.mxu1 %v28766_v17 }
 0x926   : > { %25556 = vmatmul.mubr.f32.vlgmr.msra.gmra.mrb[104].mxu1 %v12947_v43 }
 0x927   : > { %25560 = vmatprep.mubr.msk.f32.mxu1 %vm28765_vm3, %v28766_v17 }
 0x9cd   : > { %v25461_v21 = vpop.f32.mrb[102].mxu1 }
 0x9ce   : > { %v12342_v57 = vsel %vm818_vm1, %v25461_v21, 0  ;;  %v12324_v51 = vpop.f32.mrb[103].mxu1  ;;  %v38166_v21 = vld [vmem:[#allocation90_spill] sm:$0xff] }
 0x9cf   : > { %v12423_v40 = vand.u32 4294901760, %v12342_v57  ;;  %v12339_v41 = vsel %vm818_vm1, %v12324_v51, 0  ;;  %v38167_v51 = vld [vmem:[#allocation18_spill] sm:$0xff] }
 0x9d0   : > { %v12413_v24 = vand.u32 4294901760, %v12339_v41 }
 0x9d1   : > { %v12424_v33 = vsub.f32 %v12342_v57, %v12423_v40  ;;  %v14247_v57 = vsel %vm818_vm1, %v38166_v21, 0 }
 0x9d2   : > { %v12414_v62 = vsub.f32 %v12339_v41, %v12413_v24  ;;  %v14241_v41 = vsel %vm818_vm1, %v34713_v37, 0 }
 0x9d3   : > { %v12425_v18 = vand.u32 4294901760, %v12424_v33 }
 0x9d4   : > { %v12415_v26 = vand.u32 4294901760, %v12414_v62 }
 0x9d5   : > { %v12426_v43 = vsub.f32 %v12424_v33, %v12425_v18 }
 0x9d6   : > { %v12416_v32 = vsub.f32 %v12414_v62, %v12415_v26 }
 0x9d7   : > { %v12427_v42 = vand.u32 4294901760, %v12426_v43 }
 0x9d8   : > { %v12417_v6 = vand.u32 4294901760, %v12416_v32 }
 0x9da   : > { %25470 = vmatprep.mubr.f32.mxu0 %v12417_v6 }
 0x9db   : > { %25471 = vmatmul.mubr.f32.vlgmr.msra.gmra.mrb[110].mxu0 %v12427_v42 }
 0x9dc   : > { %27711 = vmatpush3.bf16.msra.mxu0 %v34641_v14  ;;  %25481 = vmatprep.mubr.f32.mxu0 %v12413_v24 }
 0x9dd   : > { %27713 = vmatprep.subr.bf16.mxu0 %v34645_v56 }
 0x9e0   : > { %27715 = vmatpush3.bf16.msra.mxu0 %v34645_v56 }
 0x9e1   : > { %27717 = vmatprep.subr.bf16.mxu0 %v34643_v30 }
 0x9e3   : > { %25482 = vmatmul.mubr.f32.vlgmr.msra.gmra.mrb[110].mxu0 %v12423_v40 }
 0x9e4   : > { %27719 = vmatpush3.bf16.msra.mxu0 %v34643_v30  ;;  %25492 = vmatprep.mubr.f32.mxu0 %v12414_v62  ;;  %v14316_v62 = vand.u32 4294901760, %v14241_v41 }
 0x9e5   : > { %27721 = vmatprep.subr.bf16.mxu0 %v34647_v9 }
 0x9e6   : > { %v14317_v43 = vsub.f32 %v14241_v41, %v14316_v62 }
 0x9e8   : > { %27723 = vmatpush3.bf16.msra.mxu0 %v34647_v9  ;;  %v14318_v42 = vand.u32 4294901760, %v14317_v43 }
 0x9e9   : > { %27725 = vmatprep.subr.bf16.mxu0 %v34633_v63 }
 0x9eb   : > { %25493 = vmatmul.mubr.f32.vlgmr.msra.gmra.mrb[110].mxu0 %v12424_v33 }
 0x9ec   : > { %27727 = vmatpush3.bf16.msra.mxu0 %v34633_v63  ;;  %25503 = vmatprep.mubr.f32.mxu0 %v12415_v26 }
 0x9ed   : > { %27729 = vmatprep.subr.bf16.mxu0 %v34635_v50 }
 0x9f0   : > { %27731 = vmatpush3.bf16.msra.mxu0 %v34635_v50 }
 0x9f1   : > { %27733 = vmatprep.subr.bf16.mxu0 %v34650_v7 }
 0x9f3   : > { %25504 = vmatmul.mubr.f32.vlgmr.msra.gmra.mrb[110].mxu0 %v12425_v18 }
 0x9f4   : > { %27735 = vmatpush3.bf16.msra.mxu0 %v34650_v7  ;;  %25514 = vmatprep.mubr.f32.mxu0 %v12413_v24 }
 0x9f5   : > { %27737 = vmatprep.subr.bf16.mxu0 %v34652_v47 }
 0x9f8   : > { %27739 = vmatpush3.bf16.msra.mxu0 %v34652_v47 }
 0x9f9   : > { %v13323_v45 = vpop.f32.mrb[104].mxu1  ;;  %27741 = vmatprep.subr.bf16.mxu0 %v34633_v63 }
 0x9fa   : > { %v25557_v35 = vpop.f32.mrb[105].mxu1  ;;  %v13327_v2 = vsel %vm309_vm0, %v13323_v45, -inf }
 0x9fb   : > { %13328 = vmax.xlane.f32.xlu1 %v13327_v2  ;;  %25515 = vmatmul.mubr.f32.vlgmr.msra.gmra.mrb[110].mxu0 %v12423_v40 }
 0x9fc   : > { %27743 = vmatpush3.bf16.msra.mxu0 %v34633_v63  ;;  %25525 = vmatprep.mubr.f32.mxu0 %v12413_v24  ;;  %v14253_v24 = vand.u32 4294901760, %v14247_v57 }
 0x9fd   : > { %27745 = vmatprep.subr.bf16.mxu0 %v34635_v50 }
 0x9fe   : > { %v14335_v18 = vsub.f32 %v14247_v57, %v14253_v24 }
 0xa00   : > { %27747 = vmatpush3.bf16.msra.mxu0 %v34635_v50  ;;  %v14336_v32 = vand.u32 4294901760, %v14335_v18 }
 0xa01   : > { %25588 = vmatprep.subr.mxu0 %v28766_v17 }
 0xa03   : > { %25526 = vmatmul.mubr.f32.vlgmr.msra.gmra.mrb[110].mxu0 %v12423_v40  ;;  %v14244_v40 = vsel %vm818_vm1, %v38167_v51, 0 }
 0xa04   : > { %25590 = vmatprep.mubr.msk.f32.mxu0 %vm28765_vm3, %v28766_v17  ;;  %v14250_v33 = vand.u32 4294901760, %v14244_v40 }
 0xa06   : > { %v14328_v26 = vsub.f32 %v14244_v40, %v14250_v33  ;;  %v27749_v35 = vpack.c.bf16 %v14253_v24, %v14250_v33 }
 0xa08   : > { %v14329_v6 = vand.u32 4294901760, %v14328_v26 }
 0xa0a   : > { %v14330_v2 = vsub.f32 %v14328_v26, %v14329_v6 }
 0xa0c   : > { %13338 = vrot.lane.b32.xlu1 %v34590_v28, %s28763_s10  ;;  %v34689_v28 = vld [vmem:[%s36226_s2 + $0x110] ss:$0 sm:$0xff] }
 0xa88   : > { %v13329_v53 = vpop.xlane.xlu1 %13328 }
 0xa89   : > { %v13330_v12 = vsub.f32 %v13323_v45, %v13329_v53  ;;  %v14337_v45 = vsub.f32 %v14335_v18, %v14336_v32  ;;  %v14319_v53 = vsub.f32 %v14317_v43, %v14318_v42 }
 0xa8b   : > { %v13331_v55 = vmul.f32 1.442695, %v13330_v12  ;;  %v14338_v12 = vand.u32 4294901760, %v14337_v45 }
 0xa8c   : > { %v13339_v61 = vpop.permute.xlu1 %13338 }
 0xa8d   : > { %28686 = vpow2.f32 %v13331_v55  ;;  %v13345_v20 = vand.u32 4294901760, %v13339_v61  ;;  %v14331_v55 = vand.u32 4294901760, %v14330_v2 }
 0xa8f   : > { %25559 = vmatpush3.msra.mxu1 %v13345_v20  ;;  %v13422_v10 = vsub.f32 %v13339_v61, %v13345_v20  ;;  %v14320_v61 = vand.u32 4294901760, %v14319_v53 }
 0xa90   : > { %25563 = vmatprep.subr.mxu1 %v28766_v17 }
 0xa91   : > { %v13423_v1 = vand.u32 4294901760, %v13422_v10 }
 0xa93   : > { %v13424_v49 = vsub.f32 %v13422_v10, %v13423_v1 }
 0xa95   : > { %v13425_v0 = vand.u32 4294901760, %v13424_v49 }
 0xa97   : > { %v28687_v44 = vpop.eup %28686 }
 0xa98   : > { %v13333_v16 = vsel %vm309_vm0, %v28687_v44, 0.0 }
 0xa99   : > { %13334 = vadd.xlane.f32.xlu0 %v13333_v16  ;;  %v27761_v16 = vpack.c.bf16 %v14336_v32, %v14329_v6 }
 0xad6   : > { %v25527_v31 = vpop.f32.mrb[110].mxu0 }
 0xad7   : > { %v28232_v52 = vadd.f32 %v25527_v31, %v34689_v28  ;;  %v12862_v48 = vpop.f32.mrb[111].mxu0  ;;  %v10884_v31 = vld [vmem:[%s36226_s2 + $0x128] sm:$0xff] }
 0xad8   : > { %v28233_v25 = vadd.f32 %v34689_v28, %v12862_v48 }
 0xad9   : > { %12873 = vst.msk [vmem:[%s34693_s19 + $0x8] sm:$0xff] %vm818_vm1, %v28232_v52  ;;  %v13792_v52 = vsel %vm309_vm0, %v10884_v31, 0 }
 0xada   : > { %12872 = vst.msk [vmem:[%s34693_s19] sm:$0xff] %vm818_vm1, %v28233_v25  ;;  %v34753_v48 = vand.u32 4294901760, %v13792_v52 }
 0xadc   : > { %v34756_v25 = vsub.f32 %v13792_v52, %v34753_v48 }
 0xb26   : > { %v13335_v54 = vpop.xlane.xlu0 %13334 }
 0xb27   : > { %28688 = vrcp.f32 %v13335_v54  ;;  %v34759_v54 = vand.u32 4294901760, %v34756_v25 }
 0xb31   : > { %v28689_v5 = vpop.eup %28688 }
 0xb32   : > { %v13337_v38 = vmul.f32 %v28689_v5, %v28687_v44  ;;  %v27755_v44 = vpack.c.bf16 %v14335_v18, %v14328_v26  ;;  %v13863_v5 = vsub.f32 %v34756_v25, %v34759_v54 }
 0xb34   : > { %v13342_v36 = vsel %vm309_vm0, %v13337_v38, 0  ;;  %v34766_v38 = vld [vmem:[%s36226_s2 + $0x38] sm:$0xff] }
 0xb35   : > { %v13410_v59 = vand.u32 4294901760, %v13342_v36 }
 0xb37   : > { %v13411_v27 = vsub.f32 %v13342_v36, %v13410_v59 }
 0xb39   : > { %v13412_v46 = vand.u32 4294901760, %v13411_v27 }
 0xb3b   : > { %v13413_v29 = vsub.f32 %v13411_v27, %v13412_v46 }
 0xb3d   : > { %v13414_v22 = vand.u32 4294901760, %v13413_v29 }
 0xb3f   : > { %25561 = vmatmul.mubr.f32.vlgmr.msra.gmra.mrb[106].mxu1 %v13414_v22 }
 0xb40   : > { %25564 = vmatpush3.msra.mxu1 %v13425_v0  ;;  %25565 = vmatprep.mubr.msk.f32.mxu1 %vm28765_vm3, %v28766_v17 }
 0xb41   : > { %25568 = vmatprep.subr.mxu1 %v28766_v17 }
 0xb47   : > { %25566 = vmatmul.mubr.f32.vlgmr.msra.gmra.mrb[106].mxu1 %v13410_v59 }
 0xb48   : > { %25569 = vmatpush3.msra.mxu1 %v13422_v10  ;;  %25570 = vmatprep.mubr.msk.f32.mxu1 %vm28765_vm3, %v28766_v17 }
 0xb49   : > { %25573 = vmatprep.subr.mxu1 %v28766_v17 }
 0xb4f   : > { %25571 = vmatmul.mubr.f32.vlgmr.msra.gmra.mrb[106].mxu1 %v13411_v27 }
 0xb50   : > { %25574 = vmatpush3.msra.mxu1 %v13345_v20  ;;  %25575 = vmatprep.mubr.msk.f32.mxu1 %vm28765_vm3, %v28766_v17 }
 0xb51   : > { %25578 = vmatprep.subr.mxu1 %v28766_v17 }
 0xb57   : > { %25576 = vmatmul.mubr.f32.vlgmr.msra.gmra.mrb[106].mxu1 %v13412_v46 }
 0xb58   : > { %25579 = vmatpush3.msra.mxu1 %v13423_v1  ;;  %25580 = vmatprep.mubr.msk.f32.mxu1 %vm28765_vm3, %v28766_v17  ;;  %v34769_v1 = vand.u32 4294901760, %v13863_v5 }
 0xb59   : > { %25583 = vmatprep.subr.mxu1 %v28766_v17 }
 0xb5f   : > { %25581 = vmatmul.mubr.f32.vlgmr.msra.gmra.mrb[106].mxu1 %v13410_v59 }
 0xb60   : > { %25584 = vmatpush3.msra.mxu1 %v13345_v20  ;;  %25585 = vmatprep.mubr.msk.f32.mxu1 %vm28765_vm3, %v28766_v17  ;;  %v27752_v20 = vpack.c.bf16 %v14338_v12, %v14331_v55 }
 0xb61   : > { %27748 = vmatprep.subr.bf16.mxu1 %v28764_v58 }
 0xb67   : > { %25586 = vmatmul.mubr.f32.vlgmr.msra.gmra.mrb[106].mxu1 %v13410_v59 }
 0xb68   : > { %27750 = vmatpush3.bf16.xpose.msra.mxu1 %v27749_v35  ;;  %25622 = vmatprep.mubr.msk.f32.mxu1 %vm28765_vm3, %v28766_v17 }
 0xb69   : > { %27751 = vmatprep.subr.bf16.mxu1 %v28764_v58 }
 0xb6f   : > { %25623 = vmatmul.mubr.f32.vlgmr.msra.gmra.mrb[108].mxu1 %v14320_v61 }
 0xb70   : > { %27753 = vmatpush3.bf16.xpose.msra.mxu1 %v27752_v20  ;;  %25629 = vmatprep.mubr.msk.f32.mxu1 %vm28765_vm3, %v28766_v17 }
 0xb71   : > { %27754 = vmatprep.subr.bf16.mxu1 %v28764_v58 }
 0xb77   : > { %25630 = vmatmul.mubr.f32.vlgmr.msra.gmra.mrb[108].mxu1 %v14316_v62 }
 0xb78   : > { %27756 = vmatpush3.bf16.xpose.msra.mxu1 %v27755_v44  ;;  %25636 = vmatprep.mubr.msk.f32.mxu1 %vm28765_vm3, %v28766_v17 }
 0xb79   : > { %27757 = vmatprep.subr.bf16.mxu1 %v28764_v58 }
 0xb7f   : > { %25637 = vmatmul.mubr.f32.vlgmr.msra.gmra.mrb[108].mxu1 %v14317_v43 }
 0xb80   : > { %27759 = vmatpush3.bf16.xpose.msra.mxu1 %v27749_v35  ;;  %25643 = vmatprep.mubr.msk.f32.mxu1 %vm28765_vm3, %v28766_v17 }
 0xb81   : > { %27760 = vmatprep.subr.bf16.mxu1 %v28764_v58 }
 0xb87   : > { %25644 = vmatmul.mubr.f32.vlgmr.msra.gmra.mrb[108].mxu1 %v14318_v42 }
 0xb88   : > { %27762 = vmatpush3.bf16.xpose.msra.mxu1 %v27761_v16  ;;  %25650 = vmatprep.mubr.msk.f32.mxu1 %vm28765_vm3, %v28766_v17 }
 0xb89   : > { %27763 = vmatprep.subr.bf16.mxu1 %v28764_v58 }
 0xb8f   : > { %25651 = vmatmul.mubr.f32.vlgmr.msra.gmra.mrb[108].mxu1 %v14316_v62 }
 0xb90   : > { %27765 = vmatpush3.bf16.xpose.msra.mxu1 %v27749_v35  ;;  %25657 = vmatprep.mubr.msk.f32.mxu1 %vm28765_vm3, %v28766_v17 }
 0xb91   : > { %27785 = vmatprep.subr.bf16.mxu1 %v34633_v63 }
 0xb97   : > { %25658 = vmatmul.mubr.f32.vlgmr.msra.gmra.mrb[108].mxu1 %v14316_v62 }
 0xb98   : > { %27787 = vmatpush3.bf16.msra.mxu1 %v34633_v63 }
 0xb99   : > { %27789 = vmatprep.subr.bf16.mxu1 %v34635_v50 }
 0xb9c   : > { %27791 = vmatpush3.bf16.msra.mxu1 %v34635_v50 }
 0xb9d   : > { %27793 = vmatprep.subr.bf16.mxu1 %v34641_v14 }
 0xc3a   : > { %v13786_v10 = vpop.f32.mrb[106].mxu1 }
 0xc3b   : > { %v13790_v36 = vmul.f32 %v34766_v38, %v13786_v10  ;;  %v25587_v59 = vpop.f32.mrb[107].mxu1 }
 0xc3d   : > { %v13795_v27 = vand.u32 4294901760, %v13790_v36 }
 0xc3f   : > { %v13872_v46 = vsub.f32 %v13790_v36, %v13795_v27  ;;  %25589 = vmatpush3.msra.mxu0 %v13795_v27 }
 0xc40   : > { %25591 = vmatmul.mubr.f32.vlgmr.msra.gmra.mrb[112].mxu0 %v34769_v1  ;;  %25593 = vmatprep.subr.mxu0 %v28766_v17 }
 0xc41   : > { %v13873_v49 = vand.u32 4294901760, %v13872_v46  ;;  %25595 = vmatprep.mubr.msk.f32.mxu0 %vm28765_vm3, %v28766_v17 }
 0xc43   : > { %v13874_v29 = vsub.f32 %v13872_v46, %v13873_v49 }
 0xc45   : > { %v13875_v22 = vand.u32 4294901760, %v13874_v29 }
 0xc47   : > { %25594 = vmatpush3.msra.mxu0 %v13875_v22 }
 0xc48   : > { %25596 = vmatmul.mubr.f32.vlgmr.msra.gmra.mrb[112].mxu0 %v34753_v48  ;;  %25598 = vmatprep.subr.mxu0 %v28766_v17 }
 0xc49   : > { %25599 = vmatpush3.msra.mxu0 %v13872_v46  ;;  %25600 = vmatprep.mubr.msk.f32.mxu0 %vm28765_vm3, %v28766_v17 }
 0xc4a   : > { %25603 = vmatprep.subr.mxu0 %v28766_v17 }
 0xc50   : > { %25601 = vmatmul.mubr.f32.vlgmr.msra.gmra.mrb[112].mxu0 %v34756_v25 }
 0xc51   : > { %25604 = vmatpush3.msra.mxu0 %v13795_v27  ;;  %25605 = vmatprep.mubr.msk.f32.mxu0 %vm28765_vm3, %v28766_v17 }
 0xc52   : > { %25608 = vmatprep.subr.mxu0 %v28766_v17 }
 0xc58   : > { %25606 = vmatmul.mubr.f32.vlgmr.msra.gmra.mrb[112].mxu0 %v34759_v54 }
 0xc59   : > { %25609 = vmatpush3.msra.mxu0 %v13873_v49  ;;  %25610 = vmatprep.mubr.msk.f32.mxu0 %vm28765_vm3, %v28766_v17 }
 0xc5a   : > { %25613 = vmatprep.subr.mxu0 %v28766_v17 }
 0xc60   : > { %25611 = vmatmul.mubr.f32.vlgmr.msra.gmra.mrb[112].mxu0 %v34753_v48 }
 0xc61   : > { %25614 = vmatpush3.msra.mxu0 %v13795_v27  ;;  %25615 = vmatprep.mubr.msk.f32.mxu0 %vm28765_vm3, %v28766_v17 }
 0xc62   : > { %27766 = vmatprep.subr.bf16.mxu0 %v28764_v58 }
 0xc68   : > { %25616 = vmatmul.mubr.f32.vlgmr.msra.gmra.mrb[112].mxu0 %v34753_v48 }
 0xc69   : > { %25664 = vmatprep.mubr.msk.f32.mxu0 %vm28765_vm3, %v28766_v17 }
 0xc6a   : > { %v14704_v0 = vpop.f32.mrb[108].mxu1 }
 0xc6b   : > { %v25659_v23 = vpop.f32.mrb[109].mxu1  ;;  %v14708_v3 = vsel %vm11358_vm4, %v14704_v0, -inf }
 0xc6c   : > { %14709 = vmax.xlane.f32.xlu0 %v14708_v3 }
 0xc82   : > { %14719 = vrot.lane.b32.xlu0 %v38167_v51, %s28763_s10 }
 0xc86   : > { %14721 = vrot.lane.b32.xlu0 %v38166_v21, %s28763_s10 }
 0xc8a   : > { %16214 = vrot.lane.b32.xlu0 %v34713_v37, %s28763_s10 }
 0xcf9   : > { %v14710_v57 = vpop.xlane.xlu0 %14709 }
 0xcfa   : > { %v14711_v40 = vsub.f32 %v14704_v0, %v14710_v57  ;;  %v16219_v57 = vsel %vm818_vm1, %v34522_v15, 0 }
 0xcfc   : > { %v14712_v41 = vmul.f32 1.442695, %v14711_v40 }
 0xcfd   : > { %v14720_v24 = vpop.permute.xlu0 %14719 }
 0xcfe   : > { %28690 = vpow2.f32 %v14712_v41  ;;  %v14729_v33 = vand.u32 4294901760, %v14720_v24 }
 0xd00   : > { %v14807_v62 = vsub.f32 %v14720_v24, %v14729_v33 }
 0xd01   : > { %v14722_v18 = vpop.permute.xlu0 %14721 }
 0xd02   : > { %v14808_v26 = vand.u32 4294901760, %v14807_v62  ;;  %v14732_v43 = vand.u32 4294901760, %v14722_v18 }
 0xd04   : > { %v27767_v32 = vpack.c.bf16 %v14732_v43, %v14729_v33  ;;  %v14814_v6 = vsub.f32 %v14722_v18, %v14732_v43  ;;  %v14809_v42 = vsub.f32 %v14807_v62, %v14808_v26 }
 0xd06   : > { %v14815_v51 = vand.u32 4294901760, %v14814_v6  ;;  %v27773_v45 = vpack.c.bf16 %v14814_v6, %v14807_v62  ;;  %27768 = vmatpush3.bf16.msra.mxu0 %v27767_v32  ;;  %v14810_v53 = vand.u32 4294901760, %v14809_v42 }
 0xd07   : > { %27769 = vmatprep.subr.bf16.mxu0 %v28764_v58 }
 0xd08   : > { %v28691_v21 = vpop.eup %28690  ;;  %v14816_v37 = vsub.f32 %v14814_v6, %v14815_v51  ;;  %v27779_v35 = vpack.c.bf16 %v14815_v51, %v14808_v26 }
 0xd09   : > { %v14714_v2 = vsel %vm11358_vm4, %v28691_v21, 0.0 }
 0xd0a   : > { %v14817_v12 = vand.u32 4294901760, %v14816_v37  ;;  %14715 = vadd.xlane.f32.xlu1 %v14714_v2 }
 0xd0c   : > { %v27770_v55 = vpack.c.bf16 %v14817_v12, %v14810_v53 }
 0xd3b   : > { %v34804_v61 = vpop.f32.mrb[112].mxu0 }
 0xd3c   : > { %v25617_v20 = vpop.f32.mrb[113].mxu0 }
 0xd97   : > { %v14716_v44 = vpop.xlane.xlu1 %14715 }
 0xd98   : > { %28692 = vrcp.f32 %v14716_v44 }
 0xda2   : > { %v28693_v16 = vpop.eup %28692 }
 0xda3   : > { %v14718_v31 = vmul.f32 %v28693_v16, %v28691_v21  ;;  %v17578_v16 = vld [vmem:[%s36228_s4 + $0x8] sm:$0xff] }
 0xda5   : > { %v14726_v52 = vsel %vm11358_vm4, %v14718_v31, 0  ;;  %v17594_v31 = vld [vmem:[%s36228_s4 + $0x88] sm:$0xff] }
 0xda6   : > { %v14795_v5 = vand.u32 4294901760, %v14726_v52 }
 0xda8   : > { %v14796_v10 = vsub.f32 %v14726_v52, %v14795_v5  ;;  %v17737_v52 = vand.u32 4294901760, %v17578_v16 }
 0xdaa   : > { %v14797_v36 = vand.u32 4294901760, %v14796_v10 }
 0xdac   : > { %v14798_v59 = vsub.f32 %v14796_v10, %v14797_v36 }
 0xdae   : > { %v14799_v27 = vand.u32 4294901760, %v14798_v59 }
 0xdb0   : > { %25665 = vmatmul.mubr.f32.vlgmr.msra.gmra.mrb[114].mxu0 %v14799_v27 }
 0xdb1   : > { %27771 = vmatpush3.bf16.msra.mxu0 %v27770_v55  ;;  %25671 = vmatprep.mubr.msk.f32.mxu0 %vm28765_vm3, %v28766_v17 }
 0xdb2   : > { %27772 = vmatprep.subr.bf16.mxu0 %v28764_v58 }
 0xdb8   : > { %25672 = vmatmul.mubr.f32.vlgmr.msra.gmra.mrb[114].mxu0 %v14795_v5 }
 0xdb9   : > { %27774 = vmatpush3.bf16.msra.mxu0 %v27773_v45  ;;  %25678 = vmatprep.mubr.msk.f32.mxu0 %vm28765_vm3, %v28766_v17 }
 0xdba   : > { %27775 = vmatprep.subr.bf16.mxu0 %v28764_v58 }
 0xdc0   : > { %25679 = vmatmul.mubr.f32.vlgmr.msra.gmra.mrb[114].mxu0 %v14796_v10 }
 0xdc1   : > { %27777 = vmatpush3.bf16.msra.mxu0 %v27767_v32  ;;  %25685 = vmatprep.mubr.msk.f32.mxu0 %vm28765_vm3, %v28766_v17 }
 0xdc2   : > { %27778 = vmatprep.subr.bf16.mxu0 %v28764_v58 }
 0xdc8   : > { %25686 = vmatmul.mubr.f32.vlgmr.msra.gmra.mrb[114].mxu0 %v14797_v36  ;;  %v17593_v36 = vld [vmem:[%s36228_s4 + $0x80] sm:$0xff] }
 0xdc9   : > { %27780 = vmatpush3.bf16.msra.mxu0 %v27779_v35  ;;  %25692 = vmatprep.mubr.msk.f32.mxu0 %vm28765_vm3, %v28766_v17  ;;  %v17743_v27 = vand.u32 4294901760, %v17593_v36 }
 0xdca   : > { %27781 = vmatprep.subr.bf16.mxu0 %v28764_v58 }
 0xdd0   : > { %25693 = vmatmul.mubr.f32.vlgmr.msra.gmra.mrb[114].mxu0 %v14795_v5 }
 0xdd1   : > { %27783 = vmatpush3.bf16.msra.mxu0 %v27767_v32  ;;  %25699 = vmatprep.mubr.msk.f32.mxu0 %vm28765_vm3, %v28766_v17 }
 0xdd8   : > { %25700 = vmatmul.mubr.f32.vlgmr.msra.gmra.mrb[114].mxu0 %v14795_v5  ;;  %v34898_v5 = vsub.f32 %v17578_v16, %v17737_v52 }
 0xdd9   : > { %25704 = vmatprep.mubr.f32.mxu0 %v34562_v13  ;;  %v16215_v13 = vpop.permute.xlu0 %16214 }
 0xeab   : > { %v15183_v46 = vpop.f32.mrb[114].mxu0 }
 0xeac   : > { %v15187_v49 = vmul.f32 %v34766_v38, %v15183_v46  ;;  %v25701_v29 = vpop.f32.mrb[115].mxu0  ;;  %v17610_v46 = vld [vmem:[%s36228_s4 + $0x108] sm:$0xff] }
 0xead   : > { %v17745_v29 = vand.u32 4294901760, %v17610_v46 }
 0xeae   : > { %v15189_v22 = vand.u32 4294901760, %v15187_v49 }
 0xeb0   : > { %v15276_v0 = vsub.f32 %v15187_v49, %v15189_v22  ;;  %25702 = vmatprep.subr.mxu0 %v15189_v22  ;;  %v17626_v49 = vld [vmem:[%s36228_s4 + $0x188] sm:$0xff] }
 0xeb1   : > { %25703 = vmatpush3.msra.mxu0 %v15189_v22 }
 0xeb2   : > { %25705 = vmatmul.mubr.f32.vlgmr.msra.gmra.mrb[116].mxu0 %v34580_v39  ;;  %v15277_v23 = vand.u32 4294901760, %v15276_v0  ;;  %v16216_v39 = vsel %vm818_vm1, %v16215_v13, 0 }
 0xeb3   : > { %25709 = vmatprep.mubr.f32.mxu0 %v34552_v11  ;;  %v16287_v40 = vand.u32 4294901760, %v16216_v39 }
 0xeb4   : > { %v15278_v58 = vsub.f32 %v15276_v0, %v15277_v23 }
 0xeb5   : > { %v16288_v41 = vsub.f32 %v16216_v39, %v16287_v40  ;;  %v34924_v39 = vsub.f32 %v17610_v46, %v17745_v29 }
 0xeb6   : > { %v15279_v3 = vand.u32 4294901760, %v15278_v58 }
 0xeb8   : > { %25707 = vmatprep.subr.mxu0 %v15279_v3 }
 0xeb9   : > { %25708 = vmatpush3.msra.mxu0 %v15279_v3  ;;  %v34922_v3 = vsub.f32 %v17593_v36, %v17743_v27  ;;  %v17611_v36 = vld [vmem:[%s36228_s4 + $0x110] sm:$0xff] }
 0xeba   : > { %25710 = vmatmul.mubr.f32.vlgmr.msra.gmra.mrb[116].mxu0 %v34569_v60  ;;  %25712 = vmatprep.subr.mxu0 %v15276_v0 }
 0xebb   : > { %25713 = vmatpush3.msra.mxu0 %v15276_v0  ;;  %25714 = vmatprep.mubr.f32.mxu0 %v34555_v34  ;;  %v16222_v34 = vand.u32 4294901760, %v16219_v57  ;;  %v17609_v0 = vld [vmem:[%s36228_s4 + $0x100] sm:$0xff] }
 0xebc   : > { %25717 = vmatprep.subr.mxu0 %v15189_v22  ;;  %v17747_v13 = vand.u32 4294901760, %v17609_v0 }
 0xec2   : > { %25715 = vmatmul.mubr.f32.vlgmr.msra.gmra.mrb[116].mxu0 %v34572_v8  ;;  %v16299_v8 = vsub.f32 %v16219_v57, %v16222_v34 }
 0xec3   : > { %25718 = vmatpush3.msra.mxu0 %v15189_v22  ;;  %25719 = vmatprep.mubr.f32.mxu0 %v34558_v4  ;;  %v16289_v4 = vand.u32 4294901760, %v16288_v41 }
 0xec4   : > { %25722 = vmatprep.subr.mxu0 %v15277_v23  ;;  %v16300_v24 = vand.u32 4294901760, %v16299_v8 }
 0xec5   : > { %v16290_v33 = vsub.f32 %v16288_v41, %v16289_v4 }
 0xec6   : > { %v16301_v62 = vsub.f32 %v16299_v8, %v16300_v24 }
 0xec8   : > { %v16302_v18 = vand.u32 4294901760, %v16301_v62 }
 0xeca   : > { %25720 = vmatmul.mubr.f32.vlgmr.msra.gmra.mrb[116].mxu0 %v34575_v19  ;;  %v16291_v19 = vand.u32 4294901760, %v16290_v33 }
 0xecb   : > { %25723 = vmatpush3.msra.mxu0 %v15277_v23  ;;  %25724 = vmatprep.mubr.f32.mxu0 %v34552_v11  ;;  %v17625_v23 = vld [vmem:[%s36228_s4 + $0x180] sm:$0xff] }
 0xecc   : > { %25727 = vmatprep.subr.mxu0 %v15189_v22 }
 0xed2   : > { %25725 = vmatmul.mubr.f32.vlgmr.msra.gmra.mrb[116].mxu0 %v34569_v60 }
 0xed3   : > { %25728 = vmatpush3.msra.mxu0 %v15189_v22  ;;  %25729 = vmatprep.mubr.f32.mxu0 %v34552_v11  ;;  %v17749_v22 = vand.u32 4294901760, %v17626_v49 }
 0xed4   : > { %25798 = vmatprep.subr.mxu0 %v28766_v17 }
 0xed5   : > { %v34926_v57 = vsub.f32 %v17626_v49, %v17749_v22  ;;  %v18339_v49 = vand.u32 4294901760, %v17611_v36 }
 0xeda   : > { %25730 = vmatmul.mubr.f32.vlgmr.msra.gmra.mrb[116].mxu0 %v34569_v60 }
 0xedb   : > { %25799 = vmatpush3.xpose.msra.mxu0 %v16222_v34  ;;  %25800 = vmatprep.mubr.msk.f32.mxu0 %vm28765_vm3, %v28766_v17 }
 0xedc   : > { %25803 = vmatprep.subr.mxu0 %v28766_v17 }
 0xede   : > { %25801 = vmatmul.mubr.f32.vlgmr.msra.gmra.mrb[118].mxu0 %v16291_v19 }
 0xedf   : > { %25804 = vmatpush3.xpose.msra.mxu0 %v16302_v18  ;;  %25805 = vmatprep.mubr.msk.f32.mxu0 %vm28765_vm3, %v28766_v17 }
 0xee0   : > { %25808 = vmatprep.subr.mxu0 %v28766_v17 }
 0xee6   : > { %25806 = vmatmul.mubr.f32.vlgmr.msra.gmra.mrb[118].mxu0 %v16287_v40 }
 0xee7   : > { %25809 = vmatpush3.xpose.msra.mxu0 %v16299_v8  ;;  %25810 = vmatprep.mubr.msk.f32.mxu0 %vm28765_vm3, %v28766_v17 }
 0xee8   : > { %25813 = vmatprep.subr.mxu0 %v28766_v17 }
 0xeee   : > { %25811 = vmatmul.mubr.f32.vlgmr.msra.gmra.mrb[118].mxu0 %v16288_v41 }
 0xeef   : > { %25814 = vmatpush3.xpose.msra.mxu0 %v16222_v34  ;;  %25815 = vmatprep.mubr.msk.f32.mxu0 %vm28765_vm3, %v28766_v17 }
 0xef0   : > { %25818 = vmatprep.subr.mxu0 %v28766_v17 }
 0xef6   : > { %25816 = vmatmul.mubr.f32.vlgmr.msra.gmra.mrb[118].mxu0 %v16289_v4 }
 0xef7   : > { %25819 = vmatpush3.xpose.msra.mxu0 %v16300_v24  ;;  %25820 = vmatprep.mubr.msk.f32.mxu0 %vm28765_vm3, %v28766_v17 }
 0xef8   : > { %25823 = vmatprep.subr.mxu0 %v28766_v17 }
 0xefe   : > { %25821 = vmatmul.mubr.f32.vlgmr.msra.gmra.mrb[118].mxu0 %v16287_v40 }
 0xeff   : > { %25824 = vmatpush3.xpose.msra.mxu0 %v16222_v34  ;;  %25825 = vmatprep.mubr.msk.f32.mxu0 %vm28765_vm3, %v28766_v17  ;;  %v34928_v34 = vsub.f32 %v17609_v0, %v17747_v13 }
 0xf00   : > { %25828 = vmatprep.subr.mxu0 %v28766_v17 }
 0xf06   : > { %25826 = vmatmul.mubr.f32.vlgmr.msra.gmra.mrb[118].mxu0 %v16287_v40  ;;  %v17751_v40 = vand.u32 4294901760, %v17625_v23 }
 0xf07   : > { %25830 = vmatprep.mubr.msk.f32.mxu0 %vm28765_vm3, %v28766_v17 }
 0xf08   : > { %v34930_v41 = vsub.f32 %v17625_v23, %v17751_v40  ;;  %v35013_v23 = vsub.f32 %v17611_v36, %v18339_v49 }
 0xfad   : > { %v25731_v11 = vpop.f32.mrb[116].mxu0 }
 0xfae   : > { %v15681_v60 = vsel %vm818_vm1, %v25731_v11, 0  ;;  %v15667_v26 = vpop.f32.mrb[117].mxu0 }
 0xfaf   : > { %v15762_v43 = vand.u32 4294901760, %v15681_v60  ;;  %v15678_v32 = vsel %vm818_vm1, %v15667_v26, 0 }
 0xfb0   : > { %v15752_v6 = vand.u32 4294901760, %v15678_v32 }
 0xfb1   : > { %v15763_v42 = vsub.f32 %v15681_v60, %v15762_v43 }
 0xfb2   : > { %v15753_v51 = vsub.f32 %v15678_v32, %v15752_v6 }
 0xfb3   : > { %v15764_v45 = vand.u32 4294901760, %v15763_v42 }
 0xfb4   : > { %v15754_v21 = vand.u32 4294901760, %v15753_v51 }
 0xfb5   : > { %v15765_v37 = vsub.f32 %v15763_v42, %v15764_v45 }
 0xfb6   : > { %v15755_v35 = vsub.f32 %v15753_v51, %v15754_v21 }
 0xfb7   : > { %v15766_v53 = vand.u32 4294901760, %v15765_v37 }
 0xfb8   : > { %v15756_v2 = vand.u32 4294901760, %v15755_v35 }
 0xfba   : > { %25740 = vmatprep.mubr.f32.mxu1 %v15756_v2 }
 0xfbb   : > { %25741 = vmatmul.mubr.f32.vlgmr.msra.gmra.mrb[110].mxu1 %v15766_v53 }
 0xfbc   : > { %27795 = vmatpush3.bf16.msra.mxu1 %v34641_v14  ;;  %25751 = vmatprep.mubr.f32.mxu1 %v15752_v6 }
 0xfbd   : > { %27797 = vmatprep.subr.bf16.mxu1 %v34645_v56 }
 0xfc0   : > { %27799 = vmatpush3.bf16.msra.mxu1 %v34645_v56 }
 0xfc1   : > { %27801 = vmatprep.subr.bf16.mxu1 %v34643_v30 }
 0xfc3   : > { %25752 = vmatmul.mubr.f32.vlgmr.msra.gmra.mrb[110].mxu1 %v15762_v43 }
 0xfc4   : > { %27803 = vmatpush3.bf16.msra.mxu1 %v34643_v30  ;;  %25762 = vmatprep.mubr.f32.mxu1 %v15753_v51 }
 0xfc5   : > { %27805 = vmatprep.subr.bf16.mxu1 %v34647_v9 }
 0xfc8   : > { %27807 = vmatpush3.bf16.msra.mxu1 %v34647_v9 }
 0xfc9   : > { %27809 = vmatprep.subr.bf16.mxu1 %v34633_v63 }
 0xfcb   : > { %25763 = vmatmul.mubr.f32.vlgmr.msra.gmra.mrb[110].mxu1 %v15763_v42 }
 0xfcc   : > { %27811 = vmatpush3.bf16.msra.mxu1 %v34633_v63  ;;  %25773 = vmatprep.mubr.f32.mxu1 %v15754_v21 }
 0xfcd   : > { %27813 = vmatprep.subr.bf16.mxu1 %v34635_v50 }
 0xfd0   : > { %27815 = vmatpush3.bf16.msra.mxu1 %v34635_v50 }
 0xfd1   : > { %27817 = vmatprep.subr.bf16.mxu1 %v34650_v7 }
 0xfd3   : > { %25774 = vmatmul.mubr.f32.vlgmr.msra.gmra.mrb[110].mxu1 %v15764_v45  ;;  %v17732_v45 = vsel %vm818_vm1, %v34804_v61, 0  ;;  %v34963_v61 = vpack.c.bf16 %v17749_v22, %v17745_v29 }
 0xfd4   : > { %27819 = vmatpush3.bf16.msra.mxu1 %v34650_v7  ;;  %25784 = vmatprep.mubr.f32.mxu1 %v15752_v6  ;;  %v34948_v21 = vand.u32 4294901760, %v17732_v45 }
 0xfd5   : > { %27821 = vmatprep.subr.bf16.mxu1 %v34652_v47 }
 0xfd6   : > { %v34955_v35 = vsub.f32 %v17732_v45, %v34948_v21 }
 0xfd8   : > { %27823 = vmatpush3.bf16.msra.mxu1 %v34652_v47  ;;  %v34961_v53 = vand.u32 4294901760, %v34955_v35 }
 0xfd9   : > { %v16663_v14 = vpop.f32.mrb[118].mxu0  ;;  %27825 = vmatprep.subr.bf16.mxu1 %v34633_v63 }
 0xfda   : > { %v25827_v30 = vpop.f32.mrb[119].mxu0  ;;  %v16667_v56 = vsel %vm309_vm0, %v16663_v14, -inf }
 0xfdb   : > { %16668 = vmax.xlane.f32.xlu0 %v16667_v56  ;;  %25785 = vmatmul.mubr.f32.vlgmr.msra.gmra.mrb[110].mxu1 %v15762_v43  ;;  %v17813_v30 = vsub.f32 %v34955_v35, %v34961_v53 }
 0xfdc   : > { %27827 = vmatpush3.bf16.msra.mxu1 %v34633_v63  ;;  %25795 = vmatprep.mubr.f32.mxu1 %v15752_v6 }
 0xfdd   : > { %27829 = vmatprep.subr.bf16.mxu1 %v34635_v50  ;;  %v34973_v56 = vand.u32 4294901760, %v17813_v30 }
 0xfe0   : > { %27831 = vmatpush3.bf16.msra.mxu1 %v34635_v50 }
 0xfe1   : > { %25858 = vmatprep.subr.mxu1 %v28766_v17 }
 0xfe3   : > { %25796 = vmatmul.mubr.f32.vlgmr.msra.gmra.mrb[110].mxu1 %v15762_v43 }
 0xfe4   : > { %25860 = vmatprep.mubr.msk.f32.mxu1 %vm28765_vm3, %v28766_v17 }
0x1068   : > { %v16669_v9 = vpop.xlane.xlu0 %16668 }
0x1069   : > { %v16670_v7 = vsub.f32 %v16663_v14, %v16669_v9  ;;  %v34966_v14 = vpack.c.bf16 %v17751_v40, %v17747_v13  ;;  %v17580_v9 = vld [vmem:[%s36228_s4 + $0x18] sm:$0xff] }
0x106b   : > { %v16671_v47 = vmul.f32 1.442695, %v16670_v7  ;;  %v17596_v7 = vld [vmem:[%s36228_s4 + $0x98] sm:$0xff] }
0x106d   : > { %28694 = vpow2.f32 %v16671_v47  ;;  %v18329_v47 = vand.u32 4294901760, %v17580_v9 }
0x1077   : > { %v28695_v12 = vpop.eup %28694 }
0x1078   : > { %v16673_v63 = vsel %vm309_vm0, %v28695_v12, 0.0 }
0x1079   : > { %16674 = vadd.xlane.f32.xlu1 %v16673_v63  ;;  %v34983_v63 = vsub.f32 %v17580_v9, %v18329_v47 }
0x108a   : > { %16678 = vrot.lane.b32.xlu1 %v34522_v15, %s28763_s10  ;;  %v17741_v15 = vand.u32 4294901760, %v17594_v31 }
0x108c   : > { %v34900_v10 = vsub.f32 %v17594_v31, %v17741_v15  ;;  %v34950_v37 = vpack.c.bf16 %v17741_v15, %v17737_v52  ;;  %v17612_v31 = vld [vmem:[%s36228_s4 + $0x118] sm:$0xff] }
0x108d   : > { %v17628_v52 = vld [vmem:[%s36228_s4 + $0x198] sm:$0xff]  ;;  %v18337_v15 = vand.u32 4294901760, %v17612_v31 }
0x108f   : > { %v35009_v29 = vsub.f32 %v17612_v31, %v18337_v15 }
0x10b6   : > { %v25797_v50 = vpop.f32.mrb[110].mxu1 }
0x10b7   : > { %v28234_v55 = vadd.f32 %v25797_v50, %v34689_v28  ;;  %v16201_v20 = vpop.f32.mrb[111].mxu1 }
0x10b8   : > { %v28235_v44 = vadd.f32 %v34689_v28, %v16201_v20  ;;  %v17577_v28 = vld [vmem:[%s36228_s4] sm:$0xff]  ;;  %v17595_v20 = vld [vmem:[%s36228_s4 + $0x90] sm:$0xff] }
0x10b9   : > { %22651 = vst.msk [vmem:[%s34693_s19 + $0x18] sm:$0xff] %vm818_vm1, %v28234_v55  ;;  %v17739_v59 = vand.u32 4294901760, %v17577_v28  ;;  %v17579_v55 = vld [vmem:[%s36228_s4 + $0x10] sm:$0xff]  ;;  %v18335_v16 = vand.u32 4294901760, %v17595_v20 }
0x10ba   : > { %22650 = vst.msk [vmem:[%s34693_s19 + $0x10] sm:$0xff] %vm818_vm1, %v28235_v44  ;;  %v18331_v44 = vand.u32 4294901760, %v17579_v55  ;;  %s28767_s19 = smov [#allocation2]  }
0x10bb   : > { %v34920_v58 = vsub.f32 %v17577_v28, %v17739_v59  ;;  %v34958_v2 = vpack.c.bf16 %v17743_v27, %v17739_v59  ;;  %v18341_v28 = vand.u32 4294901760, %v17628_v52  ;;  %v17627_v59 = vld [vmem:[%s36228_s4 + $0x190] sm:$0xff]  ;;  %v35007_v46 = vsub.f32 %v17595_v20, %v18335_v16  ;;  %s28703_s14 = sshll.u32 %s28767_s19, 4  ;;  %s28704_s14 = int_to_ptr.vmem [resolvable:$false] %s28703_s14 }
0x10bc   : > { %v35005_v27 = vsub.f32 %v17579_v55, %v18331_v44  ;;  %v18343_v0 = vand.u32 4294901760, %v17627_v59  ;;  %s28705_s15 = scalar_lea.vmem %s28704_s14, 1024  ;;  %p28706_p0 = scmp.lt.s32.totalorder %s36111_s11, %s28704_s14 }
0x10bd   : > { %v35011_v22 = vsub.f32 %v17628_v52, %v18341_v28  ;;  %p28707_p1 = scmp.lt.s32.totalorder %s28705_s15, %s28699_s13 }
0x10be   : > { %v35015_v13 = vsub.f32 %v17627_v59, %v18343_v0 }
0x10bf   : > { %p28708_p2 = por %p28707_p1, %p28706_p0 }
0x10c1   : > { %p28709_p3 = pnand %p28708_p2, %p28702_p13 }
0x1106   : > { %v16675_v8 = vpop.xlane.xlu1 %16674 }
0x1107   : > { %28696 = vrcp.f32 %v16675_v8 }
0x110a   : > { %v16679_v4 = vpop.permute.xlu1 %16678 }
0x110b   : > { %v16685_v24 = vand.u32 4294901760, %v16679_v4 }
0x110d   : > { %25829 = vmatpush3.msra.mxu0 %v16685_v24  ;;  %v16762_v19 = vsub.f32 %v16679_v4, %v16685_v24 }
0x110e   : > { %25833 = vmatprep.subr.mxu0 %v28766_v17 }
0x110f   : > { %v16763_v60 = vand.u32 4294901760, %v16762_v19 }
0x1111   : > { %v28697_v33 = vpop.eup %28696  ;;  %v16764_v32 = vsub.f32 %v16762_v19, %v16763_v60 }
0x1112   : > { %v16677_v62 = vmul.f32 %v28697_v33, %v28695_v12  ;;  %v18333_v12 = vand.u32 4294901760, %v17596_v7 }
0x1113   : > { %v16765_v51 = vand.u32 4294901760, %v16764_v32  ;;  %v17852_v32 = vand.u32 4294901760, %v34922_v3 }
0x1114   : > { %v16682_v18 = vsel %vm309_vm0, %v16677_v62, 0  ;;  %v34985_v50 = vsub.f32 %v17596_v7, %v18333_v12 }
0x1115   : > { %v16750_v11 = vand.u32 4294901760, %v16682_v18 }
0x1117   : > { %v16751_v26 = vsub.f32 %v16682_v18, %v16750_v11 }
0x1119   : > { %v16752_v43 = vand.u32 4294901760, %v16751_v26 }
0x111b   : > { %v16753_v6 = vsub.f32 %v16751_v26, %v16752_v43 }
0x111d   : > { %v16754_v42 = vand.u32 4294901760, %v16753_v6  ;;  %v18432_v6 = vand.u32 4294901760, %v35005_v27 }
0x111f   : > { %25831 = vmatmul.mubr.f32.vlgmr.msra.gmra.mrb[120].mxu0 %v16754_v42  ;;  %v18444_v42 = vand.u32 4294901760, %v35007_v46 }
0x1120   : > { %25834 = vmatpush3.msra.mxu0 %v16765_v51  ;;  %25835 = vmatprep.mubr.msk.f32.mxu0 %vm28765_vm3, %v28766_v17 }
0x1121   : > { %25838 = vmatprep.subr.mxu0 %v28766_v17  ;;  %v18445_v55 = vsub.f32 %v35007_v46, %v18444_v42 }
0x1123   : > { %v18446_v36 = vand.u32 4294901760, %v18445_v55 }
0x1127   : > { %25836 = vmatmul.mubr.f32.vlgmr.msra.gmra.mrb[120].mxu0 %v16750_v11 }
0x1128   : > { %25839 = vmatpush3.msra.mxu0 %v16762_v19  ;;  %25840 = vmatprep.mubr.msk.f32.mxu0 %vm28765_vm3, %v28766_v17 }
0x1129   : > { %25843 = vmatprep.subr.mxu0 %v28766_v17 }
0x112f   : > { %25841 = vmatmul.mubr.f32.vlgmr.msra.gmra.mrb[120].mxu0 %v16751_v26  ;;  %v18438_v26 = vand.u32 4294901760, %v34985_v50 }
0x1130   : > { %25844 = vmatpush3.msra.mxu0 %v16685_v24  ;;  %25845 = vmatprep.mubr.msk.f32.mxu0 %vm28765_vm3, %v28766_v17 }
0x1131   : > { %25848 = vmatprep.subr.mxu0 %v28766_v17  ;;  %v18439_v9 = vsub.f32 %v34985_v50, %v18438_v26 }
0x1133   : > { %v18440_v31 = vand.u32 4294901760, %v18439_v9  ;;  %v18456_v9 = vand.u32 4294901760, %v35013_v23 }
0x1137   : > { %25846 = vmatmul.mubr.f32.vlgmr.msra.gmra.mrb[120].mxu0 %v16752_v43  ;;  %v17840_v43 = vand.u32 4294901760, %v34920_v58 }
0x1138   : > { %25849 = vmatpush3.msra.mxu0 %v16763_v60  ;;  %25850 = vmatprep.mubr.msk.f32.mxu0 %vm28765_vm3, %v28766_v17  ;;  %v17846_v60 = vand.u32 4294901760, %v34900_v10 }
0x1139   : > { %25853 = vmatprep.subr.mxu0 %v28766_v17  ;;  %v17841_v7 = vsub.f32 %v34920_v58, %v17840_v43 }
0x113a   : > { %v17847_v45 = vsub.f32 %v34900_v10, %v17846_v60 }
0x113b   : > { %v17842_v52 = vand.u32 4294901760, %v17841_v7  ;;  %v18468_v7 = vand.u32 4294901760, %v35015_v13 }
0x113f   : > { %25851 = vmatmul.mubr.f32.vlgmr.msra.gmra.mrb[120].mxu0 %v16750_v11 }
0x1140   : > { %25854 = vmatpush3.msra.mxu0 %v16685_v24  ;;  %25855 = vmatprep.mubr.msk.f32.mxu0 %vm28765_vm3, %v28766_v17 }
0x1141   : > { %27833 = vmatprep.subr.bf16.mxu0 %v34950_v37 }
0x1147   : > { %25856 = vmatmul.mubr.f32.vlgmr.msra.gmra.mrb[120].mxu0 %v16750_v11  ;;  %v17834_v11 = vand.u32 4294901760, %v34898_v5 }
0x1148   : > { %27835 = vmatpush1.bf16.msra.mxu0 %v34958_v2  ;;  %17809 = vmatprep.mubr.f32.mxu0 %v28766_v17 }
0x1149   : > { %27837 = vmatprep.subr.bf16.mxu0 %v34963_v61  ;;  %v17835_v51 = vsub.f32 %v34898_v5, %v17834_v11 }
0x114b   : > { %v17836_v20 = vand.u32 4294901760, %v17835_v51  ;;  %v17876_v51 = vand.u32 4294901760, %v34930_v41 }
0x114c   : > { %27839 = vmatpush1.bf16.msra.mxu0 %v34966_v14 }
0x114f   : > { %17815 = vmatmul.mubr.f32.vlgmr.msra.gmra.mrb[122].mxu0 %v34973_v56 }
0x1150   : > { %17820 = vmatprep.mubr.f32.mxu0 %v28766_v17 }
0x121a   : > { %v17126_v40 = vpop.f32.mrb[120].mxu0 }
0x121b   : > { %v17130_v8 = vmul.f32 %v34766_v38, %v17126_v40  ;;  %v25857_v4 = vpop.f32.mrb[121].mxu0  ;;  %v35035_v38 = vpack.c.bf16 %v18333_v12, %v18329_v47  ;;  %v17853_v47 = vsub.f32 %v34922_v3, %v17852_v32  ;;  %v18433_v12 = vsub.f32 %v35005_v27, %v18432_v6 }
0x121c   : > { %v17870_v40 = vand.u32 4294901760, %v34926_v57 }
0x121d   : > { %v17132_v24 = vand.u32 4294901760, %v17130_v8 }
0x121f   : > { %v17209_v33 = vsub.f32 %v17130_v8, %v17132_v24  ;;  %25859 = vmatpush3.msra.mxu1 %v17132_v24 }
0x1220   : > { %25861 = vmatmul.mubr.f32.vlgmr.msra.gmra.mrb[112].mxu1 %v34769_v1  ;;  %25863 = vmatprep.subr.mxu1 %v28766_v17  ;;  %v35043_v1 = vpack.c.bf16 %v18341_v28, %v18337_v15  ;;  %v17854_v15 = vand.u32 4294901760, %v17853_v47  ;;  %v18434_v28 = vand.u32 4294901760, %v18433_v12 }
0x1221   : > { %v17210_v62 = vand.u32 4294901760, %v17209_v33  ;;  %25865 = vmatprep.mubr.msk.f32.mxu1 %vm28765_vm3, %v28766_v17 }
0x1222   : > { %v27842_v8 = vpack.c.bf16 %v17854_v15, %v17842_v52  ;;  %v27890_v4 = vpack.c.bf16 %v18446_v36, %v18434_v28  ;;  %v18469_v52 = vsub.f32 %v35015_v13, %v18468_v7 }
0x1223   : > { %v17211_v19 = vsub.f32 %v17209_v33, %v17210_v62 }
0x1225   : > { %v17212_v18 = vand.u32 4294901760, %v17211_v19  ;;  %v17871_v19 = vsub.f32 %v34926_v57, %v17870_v40 }
0x1227   : > { %25864 = vmatpush3.msra.mxu1 %v17212_v18  ;;  %v17864_v18 = vand.u32 4294901760, %v34928_v34  ;;  %v17872_v12 = vand.u32 4294901760, %v17871_v19 }
0x1228   : > { %25866 = vmatmul.mubr.f32.vlgmr.msra.gmra.mrb[112].mxu1 %v34753_v48  ;;  %25868 = vmatprep.subr.mxu1 %v28766_v17 }
0x1229   : > { %25869 = vmatpush3.msra.mxu1 %v17209_v33  ;;  %25870 = vmatprep.mubr.msk.f32.mxu1 %vm28765_vm3, %v28766_v17  ;;  %v18462_v33 = vand.u32 4294901760, %v35011_v22  ;;  %v17865_v55 = vsub.f32 %v34928_v34, %v17864_v18 }
0x122a   : > { %25873 = vmatprep.subr.mxu1 %v28766_v17 }
0x122b   : > { %v17866_v28 = vand.u32 4294901760, %v17865_v55  ;;  %v27900_v55 = vpack.c.bf16 %v35011_v22, %v35009_v29 }
0x1230   : > { %25871 = vmatmul.mubr.f32.vlgmr.msra.gmra.mrb[112].mxu1 %v34756_v25  ;;  %v35041_v25 = vpack.c.bf16 %v18335_v16, %v18331_v44  ;;  %v17848_v44 = vand.u32 4294901760, %v17847_v45 }
0x1231   : > { %25874 = vmatpush3.msra.mxu1 %v17132_v24  ;;  %25875 = vmatprep.mubr.msk.f32.mxu1 %vm28765_vm3, %v28766_v17 }
0x1232   : > { %25878 = vmatprep.subr.mxu1 %v28766_v17  ;;  %v27840_v59 = vpack.c.bf16 %v17848_v44, %v17836_v20  ;;  %v17877_v20 = vsub.f32 %v34930_v41, %v17876_v51 }
0x1234   : > { %27841 = vmatprep.subr.bf16.mxu0 %v27840_v59  ;;  %v17878_v36 = vand.u32 4294901760, %v17877_v20  ;;  %v27848_v59 = vpack.c.bf16 %v34900_v10, %v34898_v5  ;;  %v27854_v20 = vpack.c.bf16 %v34930_v41, %v34928_v34  ;;  %v35134_v34 = vpack.c.bf16 %v17852_v32, %v17840_v43 }
0x1235   : > { %27843 = vmatpush1.bf16.msra.mxu0 %v27842_v8  ;;  %v35140_v5 = vpack.c.bf16 %v18444_v42, %v18432_v6  ;;  %v17581_v6 = vld [vmem:[%s36228_s4 + $0x20] sm:$0xff] }
0x1236   : > { %v27846_v19 = vpack.c.bf16 %v17878_v36, %v17866_v28  ;;  %v17597_v42 = vld [vmem:[%s36228_s4 + $0xa0] sm:$0xff] }
0x1238   : > { %25876 = vmatmul.mubr.f32.vlgmr.msra.gmra.mrb[112].mxu1 %v34759_v54  ;;  %v35047_v54 = vpack.c.bf16 %v18343_v0, %v18339_v49  ;;  %v17858_v0 = vand.u32 4294901760, %v34924_v39 }
0x1239   : > { %25879 = vmatpush3.msra.mxu1 %v17210_v62  ;;  %25880 = vmatprep.mubr.msk.f32.mxu1 %vm28765_vm3, %v28766_v17 }
0x123a   : > { %25883 = vmatprep.subr.mxu1 %v28766_v17  ;;  %v17859_v62 = vsub.f32 %v34924_v39, %v17858_v0  ;;  %v35142_v10 = vpack.c.bf16 %v17870_v40, %v17858_v0  ;;  %v17583_v40 = vld [vmem:[%s36228_s4 + $0x30] sm:$0xff] }
0x123b   : > { %v19515_v28 = vand.u32 4294901760, %v17583_v40 }
0x123c   : > { %v17860_v47 = vand.u32 4294901760, %v17859_v62  ;;  %v27896_v62 = vpack.c.bf16 %v34985_v50, %v34983_v63  ;;  %v35148_v50 = vpack.c.bf16 %v18468_v7, %v18456_v9  ;;  %v18927_v7 = vand.u32 4294901760, %v17597_v42 }
0x123e   : > { %v27844_v15 = vpack.c.bf16 %v17872_v12, %v17860_v47  ;;  %v27852_v47 = vpack.c.bf16 %v34926_v57, %v34924_v39  ;;  %v35122_v39 = vpack.c.bf16 %v17846_v60, %v17834_v11  ;;  %v17582_v11 = vld [vmem:[%s36228_s4 + $0x28] sm:$0xff] }
0x123f   : > { %v17598_v60 = vld [vmem:[%s36228_s4 + $0xa8] sm:$0xff]  ;;  %v18921_v43 = vand.u32 4294901760, %v17582_v11 }
0x1240   : > { %25881 = vmatmul.mubr.f32.vlgmr.msra.gmra.mrb[112].mxu1 %v34753_v48  ;;  %27845 = vmatprep.subr.bf16.mxu0 %v27844_v15  ;;  %v18925_v32 = vand.u32 4294901760, %v17598_v60 }
0x1241   : > { %25884 = vmatpush3.msra.mxu1 %v17132_v24  ;;  %25885 = vmatprep.mubr.msk.f32.mxu1 %vm28765_vm3, %v28766_v17  ;;  %v18450_v24 = vand.u32 4294901760, %v35009_v29  ;;  %v35231_v15 = vsub.f32 %v17582_v11, %v18921_v43 }
0x1242   : > { %27881 = vmatprep.subr.bf16.mxu1 %v35035_v38  ;;  %27847 = vmatpush1.bf16.msra.mxu0 %v27846_v19  ;;  %v17629_v19 = vld [vmem:[%s36228_s4 + $0x1a0] sm:$0xff] }
0x1243   : > { %v18451_v45 = vsub.f32 %v35009_v29, %v18450_v24  ;;  %27849 = vmatprep.subr.bf16.mxu0 %v27848_v59  ;;  %v35144_v41 = vpack.c.bf16 %v18462_v33, %v18450_v24  ;;  %v17599_v24 = vld [vmem:[%s36228_s4 + $0xb0] sm:$0xff]  ;;  %v17613_v59 = vld [vmem:[%s36228_s4 + $0x120] sm:$0xff] }
0x1244   : > { %v19519_v36 = vand.u32 4294901760, %v17599_v24 }
0x1245   : > { %v18452_v44 = vand.u32 4294901760, %v18451_v45  ;;  %v27850_v45 = vpack.c.bf16 %v34922_v3, %v34920_v58 }
0x1248   : > { %25886 = vmatmul.mubr.f32.vlgmr.msra.gmra.mrb[112].mxu1 %v34753_v48  ;;  %v18426_v48 = vand.u32 4294901760, %v34983_v63 }
0x1249   : > { %27883 = vmatpush1.bf16.msra.mxu1 %v35041_v25  ;;  %18401 = vmatprep.mubr.f32.mxu1 %v28766_v17 }
0x124a   : > { %27885 = vmatprep.subr.bf16.mxu1 %v35043_v1  ;;  %v18427_v30 = vsub.f32 %v34983_v63, %v18426_v48  ;;  %v35128_v57 = vpack.c.bf16 %v18438_v26, %v18426_v48  ;;  %v35146_v63 = vpack.c.bf16 %v17876_v51, %v17864_v18  ;;  %v17584_v48 = vld [vmem:[%s36228_s4 + $0x38] sm:$0xff]  ;;  %v17614_v18 = vld [vmem:[%s36228_s4 + $0x128] sm:$0xff] }
0x124b   : > { %v17600_v26 = vld [vmem:[%s36228_s4 + $0xb8] sm:$0xff]  ;;  %v19513_v0 = vand.u32 4294901760, %v17584_v48  ;;  %v17630_v51 = vld [vmem:[%s36228_s4 + $0x1a8] sm:$0xff] }
0x124c   : > { %v18428_v16 = vand.u32 4294901760, %v18427_v30  ;;  %v18463_v30 = vsub.f32 %v35011_v22, %v18462_v33  ;;  %v19517_v33 = vand.u32 4294901760, %v17600_v26 }
0x124d   : > { %27887 = vmatpush1.bf16.msra.mxu1 %v35047_v54 }
0x124e   : > { %v27888_v49 = vpack.c.bf16 %v18440_v31, %v18428_v16  ;;  %v18464_v16 = vand.u32 4294901760, %v18463_v30  ;;  %v18457_v31 = vsub.f32 %v35013_v23, %v18456_v9  ;;  %v27898_v30 = vpack.c.bf16 %v35007_v46, %v35005_v27 }
0x124f   : > { %v18923_v9 = vand.u32 4294901760, %v17581_v6 }
0x1250   : > { %18407 = vmatmul.mubr.f32.vlgmr.msra.gmra.mrb[114].mxu1 %v34973_v56  ;;  %27889 = vmatprep.subr.bf16.mxu1 %v27888_v49  ;;  %v27892_v49 = vpack.c.bf16 %v18464_v16, %v18452_v44  ;;  %v18458_v8 = vand.u32 4294901760, %v18457_v31  ;;  %v27902_v44 = vpack.c.bf16 %v35015_v13, %v35013_v23  ;;  %v17616_v16 = vld [vmem:[%s36228_s4 + $0x138] sm:$0xff] }
0x1251   : > { %18412 = vmatprep.mubr.f32.mxu1 %v28766_v17  ;;  %27891 = vmatpush1.bf16.msra.mxu1 %v27890_v4  ;;  %v18470_v4 = vand.u32 4294901760, %v18469_v52  ;;  %v17632_v31 = vld [vmem:[%s36228_s4 + $0x1b8] sm:$0xff]  ;;  %v35229_v52 = vpack.c.bf16 %v18925_v32, %v18921_v43  ;;  %v19018_v43 = vand.u32 4294901760, %v35231_v15 }
0x1252   : > { %27893 = vmatprep.subr.bf16.mxu1 %v27892_v49  ;;  %v35238_v49 = vsub.f32 %v17598_v60, %v18925_v32 }
0x1253   : > { %v27894_v12 = vpack.c.bf16 %v18470_v4, %v18458_v8  ;;  %v35240_v8 = vsub.f32 %v17584_v48, %v19513_v0  ;;  %v18929_v4 = vand.u32 4294901760, %v17614_v18 }
0x1255   : > { %27895 = vmatpush1.bf16.msra.mxu1 %v27894_v12  ;;  %v19525_v12 = vand.u32 4294901760, %v17632_v31  ;;  %v35277_v11 = vsub.f32 %v17614_v18, %v18929_v4 }
0x1256   : > { %27897 = vmatprep.subr.bf16.mxu1 %v27896_v62  ;;  %v18933_v62 = vand.u32 4294901760, %v17630_v51 }
0x1257   : > { %v35290_v32 = vsub.f32 %v17632_v31, %v19525_v12  ;;  %v36909_v31 = vand.u32 4294901760, %v35277_v11 }
0x1258   : > { %v35279_v60 = vsub.f32 %v17630_v51, %v18933_v62 }
0x131b   : > { %v17573_v29 = vpop.f32.mrb[112].mxu1 }
0x131c   : > { %v17735_v58 = vsel %vm818_vm1, %v17573_v29, 0  ;;  %v25887_v3 = vpop.f32.mrb[113].mxu1  ;;  %v35269_v29 = vsub.f32 %v17583_v40, %v19515_v28 }
0x131d   : > { %v35151_v22 = vand.u32 4294901760, %v17735_v58  ;;  %v18935_v3 = vand.u32 4294901760, %v17629_v19 }
0x131f   : > { %v35154_v27 = vsub.f32 %v17735_v58, %v35151_v22  ;;  %v35271_v58 = vsub.f32 %v17599_v24, %v19519_v36  ;;  %v35301_v40 = vsub.f32 %v17629_v19, %v18935_v3 }
0x1321   : > { %v35157_v46 = vand.u32 4294901760, %v35154_v27 }
0x1323   : > { %v17824_v23 = vsub.f32 %v35154_v27, %v35157_v46 }
0x1325   : > { %v35161_v13 = vand.u32 4294901760, %v17824_v23  ;;  %v35275_v23 = vpack.c.bf16 %v18933_v62, %v18929_v4  ;;  %v36911_v4 = vand.u32 4294901760, %v35290_v32 }
0x1327   : > { %17826 = vmatmul.mubr.f32.gmra.mrb[124].mxu0 %v35161_v13  ;;  %18418 = vmatmul.mubr.f32.gmra.mrb[116].mxu1 %v35161_v13 }
0x1328   : > { %17936 = vmatprep.mubr.f32.mxu0 %v28766_v17  ;;  %18528 = vmatprep.mubr.f32.mxu1 %v28766_v17 }
0x132b   : > { %17938 = vmatmul.mubr.f32.vlgmr.msra.gmra.mrb[122].mxu0 %v34948_v21  ;;  %18530 = vmatmul.mubr.f32.vlgmr.msra.gmra.mrb[114].mxu1 %v34948_v21 }
0x132c   : > { %27851 = vmatpush1.bf16.msra.mxu0 %v27850_v45  ;;  %27899 = vmatpush1.bf16.msra.mxu1 %v27898_v30  ;;  %v35247_v45 = vpack.c.bf16 %v19517_v33, %v19513_v0  ;;  %v35249_v30 = vsub.f32 %v17600_v26, %v19517_v33 }
0x132d   : > { %17943 = vmatprep.mubr.f32.mxu0 %v28766_v17  ;;  %18535 = vmatprep.mubr.f32.mxu1 %v28766_v17 }
0x132e   : > { %27853 = vmatprep.subr.bf16.mxu0 %v27852_v47  ;;  %27901 = vmatprep.subr.bf16.mxu1 %v27900_v55  ;;  %v19521_v47 = vand.u32 4294901760, %v17616_v16  ;;  %v17615_v55 = vld [vmem:[%s36228_s4 + $0x130] sm:$0xff] }
0x132f   : > { %17945 = vmatmul.mubr.f32.gmra.mrb[124].mxu0 %v35151_v22  ;;  %18537 = vmatmul.mubr.f32.gmra.mrb[116].mxu1 %v35151_v22 }
0x1330   : > { %27855 = vmatpush1.bf16.msra.mxu0 %v27854_v20  ;;  %27903 = vmatpush1.bf16.msra.mxu1 %v27902_v44  ;;  %v35256_v20 = vpack.c.bf16 %v18927_v7, %v18923_v9  ;;  %v35258_v44 = vsub.f32 %v17581_v6, %v18923_v9  ;;  %v35285_v48 = vsub.f32 %v17616_v16, %v19521_v47  ;;  %v19030_v6 = vand.u32 4294901760, %v35238_v49 }
0x1331   : > { %18031 = vmatprep.mubr.f32.mxu0 %v28766_v17  ;;  %18623 = vmatprep.mubr.f32.mxu1 %v28766_v17 }
0x1332   : > { %27857 = vmatprep.subr.bf16.mxu0 %v34950_v37  ;;  %27905 = vmatprep.subr.bf16.mxu1 %v35035_v38  ;;  %v19024_v24 = vand.u32 4294901760, %v35258_v44  ;;  %v19031_v16 = vsub.f32 %v35238_v49, %v19030_v6 }
0x1333   : > { %18034 = vmatmul.mubr.f32.vlgmr.msra.gmra.mrb[122].mxu0 %v34955_v35  ;;  %18626 = vmatmul.mubr.f32.vlgmr.msra.gmra.mrb[114].mxu1 %v34955_v35 }
0x1334   : > { %27859 = vmatpush1.bf16.msra.mxu0 %v34958_v2  ;;  %27907 = vmatpush1.bf16.msra.mxu1 %v35041_v25 }
0x1335   : > { %18039 = vmatprep.mubr.f32.mxu0 %v28766_v17  ;;  %18631 = vmatprep.mubr.f32.mxu1 %v28766_v17 }
0x1336   : > { %27861 = vmatprep.subr.bf16.mxu0 %v34963_v61  ;;  %27909 = vmatprep.subr.bf16.mxu1 %v35043_v1 }
0x1337   : > { %18042 = vmatmul.mubr.f32.gmra.mrb[124].mxu0 %v35154_v27  ;;  %18634 = vmatmul.mubr.f32.gmra.mrb[116].mxu1 %v35154_v27 }
0x1338   : > { %27863 = vmatpush1.bf16.msra.mxu0 %v34966_v14  ;;  %27911 = vmatpush1.bf16.msra.mxu1 %v35047_v54 }
0x1339   : > { %18120 = vmatprep.mubr.f32.mxu0 %v28766_v17  ;;  %18712 = vmatprep.mubr.f32.mxu1 %v28766_v17 }
0x133a   : > { %27865 = vmatprep.subr.bf16.mxu0 %v35122_v39  ;;  %27913 = vmatprep.subr.bf16.mxu1 %v35128_v57  ;;  %v35260_v39 = vsub.f32 %v17597_v42, %v18927_v7  ;;  %v18931_v57 = vand.u32 4294901760, %v17613_v59  ;;  %v19610_v42 = vand.u32 4294901760, %v35240_v8  ;;  %v19019_v7 = vsub.f32 %v35231_v15, %v19018_v43 }
0x133b   : > { %18124 = vmatmul.mubr.f32.vlgmr.msra.gmra.mrb[122].mxu0 %v34961_v53  ;;  %18716 = vmatmul.mubr.f32.vlgmr.msra.gmra.mrb[114].mxu1 %v34961_v53 }
0x133c   : > { %27867 = vmatpush1.bf16.msra.mxu0 %v35134_v34  ;;  %27915 = vmatpush1.bf16.msra.mxu1 %v35140_v5  ;;  %v17631_v34 = vld [vmem:[%s36228_s4 + $0x1b0] sm:$0xff]  ;;  %v35267_v5 = vpack.c.bf16 %v19519_v36, %v19515_v28  ;;  %v35299_v0 = vsub.f32 %v17613_v59, %v18931_v57  ;;  %v19036_v18 = vand.u32 4294901760, %v35260_v39  ;;  %v19025_v28 = vsub.f32 %v35258_v44, %v19024_v24 }
0x133d   : > { %18129 = vmatprep.mubr.f32.mxu0 %v28766_v17  ;;  %18721 = vmatprep.mubr.f32.mxu1 %v28766_v17  ;;  %v19527_v26 = vand.u32 4294901760, %v17631_v34  ;;  %v36914_v36 = vand.u32 4294901760, %v35279_v60  ;;  %v36910_v59 = vand.u32 4294901760, %v35285_v48 }
0x133e   : > { %27869 = vmatprep.subr.bf16.mxu0 %v35142_v10  ;;  %27917 = vmatprep.subr.bf16.mxu1 %v35144_v41  ;;  %v19523_v10 = vand.u32 4294901760, %v17615_v55  ;;  %v35283_v41 = vpack.c.bf16 %v19525_v12, %v19521_v47  ;;  %v36912_v19 = vand.u32 4294901760, %v35299_v0  ;;  %v19020_v47 = vand.u32 4294901760, %v19019_v7 }
0x133f   : > { %18133 = vmatmul.mubr.f32.gmra.mrb[124].mxu0 %v35157_v46  ;;  %18725 = vmatmul.mubr.f32.gmra.mrb[116].mxu1 %v35157_v46  ;;  %v35315_v9 = vsub.f32 %v17631_v34, %v19527_v26  ;;  %v36913_v12 = vand.u32 4294901760, %v35301_v40  ;;  %v19032_v34 = vand.u32 4294901760, %v19031_v16  ;;  %v19635_v7 = vsub.f32 %v35285_v48, %v36910_v59 }
0x1340   : > { %27871 = vmatpush1.bf16.msra.mxu0 %v35146_v63  ;;  %27919 = vmatpush1.bf16.msra.mxu1 %v35148_v50  ;;  %v19622_v63 = vand.u32 4294901760, %v35249_v30  ;;  %v35297_v50 = vpack.c.bf16 %v18935_v3, %v18931_v57  ;;  %v35306_v33 = vsub.f32 %v17615_v55, %v19523_v10  ;;  %v35313_v51 = vpack.c.bf16 %v19527_v26, %v19523_v10 }
0x1341   : > { %18227 = vmatprep.mubr.f32.mxu0 %v28766_v17  ;;  %18819 = vmatprep.mubr.f32.mxu1 %v28766_v17  ;;  %v36917_v57 = vand.u32 4294901760, %v35315_v9  ;;  %v19055_v26 = vsub.f32 %v35279_v60, %v36914_v36  ;;  %v19647_v16 = vsub.f32 %v35290_v32, %v36911_v4  ;;  %v19061_v59 = vsub.f32 %v35301_v40, %v36913_v12 }
0x1342   : > { %27873 = vmatprep.subr.bf16.mxu0 %v34950_v37  ;;  %27921 = vmatprep.subr.bf16.mxu1 %v35035_v38  ;;  %v19616_v37 = vand.u32 4294901760, %v35269_v29  ;;  %v36915_v38 = vand.u32 4294901760, %v35271_v58  ;;  %v36916_v55 = vand.u32 4294901760, %v35306_v33  ;;  %v19636_v36 = vand.u32 4294901760, %v19635_v7  ;;  %v17586_v7 = vld [vmem:[%s36228_s4 + $0x48] sm:$0xff] }
0x1343   : > { %18229 = vmatmul.mubr.f32.vlgmr.msra.gmra.mrb[122].mxu0 %v34948_v21  ;;  %18821 = vmatmul.mubr.f32.vlgmr.msra.gmra.mrb[114].mxu1 %v34948_v21  ;;  %v19056_v12 = vand.u32 4294901760, %v19055_v26 }
0x1344   : > { %27875 = vmatpush1.bf16.msra.mxu0 %v34958_v2  ;;  %27923 = vmatpush1.bf16.msra.mxu1 %v35041_v25  ;;  %v19611_v2 = vsub.f32 %v35240_v8, %v19610_v42  ;;  %v19623_v25 = vsub.f32 %v35249_v30, %v19622_v63  ;;  %v19629_v62 = vsub.f32 %v35271_v58, %v36915_v38  ;;  %v19648_v38 = vand.u32 4294901760, %v19647_v16  ;;  %v17602_v16 = vld [vmem:[%s36228_s4 + $0xc8] sm:$0xff] }
0x1345   : > { %18234 = vmatprep.mubr.f32.mxu0 %v28766_v17  ;;  %18826 = vmatprep.mubr.f32.mxu1 %v28766_v17  ;;  %v19641_v4 = vsub.f32 %v35306_v33, %v36916_v55 }
0x1346   : > { %27877 = vmatprep.subr.bf16.mxu0 %v34963_v61  ;;  %27925 = vmatprep.subr.bf16.mxu1 %v35043_v1  ;;  %v19037_v61 = vsub.f32 %v35260_v39, %v19036_v18  ;;  %v19617_v1 = vsub.f32 %v35269_v29, %v19616_v37  ;;  %v19612_v3 = vand.u32 4294901760, %v19611_v2  ;;  %v19624_v10 = vand.u32 4294901760, %v19623_v25 }
0x1347   : > { %18236 = vmatmul.mubr.f32.gmra.mrb[124].mxu0 %v35151_v22  ;;  %18828 = vmatmul.mubr.f32.gmra.mrb[116].mxu1 %v35151_v22  ;;  %v27988_v26 = vpack.c.bf16 %v19648_v38, %v19636_v36  ;;  %v27992_v38 = vpack.c.bf16 %v35249_v30, %v35240_v8  ;;  %v27946_v36 = vpack.c.bf16 %v35260_v39, %v35258_v44  ;;  %v17587_v8 = vld [vmem:[%s36228_s4 + $0x50] sm:$0xff]  ;;  %v38168_v44 = vand.u32 4294901760, %v35271_v58 }
0x1348   : > { %27879 = vmatpush1.bf16.msra.mxu0 %v34966_v14  ;;  %27927 = vmatpush1.bf16.msra.mxu1 %v35047_v54  ;;  %v19043_v14 = vsub.f32 %v35277_v11, %v36909_v31  ;;  %v19026_v54 = vand.u32 4294901760, %v19025_v28  ;;  %v19038_v2 = vand.u32 4294901760, %v19037_v61  ;;  %v19618_v25 = vand.u32 4294901760, %v19617_v1  ;;  %v17603_v30 = vld [vmem:[%s36228_s4 + $0xd0] sm:$0xff] }
0x1349   : > { %18314 = vmatprep.mubr.f32.mxu0 %v28766_v17  ;;  %18906 = vmatprep.mubr.f32.mxu1 %v28766_v17  ;;  %v19630_v31 = vand.u32 4294901760, %v19629_v62  ;;  %v19049_v28 = vsub.f32 %v35299_v0, %v36912_v19  ;;  %v19653_v61 = vsub.f32 %v35315_v9, %v36917_v57  ;;  %v27936_v1 = vpack.c.bf16 %v19032_v34, %v19020_v47 }
0x134a   : > { %27929 = vmatprep.subr.bf16.mxu0 %v35229_v52  ;;  %27977 = vmatprep.subr.bf16.mxu1 %v35247_v45  ;;  %v27984_v62 = vpack.c.bf16 %v19624_v10, %v19612_v3  ;;  %v19044_v19 = vand.u32 4294901760, %v19043_v14  ;;  %v27938_v55 = vpack.c.bf16 %v19038_v2, %v19026_v54  ;;  %v19062_v34 = vand.u32 4294901760, %v19061_v59  ;;  %v17588_v2 = vld [vmem:[%s36228_s4 + $0x58] sm:$0xff] }
0x134b   : > { %18316 = vmatmul.mubr.f32.vlgmr.msra.gmra.mrb[122].mxu0 %v34948_v21  ;;  %18908 = vmatmul.mubr.f32.vlgmr.msra.gmra.mrb[114].mxu1 %v34948_v21  ;;  %v27986_v57 = vpack.c.bf16 %v19630_v31, %v19618_v25  ;;  %v19050_v47 = vand.u32 4294901760, %v19049_v28  ;;  %v19642_v3 = vand.u32 4294901760, %v19641_v4  ;;  %v19654_v10 = vand.u32 4294901760, %v19653_v61  ;;  %v17604_v25 = vld [vmem:[%s36228_s4 + $0xd8] sm:$0xff] }
0x134c   : > { %27931 = vmatpush1.bf16.msra.mxu0 %v35256_v20  ;;  %27979 = vmatpush1.bf16.msra.mxu1 %v35267_v5  ;;  %v27940_v14 = vpack.c.bf16 %v19056_v12, %v19044_v19  ;;  %v27944_v59 = vpack.c.bf16 %v35238_v49, %v35231_v15  ;;  %v27994_v4 = vpack.c.bf16 %v35271_v58, %v35269_v29  ;;  %v20697_v49 = vand.u32 4294901760, %v17588_v2  ;;  %v17634_v29 = vld [vmem:[%s36228_s4 + $0x1c8] sm:$0xff] }
0x134d   : > { %18321 = vmatprep.mubr.f32.mxu0 %v28766_v17  ;;  %18913 = vmatprep.mubr.f32.mxu1 %v28766_v17  ;;  %v27942_v31 = vpack.c.bf16 %v19062_v34, %v19050_v47  ;;  %v27990_v54 = vpack.c.bf16 %v19654_v10, %v19642_v3  ;;  %v27948_v19 = vpack.c.bf16 %v35279_v60, %v35277_v11  ;;  %v17585_v47 = vld [vmem:[%s36228_s4 + $0x40] sm:$0xff]  ;;  %v38169_v39 = vand.u32 4294901760, %v35277_v11  ;;  %v17618_v10 = vld [vmem:[%s36228_s4 + $0x148] sm:$0xff] }
0x134e   : > { %27933 = vmatprep.subr.bf16.mxu0 %v35275_v23  ;;  %27981 = vmatprep.subr.bf16.mxu1 %v35283_v41  ;;  %v27996_v12 = vpack.c.bf16 %v35290_v32, %v35285_v48  ;;  %v27960_v28 = vpack.c.bf16 %v19030_v6, %v19018_v43  ;;  %v28008_v61 = vpack.c.bf16 %v19622_v63, %v19610_v42  ;;  %v17601_v34 = vld [vmem:[%s36228_s4 + $0xc0] sm:$0xff]  ;;  %v38170_v6 = vand.u32 4294901760, %v35279_v60 }
0x134f   : > { %18323 = vmatmul.mubr.f32.gmra.mrb[124].mxu0 %v35151_v22  ;;  %18915 = vmatmul.mubr.f32.gmra.mrb[116].mxu1 %v35151_v22  ;;  %v27962_v15 = vpack.c.bf16 %v19036_v18, %v19024_v24  ;;  %v28010_v43 = vpack.c.bf16 %v38168_v44, %v19616_v37  ;;  %v38171_v63 = vand.u32 4294901760, %v35285_v48  ;;  %v38172_v24 = vand.u32 4294901760, %v35290_v32 }
0x1350   : > { %27935 = vmatpush1.bf16.msra.mxu0 %v35297_v50  ;;  %27983 = vmatpush1.bf16.msra.mxu1 %v35313_v51  ;;  %v27964_v42 = vpack.c.bf16 %v38170_v6, %v38169_v39  ;;  %v20701_v3 = vand.u32 4294901760, %v17604_v25  ;;  %v38173_v58 = vand.u32 4294901760, %v35299_v0  ;;  %v38174_v11 = vand.u32 4294901760, %v35301_v40 }
0x1351   : > { %18993 = vmatprep.mubr.f32.mxu0 %v28766_v17  ;;  %19585 = vmatprep.mubr.f32.mxu1 %v28766_v17  ;;  %v28012_v18 = vpack.c.bf16 %v38172_v24, %v38171_v63  ;;  %v38175_v48 = vand.u32 4294901760, %v35306_v33  ;;  %v38176_v32 = vand.u32 4294901760, %v35315_v9 }
0x1352   : > { %27937 = vmatprep.subr.bf16.mxu0 %v27936_v1  ;;  %27985 = vmatprep.subr.bf16.mxu1 %v27984_v62  ;;  %v20105_v1 = vand.u32 4294901760, %v17586_v7  ;;  %v20109_v62 = vand.u32 4294901760, %v17602_v16  ;;  %v27966_v60 = vpack.c.bf16 %v38174_v11, %v38173_v58 }
0x1353   : > { %18999 = vmatmul.mubr.f32.vlgmr.msra.gmra.mrb[126].mxu0 %v34973_v56  ;;  %19591 = vmatmul.mubr.f32.vlgmr.msra.gmra.mrb[118].mxu1 %v34973_v56  ;;  %v28014_v37 = vpack.c.bf16 %v38176_v32, %v38175_v48 }
0x1354   : > { %27939 = vmatpush1.bf16.msra.mxu0 %v27938_v55  ;;  %27987 = vmatpush1.bf16.msra.mxu1 %v27986_v57  ;;  %v27950_v55 = vpack.c.bf16 %v35301_v40, %v35299_v0  ;;  %v27998_v57 = vpack.c.bf16 %v35315_v9, %v35306_v33  ;;  %v35515_v0 = vpack.c.bf16 %v20109_v62, %v20105_v1  ;;  %v20699_v33 = vand.u32 4294901760, %v17587_v8  ;;  %v17617_v9 = vld [vmem:[%s36228_s4 + $0x140] sm:$0xff] }
0x1355   : > { %19004 = vmatprep.mubr.f32.mxu0 %v28766_v17  ;;  %19596 = vmatprep.mubr.f32.mxu1 %v28766_v17  ;;  %v35517_v40 = vsub.f32 %v17586_v7, %v20105_v1 }
0x1356   : > { %27941 = vmatprep.subr.bf16.mxu0 %v27940_v14  ;;  %27989 = vmatprep.subr.bf16.mxu1 %v27988_v26  ;;  %v20107_v14 = vand.u32 4294901760, %v17585_v47  ;;  %v20111_v26 = vand.u32 4294901760, %v17601_v34 }
0x1357   : > { %19010 = vmatmul.mubr.f32.gmra.mrb[128].mxu0 %v35161_v13  ;;  %19602 = vmatmul.mubr.f32.gmra.mrb[120].mxu1 %v35161_v13  ;;  %v20202_v63 = vand.u32 4294901760, %v35517_v40 }
0x1358   : > { %27943 = vmatpush1.bf16.msra.mxu0 %v27942_v31  ;;  %27991 = vmatpush1.bf16.msra.mxu1 %v27990_v54  ;;  %v17620_v31 = vld [vmem:[%s36228_s4 + $0x158] sm:$0xff]  ;;  %v35544_v1 = vsub.f32 %v17601_v34, %v20111_v26 }
0x1359   : > { %19120 = vmatprep.mubr.f32.mxu0 %v28766_v17  ;;  %19712 = vmatprep.mubr.f32.mxu1 %v28766_v17  ;;  %v17636_v54 = vld [vmem:[%s36228_s4 + $0x1d8] sm:$0xff]  ;;  %v20705_v7 = vand.u32 4294901760, %v17620_v31 }
0x135a   : > { %27945 = vmatprep.subr.bf16.mxu0 %v27944_v59  ;;  %27993 = vmatprep.subr.bf16.mxu1 %v27992_v38  ;;  %v20703_v59 = vand.u32 4294901760, %v17603_v30  ;;  %v35524_v38 = vsub.f32 %v17602_v16, %v20109_v62  ;;  %v17619_v16 = vld [vmem:[%s36228_s4 + $0x150] sm:$0xff]  ;;  %v20115_v62 = vand.u32 4294901760, %v17617_v9  ;;  %v20220_v32 = vand.u32 4294901760, %v35544_v1 }
0x135b   : > { %19122 = vmatmul.mubr.f32.vlgmr.msra.gmra.mrb[126].mxu0 %v34948_v21  ;;  %19714 = vmatmul.mubr.f32.vlgmr.msra.gmra.mrb[118].mxu1 %v34948_v21  ;;  %v20707_v6 = vand.u32 4294901760, %v17619_v16 }
0x135c   : > { %27947 = vmatpush1.bf16.msra.mxu0 %v27946_v36  ;;  %27995 = vmatpush1.bf16.msra.mxu1 %v27994_v4  ;;  %v35526_v36 = vsub.f32 %v17588_v2, %v20697_v49  ;;  %v20113_v4 = vand.u32 4294901760, %v17618_v10  ;;  %v35540_v2 = vpack.c.bf16 %v20111_v26, %v20107_v14  ;;  %v35553_v44 = vsub.f32 %v17603_v30, %v20703_v59 }
0x135d   : > { %19127 = vmatprep.mubr.f32.mxu0 %v28766_v17  ;;  %19719 = vmatprep.mubr.f32.mxu1 %v28766_v17  ;;  %v35579_v58 = vsub.f32 %v17617_v9, %v20115_v62  ;;  %v35586_v48 = vsub.f32 %v17619_v16, %v20707_v6  ;;  %v20203_v26 = vsub.f32 %v35517_v40, %v20202_v63 }
0x135e   : > { %27949 = vmatprep.subr.bf16.mxu0 %v27948_v19  ;;  %27997 = vmatprep.subr.bf16.mxu1 %v27996_v12  ;;  %v20117_v19 = vand.u32 4294901760, %v17634_v29  ;;  %v17633_v12 = vld [vmem:[%s36228_s4 + $0x1c0] sm:$0xff]  ;;  %v35559_v34 = vsub.f32 %v17618_v10, %v20113_v4 }
0x135f   : > { %19129 = vmatmul.mubr.f32.gmra.mrb[128].mxu0 %v35151_v22  ;;  %19721 = vmatmul.mubr.f32.gmra.mrb[120].mxu1 %v35151_v22  ;;  %v36925_v16 = vand.u32 4294901760, %v35586_v48 }
0x1360   : > { %27951 = vmatpush1.bf16.msra.mxu0 %v27950_v55  ;;  %27999 = vmatpush1.bf16.msra.mxu1 %v27998_v57  ;;  %v35531_v55 = vpack.c.bf16 %v20701_v3, %v20697_v49  ;;  %v35533_v57 = vsub.f32 %v17604_v25, %v20701_v3  ;;  %v17635_v25 = vld [vmem:[%s36228_s4 + $0x1d0] sm:$0xff]  ;;  %v35551_v49 = vsub.f32 %v17587_v8, %v20699_v33  ;;  %v20794_v3 = vand.u32 4294901760, %v35526_v36 }
0x1361   : > { %19215 = vmatprep.mubr.f32.mxu0 %v28766_v17  ;;  %19807 = vmatprep.mubr.f32.mxu1 %v28766_v17  ;;  %v35561_v39 = vsub.f32 %v17634_v29, %v20117_v19  ;;  %v35565_v8 = vsub.f32 %v17620_v31, %v20705_v7  ;;  %v20711_v30 = vand.u32 4294901760, %v17635_v25 }
0x1362   : > { %27953 = vmatprep.subr.bf16.mxu0 %v35229_v52  ;;  %28001 = vmatprep.subr.bf16.mxu1 %v35247_v45  ;;  %v20806_v10 = vand.u32 4294901760, %v35533_v57 }
0x1363   : > { %19218 = vmatmul.mubr.f32.vlgmr.msra.gmra.mrb[126].mxu0 %v34955_v35  ;;  %19810 = vmatmul.mubr.f32.vlgmr.msra.gmra.mrb[118].mxu1 %v34955_v35  ;;  %v36919_v9 = vand.u32 4294901760, %v35565_v8 }
0x1364   : > { %27955 = vmatpush1.bf16.msra.mxu0 %v35256_v20  ;;  %28003 = vmatpush1.bf16.msra.mxu1 %v35267_v5 }
0x1365   : > { %19223 = vmatprep.mubr.f32.mxu0 %v28766_v17  ;;  %19815 = vmatprep.mubr.f32.mxu1 %v28766_v17 }
0x1366   : > { %27957 = vmatprep.subr.bf16.mxu0 %v35275_v23  ;;  %28005 = vmatprep.subr.bf16.mxu1 %v35283_v41 }
0x1367   : > { %19226 = vmatmul.mubr.f32.gmra.mrb[128].mxu0 %v35154_v27  ;;  %19818 = vmatmul.mubr.f32.gmra.mrb[120].mxu1 %v35154_v27 }
0x1368   : > { %27959 = vmatpush1.bf16.msra.mxu0 %v35297_v50  ;;  %28007 = vmatpush1.bf16.msra.mxu1 %v35313_v51 }
0x1369   : > { %19304 = vmatprep.mubr.f32.mxu0 %v28766_v17  ;;  %19896 = vmatprep.mubr.f32.mxu1 %v28766_v17 }
0x136a   : > { %27961 = vmatprep.subr.bf16.mxu0 %v27960_v28  ;;  %28009 = vmatprep.subr.bf16.mxu1 %v28008_v61  ;;  %v20709_v28 = vand.u32 4294901760, %v17636_v54  ;;  %v35542_v61 = vsub.f32 %v17585_v47, %v20107_v14  ;;  %v35557_v47 = vpack.c.bf16 %v20117_v19, %v20113_v4  ;;  %v35595_v14 = vsub.f32 %v17635_v25, %v20711_v30 }
0x136b   : > { %19308 = vmatmul.mubr.f32.vlgmr.msra.gmra.mrb[126].mxu0 %v34961_v53  ;;  %19900 = vmatmul.mubr.f32.vlgmr.msra.gmra.mrb[118].mxu1 %v34961_v53 }
0x136c   : > { %27963 = vmatpush1.bf16.msra.mxu0 %v27962_v15  ;;  %28011 = vmatpush1.bf16.msra.mxu1 %v28010_v43  ;;  %v35549_v15 = vpack.c.bf16 %v20703_v59, %v20699_v33  ;;  %v20119_v43 = vand.u32 4294901760, %v17633_v12  ;;  %v35570_v24 = vsub.f32 %v17636_v54, %v20709_v28  ;;  %v36918_v54 = vand.u32 4294901760, %v35559_v34 }
0x136d   : > { %19313 = vmatprep.mubr.f32.mxu0 %v28766_v17  ;;  %19905 = vmatprep.mubr.f32.mxu1 %v28766_v17  ;;  %v36923_v59 = vand.u32 4294901760, %v35561_v39 }
0x136e   : > { %27965 = vmatprep.subr.bf16.mxu0 %v27964_v42  ;;  %28013 = vmatprep.subr.bf16.mxu1 %v28012_v18  ;;  %v35563_v42 = vpack.c.bf16 %v20709_v28, %v20705_v7  ;;  %v20214_v18 = vand.u32 4294901760, %v35524_v38  ;;  %v35577_v29 = vpack.c.bf16 %v20119_v43, %v20115_v62  ;;  %v35581_v11 = vsub.f32 %v17633_v12, %v20119_v43 }
0x136f   : > { %19317 = vmatmul.mubr.f32.gmra.mrb[128].mxu0 %v35157_v46  ;;  %19909 = vmatmul.mubr.f32.gmra.mrb[120].mxu1 %v35157_v46  ;;  %v36920_v4 = vand.u32 4294901760, %v35570_v24  ;;  %v36921_v12 = vand.u32 4294901760, %v35579_v58  ;;  %v20204_v7 = vand.u32 4294901760, %v20203_v26  ;;  %v36926_v62 = vand.u32 4294901760, %v35595_v14 }
0x1370   : > { %27967 = vmatpush1.bf16.msra.mxu0 %v27966_v60  ;;  %28015 = vmatpush1.bf16.msra.mxu1 %v28014_v37  ;;  %v20208_v60 = vand.u32 4294901760, %v35542_v61  ;;  %v35593_v37 = vpack.c.bf16 %v20711_v30, %v20707_v6  ;;  %v20215_v31 = vsub.f32 %v35524_v38, %v20214_v18  ;;  %v36922_v28 = vand.u32 4294901760, %v35581_v11 }
0x1371   : > { %19411 = vmatprep.mubr.f32.mxu0 %v28766_v17  ;;  %20003 = vmatprep.mubr.f32.mxu1 %v28766_v17  ;;  %v20239_v30 = vsub.f32 %v35561_v39, %v36923_v59  ;;  %v20819_v26 = vsub.f32 %v35565_v8, %v36919_v9 }
0x1372   : > { %27969 = vmatprep.subr.bf16.mxu0 %v35229_v52  ;;  %28017 = vmatprep.subr.bf16.mxu1 %v35247_v45  ;;  %v20800_v52 = vand.u32 4294901760, %v35551_v49  ;;  %v36924_v45 = vand.u32 4294901760, %v35553_v44  ;;  %v20209_v33 = vsub.f32 %v35542_v61, %v20208_v60  ;;  %v20216_v25 = vand.u32 4294901760, %v20215_v31 }
0x1373   : > { %19413 = vmatmul.mubr.f32.vlgmr.msra.gmra.mrb[126].mxu0 %v34948_v21  ;;  %20005 = vmatmul.mubr.f32.vlgmr.msra.gmra.mrb[118].mxu1 %v34948_v21  ;;  %v20831_v31 = vsub.f32 %v35570_v24, %v36920_v4  ;;  %v20245_v9 = vsub.f32 %v35581_v11, %v36922_v28  ;;  %v20825_v4 = vsub.f32 %v35586_v48, %v36925_v16  ;;  %v20240_v28 = vand.u32 4294901760, %v20239_v30 }
0x1374   : > { %27971 = vmatpush1.bf16.msra.mxu0 %v35256_v20  ;;  %28019 = vmatpush1.bf16.msra.mxu1 %v35267_v5  ;;  %v20795_v20 = vsub.f32 %v35526_v36, %v20794_v3  ;;  %v20807_v5 = vsub.f32 %v35533_v57, %v20806_v10  ;;  %v20813_v19 = vsub.f32 %v35553_v44, %v36924_v45  ;;  %v20820_v59 = vand.u32 4294901760, %v20819_v26  ;;  %v17590_v26 = vld [vmem:[%s36228_s4 + $0x68] sm:$0xff] }
0x1375   : > { %19418 = vmatprep.mubr.f32.mxu0 %v28766_v17  ;;  %20010 = vmatprep.mubr.f32.mxu1 %v28766_v17  ;;  %v20832_v45 = vand.u32 4294901760, %v20831_v31  ;;  %v17606_v31 = vld [vmem:[%s36228_s4 + $0xe8] sm:$0xff] }
0x1376   : > { %27973 = vmatprep.subr.bf16.mxu0 %v35275_v23  ;;  %28021 = vmatprep.subr.bf16.mxu1 %v35283_v41  ;;  %v20221_v23 = vsub.f32 %v35544_v1, %v20220_v32  ;;  %v20801_v41 = vsub.f32 %v35551_v49, %v20800_v52  ;;  %v20796_v43 = vand.u32 4294901760, %v20795_v20  ;;  %v20808_v6 = vand.u32 4294901760, %v20807_v5 }
0x1377   : > { %19420 = vmatmul.mubr.f32.gmra.mrb[128].mxu0 %v35151_v22  ;;  %20012 = vmatmul.mubr.f32.gmra.mrb[120].mxu1 %v35151_v22  ;;  %v28084_v30 = vpack.c.bf16 %v20832_v45, %v20820_v59  ;;  %v28088_v45 = vpack.c.bf16 %v35533_v57, %v35526_v36  ;;  %v28042_v59 = vpack.c.bf16 %v35544_v1, %v35542_v61  ;;  %v38180_v61 = vand.u32 4294901760, %v35565_v8 }
0x1378   : > { %27975 = vmatpush1.bf16.msra.mxu0 %v35297_v50  ;;  %28023 = vmatpush1.bf16.msra.mxu1 %v35313_v51  ;;  %v20227_v50 = vsub.f32 %v35559_v34, %v36918_v54  ;;  %v20210_v51 = vand.u32 4294901760, %v20209_v33  ;;  %v20222_v20 = vand.u32 4294901760, %v20221_v23  ;;  %v20802_v5 = vand.u32 4294901760, %v20801_v41 }
0x1379   : > { %19498 = vmatprep.mubr.f32.mxu0 %v28766_v17  ;;  %20090 = vmatprep.mubr.f32.mxu1 %v28766_v17  ;;  %v20814_v54 = vand.u32 4294901760, %v20813_v19  ;;  %v20233_v33 = vsub.f32 %v35579_v58, %v36921_v12  ;;  %v20837_v23 = vsub.f32 %v35595_v14, %v36926_v62  ;;  %v28032_v41 = vpack.c.bf16 %v20216_v25, %v20204_v7 }
0x137a   : > { %28025 = vmatprep.subr.bf16.mxu0 %v35515_v0  ;;  %28073 = vmatprep.subr.bf16.mxu1 %v35531_v55  ;;  %v28080_v19 = vpack.c.bf16 %v20808_v6, %v20796_v43  ;;  %v20228_v12 = vand.u32 4294901760, %v20227_v50  ;;  %v28034_v16 = vpack.c.bf16 %v20222_v20, %v20210_v51  ;;  %v20246_v25 = vand.u32 4294901760, %v20245_v9  ;;  %v17592_v20 = vld [vmem:[%s36228_s4 + $0x78] sm:$0xff] }
0x137b   : > { %19500 = vmatmul.mubr.f32.vlgmr.msra.gmra.mrb[126].mxu0 %v34948_v21  ;;  %20092 = vmatmul.mubr.f32.vlgmr.msra.gmra.mrb[118].mxu1 %v34948_v21  ;;  %v28082_v62 = vpack.c.bf16 %v20814_v54, %v20802_v5  ;;  %v20234_v7 = vand.u32 4294901760, %v20233_v33  ;;  %v20826_v43 = vand.u32 4294901760, %v20825_v4  ;;  %v20838_v6 = vand.u32 4294901760, %v20837_v23  ;;  %v17608_v5 = vld [vmem:[%s36228_s4 + $0xf8] sm:$0xff]  ;;  %v17589_v33 = vld [vmem:[%s36228_s4 + $0x60] sm:$0xff] }
0x137c   : > { %28027 = vmatpush1.bf16.msra.mxu0 %v35540_v2  ;;  %28075 = vmatpush1.bf16.msra.mxu1 %v35549_v15  ;;  %v28036_v50 = vpack.c.bf16 %v20240_v28, %v20228_v12  ;;  %v28040_v9 = vpack.c.bf16 %v35524_v38, %v35517_v40  ;;  %v28090_v4 = vpack.c.bf16 %v35553_v44, %v35551_v49  ;;  %v17605_v23 = vld [vmem:[%s36228_s4 + $0xe0] sm:$0xff]  ;;  %v38177_v38 = vand.u32 4294901760, %v35553_v44  ;;  %v17622_v44 = vld [vmem:[%s36228_s4 + $0x168] sm:$0xff] }
0x137d   : > { %19505 = vmatprep.mubr.f32.mxu0 %v28766_v17  ;;  %20097 = vmatprep.mubr.f32.mxu1 %v28766_v17  ;;  %v28038_v54 = vpack.c.bf16 %v20246_v25, %v20234_v7  ;;  %v28086_v51 = vpack.c.bf16 %v20838_v6, %v20826_v43  ;;  %v28044_v12 = vpack.c.bf16 %v35561_v39, %v35559_v34  ;;  %v21289_v7 = vand.u32 4294901760, %v17590_v26  ;;  %v17591_v43 = vld [vmem:[%s36228_s4 + $0x70] sm:$0xff] }
0x137e   : > { %28029 = vmatprep.subr.bf16.mxu0 %v35557_v47  ;;  %28077 = vmatprep.subr.bf16.mxu1 %v35563_v42  ;;  %v28092_v28 = vpack.c.bf16 %v35570_v24, %v35565_v8  ;;  %v21293_v25 = vand.u32 4294901760, %v17606_v31  ;;  %v17607_v6 = vld [vmem:[%s36228_s4 + $0xf0] sm:$0xff]  ;;  %v28058_v40 = vpack.c.bf16 %v20220_v32, %v20208_v60  ;;  %v28106_v36 = vpack.c.bf16 %v38177_v38, %v20800_v52  ;;  %v17638_v52 = vld [vmem:[%s36228_s4 + $0x1e8] sm:$0xff] }
0x137f   : > { %19507 = vmatmul.mubr.f32.gmra.mrb[128].mxu0 %v35151_v22  ;;  %20099 = vmatmul.mubr.f32.gmra.mrb[120].mxu1 %v35151_v22  ;;  %v21881_v57 = vand.u32 4294901760, %v17592_v20  ;;  %v38181_v1 = vand.u32 4294901760, %v35570_v24  ;;  %v21291_v49 = vand.u32 4294901760, %v17589_v33  ;;  %v21295_v32 = vand.u32 4294901760, %v17605_v23 }
0x1380   : > { %28031 = vmatpush1.bf16.msra.mxu0 %v35577_v29  ;;  %28079 = vmatpush1.bf16.msra.mxu1 %v35593_v37  ;;  %v38184_v24 = vand.u32 4294901760, %v35586_v48 }
0x1381   : > { %20177 = vmatprep.mubr.f32.mxu0 %v28766_v17  ;;  %20769 = vmatprep.mubr.f32.mxu1 %v28766_v17  ;;  %v28108_v60 = vpack.c.bf16 %v38181_v1, %v38180_v61 }
0x1382   : > { %28033 = vmatprep.subr.bf16.mxu0 %v28032_v41  ;;  %28081 = vmatprep.subr.bf16.mxu1 %v28080_v19  ;;  %v28056_v41 = vpack.c.bf16 %v20214_v18, %v20202_v63  ;;  %v28104_v19 = vpack.c.bf16 %v20806_v10, %v20794_v3  ;;  %v21885_v63 = vand.u32 4294901760, %v17608_v5  ;;  %v38178_v18 = vand.u32 4294901760, %v35559_v34 }
0x1383   : > { %20183 = vmatmul.mubr.f32.vlgmr.msra.gmra.mrb[130].mxu0 %v34973_v56  ;;  %20775 = vmatmul.mubr.f32.vlgmr.msra.gmra.mrb[122].mxu1 %v34973_v56  ;;  %v38179_v3 = vand.u32 4294901760, %v35561_v39  ;;  %v38182_v34 = vand.u32 4294901760, %v35579_v58  ;;  %v38183_v39 = vand.u32 4294901760, %v35581_v11 }
0x1384   : > { %28035 = vmatpush1.bf16.msra.mxu0 %v28034_v16  ;;  %28083 = vmatpush1.bf16.msra.mxu1 %v28082_v62  ;;  %v28046_v16 = vpack.c.bf16 %v35581_v11, %v35579_v58  ;;  %v28094_v62 = vpack.c.bf16 %v35595_v14, %v35586_v48  ;;  %v35795_v58 = vpack.c.bf16 %v21293_v25, %v21289_v7 }
0x1385   : > { %20188 = vmatprep.mubr.f32.mxu0 %v28766_v17  ;;  %20780 = vmatprep.mubr.f32.mxu1 %v28766_v17  ;;  %v28060_v10 = vpack.c.bf16 %v38179_v3, %v38178_v18  ;;  %v28062_v8 = vpack.c.bf16 %v38183_v39, %v38182_v34  ;;  %v35797_v11 = vsub.f32 %v17590_v26, %v21289_v7 }
0x1386   : > { %28037 = vmatprep.subr.bf16.mxu0 %v28036_v50  ;;  %28085 = vmatprep.subr.bf16.mxu1 %v28084_v30  ;;  %v38185_v50 = vand.u32 4294901760, %v35595_v14  ;;  %v35799_v48 = vsub.f32 %v17606_v31, %v21293_v25  ;;  %v35803_v14 = vpack.c.bf16 %v21885_v63, %v21881_v57  ;;  %v35815_v26 = vpack.c.bf16 %v21295_v32, %v21291_v49 }
0x1387   : > { %20194 = vmatmul.mubr.f32.gmra.mrb[132].mxu0 %v35161_v13  ;;  %20786 = vmatmul.mubr.f32.gmra.mrb[124].mxu1 %v35161_v13  ;;  %v35825_v7 = vsub.f32 %v17589_v33, %v21291_v49 }
0x1388   : > { %28039 = vmatpush1.bf16.msra.mxu0 %v28038_v54  ;;  %28087 = vmatpush1.bf16.msra.mxu1 %v28086_v51  ;;  %v28110_v30 = vpack.c.bf16 %v38185_v50, %v38184_v24  ;;  %v21883_v54 = vand.u32 4294901760, %v17591_v43  ;;  %v21887_v51 = vand.u32 4294901760, %v17607_v6  ;;  %v21398_v1 = vand.u32 4294901760, %v35799_v48 }
0x1389   : > { %20304 = vmatprep.mubr.f32.mxu0 %v28766_v17  ;;  %20896 = vmatprep.mubr.f32.mxu1 %v28766_v17  ;;  %v21392_v34 = vand.u32 4294901760, %v35825_v7 }
0x138a   : > { %28041 = vmatprep.subr.bf16.mxu0 %v28040_v9  ;;  %28089 = vmatprep.subr.bf16.mxu1 %v28088_v45  ;;  %v17624_v9 = vld [vmem:[%s36228_s4 + $0x178] sm:$0xff]  ;;  %v35829_v25 = vpack.c.bf16 %v21887_v51, %v21883_v54  ;;  %v35833_v38 = vsub.f32 %v17607_v6, %v21887_v51 }
0x138b   : > { %20306 = vmatmul.mubr.f32.vlgmr.msra.gmra.mrb[130].mxu0 %v34948_v21  ;;  %20898 = vmatmul.mubr.f32.vlgmr.msra.gmra.mrb[122].mxu1 %v34948_v21  ;;  %v17640_v45 = vld [vmem:[%s36228_s4 + $0x1f8] sm:$0xff]  ;;  %v21889_v31 = vand.u32 4294901760, %v17624_v9 }
0x138c   : > { %28043 = vmatpush1.bf16.msra.mxu0 %v28042_v59  ;;  %28091 = vmatpush1.bf16.msra.mxu1 %v28090_v4  ;;  %v35805_v59 = vsub.f32 %v17592_v20, %v21881_v57  ;;  %v21297_v4 = vand.u32 4294901760, %v17622_v44  ;;  %v17623_v20 = vld [vmem:[%s36228_s4 + $0x170] sm:$0xff] }
0x138d   : > { %20311 = vmatprep.mubr.f32.mxu0 %v28766_v17  ;;  %20903 = vmatprep.mubr.f32.mxu1 %v28766_v17  ;;  %v35845_v6 = vsub.f32 %v17624_v9, %v21889_v31  ;;  %v21393_v9 = vsub.f32 %v35825_v7, %v21392_v34 }
0x138e   : > { %28045 = vmatprep.subr.bf16.mxu0 %v28044_v12  ;;  %28093 = vmatprep.subr.bf16.mxu1 %v28092_v28  ;;  %v21301_v12 = vand.u32 4294901760, %v17638_v52  ;;  %v17621_v28 = vld [vmem:[%s36228_s4 + $0x160] sm:$0xff]  ;;  %v35839_v33 = vsub.f32 %v17622_v44, %v21297_v4 }
0x138f   : > { %20313 = vmatmul.mubr.f32.gmra.mrb[132].mxu0 %v35151_v22  ;;  %20905 = vmatmul.mubr.f32.gmra.mrb[124].mxu1 %v35151_v22 }
0x1390   : > { %28047 = vmatpush1.bf16.msra.mxu0 %v28046_v16  ;;  %28095 = vmatpush1.bf16.msra.mxu1 %v28094_v62  ;;  %v17637_v16 = vld [vmem:[%s36228_s4 + $0x1e0] sm:$0xff]  ;;  %v35813_v62 = vsub.f32 %v17608_v5, %v21885_v63  ;;  %v35827_v5 = vsub.f32 %v17605_v23, %v21295_v32  ;;  %v35837_v63 = vpack.c.bf16 %v21301_v12, %v21297_v4  ;;  %v21891_v23 = vand.u32 4294901760, %v17623_v20 }
0x1391   : > { %20399 = vmatprep.mubr.f32.mxu0 %v28766_v17  ;;  %20991 = vmatprep.mubr.f32.mxu1 %v28766_v17  ;;  %v21303_v57 = vand.u32 4294901760, %v17637_v16  ;;  %v35841_v3 = vsub.f32 %v17638_v52, %v21301_v12  ;;  %v36927_v51 = vand.u32 4294901760, %v35839_v33  ;;  %v36928_v4 = vand.u32 4294901760, %v35845_v6 }
0x1392   : > { %28049 = vmatprep.subr.bf16.mxu0 %v35515_v0  ;;  %28097 = vmatprep.subr.bf16.mxu1 %v35531_v55  ;;  %v21990_v49 = vand.u32 4294901760, %v35813_v62  ;;  %v35873_v24 = vsub.f32 %v17623_v20, %v21891_v23 }
0x1393   : > { %20402 = vmatmul.mubr.f32.vlgmr.msra.gmra.mrb[130].mxu0 %v34955_v35  ;;  %20994 = vmatmul.mubr.f32.vlgmr.msra.gmra.mrb[122].mxu1 %v34955_v35  ;;  %v35861_v52 = vsub.f32 %v17637_v16, %v21303_v57 }
0x1394   : > { %28051 = vmatpush1.bf16.msra.mxu0 %v35540_v2  ;;  %28099 = vmatpush1.bf16.msra.mxu1 %v35549_v15  ;;  %v36934_v20 = vand.u32 4294901760, %v35873_v24 }
0x1395   : > { %20407 = vmatprep.mubr.f32.mxu0 %v28766_v17  ;;  %20999 = vmatprep.mubr.f32.mxu1 %v28766_v17 }
0x1396   : > { %28053 = vmatprep.subr.bf16.mxu0 %v35557_v47  ;;  %28101 = vmatprep.subr.bf16.mxu1 %v35563_v42 }
0x1397   : > { %20410 = vmatmul.mubr.f32.gmra.mrb[132].mxu0 %v35154_v27  ;;  %21002 = vmatmul.mubr.f32.gmra.mrb[124].mxu1 %v35154_v27 }
0x1398   : > { %28055 = vmatpush1.bf16.msra.mxu0 %v35577_v29  ;;  %28103 = vmatpush1.bf16.msra.mxu1 %v35593_v37 }
0x1399   : > { %20488 = vmatprep.mubr.f32.mxu0 %v28766_v17  ;;  %21080 = vmatprep.mubr.f32.mxu1 %v28766_v17 }
0x139a   : > { %28057 = vmatprep.subr.bf16.mxu0 %v28056_v41  ;;  %28105 = vmatprep.subr.bf16.mxu1 %v28104_v19  ;;  %v21893_v41 = vand.u32 4294901760, %v17640_v45  ;;  %v17639_v19 = vld [vmem:[%s36228_s4 + $0x1f0] sm:$0xff] }
0x139b   : > { %20492 = vmatmul.mubr.f32.vlgmr.msra.gmra.mrb[130].mxu0 %v34961_v53  ;;  %21084 = vmatmul.mubr.f32.vlgmr.msra.gmra.mrb[122].mxu1 %v34961_v53  ;;  %v21895_v18 = vand.u32 4294901760, %v17639_v19 }
0x139c   : > { %28059 = vmatpush1.bf16.msra.mxu0 %v28058_v40  ;;  %28107 = vmatpush1.bf16.msra.mxu1 %v28106_v36  ;;  %v35831_v40 = vsub.f32 %v17591_v43, %v21883_v54  ;;  %v21299_v36 = vand.u32 4294901760, %v17621_v28  ;;  %v35843_v43 = vpack.c.bf16 %v21893_v41, %v21889_v31  ;;  %v35850_v61 = vsub.f32 %v17640_v45, %v21893_v41 }
0x139d   : > { %20497 = vmatprep.mubr.f32.mxu0 %v28766_v17  ;;  %21089 = vmatprep.mubr.f32.mxu1 %v28766_v17  ;;  %v35866_v39 = vpack.c.bf16 %v21895_v18, %v21891_v23  ;;  %v35875_v50 = vsub.f32 %v17639_v19, %v21895_v18  ;;  %v21399_v54 = vsub.f32 %v35799_v48, %v21398_v1  ;;  %v36932_v45 = vand.u32 4294901760, %v35841_v3 }
0x139e   : > { %28061 = vmatprep.subr.bf16.mxu0 %v28060_v10  ;;  %28109 = vmatprep.subr.bf16.mxu1 %v28108_v60  ;;  %v21386_v10 = vand.u32 4294901760, %v35797_v11  ;;  %v21978_v60 = vand.u32 4294901760, %v35805_v59  ;;  %v35857_v32 = vpack.c.bf16 %v21303_v57, %v21299_v36  ;;  %v35859_v44 = vsub.f32 %v17621_v28, %v21299_v36 }
0x139f   : > { %20501 = vmatmul.mubr.f32.gmra.mrb[132].mxu0 %v35157_v46  ;;  %21093 = vmatmul.mubr.f32.gmra.mrb[124].mxu1 %v35157_v46  ;;  %v36929_v12 = vand.u32 4294901760, %v35850_v61  ;;  %v36931_v41 = vand.u32 4294901760, %v35861_v52  ;;  %v36935_v19 = vand.u32 4294901760, %v35875_v50  ;;  %v21400_v36 = vand.u32 4294901760, %v21399_v54 }
0x13a0   : > { %28063 = vmatpush1.bf16.msra.mxu0 %v28062_v8  ;;  %28111 = vmatpush1.bf16.msra.mxu1 %v28110_v30  ;;  %v21404_v8 = vand.u32 4294901760, %v35827_v5  ;;  %v21387_v30 = vsub.f32 %v35797_v11, %v21386_v10  ;;  %v36930_v16 = vand.u32 4294901760, %v35859_v44  ;;  %v21423_v18 = vsub.f32 %v35841_v3, %v36932_v45 }
0x13a1   : > { %20595 = vmatprep.mubr.f32.mxu0 %v28766_v17  ;;  %21187 = vmatprep.mubr.f32.mxu1 %v28766_v17  ;;  %v22015_v54 = vsub.f32 %v35850_v61, %v36929_v12  ;;  %v22009_v12 = vsub.f32 %v35873_v24, %v36934_v20 }
0x13a2   : > { %28065 = vmatprep.subr.bf16.mxu0 %v35515_v0  ;;  %28113 = vmatprep.subr.bf16.mxu1 %v35531_v55  ;;  %v21984_v0 = vand.u32 4294901760, %v35831_v40  ;;  %v36933_v55 = vand.u32 4294901760, %v35833_v38  ;;  %v21388_v31 = vand.u32 4294901760, %v21387_v30  ;;  %v22003_v30 = vsub.f32 %v35845_v6, %v36928_v4 }
0x13a3   : > { %20597 = vmatmul.mubr.f32.vlgmr.msra.gmra.mrb[130].mxu0 %v34948_v21  ;;  %21189 = vmatmul.mubr.f32.vlgmr.msra.gmra.mrb[122].mxu1 %v34948_v21  ;;  %v21429_v4 = vsub.f32 %v35861_v52, %v36931_v41  ;;  %v21424_v41 = vand.u32 4294901760, %v21423_v18 }
0x13a4   : > { %28067 = vmatpush1.bf16.msra.mxu0 %v35540_v2  ;;  %28115 = vmatpush1.bf16.msra.mxu1 %v35549_v15  ;;  %v21979_v2 = vsub.f32 %v35805_v59, %v21978_v60  ;;  %v21991_v15 = vsub.f32 %v35813_v62, %v21990_v49  ;;  %v21997_v28 = vsub.f32 %v35833_v38, %v36933_v55  ;;  %v22004_v45 = vand.u32 4294901760, %v22003_v30 }
0x13a5   : > { %20602 = vmatprep.mubr.f32.mxu0 %v28766_v17  ;;  %21194 = vmatprep.mubr.f32.mxu1 %v28766_v17  ;;  %v22016_v55 = vand.u32 4294901760, %v22015_v54 }
0x13a6   : > { %28069 = vmatprep.subr.bf16.mxu0 %v35557_v47  ;;  %28117 = vmatprep.subr.bf16.mxu1 %v35563_v42  ;;  %v21405_v47 = vsub.f32 %v35827_v5, %v21404_v8  ;;  %v21985_v42 = vsub.f32 %v35831_v40, %v21984_v0  ;;  %v21980_v57 = vand.u32 4294901760, %v21979_v2  ;;  %v21992_v23 = vand.u32 4294901760, %v21991_v15 }
0x13a7   : > { %20604 = vmatmul.mubr.f32.gmra.mrb[132].mxu0 %v35151_v22  ;;  %21196 = vmatmul.mubr.f32.gmra.mrb[124].mxu1 %v35151_v22  ;;  %v28180_v18 = vpack.c.bf16 %v22016_v55, %v22004_v45  ;;  %v28184_v55 = vpack.c.bf16 %v35813_v62, %v35805_v59  ;;  %v28186_v45 = vpack.c.bf16 %v35833_v38, %v35831_v40  ;;  %v38188_v62 = vand.u32 4294901760, %v35841_v3 }
0x13a8   : > { %28071 = vmatpush1.bf16.msra.mxu0 %v35577_v29  ;;  %28119 = vmatpush1.bf16.msra.mxu1 %v35593_v37  ;;  %v21411_v29 = vsub.f32 %v35839_v33, %v36927_v51  ;;  %v21394_v37 = vand.u32 4294901760, %v21393_v9  ;;  %v21406_v2 = vand.u32 4294901760, %v21405_v47  ;;  %v21986_v15 = vand.u32 4294901760, %v21985_v42 }
0x13a9   : > { %20682 = vmatprep.mubr.f32.mxu0 %v28766_v17  ;;  %21274 = vmatprep.mubr.f32.mxu1 %v28766_v17  ;;  %v21998_v51 = vand.u32 4294901760, %v21997_v28  ;;  %v21417_v9 = vsub.f32 %v35859_v44, %v36930_v16  ;;  %v22021_v47 = vsub.f32 %v35875_v50, %v36935_v19  ;;  %v28128_v42 = vpack.c.bf16 %v21400_v36, %v21388_v31 }
0x13aa   : > { %28121 = vmatprep.subr.bf16.mxu0 %v35795_v58  ;;  %28169 = vmatprep.subr.bf16.mxu1 %v35803_v14  ;;  %v28176_v28 = vpack.c.bf16 %v21992_v23, %v21980_v57  ;;  %v21412_v16 = vand.u32 4294901760, %v21411_v29  ;;  %v28130_v20 = vpack.c.bf16 %v21406_v2, %v21394_v37  ;;  %v21430_v36 = vand.u32 4294901760, %v21429_v4 }
0x13ab   : > { %20684 = vmatmul.mubr.f32.vlgmr.msra.gmra.mrb[130].mxu0 %v34948_v21  ;;  %21276 = vmatmul.mubr.f32.vlgmr.msra.gmra.mrb[122].mxu1 %v34948_v21  ;;  %v28178_v19 = vpack.c.bf16 %v21998_v51, %v21986_v15  ;;  %v21418_v31 = vand.u32 4294901760, %v21417_v9  ;;  %v22010_v57 = vand.u32 4294901760, %v22009_v12  ;;  %v22022_v23 = vand.u32 4294901760, %v22021_v47 }
0x13ac   : > { %28123 = vmatpush1.bf16.msra.mxu0 %v35815_v26  ;;  %28171 = vmatpush1.bf16.msra.mxu1 %v35829_v25  ;;  %v28132_v29 = vpack.c.bf16 %v21424_v41, %v21412_v16  ;;  %v28136_v4 = vpack.c.bf16 %v35799_v48, %v35797_v11  ;;  %v28140_v12 = vpack.c.bf16 %v35841_v3, %v35839_v33  ;;  %v38186_v48 = vand.u32 4294901760, %v35833_v38 }
0x13ad   : > { %20689 = vmatprep.mubr.f32.mxu0 %v28766_v17  ;;  %21281 = vmatprep.mubr.f32.mxu1 %v28766_v17  ;;  %v28134_v51 = vpack.c.bf16 %v21430_v36, %v21418_v31  ;;  %v28182_v37 = vpack.c.bf16 %v22022_v23, %v22010_v57  ;;  %v28142_v16 = vpack.c.bf16 %v35861_v52, %v35859_v44  ;;  %v38191_v40 = vand.u32 4294901760, %v35859_v44 }
0x13ae   : > { %28125 = vmatprep.subr.bf16.mxu0 %v35837_v63  ;;  %28173 = vmatprep.subr.bf16.mxu1 %v35843_v43  ;;  %v28190_v41 = vpack.c.bf16 %v35875_v50, %v35873_v24  ;;  %v28154_v11 = vpack.c.bf16 %v21404_v8, %v21392_v34  ;;  %v28202_v59 = vpack.c.bf16 %v38186_v48, %v21984_v0  ;;  %v38192_v38 = vand.u32 4294901760, %v35861_v52 }
0x13af   : > { %20691 = vmatmul.mubr.f32.gmra.mrb[132].mxu0 %v35151_v22  ;;  %21283 = vmatmul.mubr.f32.gmra.mrb[124].mxu1 %v35151_v22  ;;  %v38194_v3 = vand.u32 4294901760, %v35875_v50 }
0x13b0   : > { %28127 = vmatpush1.bf16.msra.mxu0 %v35857_v32  ;;  %28175 = vmatpush1.bf16.msra.mxu1 %v35866_v39 }
0x13b1   : > { %21361 = vmatprep.mubr.f32.mxu0 %v28766_v17  ;;  %21953 = vmatprep.mubr.f32.mxu1 %v28766_v17 }
0x13b2   : > { %28129 = vmatprep.subr.bf16.mxu0 %v28128_v42  ;;  %28177 = vmatprep.subr.bf16.mxu1 %v28176_v28 }
0x13b3   : > { %21367 = vmatmul.mubr.f32.vlgmr.msra.gmra.mrb[134].mxu0 %v34973_v56  ;;  %21959 = vmatmul.mubr.f32.vlgmr.msra.gmra.mrb[126].mxu1 %v34973_v56  ;;  %v28138_v56 = vpack.c.bf16 %v35827_v5, %v35825_v7  ;;  %v38189_v7 = vand.u32 4294901760, %v35845_v6  ;;  %v38190_v5 = vand.u32 4294901760, %v35850_v61 }
0x13b4   : > { %28131 = vmatpush1.bf16.msra.mxu0 %v28130_v20  ;;  %28179 = vmatpush1.bf16.msra.mxu1 %v28178_v19  ;;  %v28152_v20 = vpack.c.bf16 %v21398_v1, %v21386_v10 }
0x13b5   : > { %21372 = vmatprep.mubr.f32.mxu0 %v28766_v17  ;;  %21964 = vmatprep.mubr.f32.mxu1 %v28766_v17  ;;  %v28204_v1 = vpack.c.bf16 %v38190_v5, %v38189_v7 }
0x13b6   : > { %28133 = vmatprep.subr.bf16.mxu0 %v28132_v29  ;;  %28181 = vmatprep.subr.bf16.mxu1 %v28180_v18 }
0x13b7   : > { %21378 = vmatmul.mubr.f32.gmra.mrb[136].mxu0 %v35161_v13  ;;  %21970 = vmatmul.mubr.f32.gmra.mrb[128].mxu1 %v35161_v13  ;;  %v28188_v13 = vpack.c.bf16 %v35850_v61, %v35845_v6 }
0x13b8   : > { %28135 = vmatpush1.bf16.msra.mxu0 %v28134_v51  ;;  %28183 = vmatpush1.bf16.msra.mxu1 %v28182_v37 }
0x13b9   : > { %21488 = vmatprep.mubr.f32.mxu0 %v28766_v17  ;;  %22080 = vmatprep.mubr.f32.mxu1 %v28766_v17 }
0x13ba   : > { %28137 = vmatprep.subr.bf16.mxu0 %v28136_v4  ;;  %28185 = vmatprep.subr.bf16.mxu1 %v28184_v55 }
0x13bb   : > { %21490 = vmatmul.mubr.f32.vlgmr.msra.gmra.mrb[134].mxu0 %v34948_v21  ;;  %22082 = vmatmul.mubr.f32.vlgmr.msra.gmra.mrb[126].mxu1 %v34948_v21 }
0x13bc   : > { %28139 = vmatpush1.bf16.msra.mxu0 %v28138_v56  ;;  %28187 = vmatpush1.bf16.msra.mxu1 %v28186_v45 }
0x13bd   : > { %21495 = vmatprep.mubr.f32.mxu0 %v28766_v17  ;;  %22087 = vmatprep.mubr.f32.mxu1 %v28766_v17 }
0x13be   : > { %28141 = vmatprep.subr.bf16.mxu0 %v28140_v12  ;;  %28189 = vmatprep.subr.bf16.mxu1 %v28188_v13 }
0x13bf   : > { %21497 = vmatmul.mubr.f32.gmra.mrb[136].mxu0 %v35151_v22  ;;  %22089 = vmatmul.mubr.f32.gmra.mrb[128].mxu1 %v35151_v22 }
0x13c0   : > { %28143 = vmatpush1.bf16.msra.mxu0 %v28142_v16  ;;  %28191 = vmatpush1.bf16.msra.mxu1 %v28190_v41 }
0x13c1   : > { %21583 = vmatprep.mubr.f32.mxu0 %v28766_v17  ;;  %22175 = vmatprep.mubr.f32.mxu1 %v28766_v17 }
0x13c2   : > { %28145 = vmatprep.subr.bf16.mxu0 %v35795_v58  ;;  %28193 = vmatprep.subr.bf16.mxu1 %v35803_v14 }
0x13c3   : > { %21586 = vmatmul.mubr.f32.vlgmr.msra.gmra.mrb[134].mxu0 %v34955_v35  ;;  %22178 = vmatmul.mubr.f32.vlgmr.msra.gmra.mrb[126].mxu1 %v34955_v35  ;;  %v28200_v35 = vpack.c.bf16 %v21990_v49, %v21978_v60  ;;  %v28158_v60 = vpack.c.bf16 %v38192_v38, %v38191_v40 }
0x13c4   : > { %28147 = vmatpush1.bf16.msra.mxu0 %v35815_v26  ;;  %28195 = vmatpush1.bf16.msra.mxu1 %v35829_v25 }
0x13c5   : > { %21591 = vmatprep.mubr.f32.mxu0 %v28766_v17  ;;  %22183 = vmatprep.mubr.f32.mxu1 %v28766_v17 }
0x13c6   : > { %28149 = vmatprep.subr.bf16.mxu0 %v35837_v63  ;;  %28197 = vmatprep.subr.bf16.mxu1 %v35843_v43 }
0x13c7   : > { %21594 = vmatmul.mubr.f32.gmra.mrb[136].mxu0 %v35154_v27  ;;  %22186 = vmatmul.mubr.f32.gmra.mrb[128].mxu1 %v35154_v27  ;;  %v38187_v27 = vand.u32 4294901760, %v35839_v33  ;;  %v38193_v33 = vand.u32 4294901760, %v35873_v24 }
0x13c8   : > { %28151 = vmatpush1.bf16.msra.mxu0 %v35857_v32  ;;  %28199 = vmatpush1.bf16.msra.mxu1 %v35866_v39 }
0x13c9   : > { %21672 = vmatprep.mubr.f32.mxu0 %v28766_v17  ;;  %22264 = vmatprep.mubr.f32.mxu1 %v28766_v17  ;;  %v28156_v10 = vpack.c.bf16 %v38188_v62, %v38187_v27  ;;  %v28206_v49 = vpack.c.bf16 %v38194_v3, %v38193_v33 }
0x13ca   : > { %28153 = vmatprep.subr.bf16.mxu0 %v28152_v20  ;;  %28201 = vmatprep.subr.bf16.mxu1 %v28200_v35 }
0x13cb   : > { %21676 = vmatmul.mubr.f32.vlgmr.msra.gmra.mrb[134].mxu0 %v34961_v53  ;;  %22268 = vmatmul.mubr.f32.vlgmr.msra.gmra.mrb[126].mxu1 %v34961_v53  ;;  %v17651_v53 = vlaneseq }
0x13cc   : > { %28155 = vmatpush1.bf16.msra.mxu0 %v28154_v11  ;;  %28203 = vmatpush1.bf16.msra.mxu1 %v28202_v59 }
0x13cd   : > { %21681 = vmatprep.mubr.f32.mxu0 %v28766_v17  ;;  %22273 = vmatprep.mubr.f32.mxu1 %v28766_v17 }
0x13ce   : > { %28157 = vmatprep.subr.bf16.mxu0 %v28156_v10  ;;  %28205 = vmatprep.subr.bf16.mxu1 %v28204_v1 }
0x13cf   : > { %21685 = vmatmul.mubr.f32.gmra.mrb[136].mxu0 %v35157_v46  ;;  %22277 = vmatmul.mubr.f32.gmra.mrb[128].mxu1 %v35157_v46  ;;  %v36069_v46 = vshrl.u32 %v17651_v53, 7 }
0x13d0   : > { %28159 = vmatpush1.bf16.msra.mxu0 %v28158_v60  ;;  %28207 = vmatpush1.bf16.msra.mxu1 %v28206_v49 }
0x13d1   : > { %21779 = vmatprep.mubr.f32.mxu0 %v28766_v17  ;;  %22371 = vmatprep.mubr.f32.mxu1 %v28766_v17 }
0x13d2   : > { %28161 = vmatprep.subr.bf16.mxu0 %v35795_v58  ;;  %28209 = vmatprep.subr.bf16.mxu1 %v35803_v14  ;;  %v22652_v58 = vld [vmem:[%s36228_s4 + $0x200] ss:$8 sm:$0xf] }
0x13d3   : > { %21781 = vmatmul.mubr.f32.vlgmr.msra.gmra.mrb[134].mxu0 %v34948_v21  ;;  %22373 = vmatmul.mubr.f32.vlgmr.msra.gmra.mrb[126].mxu1 %v34948_v21 }
0x13d4   : > { %28163 = vmatpush1.bf16.msra.mxu0 %v35815_v26  ;;  %28211 = vmatpush1.bf16.msra.mxu1 %v35829_v25  ;;  %v17661_v26 = vsub.s32 2, %v36069_v46  ;;  %v17657_v25 = vsub.s32 1, %v36069_v46 }
0x13d5   : > { %21786 = vmatprep.mubr.f32.mxu0 %v28766_v17  ;;  %22378 = vmatprep.mubr.f32.mxu1 %v28766_v17 }
0x13d6   : > { %28165 = vmatprep.subr.bf16.mxu0 %v35837_v63  ;;  %28213 = vmatprep.subr.bf16.mxu1 %v35843_v43 }
0x13d7   : > { %21788 = vmatmul.mubr.f32.gmra.mrb[136].mxu0 %v35151_v22  ;;  %22380 = vmatmul.mubr.f32.gmra.mrb[128].mxu1 %v35151_v22 }
0x13d8   : > { %28167 = vmatpush1.bf16.msra.mxu0 %v35857_v32  ;;  %28215 = vmatpush1.bf16.msra.mxu1 %v35866_v39 }
0x13d9   : > { %21866 = vmatprep.mubr.f32.mxu0 %v28766_v17  ;;  %22458 = vmatprep.mubr.f32.mxu1 %v28766_v17 }
0x13db   : > { %21868 = vmatmul.mubr.f32.vlgmr.msra.gmra.mrb[134].mxu0 %v34948_v21  ;;  %22460 = vmatmul.mubr.f32.vlgmr.msra.gmra.mrb[126].mxu1 %v34948_v21  ;;  %v22653_v21 = vld [vmem:[%s36228_s4 + $0x200] ss:$8 sm:$0xf0] }
0x13dc   : > { %21873 = vmatprep.mubr.f32.mxu0 %v28766_v17  ;;  %22465 = vmatprep.mubr.f32.mxu1 %v28766_v17  ;;  %v36077_v14 = vor.u32 %v22653_v21, %v22652_v58  ;;  %v17653_v17 = vsub.s32 0, %v36069_v46 }
0x13de   : > { %v17654_v63 = vrot.slane %v36077_v14, %v17653_v17  ;;  %v17662_v43 = vrot.slane %v36077_v14, %v17661_v26  ;;  %v17658_v6 = vrot.slane %v36077_v14, %v17657_v25 }
0x13df   : > { %21875 = vmatmul.mubr.f32.gmra.mrb[136].mxu0 %v35151_v22  ;;  %22467 = vmatmul.mubr.f32.gmra.mrb[128].mxu1 %v35151_v22  ;;  %v17665_v22 = vsub.s32 3, %v36069_v46 }
0x13e1   : > { %v17666_v61 = vrot.slane %v36077_v14, %v17665_v22 }
0x141e   : > { %v18317_v32 = vpop.f32.mrb[122].mxu0  ;;  %v18909_v44 = vpop.f32.mrb[114].mxu1 }
0x141f   : > { %v28236_v52 = vadd.f32 %v18317_v32, %v17654_v63  ;;  %v28240_v34 = vadd.f32 %v18909_v44, %v17662_v43  ;;  %v18319_v39 = vpop.f32.mrb[123].mxu0  ;;  %v18911_v8 = vpop.f32.mrb[115].mxu1 }
0x1420   : > { %v28237_v0 = vadd.f32 %v18319_v39, %v17658_v6  ;;  %v28241_v24 = vadd.f32 %v18911_v8, %v17666_v61 }
0x1421   : > { %22473 = vst [vmem:[%s36100_s26] sm:$0xff] %v28236_v52  ;;  %22475 = vst [vmem:[%s36100_s26 + $0x10] sm:$0xff] %v28240_v34 }
0x1422   : > { %22474 = vst [vmem:[%s36100_s26 + $0x8] sm:$0xff] %v28237_v0  ;;  %22476 = vst [vmem:[%s36100_s26 + $0x18] sm:$0xff] %v28241_v24  ;;  %v18324_v50 = vpop.f32.mrb[124].mxu0  ;;  %v18916_v19 = vpop.f32.mrb[116].mxu1 }
0x1423   : > { %v28238_v30 = vadd.f32 %v18324_v50, %v17654_v63  ;;  %v28242_v54 = vadd.f32 %v18916_v19, %v17662_v43  ;;  %v18326_v2 = vpop.f32.mrb[125].mxu0  ;;  %v18918_v15 = vpop.f32.mrb[117].mxu1 }
0x1424   : > { %v28239_v9 = vadd.f32 %v18326_v2, %v17658_v6  ;;  %v28243_v47 = vadd.f32 %v18918_v15, %v17666_v61 }
0x1425   : > { %22489 = vst [vmem:[%s36100_s26 + $0x80] sm:$0xff] %v28238_v30  ;;  %22491 = vst [vmem:[%s36100_s26 + $0x90] sm:$0xff] %v28242_v54 }
0x1426   : > { %22490 = vst [vmem:[%s36100_s26 + $0x88] sm:$0xff] %v28239_v9  ;;  %22492 = vst [vmem:[%s36100_s26 + $0x98] sm:$0xff] %v28243_v47 }
0x1427   : > { %28712 = shalt.err (!%p28709_p3)
}
0x1428   : > { %s28713_s25 = scalar_lea.hbm %s36117_s9, 512  ;;  %s28717_s17 = scalar_lea.hbm %s36229_s5, 1024 }
0x1429   : > { %p28714_p4 = scmp.ne.s32.totalorder %s36117_s9, %s28713_s25  ;;  %p28718_p9 = scmp.lt.u32.totalorder %s36117_s9, %s36229_s5 }
0x142a   : > { %p28719_p10 = scmp.lt.u32.totalorder %s28717_s17, %s28713_s25  ;;  %p28721_p12 = scmp.lt.u32.totalorder %s28713_s25, %s36117_s9 }
0x142b   : > { %p28715_p7 = pnand %p28714_p4, %p28843_p5 }
0x142c   : > { %p28720_p11 = por %p28719_p10, %p28718_p9 }
0x142d   : > { %p28716_p8 = pneg %p28715_p7 }
0x142e   : > { %p28722_p13 = por %p28721_p12, %p28720_p11 }
0x1430   : > { %p28723_p0 = pnand %p28722_p13, %p28716_p8 }
0x1432   : > { %28726 = shalt.err (!%p28723_p0)
}
0x1433   : > { %s28768_s29 = smov 128   ;;  %s28769_s10 = smov 8   ;;  %v17669_v42 = vsub.s32 4, %v36069_v46  ;;  %v17677_v28 = vsub.s32 6, %v36069_v46  ;;  %v17673_v31 = vsub.s32 5, %v36069_v46  ;;  %v17681_v36 = vsub.s32 7, %v36069_v46 }
0x1434   : > { %28637 = dma.vmem_to_hbm [thread:$0]  (%p28843_p5), %s36111_s11, 512, %s36117_s9, %s36121_s12, %s28768_s29, %s28768_s29, %s28769_s10  }
0x1435   : > { %v17670_v57 = vrot.slane %v36077_v14, %v17669_v42  ;;  %v17678_v23 = vrot.slane %v36077_v14, %v17677_v28  ;;  %v17674_v29 = vrot.slane %v36077_v14, %v17673_v31  ;;  %v17682_v18 = vrot.slane %v36077_v14, %v17681_v36  ;;  %v22654_v62 = vld [vmem:[%s36228_s4 + $0x240] ss:$8 sm:$0xf] }
0x1436   : > { %v22655_v10 = vld [vmem:[%s36228_s4 + $0x240] ss:$8 sm:$0xf0] }
0x1437   : > { %v17648_v7 = vor.u32 %v22655_v10, %v22654_v62 }
0x1439   : > { %v17686_v5 = vrot.slane %v17648_v7, %v17653_v17  ;;  %v17694_v1 = vrot.slane %v17648_v7, %v17661_v26  ;;  %v17690_v40 = vrot.slane %v17648_v7, %v17657_v25  ;;  %v17698_v38 = vrot.slane %v17648_v7, %v17665_v22 }
0x143a   : > { %v17702_v32 = vrot.slane %v17648_v7, %v17669_v42  ;;  %v17710_v44 = vrot.slane %v17648_v7, %v17677_v28  ;;  %v17706_v52 = vrot.slane %v17648_v7, %v17673_v31  ;;  %v17714_v34 = vrot.slane %v17648_v7, %v17681_v36 }
0x144e   : > { %v19501_v51 = vpop.f32.mrb[126].mxu0  ;;  %v20093_v37 = vpop.f32.mrb[118].mxu1 }
0x144f   : > { %v28244_v4 = vadd.f32 %v19501_v51, %v17670_v57  ;;  %v28248_v55 = vadd.f32 %v20093_v37, %v17678_v23  ;;  %v19503_v56 = vpop.f32.mrb[127].mxu0  ;;  %v20095_v45 = vpop.f32.mrb[119].mxu1 }
0x1450   : > { %v28245_v12 = vadd.f32 %v19503_v56, %v17674_v29  ;;  %v28249_v13 = vadd.f32 %v20095_v45, %v17682_v18 }
0x1451   : > { %22477 = vst [vmem:[%s36100_s26 + $0x20] sm:$0xff] %v28244_v4  ;;  %22479 = vst [vmem:[%s36100_s26 + $0x30] sm:$0xff] %v28248_v55 }
0x1452   : > { %22478 = vst [vmem:[%s36100_s26 + $0x28] sm:$0xff] %v28245_v12  ;;  %22480 = vst [vmem:[%s36100_s26 + $0x38] sm:$0xff] %v28249_v13  ;;  %v19508_v16 = vpop.f32.mrb[128].mxu0  ;;  %v20100_v41 = vpop.f32.mrb[120].mxu1 }
0x1453   : > { %v28246_v20 = vadd.f32 %v19508_v16, %v17670_v57  ;;  %v28250_v35 = vadd.f32 %v20100_v41, %v17678_v23  ;;  %v19510_v11 = vpop.f32.mrb[129].mxu0  ;;  %v20102_v48 = vpop.f32.mrb[121].mxu1 }
0x1454   : > { %v28247_v59 = vadd.f32 %v19510_v11, %v17674_v29  ;;  %v28251_v27 = vadd.f32 %v20102_v48, %v17682_v18 }
0x1455   : > { %22493 = vst [vmem:[%s36100_s26 + $0xa0] sm:$0xff] %v28246_v20  ;;  %22495 = vst [vmem:[%s36100_s26 + $0xb0] sm:$0xff] %v28250_v35 }
0x1456   : > { %22494 = vst [vmem:[%s36100_s26 + $0xa8] sm:$0xff] %v28247_v59  ;;  %22496 = vst [vmem:[%s36100_s26 + $0xb8] sm:$0xff] %v28251_v27 }
0x147e   : > { %v20685_v60 = vpop.f32.mrb[130].mxu0  ;;  %v21277_v33 = vpop.f32.mrb[122].mxu1 }
0x147f   : > { %v28252_v3 = vadd.f32 %v20685_v60, %v17686_v5  ;;  %v28256_v49 = vadd.f32 %v21277_v33, %v17694_v1  ;;  %v20687_v53 = vpop.f32.mrb[131].mxu0  ;;  %v21279_v58 = vpop.f32.mrb[123].mxu1 }
0x1480   : > { %v28253_v21 = vadd.f32 %v20687_v53, %v17690_v40  ;;  %v28257_v14 = vadd.f32 %v21279_v58, %v17698_v38 }
0x1481   : > { %22481 = vst [vmem:[%s36100_s26 + $0x40] sm:$0xff] %v28252_v3  ;;  %22483 = vst [vmem:[%s36100_s26 + $0x50] sm:$0xff] %v28256_v49 }
0x1482   : > { %22482 = vst [vmem:[%s36100_s26 + $0x48] sm:$0xff] %v28253_v21  ;;  %22484 = vst [vmem:[%s36100_s26 + $0x58] sm:$0xff] %v28257_v14  ;;  %v20692_v17 = vpop.f32.mrb[132].mxu0  ;;  %v21284_v26 = vpop.f32.mrb[124].mxu1 }
0x1483   : > { %v28254_v25 = vadd.f32 %v20692_v17, %v17686_v5  ;;  %v28258_v22 = vadd.f32 %v21284_v26, %v17694_v1  ;;  %v20694_v63 = vpop.f32.mrb[133].mxu0  ;;  %v21286_v43 = vpop.f32.mrb[125].mxu1 }
0x1484   : > { %v28255_v6 = vadd.f32 %v20694_v63, %v17690_v40  ;;  %v28259_v61 = vadd.f32 %v21286_v43, %v17698_v38 }
0x1485   : > { %22497 = vst [vmem:[%s36100_s26 + $0xc0] sm:$0xff] %v28254_v25  ;;  %22499 = vst [vmem:[%s36100_s26 + $0xd0] sm:$0xff] %v28258_v22 }
0x1486   : > { %22498 = vst [vmem:[%s36100_s26 + $0xc8] sm:$0xff] %v28255_v6  ;;  %22500 = vst [vmem:[%s36100_s26 + $0xd8] sm:$0xff] %v28259_v61 }
0x14ae   : > { %v21869_v39 = vpop.f32.mrb[134].mxu0  ;;  %v22461_v8 = vpop.f32.mrb[126].mxu1 }
0x14af   : > { %v28260_v0 = vadd.f32 %v21869_v39, %v17702_v32  ;;  %v28264_v24 = vadd.f32 %v22461_v8, %v17710_v44  ;;  %v21871_v50 = vpop.f32.mrb[135].mxu0  ;;  %v22463_v19 = vpop.f32.mrb[127].mxu1 }
0x14b0   : > { %v28261_v30 = vadd.f32 %v21871_v50, %v17706_v52  ;;  %v28265_v54 = vadd.f32 %v22463_v19, %v17714_v34 }
0x14b1   : > { %22485 = vst [vmem:[%s36100_s26 + $0x60] sm:$0xff] %v28260_v0  ;;  %22487 = vst [vmem:[%s36100_s26 + $0x70] sm:$0xff] %v28264_v24 }
0x14b2   : > { %22486 = vst [vmem:[%s36100_s26 + $0x68] sm:$0xff] %v28261_v30  ;;  %22488 = vst [vmem:[%s36100_s26 + $0x78] sm:$0xff] %v28265_v54  ;;  %v21876_v2 = vpop.f32.mrb[136].mxu0  ;;  %v22468_v15 = vpop.f32.mrb[128].mxu1 }
0x14b3   : > { %v28262_v46 = vadd.f32 %v21876_v2, %v17702_v32  ;;  %v28266_v9 = vadd.f32 %v22468_v15, %v17710_v44  ;;  %v21878_v47 = vpop.f32.mrb[137].mxu0  ;;  %v22470_v42 = vpop.f32.mrb[129].mxu1 }
0x14b4   : > { %v28263_v28 = vadd.f32 %v21878_v47, %v17706_v52  ;;  %v28267_v31 = vadd.f32 %v22470_v42, %v17714_v34 }
0x14b5   : > { %22501 = vst [vmem:[%s36100_s26 + $0xe0] sm:$0xff] %v28262_v46  ;;  %22503 = vst [vmem:[%s36100_s26 + $0xf0] sm:$0xff] %v28266_v9 }
0x14b6   : > { %22502 = vst [vmem:[%s36100_s26 + $0xe8] sm:$0xff] %v28263_v28  ;;  %22504 = vst [vmem:[%s36100_s26 + $0xf8] sm:$0xff] %v28267_v31 }
0x14b7 PF: > { %p28643_p5 = scmp.ge.s32.totalorder %s28761_s24, 2  ;;  %s22545_s13 = sand.u32 1, %s28749_s21  }
0x14b8   : > { %s22546_s19 = scalar_lea.sflag [#allocation3], %s22545_s13 }
0x14b9   : > { %p28640_p1 = pnand %p28643_p5, %p28847_p6 }
0x14bb   : > { %28744 = dma.done.wait (!%p28640_p1), %s22546_s19, 512  }
0x14bc   : > { %28746 = vsyncadd (!%p28640_p1), %s22546_s19, 4294966784  ;;  %p17_p2 = scmp.ge.s32.totalorder %s28830_s27, 4   ;;  %s38195_s21 = smov %s28753_s22 }
0x14bd   : > { %s38196_s22 = smov %s28757_s23  ;;  %s38197_s23 = smov %s28841_s30 }
0x14be   : > { %s38198_s24 = smov %s28830_s27  ;;  %19 = sbr.rel (!%p17_p2) target bundleno = 3 (0x3), region = 93 }
0x14c5   :  { %22560 = vsyncpa [#allocation3], 1 }
0x14c6   :  { %22562 = vsyncpa [#allocation3 + $0x1], 1 }

</bundles_post_ra>
